<compile_context>
chip_gen: v7x
topology: tpu7x:2x2x1
jax: 0.10.0
libtpu: 0.0.40
codegen_flags: <defaults>
</compile_context>

<pallas_src>
import functools

import jax
import jax.numpy as jnp
from jax import lax
from jax.experimental import pallas as pl
from jax.experimental.pallas import tpu as pltpu

LEAKY_SLOPE = 0.01   # PyTorch nn.LeakyReLU default
BN_EPS = 1e-5


# ---------------------------------------------------------------------------
# VMEM budgeting / tile selection
# ---------------------------------------------------------------------------
def _vmem_block_bytes(shape, dtype):
    """Lane/sublane-padded VMEM footprint of one block (last two dims are tiled)."""
    itemsize = jnp.dtype(dtype).itemsize
    shape = tuple(int(s) for s in shape)
    if len(shape) < 2:
        shape = (1,) * (2 - len(shape)) + shape
    *lead, sub, lane = shape
    sub_tile = 8 * (4 // itemsize)          # f32: 8, bf16: 16, int8: 32
    sub_p = -(-sub // sub_tile) * sub_tile
    lane_p = -(-lane // 128) * 128
    n_lead = 1
    for d in lead:
        n_lead *= d
    return n_lead * sub_p * lane_p * itemsize


def _working_set_bytes(H, W, Cin, Cout, stride, th):
    """Per-grid-step VMEM estimate: pipeline blocks (2x buffered) + kernel temps."""
    Wu = W * stride
    bf16, f32 = jnp.bfloat16, jnp.float32
    # --- pass 1 ---
    p1 = 0
    p1 += 2 * _vmem_block_bytes((H + 2, W + 2, Cin), bf16)     # resident padded image
    p1 += 2 * _vmem_block_bytes((3, 3 * Cin, Cout), bf16)      # weights
    p1 += 2 * _vmem_block_bytes((Cout, th * Wu), bf16)         # conv-out tile
    p1 += 2 * _vmem_block_bytes((2, Cout), f32)                # stats tile
    p1 += _vmem_block_bytes((th + 2, W + 2, Cin), bf16)        # row-upsampled slab
    p1 += _vmem_block_bytes((th + 2, Wu + 2, Cin), bf16)       # row+col-upsampled slab
    p1 += 2 * _vmem_block_bytes((th * Wu, 3 * Cin), bf16)      # im2col patch (+slices)
    p1 += 2 * _vmem_block_bytes((th * Wu, Cout), f32)          # f32 accumulator
    p1 += _vmem_block_bytes((Cout, th * Wu), bf16)             # transposed/cast result
    # --- pass 2 ---
    p2 = 0
    p2 += 2 * _vmem_block_bytes((Cout, th * Wu), bf16)         # conv-out tile (in)
    p2 += 2 * _vmem_block_bytes((Cout, th * Wu), f32)          # final tile (out)
    p2 += 2 * _vmem_block_bytes((Cout, th * Wu), f32)          # in-kernel f32 temps
    return max(p1, p2)


def _choose_tiling(H, W, Cin, Cout, stride):
    """Generation-aware output-row tile size + vmem limit."""
    Hu, Wu = H * stride, W * stride
    try:
        cap = int(pltpu.get_tpu_info().vmem_capacity_bytes)
    except Exception:                        # no HW info -> assume the smallest (v7x)
        cap = 64 * 1024 * 1024
    # ~96 MiB on 128-MiB-VMEM parts (v5e/v6e), ~48 MiB on v7x (64 MiB per TC).
    vmem_limit = max(32 * 1024 * 1024, min(cap * 3 // 4, 96 * 1024 * 1024))
    budget = int(vmem_limit * 0.6)           # headroom for Mosaic internal scratch

    # Legal row tiles: multiple of stride, divide Hu, and keep the lane dim of the
    # (Cout, TH*Wu) blocks a multiple of 128 (or cover the full spatial plane).
    cands = [th for th in range(stride, Hu + 1, stride)
             if Hu % th == 0 and (th == Hu or (th * Wu) % 128 == 0)]
    best = None
    for th in sorted(cands):
        if _working_set_bytes(H, W, Cin, Cout, stride, th) <= budget:
            best = th                        # keep the biggest tile that fits
    if best is None:
        # TODO(synk): for images whose resident padded input alone exceeds VMEM,
        # switch to a manual row-slab DMA path (memory_space=pl.ANY +
        # pltpu.make_async_copy of a (THs+2)-row halo slab per tile).
        best = min(cands)
    return best, vmem_limit


# ---------------------------------------------------------------------------
# Kernels
# ---------------------------------------------------------------------------
def _upsample_nn(v, stride, axis):
    """Nearest-neighbour repeat along `axis` using only broadcast + reshape."""
    if stride == 1:
        return v
    v = jnp.expand_dims(v, axis + 1)
    bshape = v.shape[:axis + 1] + (stride,) + v.shape[axis + 2:]
    v = jnp.broadcast_to(v, bshape)
    nshape = bshape[:axis] + (bshape[axis] * stride,) + bshape[axis + 2:]
    return v.reshape(nshape)


def _conv_stats_kernel(x_ref, w_ref, y_ref, s_ref, *, stride, tile_h, cin, cout, width):
    """Upsample + 3x3 same-conv (3 accumulated MXU matmuls) + partial BN stats.

    x_ref : (1, H+2, W+2, Cin)   zero-padded pre-upsample image (bf16, resident)
    w_ref : (3, 3*Cin, Cout)     conv weight, kh-major, (kw, cin) contraction (bf16)
    y_ref : (1, Cout, TH*Wu)     conv output tile, channel-major, lane-dense (bf16)
    s_ref : (1, 1, 2, Cout)      per-tile [sum, centered sum-of-squares] (f32)
    """
    i = pl.program_id(1)
    W = width
    Wu = W * stride
    TH = tile_h
    THs = TH // stride

    # (THs+2)-row slab of the padded original image needed by this output tile
    # (THs interior rows + a 1-row halo on each side; halos may be the pad rows).
    xr = x_ref[0, pl.ds(i * THs, THs + 2), :, :]              # (THs+2, W+2, Cin)

    if stride == 1:
        xuc = xr                                              # already has the halo
    else:
        # Nearest-neighbour row upsample of the interior; halo rows pass through.
        xu = jnp.concatenate(
            [xr[0:1], _upsample_nn(xr[1:THs + 1], stride, 0), xr[THs + 1:THs + 2]],
            axis=0)                                           # (TH+2, W+2, Cin)
        # Nearest-neighbour column upsample; zero-pad columns pass through.
        xuc = jnp.concatenate(
            [xu[:, 0:1, :], _upsample_nn(xu[:, 1:W + 1, :], stride, 1),
             xu[:, W + 1:W + 2, :]],
            axis=1)                                           # (TH+2, Wu+2, Cin)

    # 3x3 conv as 3 accumulated matmuls (one per kernel row, K = 3*Cin each):
    # 3x smaller live im2col patch than a single 9-tap concat, f32 accumulation.
    acc = jnp.zeros((TH * Wu, cout), jnp.float32)
    for kh in range(3):
        patch = jnp.concatenate(
            [xuc[kh:kh + TH, kw:kw + Wu, :] for kw in range(3)], axis=-1
        ).reshape(TH * Wu, 3 * cin)
        acc = acc + jnp.dot(patch, w_ref[kh], preferred_element_type=jnp.float32)

    # Per-tile BN partial statistics from the f32 accumulator, centered per tile so
    # the wrapper-side pooled-variance combine avoids E[x^2]-mean^2 cancellation.
    s = jnp.sum(acc, axis=0, keepdims=True)                   # (1, Cout)
    d = acc - s * (1.0 / (TH * Wu))
    css = jnp.sum(d * d, axis=0, keepdims=True)               # (1, Cout)
    s_ref[0, 0] = jnp.concatenate([s, css], axis=0)           # (2, Cout)

    # Channel-major bf16 writeback: lane dim = flattened spatial (lane-dense),
    # no Cout padding -> ~32x less intermediate HBM traffic for small Cout.
    y_ref[0] = jnp.transpose(acc).astype(y_ref.dtype)         # (Cout, TH*Wu)


def _bn_act_kernel(y_ref, scale_ref, shift_ref, o_ref):
    """Folded BN affine + LeakyReLU on channel-major, lane-dense tiles (NCHW out)."""
    y = y_ref[0].astype(jnp.float32)                          # (Cout, TH*Wu)
    out = y * scale_ref[...] + shift_ref[...]                 # (Cout, 1) broadcasts
    o_ref[0] = jnp.where(out > 0, out, LEAKY_SLOPE * out).astype(o_ref.dtype)


# ---------------------------------------------------------------------------
# Wrapper
# ---------------------------------------------------------------------------
@functools.partial(jax.jit, static_argnames=("stride",))
def conv_up_bn_relu(x_nchw, weight, bias, gamma, beta, *, stride=1):
    """Forward pass of ConvUpBNReLU (PyTorch NCHW in / NCHW out).

    x_nchw : (N, Cin, H, W) f32, weight: (Cout, Cin, 3, 3), bias/gamma/beta: (Cout,)
    returns (N, Cout, H*stride, W*stride).
    """
    # Conv bias followed by training-mode BatchNorm is a mathematical no-op
    # (the batch-mean subtraction cancels it), so it is dropped from the kernel.
    # TODO(synk): reinstate the bias if eval-mode / running statistics are needed.
    del bias

    N, Cin, H, W = x_nchw.shape
    Cout = weight.shape[0]
    assert weight.shape == (Cout, Cin, 3, 3), weight.shape
    Hu, Wu = H * stride, W * stride

    TH, vmem_limit = _choose_tiling(H, W, Cin, Cout, stride)
    assert TH % stride == 0 and Hu % TH == 0, (TH, stride, Hu)   # halo alignment
    n_tiles = Hu // TH
    compute_dtype = jnp.bfloat16            # MXU-native operands, f32 accumulation

    # NCHW -> NHWC; zero-pad the *small* pre-upsample image by 1 on each side.
    # TODO(synk): for tiny Cin (<32), fold (W+2)*Cin into the lane dim and express
    # the column taps as pltpu.roll; NHWC staging runs the VPU at low lane density.
    x = jnp.transpose(x_nchw, (0, 2, 3, 1))
    xp = jnp.pad(x, ((0, 0), (1, 1), (1, 1), (0, 0))).astype(compute_dtype)

    # (Cout, Cin, 3, 3) -> (kh, kw, cin, cout) -> (3, 3*Cin, Cout), kh-major.
    w = jnp.transpose(weight, (2, 3, 1, 0)).reshape(3, 3 * Cin, Cout)
    w = w.astype(compute_dtype)

    kernel1 = functools.partial(_conv_stats_kernel, stride=stride, tile_h=TH,
                                cin=Cin, cout=Cout, width=W)

    cparams = pltpu.CompilerParams(
        dimension_semantics=("parallel", "parallel"),   # batch + row tiles -> megacore
        vmem_limit_bytes=vmem_limit)

    conv_flops = 2 * N * Hu * Wu * (9 * Cin) * Cout
    pass1_bytes = (xp.size * 2 + w.size * 2
                   + N * Cout * Hu * Wu * 2 + N * n_tiles * 2 * Cout * 4)

    y_conv, stats = pl.pallas_call(
        kernel1,
        grid=(N, n_tiles),
        in_specs=[
            pl.BlockSpec((1, H + 2, W + 2, Cin), lambda n, i: (n, 0, 0, 0)),
            pl.BlockSpec((3, 3 * Cin, Cout), lambda n, i: (0, 0, 0)),
        ],
        out_specs=[
            pl.BlockSpec((1, Cout, TH * Wu), lambda n, i: (n, 0, i)),
            pl.BlockSpec((1, 1, 2, Cout), lambda n, i: (n, i, 0, 0)),
        ],
        out_shape=[
            jax.ShapeDtypeStruct((N, Cout, Hu * Wu), compute_dtype),
            jax.ShapeDtypeStruct((N, n_tiles, 2, Cout), jnp.float32),
        ],
        compiler_params=cparams,
        cost_estimate=pl.CostEstimate(flops=conv_flops, transcendentals=0,
                                      bytes_accessed=pass1_bytes),
    )(xp, w)

    # Finalize BatchNorm: pooled (biased) variance over N*Hu*Wu from the per-tile
    # centered partial sums, folded into one per-channel scale/shift (f32, tiny).
    cnt_tile = float(TH * Wu)
    total = float(N * n_tiles) * cnt_tile
    sums = stats[:, :, 0, :]
    css = stats[:, :, 1, :]
    mean = jnp.sum(sums, axis=(0, 1)) / total
    tile_mean = sums / cnt_tile
    dev = tile_mean - mean[None, None, :]
    var = (jnp.sum(css, axis=(0, 1)) + cnt_tile * jnp.sum(dev * dev, axis=(0, 1))) / total
    var = jnp.maximum(var, 0.0)
    scale = gamma.astype(jnp.float32) * lax.rsqrt(var + BN_EPS)
    shift = beta.astype(jnp.float32) - mean * scale

    pass2_bytes = N * Cout * Hu * Wu * (2 + 4) + 2 * Cout * 4
    out3 = pl.pallas_call(
        _bn_act_kernel,
        grid=(N, n_tiles),
        in_specs=[
            pl.BlockSpec((1, Cout, TH * Wu), lambda n, i: (n, 0, i)),
            pl.BlockSpec((Cout, 1), lambda n, i: (0, 0)),
            pl.BlockSpec((Cout, 1), lambda n, i: (0, 0)),
        ],
        out_specs=pl.BlockSpec((1, Cout, TH * Wu), lambda n, i: (n, 0, i)),
        out_shape=jax.ShapeDtypeStruct((N, Cout, Hu * Wu), x_nchw.dtype),
        compiler_params=cparams,
        cost_estimate=pl.CostEstimate(flops=4 * N * Cout * Hu * Wu, transcendentals=0,
                                      bytes_accessed=pass2_bytes),
    )(y_conv, scale.reshape(Cout, 1), shift.reshape(Cout, 1))

    # Pass 2 already produced NCHW; splitting the trailing dim is a free reshape.
    return out3.reshape(N, Cout, Hu, Wu)


# ---------------------------------------------------------------------------
# Pure-JAX reference + self-test
# ---------------------------------------------------------------------------
def _reference(x_nchw, weight, bias, gamma, beta, *, stride=1):
    """f32 reference (same math as the PyTorch module, training-mode BN)."""
    x = x_nchw
    if stride != 1:
        x = jnp.repeat(jnp.repeat(x, stride, axis=2), stride, axis=3)
    y = lax.conv_general_dilated(
        x, weight, window_strides=(1, 1), padding=((1, 1), (1, 1)),
        dimension_numbers=("NCHW", "OIHW", "NCHW"),
        precision=lax.Precision.HIGHEST) + bias[None, :, None, None]
    mean = jnp.mean(y, axis=(0, 2, 3), keepdims=True)
    var = jnp.mean((y - mean) ** 2, axis=(0, 2, 3), keepdims=True)
    y = (y - mean) * lax.rsqrt(var + BN_EPS)
    y = y * gamma[None, :, None, None] + beta[None, :, None, None]
    return jnp.where(y > 0, y, LEAKY_SLOPE * y)


if __name__ == "__main__":
    key = jax.random.PRNGKey(0)
    k_x, k_w, k_b, k_g, k_be = jax.random.split(key, 5)

    N, Cin, Cout, H, W, stride = 2, 4, 8, 16, 16, 2

    x = jax.random.normal(k_x, (N, Cin, H, W), dtype=jnp.float32)
    weight = 0.1 * jax.random.normal(k_w, (Cout, Cin, 3, 3), dtype=jnp.float32)
    bias = 0.05 * jax.random.normal(k_b, (Cout,), dtype=jnp.float32)
    gamma = 1.0 + 0.1 * jax.random.normal(k_g, (Cout,), dtype=jnp.float32)
    beta = 0.1 * jax.random.normal(k_be, (Cout,), dtype=jnp.float32)

    out = jax.block_until_ready(
        conv_up_bn_relu(x, weight, bias, gamma, beta, stride=stride))
    assert out.shape == (N, Cout, H * stride, W * stride), out.shape
    assert bool(jnp.all(jnp.isfinite(out)))

    ref = jax.block_until_ready(_reference(x, weight, bias, gamma, beta, stride=stride))
    # bf16 MXU operands + bf16 conv intermediate -> relaxed tolerance vs f32 reference.
    err = float(jnp.max(jnp.abs(out - ref)))
    assert jnp.allclose(out, ref, atol=3e-2, rtol=3e-2), err

    print("KERNEL_OK")
</pallas_src>

<mosaic_0001>
module attributes {stable_mosaic.version = 11 : i64} {
  func.func @_conv_stats_kernel(%arg0: i32, %arg1: i32, %arg2: memref<1x18x18x4xbf16, #tpu.memory_space<vmem>>, %arg3: memref<3x12x8xbf16, #tpu.memory_space<vmem>>, %arg4: memref<1x8x1024xbf16, #tpu.memory_space<vmem>>, %arg5: memref<1x1x2x8xf32, #tpu.memory_space<vmem>>) attributes {dimension_semantics = [#tpu.dimension_semantics<parallel>, #tpu.dimension_semantics<parallel>], iteration_bounds = array<i64: 2, 1>, scalar_prefetch = 0 : i64, scratch_operands = 0 : i64, tpu.core_type = #tpu.core_type<tc>, window_params = [{transform_indices = @transform_0, window_bounds = array<i64: 1, 18, 18, 4>}, {pipeline_mode = #tpu.pipeline_mode<synchronous>, transform_indices = @transform_1, window_bounds = array<i64: 3, 12, 8>}, {transform_indices = @transform_2, window_bounds = array<i64: 1, 8, 1024>}, {transform_indices = @transform_3, window_bounds = array<i64: 1, 1, 2, 8>}]} {
    %c16_i32 = arith.constant 16 : i32
    %0 = arith.muli %arg1, %c16_i32 : i32
    %c0 = arith.constant 0 : index
    %1 = arith.index_cast %0 : i32 to index
    %c0_0 = arith.constant 0 : index
    %c0_1 = arith.constant 0 : index
    %2 = vector.load %arg2[%c0, %1, %c0_0, %c0_1] : memref<1x18x18x4xbf16, #tpu.memory_space<vmem>>, vector<1x18x18x4xbf16>
    %3 = vector.shape_cast %2 : vector<1x18x18x4xbf16> to vector<18x18x4xbf16>
    %4 = vector.extract_strided_slice %3 {offsets = [0, 0, 0], sizes = [1, 18, 4], strides = [1, 1, 1]} : vector<18x18x4xbf16> to vector<1x18x4xbf16>
    %5 = vector.extract_strided_slice %3 {offsets = [1, 0, 0], sizes = [16, 18, 4], strides = [1, 1, 1]} : vector<18x18x4xbf16> to vector<16x18x4xbf16>
    %6 = vector.shape_cast %5 : vector<16x18x4xbf16> to vector<16x1x18x4xbf16>
    %7 = vector.shape_cast %6 : vector<16x1x18x4xbf16> to vector<16x1x18x4xbf16>
    %8 = vector.broadcast %7 : vector<16x1x18x4xbf16> to vector<16x2x18x4xbf16>
    %9 = vector.shape_cast %8 : vector<16x2x18x4xbf16> to vector<32x18x4xbf16>
    %10 = vector.extract_strided_slice %3 {offsets = [17, 0, 0], sizes = [1, 18, 4], strides = [1, 1, 1]} : vector<18x18x4xbf16> to vector<1x18x4xbf16>
    %11 = tpu.concatenate %4, %9, %10 in 0 : vector<1x18x4xbf16>, vector<32x18x4xbf16>, vector<1x18x4xbf16> -> vector<34x18x4xbf16>
    %12 = vector.extract_strided_slice %11 {offsets = [0, 0, 0], sizes = [34, 1, 4], strides = [1, 1, 1]} : vector<34x18x4xbf16> to vector<34x1x4xbf16>
    %13 = vector.extract_strided_slice %11 {offsets = [0, 1, 0], sizes = [34, 16, 4], strides = [1, 1, 1]} : vector<34x18x4xbf16> to vector<34x16x4xbf16>
    %14 = vector.shape_cast %13 : vector<34x16x4xbf16> to vector<34x16x1x4xbf16>
    %15 = vector.shape_cast %14 : vector<34x16x1x4xbf16> to vector<34x16x1x4xbf16>
    %16 = vector.broadcast %15 : vector<34x16x1x4xbf16> to vector<34x16x2x4xbf16>
    %17 = vector.shape_cast %16 : vector<34x16x2x4xbf16> to vector<34x32x4xbf16>
    %18 = vector.extract_strided_slice %11 {offsets = [0, 17, 0], sizes = [34, 1, 4], strides = [1, 1, 1]} : vector<34x18x4xbf16> to vector<34x1x4xbf16>
    %19 = tpu.concatenate %12, %17, %18 in 1 : vector<34x1x4xbf16>, vector<34x32x4xbf16>, vector<34x1x4xbf16> -> vector<34x34x4xbf16>
    %cst = arith.constant 0.000000e+00 : f32
    %20 = vector.broadcast %cst : f32 to vector<1024x8xf32>
    %21 = vector.extract_strided_slice %19 {offsets = [0, 0, 0], sizes = [32, 32, 4], strides = [1, 1, 1]} : vector<34x34x4xbf16> to vector<32x32x4xbf16>
    %22 = vector.extract_strided_slice %19 {offsets = [0, 1, 0], sizes = [32, 32, 4], strides = [1, 1, 1]} : vector<34x34x4xbf16> to vector<32x32x4xbf16>
    %23 = vector.extract_strided_slice %19 {offsets = [0, 2, 0], sizes = [32, 32, 4], strides = [1, 1, 1]} : vector<34x34x4xbf16> to vector<32x32x4xbf16>
    %24 = tpu.concatenate %21, %22, %23 in 2 : vector<32x32x4xbf16>, vector<32x32x4xbf16>, vector<32x32x4xbf16> -> vector<32x32x12xbf16>
    %25 = vector.shape_cast %24 : vector<32x32x12xbf16> to vector<1024x12xbf16>
    %c0_2 = arith.constant 0 : index
    %c0_3 = arith.constant 0 : index
    %c0_4 = arith.constant 0 : index
    %26 = vector.load %arg3[%c0_2, %c0_3, %c0_4] : memref<3x12x8xbf16, #tpu.memory_space<vmem>>, vector<1x12x8xbf16>
    %27 = vector.shape_cast %26 : vector<1x12x8xbf16> to vector<12x8xbf16>
    %cst_5 = arith.constant dense<0.000000e+00> : vector<1024x8xf32>
    %28 = tpu.matmul %25, %27, %cst_5 {dimension_numbers = #tpu.dot_dimension_numbers<[1], [0], [0], [1], [0, 0, 1, 1], [], []>} : vector<1024x12xbf16>, vector<12x8xbf16>, vector<1024x8xf32> -> vector<1024x8xf32>
    %29 = arith.addf %20, %28 : vector<1024x8xf32>
    %30 = vector.extract_strided_slice %19 {offsets = [1, 0, 0], sizes = [32, 32, 4], strides = [1, 1, 1]} : vector<34x34x4xbf16> to vector<32x32x4xbf16>
    %31 = vector.extract_strided_slice %19 {offsets = [1, 1, 0], sizes = [32, 32, 4], strides = [1, 1, 1]} : vector<34x34x4xbf16> to vector<32x32x4xbf16>
    %32 = vector.extract_strided_slice %19 {offsets = [1, 2, 0], sizes = [32, 32, 4], strides = [1, 1, 1]} : vector<34x34x4xbf16> to vector<32x32x4xbf16>
    %33 = tpu.concatenate %30, %31, %32 in 2 : vector<32x32x4xbf16>, vector<32x32x4xbf16>, vector<32x32x4xbf16> -> vector<32x32x12xbf16>
    %34 = vector.shape_cast %33 : vector<32x32x12xbf16> to vector<1024x12xbf16>
    %c1 = arith.constant 1 : index
    %c0_6 = arith.constant 0 : index
    %c0_7 = arith.constant 0 : index
    %35 = vector.load %arg3[%c1, %c0_6, %c0_7] : memref<3x12x8xbf16, #tpu.memory_space<vmem>>, vector<1x12x8xbf16>
    %36 = vector.shape_cast %35 : vector<1x12x8xbf16> to vector<12x8xbf16>
    %cst_8 = arith.constant dense<0.000000e+00> : vector<1024x8xf32>
    %37 = tpu.matmul %34, %36, %cst_8 {dimension_numbers = #tpu.dot_dimension_numbers<[1], [0], [0], [1], [0, 0, 1, 1], [], []>} : vector<1024x12xbf16>, vector<12x8xbf16>, vector<1024x8xf32> -> vector<1024x8xf32>
    %38 = arith.addf %29, %37 : vector<1024x8xf32>
    %39 = vector.extract_strided_slice %19 {offsets = [2, 0, 0], sizes = [32, 32, 4], strides = [1, 1, 1]} : vector<34x34x4xbf16> to vector<32x32x4xbf16>
    %40 = vector.extract_strided_slice %19 {offsets = [2, 1, 0], sizes = [32, 32, 4], strides = [1, 1, 1]} : vector<34x34x4xbf16> to vector<32x32x4xbf16>
    %41 = vector.extract_strided_slice %19 {offsets = [2, 2, 0], sizes = [32, 32, 4], strides = [1, 1, 1]} : vector<34x34x4xbf16> to vector<32x32x4xbf16>
    %42 = tpu.concatenate %39, %40, %41 in 2 : vector<32x32x4xbf16>, vector<32x32x4xbf16>, vector<32x32x4xbf16> -> vector<32x32x12xbf16>
    %43 = vector.shape_cast %42 : vector<32x32x12xbf16> to vector<1024x12xbf16>
    %c2 = arith.constant 2 : index
    %c0_9 = arith.constant 0 : index
    %c0_10 = arith.constant 0 : index
    %44 = vector.load %arg3[%c2, %c0_9, %c0_10] : memref<3x12x8xbf16, #tpu.memory_space<vmem>>, vector<1x12x8xbf16>
    %45 = vector.shape_cast %44 : vector<1x12x8xbf16> to vector<12x8xbf16>
    %cst_11 = arith.constant dense<0.000000e+00> : vector<1024x8xf32>
    %46 = tpu.matmul %43, %45, %cst_11 {dimension_numbers = #tpu.dot_dimension_numbers<[1], [0], [0], [1], [0, 0, 1, 1], [], []>} : vector<1024x12xbf16>, vector<12x8xbf16>, vector<1024x8xf32> -> vector<1024x8xf32>
    %47 = arith.addf %38, %46 : vector<1024x8xf32>
    %cst_12 = arith.constant dense<0.000000e+00> : vector<8xf32>
    %48 = vector.multi_reduction <add>, %47, %cst_12 [0] : vector<1024x8xf32> to vector<8xf32>
    %49 = vector.shape_cast %48 : vector<8xf32> to vector<1x8xf32>
    %cst_13 = arith.constant 9.765625E-4 : f32
    %50 = vector.broadcast %cst_13 : f32 to vector<1x8xf32>
    %51 = arith.mulf %49, %50 : vector<1x8xf32>
    %52 = vector.broadcast %51 : vector<1x8xf32> to vector<1024x8xf32>
    %53 = arith.subf %47, %52 : vector<1024x8xf32>
    %54 = arith.mulf %53, %53 : vector<1024x8xf32>
    %cst_14 = arith.constant dense<0.000000e+00> : vector<8xf32>
    %55 = vector.multi_reduction <add>, %54, %cst_14 [0] : vector<1024x8xf32> to vector<8xf32>
    %56 = vector.shape_cast %55 : vector<8xf32> to vector<1x8xf32>
    %57 = tpu.concatenate %49, %56 in 0 : vector<1x8xf32>, vector<1x8xf32> -> vector<2x8xf32>
    %c0_15 = arith.constant 0 : index
    %c0_16 = arith.constant 0 : index
    %c0_17 = arith.constant 0 : index
    %c0_18 = arith.constant 0 : index
    %58 = vector.load %arg5[%c0_15, %c0_16, %c0_17, %c0_18] : memref<1x1x2x8xf32, #tpu.memory_space<vmem>>, vector<1x1x2x8xf32>
    %59 = vector.shape_cast %58 : vector<1x1x2x8xf32> to vector<2x8xf32>
    %60 = vector.shape_cast %57 : vector<2x8xf32> to vector<1x1x2x8xf32>
    tpu.vector_store %arg5[%c0_15, %c0_16, %c0_17, %c0_18], %60 {strides = array<i32>} : memref<1x1x2x8xf32, #tpu.memory_space<vmem>>, vector<1x1x2x8xf32>,
    %61 = tpu.transpose %47, [1, 0] : vector<1024x8xf32> -> vector<8x1024xf32>
    %62 = arith.truncf %61 : vector<8x1024xf32> to vector<8x1024xbf16>
    %c0_19 = arith.constant 0 : index
    %c0_20 = arith.constant 0 : index
    %c0_21 = arith.constant 0 : index
    %63 = vector.load %arg4[%c0_19, %c0_20, %c0_21] : memref<1x8x1024xbf16, #tpu.memory_space<vmem>>, vector<1x8x1024xbf16>
    %64 = vector.shape_cast %63 : vector<1x8x1024xbf16> to vector<8x1024xbf16>
    %65 = vector.shape_cast %62 : vector<8x1024xbf16> to vector<1x8x1024xbf16>
    tpu.vector_store %arg4[%c0_19, %c0_20, %c0_21], %65 {strides = array<i32>} : memref<1x8x1024xbf16, #tpu.memory_space<vmem>>, vector<1x8x1024xbf16>,
    return
  }
  func.func @transform_0(%arg0: i32, %arg1: i32) -> (i32, i32, i32, i32) {
    %c0_i32 = arith.constant 0 : i32
    %c0_i32_0 = arith.constant 0 : i32
    %c0_i32_1 = arith.constant 0 : i32
    %c0_i32_2 = arith.constant 0 : i32
    return %arg0, %c0_i32, %c0_i32_0, %c0_i32_1 : i32, i32, i32, i32
  }
  func.func @transform_1(%arg0: i32, %arg1: i32) -> (i32, i32, i32) {
    %c0_i32 = arith.constant 0 : i32
    %c0_i32_0 = arith.constant 0 : i32
    %c0_i32_1 = arith.constant 0 : i32
    %c0_i32_2 = arith.constant 0 : i32
    return %c0_i32, %c0_i32_0, %c0_i32_1 : i32, i32, i32
  }
  func.func @transform_2(%arg0: i32, %arg1: i32) -> (i32, i32, i32) {
    %c0_i32 = arith.constant 0 : i32
    %c0_i32_0 = arith.constant 0 : i32
    return %arg0, %c0_i32, %arg1 : i32, i32, i32
  }
  func.func @transform_3(%arg0: i32, %arg1: i32) -> (i32, i32, i32, i32) {
    %c0_i32 = arith.constant 0 : i32
    %c0_i32_0 = arith.constant 0 : i32
    %c0_i32_1 = arith.constant 0 : i32
    return %arg0, %arg1, %c0_i32, %c0_i32_0 : i32, i32, i32, i32
  }
}

module attributes {stable_mosaic.version = 11 : i64} {
  func.func @_bn_act_kernel(%arg0: i32, %arg1: i32, %arg2: memref<1x8x1024xbf16, #tpu.memory_space<vmem>>, %arg3: memref<8x1xf32, #tpu.memory_space<vmem>>, %arg4: memref<8x1xf32, #tpu.memory_space<vmem>>, %arg5: memref<1x8x1024xf32, #tpu.memory_space<vmem>>) attributes {dimension_semantics = [#tpu.dimension_semantics<parallel>, #tpu.dimension_semantics<parallel>], iteration_bounds = array<i64: 2, 1>, scalar_prefetch = 0 : i64, scratch_operands = 0 : i64, tpu.core_type = #tpu.core_type<tc>, window_params = [{transform_indices = @transform_0, window_bounds = array<i64: 1, 8, 1024>}, {pipeline_mode = #tpu.pipeline_mode<synchronous>, transform_indices = @transform_1, window_bounds = array<i64: 8, 1>}, {pipeline_mode = #tpu.pipeline_mode<synchronous>, transform_indices = @transform_2, window_bounds = array<i64: 8, 1>}, {transform_indices = @transform_3, window_bounds = array<i64: 1, 8, 1024>}]} {
    %c0 = arith.constant 0 : index
    %c0_0 = arith.constant 0 : index
    %c0_1 = arith.constant 0 : index
    %0 = vector.load %arg2[%c0, %c0_0, %c0_1] : memref<1x8x1024xbf16, #tpu.memory_space<vmem>>, vector<1x8x1024xbf16>
    %1 = vector.shape_cast %0 : vector<1x8x1024xbf16> to vector<8x1024xbf16>
    %2 = arith.extf %1 : vector<8x1024xbf16> to vector<8x1024xf32>
    %c0_2 = arith.constant 0 : index
    %c0_3 = arith.constant 0 : index
    %3 = vector.load %arg3[%c0_2, %c0_3] : memref<8x1xf32, #tpu.memory_space<vmem>>, vector<8x1xf32>
    %4 = vector.broadcast %3 : vector<8x1xf32> to vector<8x1024xf32>
    %5 = arith.mulf %2, %4 : vector<8x1024xf32>
    %c0_4 = arith.constant 0 : index
    %c0_5 = arith.constant 0 : index
    %6 = vector.load %arg4[%c0_4, %c0_5] : memref<8x1xf32, #tpu.memory_space<vmem>>, vector<8x1xf32>
    %7 = vector.broadcast %6 : vector<8x1xf32> to vector<8x1024xf32>
    %8 = arith.addf %5, %7 : vector<8x1024xf32>
    %cst = arith.constant 0.000000e+00 : f32
    %9 = vector.broadcast %cst : f32 to vector<8x1024xf32>
    %10 = arith.cmpf ogt, %8, %9 : vector<8x1024xf32>
    %cst_6 = arith.constant 0.00999999977 : f32
    %11 = vector.broadcast %cst_6 : f32 to vector<8x1024xf32>
    %12 = arith.mulf %11, %8 : vector<8x1024xf32>
    %13 = arith.select %10, %8, %12 : vector<8x1024xi1>, vector<8x1024xf32>
    %c0_7 = arith.constant 0 : index
    %c0_8 = arith.constant 0 : index
    %c0_9 = arith.constant 0 : index
    %14 = vector.load %arg5[%c0_7, %c0_8, %c0_9] : memref<1x8x1024xf32, #tpu.memory_space<vmem>>, vector<1x8x1024xf32>
    %15 = vector.shape_cast %14 : vector<1x8x1024xf32> to vector<8x1024xf32>
    %16 = vector.shape_cast %13 : vector<8x1024xf32> to vector<1x8x1024xf32>
    tpu.vector_store %arg5[%c0_7, %c0_8, %c0_9], %16 {strides = array<i32>} : memref<1x8x1024xf32, #tpu.memory_space<vmem>>, vector<1x8x1024xf32>,
    return
  }
  func.func @transform_0(%arg0: i32, %arg1: i32) -> (i32, i32, i32) {
    %c0_i32 = arith.constant 0 : i32
    %c0_i32_0 = arith.constant 0 : i32
    return %arg0, %c0_i32, %arg1 : i32, i32, i32
  }
  func.func @transform_1(%arg0: i32, %arg1: i32) -> (i32, i32) {
    %c0_i32 = arith.constant 0 : i32
    %c0_i32_0 = arith.constant 0 : i32
    %c0_i32_1 = arith.constant 0 : i32
    return %c0_i32, %c0_i32_0 : i32, i32
  }
  func.func @transform_2(%arg0: i32, %arg1: i32) -> (i32, i32) {
    %c0_i32 = arith.constant 0 : i32
    %c0_i32_0 = arith.constant 0 : i32
    %c0_i32_1 = arith.constant 0 : i32
    return %c0_i32, %c0_i32_0 : i32, i32
  }
  func.func @transform_3(%arg0: i32, %arg1: i32) -> (i32, i32, i32) {
    %c0_i32 = arith.constant 0 : i32
    %c0_i32_0 = arith.constant 0 : i32
    return %arg0, %c0_i32, %arg1 : i32, i32, i32
  }
}

</mosaic_0001>

<bundles_post_ra>
// kernel: conv_up_bn_relu.3
= control target key start
LH: loop header
LB: loop body
LE: loop exit
PB: predicated region body
PF: predicated region fallthrough
CT: control target
= control target key end

     0   :  { %s453_s12 = smov 0   ;;  %s455_s13 = smov 0   ;;  %s504_s0 = inlined_call_operand.vmem [shape: bf16[2,8,1024], index: 0, kind: input, shape index: {}]   ;;  %s505_s1 = inlined_call_operand.vmem [shape: f32[8,1], index: 1, kind: input, shape index: {}]   ;;  %s506_s2 = inlined_call_operand.vmem [shape: f32[8,1], index: 2, kind: input, shape index: {}]   ;;  %s507_s3 = inlined_call_operand.vmem [shape: f32[2,8,1024], index: 3, kind: output, shape index: {}]  }
   0x1   :  { %s457_s14 = smov 0  }
   0x2 LB: > { %s25_s15 = sadd.s32 1, %s426_s13  ;;  %p373_p0 = scmp.ge.s32.totalorder %s430_s14, 1  ;;  %s430_s14 = sphi %s457_s14, %s13_s14   ;;  %s426_s13 = sphi %s455_s13, %s509_s13   ;;  %s422_s12 = sphi %s453_s12, %s508_s12  }
   0x3   : > { %p27_p1 = scmp.ge.s32.totalorder %s25_s15, 2  ;;  %p158_p2 = scmp.lt.s32.totalorder %s430_s14, 3 }
   0x5   : > { %s511_s15 = smov (%p27_p1, %s25_s15), 0  ;;  %p159_p3 = pnand %p373_p0, %p158_p2 }
   0x6   : > { %v222_v0 = vld [vmem:[%s505_s1] sm:$0xff] (!%p159_p3)  ;;  %v432_v1 = vmov (!%p159_p3), 0   ;;  %p191_p4 = scmp.lt.s32.totalorder (!%p159_p3), %s422_s12, 1 }
   0x7   : > { %162 = sbr.rel (%p159_p3) target bundleno = 152 (0x98), region = 32  ;;  %407 = vset.pattern.permute.xlu0 (!%p159_p3), %v432_v1  ;;  %v236_v2 = vld [vmem:[%s506_s2] sm:$0xff] (!%p159_p3) }
   0x8   : > { %225 = vperm.xlu0 (!%p159_p3), %407, %v222_v0  }
   0xc   : > { %239 = vperm.xlu0 (!%p159_p3), %407, %v236_v2  }
   0xe   : > { %s513_s12 = smov (!%p191_p4, %s422_s12), 1 }
   0xf   : > { %s380_s20 = sshll.u32 %s513_s12, 5  ;;  %s381_s24 = sshll.u32 %s513_s12, 6 }
  0x10   : > { %s198_s23 = scalar_lea.vmem %s504_s0, %s380_s20  ;;  %s208_s27 = scalar_lea.vmem %s507_s3, %s381_s24 }
  0x11   : > { %v210_v3 = vld [vmem:[%s198_s23] sm:$0xff]  ;;  %v211_v4 = vld [vmem:[%s198_s23 + $0x8] sm:$0xff]  ;;  %v212_v5 = vld [vmem:[%s198_s23 + $0x10] sm:$0xff] }
  0x12   : > { %v213_v6 = vld [vmem:[%s198_s23 + $0x18] sm:$0xff]  ;;  %v214_v7 = vunpack.c.l.bf16 %v210_v3  ;;  %v215_v8 = vunpack.c.h.bf16 %v210_v3  ;;  %v216_v9 = vunpack.c.l.bf16 %v211_v4  ;;  %v217_v10 = vunpack.c.h.bf16 %v211_v4 }
  0x13   : > { %v218_v12 = vunpack.c.l.bf16 %v212_v5  ;;  %v219_v13 = vunpack.c.h.bf16 %v212_v5  ;;  %v220_v14 = vunpack.c.l.bf16 %v213_v6  ;;  %v221_v15 = vunpack.c.h.bf16 %v213_v6 }
  0x87   : > { %v226_v11 = vpop.permute.xlu0 %225 }
  0x88   : > { %v228_v16 = vmul.f32 %v226_v11, %v214_v7  ;;  %v229_v17 = vmul.f32 %v226_v11, %v215_v8  ;;  %v230_v18 = vmul.f32 %v226_v11, %v216_v9  ;;  %v231_v19 = vmul.f32 %v226_v11, %v217_v10 }
  0x89   : > { %v232_v21 = vmul.f32 %v226_v11, %v218_v12  ;;  %v233_v22 = vmul.f32 %v226_v11, %v219_v13  ;;  %v234_v23 = vmul.f32 %v226_v11, %v220_v14  ;;  %v235_v24 = vmul.f32 %v226_v11, %v221_v15 }
  0x8b   : > { %v240_v20 = vpop.permute.xlu0 %239 }
  0x8c   : > { %v242_v25 = vadd.f32 %v240_v20, %v228_v16  ;;  %v243_v26 = vadd.f32 %v240_v20, %v229_v17  ;;  %v244_v27 = vadd.f32 %v240_v20, %v230_v18  ;;  %v245_v28 = vadd.f32 %v240_v20, %v231_v19 }
  0x8d   : > { %v246_v29 = vadd.f32 %v240_v20, %v232_v21  ;;  %v247_v30 = vadd.f32 %v240_v20, %v233_v22  ;;  %v248_v31 = vadd.f32 %v240_v20, %v234_v23  ;;  %v249_v32 = vadd.f32 %v240_v20, %v235_v24 }
  0x8e   : > { %vm250_vm0 = vcmp.gt.f32.partialorder %v242_v25, 0.0  ;;  %vm251_vm1 = vcmp.gt.f32.partialorder %v243_v26, 0.0  ;;  %vm252_vm2 = vcmp.gt.f32.partialorder %v244_v27, 0.0  ;;  %vm253_vm3 = vcmp.gt.f32.partialorder %v245_v28, 0.0 }
  0x8f   : > { %vm254_vm4 = vcmp.gt.f32.partialorder %v246_v29, 0.0  ;;  %vm255_vm5 = vcmp.gt.f32.partialorder %v247_v30, 0.0  ;;  %vm256_vm6 = vcmp.gt.f32.partialorder %v248_v31, 0.0  ;;  %vm257_vm7 = vcmp.gt.f32.partialorder %v249_v32, 0.0 }
  0x90   : > { %v258_v33 = vmul.f32 0.01, %v242_v25  ;;  %v259_v34 = vmul.f32 0.01, %v243_v26  ;;  %v260_v35 = vmul.f32 0.01, %v244_v27 }
  0x91   : > { %v261_v36 = vmul.f32 0.01, %v245_v28  ;;  %v262_v37 = vmul.f32 0.01, %v246_v29  ;;  %v263_v38 = vmul.f32 0.01, %v247_v30 }
  0x92   : > { %v264_v39 = vmul.f32 0.01, %v248_v31  ;;  %v265_v40 = vmul.f32 0.01, %v249_v32  ;;  %v266_v41 = vsel %vm250_vm0, %v242_v25, %v258_v33  ;;  %v267_v42 = vsel %vm251_vm1, %v243_v26, %v259_v34 }
  0x93   : > { %v268_v43 = vsel %vm252_vm2, %v244_v27, %v260_v35  ;;  %v269_v44 = vsel %vm253_vm3, %v245_v28, %v261_v36  ;;  %v270_v45 = vsel %vm254_vm4, %v246_v29, %v262_v37  ;;  %v271_v46 = vsel %vm255_vm5, %v247_v30, %v263_v38  ;;  %274 = vst [vmem:[%s208_s27] sm:$0xff] %v266_v41 }
  0x94   : > { %275 = vst [vmem:[%s208_s27 + $0x8] sm:$0xff] %v267_v42  ;;  %v272_v47 = vsel %vm256_vm6, %v248_v31, %v264_v39  ;;  %v273_v48 = vsel %vm257_vm7, %v249_v32, %v265_v40  ;;  %276 = vst [vmem:[%s208_s27 + $0x10] sm:$0xff] %v268_v43 }
  0x95   : > { %277 = vst [vmem:[%s208_s27 + $0x18] sm:$0xff] %v269_v44  ;;  %278 = vst [vmem:[%s208_s27 + $0x20] sm:$0xff] %v270_v45 }
  0x96   : > { %279 = vst [vmem:[%s208_s27 + $0x28] sm:$0xff] %v271_v46  ;;  %280 = vst [vmem:[%s208_s27 + $0x30] sm:$0xff] %v272_v47 }
  0x97   : > { %281 = vst [vmem:[%s208_s27 + $0x38] sm:$0xff] %v273_v48 }
  0x98 PF: > { %s13_s14 = sadd.s32 1, %s430_s14   ;;  %s508_s12 = smov %s426_s13 }
  0x99   : > { %p10_p5 = scmp.ge.s32.totalorder %s13_s14, 4   ;;  %s509_s13 = smov %s511_s15 }
  0x9b   :  { %12 = sbr.rel (!%p10_p5) target bundleno = 2 (0x2), region = 62 }

// kernel: conv_up_bn_relu.2
= control target key start
LH: loop header
LB: loop body
LE: loop exit
PB: predicated region body
PF: predicated region fallthrough
CT: control target
= control target key end

     0   :  { %s12883_s12 = smov 0   ;;  %s12885_s13 = smov 0   ;;  %s16968_s0 = inlined_call_operand.vmem [shape: bf16[2,18,18,4], index: 0, kind: input, shape index: {}]   ;;  %s16969_s1 = inlined_call_operand.vmem [shape: bf16[3,12,8], index: 1, kind: input, shape index: {}]   ;;  %s16970_s2 = inlined_call_operand.vmem [shape: bf16[2,8,1024], index: 2, kind: output, shape index: {0}]   ;;  %s16971_s3 = inlined_call_operand.vmem [shape: f32[2,1,2,8], index: 3, kind: output, shape index: {1}]  }
   0x1   :  { %s12887_s14 = smov 0  }
   0x2 LB: > { %s26_s15 = sadd.s32 1, %s12854_s13  ;;  %p11433_p0 = scmp.ge.s32.totalorder %s12858_s14, 1  ;;  %s12858_s14 = sphi %s12887_s14, %s14_s14   ;;  %s12854_s13 = sphi %s12885_s13, %s17306_s13   ;;  %s12850_s12 = sphi %s12883_s12, %s17305_s12  }
   0x3   : > { %p28_p1 = scmp.ge.s32.totalorder %s26_s15, 2  ;;  %p156_p2 = scmp.lt.s32.totalorder %s12858_s14, 3 }
   0x5   : > { %s17308_s15 = smov (%p28_p1, %s26_s15), 0  ;;  %p157_p3 = pnand %p11433_p0, %p156_p2 }
   0x7   : > { %160 = sbr.rel (%p157_p3) target bundleno = 1415 (0x587), region = 28 }
   0xe   : > { %p191_p4 = scmp.lt.s32.totalorder %s12850_s12, 1  ;;  %v329_v0 = vlaneseq  ;;  %v12860_v1 = vmov 1966171168   ;;  %vm7238_vm0 = vsmask.f32 256  ;;  %vm7545_vm1 = vcmask 1040384  }
   0xf   : > { %v327_v2 = vunpack.c.l.s4 %v12860_v1  ;;  %vm8026_vm2 = vcmask 1046528   ;;  %vm13004_vm3 = vmand %vm7545_vm1, %vm7238_vm0  ;;  %s12861_s20 = smov 8   ;;  %vm7583_vm4 = vsmask.f32 7424  ;;  %s12862_s21 = smov 4   ;;  %vm8180_vm5 = vcmask 31744  }
  0x10   : > { %s17310_s12 = smov (!%p191_p4, %s12850_s12), 1  ;;  %v330_v3 = vshrl.u32 %v329_v0, 7  ;;  %vm8249_vm6 = vcmask 64512   ;;  %vm8328_vm7 = vcmask 97280   ;;  %vm8393_vm8 = vcmask 1045504  }
  0x11   : > { %v328_v4 = vunpack.c.0.s8 %v327_v2  ;;  %s12657_s16 = smul.u32 216, %s17310_s12  ;;  %s11805_s28 = sshll.u32 %s17310_s12, 5  ;;  %vm11011_vm9 = vcmask 58368  }
  0x12   : > { %v12929_v15 = vsub.s32 0, %v330_v3  ;;  %s204_s4 = scalar_lea.vmem %s16970_s2, %s11805_s28  ;;  %s11437_s5 = sshll.u32 %s17310_s12, 1 }
  0x13   : > { %v12904_v5 = vsub.s32 %v328_v4, %v330_v3  ;;  %s12909_s19 = scalar_lea.vmem %s16968_s0, %s12657_s16  ;;  %s212_s8 = scalar_lea.vmem %s16971_s3, %s11437_s5 }
  0x14   : > { %v12912_v6 = vld [vmem:[%s12909_s19 + $0xc] sm:$0xf]  ;;  %v11439_v7 = vld.sshfl [vmem:[%s12909_s19 + $0x10] sm:$0x33 pattern:$0x75316420] }
  0x15   : > { %v12916_v8 = vld [vmem:[%s12909_s19 + $0x14] sm:$0x1]  ;;  %v394_v9 = vrot.slane %v12912_v6, %v12904_v5  ;;  %v419_v10 = vcombine.high %v11439_v7, %v11439_v7  ;;  %v426_v11 = vrot.slane %v11439_v7, %v12904_v5  ;;  %v12922_v12 = vld [vmem:[%s12909_s19] sm:$0xf]  ;;  %v12925_v13 = vld [vmem:[%s12909_s19 + $0x8] sm:$0x1] }
  0x16   : > { %v442_v14 = vrot.slane %v12916_v8, %v12904_v5  ;;  %v12933_v16 = vrot.slane %v12922_v12, %v12904_v5  ;;  %v380_v17 = vrot.slane %v12925_v13, %v12904_v5 }
  0x17   : > { %v395_v18 = vcombine.high %v394_v9, %v394_v9  ;;  %v402_v19 = vrot.slane %v394_v9, %v12904_v5  ;;  %v433_v20 = vrot.slane %v419_v10, %v12904_v5  ;;  %v434_v21 = vcombine.high %v426_v11, %v426_v11 }
  0x18   : > { %v449_v22 = vrot.slane %v442_v14, %v12904_v5  ;;  %v1466_v23 = vunpack.i.h.s16 %v426_v11  ;;  %v11467_v24 = vpack.i.b16 %v426_v11, %v426_v11  ;;  %v333_v25 = vcombine.high %v12933_v16, %v12933_v16 }
  0x19   : > { %v409_v26 = vrot.slane %v395_v18, %v12904_v5  ;;  %v410_v27 = vcombine.high %v402_v19, %v402_v19  ;;  %v435_v28 = vcombine.high %v433_v20, %v433_v20  ;;  %v1458_v29 = vunpack.i.h.s16 %v402_v19 }
  0x1a   : > { %v1468_v30 = vunpack.i.h.s16 %v433_v20  ;;  %v1470_v31 = vunpack.i.h.s16 %v434_v21  ;;  %v1754_v32 = vpack.i.b16 %v1466_v23, %v1466_v23  ;;  %v11468_v33 = vpack.i.b16 %v433_v20, %v433_v20 }
  0x1b   : > { %v411_v34 = vcombine.high %v409_v26, %v409_v26  ;;  %v1460_v35 = vunpack.i.h.s16 %v409_v26  ;;  %v1462_v36 = vunpack.i.h.s16 %v410_v27  ;;  %v1472_v37 = vunpack.i.h.s16 %v435_v28 }
  0x1c   : > { %v1746_v38 = vpack.i.b16 %v1458_v29, %v1458_v29  ;;  %v11464_v39 = vpack.i.b16 %v409_v26, %v409_v26  ;;  %v11465_v40 = vpack.i.b16 %v410_v27, %v410_v27  ;;  %v1756_v41 = vpack.i.b16 %v1468_v30, %v1468_v30 }
  0x1d   : > { %v1464_v42 = vunpack.i.h.s16 %v411_v34  ;;  %v1748_v43 = vpack.i.b16 %v1460_v35, %v1460_v35  ;;  %v1750_v44 = vpack.i.b16 %v1462_v36, %v1462_v36  ;;  %v11466_v45 = vpack.i.b16 %v411_v34, %v411_v34 }
  0x1e   : > { %v11469_v46 = vpack.i.b16 %v434_v21, %v434_v21  ;;  %v1758_v47 = vpack.i.b16 %v1470_v31, %v1470_v31  ;;  %v11470_v48 = vpack.i.b16 %v435_v28, %v435_v28  ;;  %v1760_v49 = vpack.i.b16 %v1472_v37, %v1472_v37 }
  0x1f   : > { %v1752_v50 = vpack.i.b16 %v1464_v42, %v1464_v42  ;;  %v11471_v51 = vpack.i.b16 %v449_v22, %v449_v22  ;;  %v2085_v52 = vrot.slane %v1746_v38, %v12929_v15  ;;  %v2089_v53 = vrot.slane %v11464_v39, %v12929_v15 }
  0x20   : > { %v2093_v54 = vrot.slane %v1748_v43, %v12929_v15  ;;  %v2097_v55 = vrot.slane %v11465_v40, %v12929_v15  ;;  %v2101_v56 = vrot.slane %v1750_v44, %v12929_v15  ;;  %v2105_v57 = vrot.slane %v11466_v45, %v12929_v15 }
  0x21   : > { %v2109_v58 = vrot.slane %v1752_v50, %v12929_v15  ;;  %v2113_v59 = vrot.slane %v11467_v24, %v12929_v15  ;;  %v2117_v60 = vrot.slane %v1754_v32, %v12929_v15  ;;  %v2121_v61 = vrot.slane %v11468_v33, %v12929_v15 }
  0x22   : > { %v2125_v62 = vrot.slane %v1756_v41, %v12929_v15  ;;  %v2129_v63 = vrot.slane %v11469_v46, %v12929_v15  ;;  %v2133_v0 = vrot.slane %v1758_v47, %v12929_v15  ;;  %v2137_v1 = vrot.slane %v11470_v48, %v12929_v15 }
  0x23   : > { %v2141_v2 = vrot.slane %v1760_v49, %v12929_v15  ;;  %v2145_v3 = vrot.slane %v11471_v51, %v12929_v15  ;;  %v3283_v4 = vpack.i.b16 %v2085_v52, %v2085_v52  ;;  %v3290_v7 = vpack.i.b16 %v2089_v53, %v2089_v53 }
  0x24   : > { %v3297_v9 = vpack.i.b16 %v2093_v54, %v2093_v54  ;;  %v3304_v10 = vpack.i.b16 %v2097_v55, %v2097_v55  ;;  %v3311_v11 = vpack.i.b16 %v2101_v56, %v2101_v56  ;;  %v3318_v14 = vpack.i.b16 %v2105_v57, %v2105_v57  ;;  %v11438_v55 = vld.sshfl [vmem:[%s12909_s19 + $0x4] sm:$0x33 pattern:$0x75316420] }
  0x25   : > { %v3288_v18 = vrot.slane %v3283_v4, %v12929_v15  ;;  %v3295_v19 = vrot.slane %v3290_v7, %v12929_v15  ;;  %v3325_v20 = vpack.i.b16 %v2109_v58, %v2109_v58  ;;  %v3332_v21 = vpack.i.b16 %v2113_v59, %v2113_v59 }
  0x26   : > { %v3302_v22 = vrot.slane %v3297_v9, %v12929_v15  ;;  %v3309_v23 = vrot.slane %v3304_v10, %v12929_v15  ;;  %v3316_v24 = vrot.slane %v3311_v11, %v12929_v15  ;;  %v3323_v26 = vrot.slane %v3318_v14, %v12929_v15 }
  0x27   : > { %v3330_v27 = vrot.slane %v3325_v20, %v12929_v15  ;;  %v3337_v28 = vrot.slane %v3332_v21, %v12929_v15  ;;  %v3339_v29 = vpack.i.b16 %v2117_v60, %v2117_v60  ;;  %v3346_v30 = vpack.i.b16 %v2121_v61, %v2121_v61 }
  0x28   : > { %v3353_v31 = vpack.i.b16 %v2125_v62, %v2125_v62  ;;  %v3360_v32 = vpack.i.b16 %v2129_v63, %v2129_v63  ;;  %v3367_v33 = vpack.i.b16 %v2133_v0, %v2133_v0  ;;  %v3374_v34 = vpack.i.b16 %v2137_v1, %v2137_v1 }
  0x29   : > { %v3344_v35 = vrot.slane %v3339_v29, %v12929_v15  ;;  %v3351_v36 = vrot.slane %v3346_v30, %v12929_v15  ;;  %v3381_v37 = vpack.i.b16 %v2141_v2, %v2141_v2  ;;  %v3388_v38 = vpack.i.b16 %v2145_v3, %v2145_v3 }
  0x2a   : > { %v3358_v39 = vrot.slane %v3353_v31, %v12929_v15  ;;  %v3365_v40 = vrot.slane %v3360_v32, %v12929_v15  ;;  %v3372_v41 = vrot.slane %v3367_v33, %v12929_v15  ;;  %v3379_v42 = vrot.slane %v3374_v34, %v12929_v15 }
  0x2b   : > { %v3386_v43 = vrot.slane %v3381_v37, %v12929_v15  ;;  %v3393_v44 = vrot.slane %v3388_v38, %v12929_v15  ;;  %v5572_v45 = vcombine.low %v3288_v18, %v3295_v19  ;;  %v5573_v46 = vcombine.low %v3302_v22, %v3309_v23 }
  0x2c   : > { %v5574_v47 = vcombine.low %v3316_v24, %v3323_v26  ;;  %v5575_v48 = vcombine.low %v3330_v27, %v3337_v28  ;;  %v5621_v49 = vcombine.low %v3344_v35, %v3351_v36  ;;  %v5622_v50 = vcombine.low %v3358_v39, %v3365_v40 }
  0x2d   : > { %v5582_v51 = vrot.slane %v5572_v45, %v12904_v5  ;;  %v5589_v52 = vrot.slane %v5573_v46, %v12904_v5  ;;  %v5623_v53 = vcombine.low %v3372_v41, %v3379_v42  ;;  %v5624_v54 = vcombine.low %v3386_v43, %v3393_v44 }
  0x2e   : > { %v5596_v56 = vrot.slane %v5574_v47, %v12904_v5  ;;  %v5603_v57 = vrot.slane %v5575_v48, %v12904_v5  ;;  %v5631_v58 = vrot.slane %v5621_v49, %v12904_v5  ;;  %v5638_v59 = vrot.slane %v5622_v50, %v12904_v5 }
  0x2f   : > { %v5604_v60 = vcombine.low %v5582_v51, %v5589_v52  ;;  %v5645_v61 = vrot.slane %v5623_v53, %v12904_v5  ;;  %v5652_v62 = vrot.slane %v5624_v54, %v12904_v5  ;;  %v340_v63 = vrot.slane %v12933_v16, %v12904_v5 }
  0x30   : > { %v5605_v0 = vcombine.low %v5596_v56, %v5603_v57  ;;  %v5653_v1 = vcombine.low %v5631_v58, %v5638_v59  ;;  %v347_v2 = vrot.slane %v333_v25, %v12904_v5  ;;  %v357_v3 = vcombine.high %v11438_v55, %v11438_v55 }
  0x31   : > { %v5612_v4 = vrot.slane %v5604_v60, %v12904_v5  ;;  %v5654_v7 = vcombine.low %v5645_v61, %v5652_v62  ;;  %v348_v9 = vcombine.high %v340_v63, %v340_v63  ;;  %v364_v10 = vrot.slane %v11438_v55, %v12904_v5 }
  0x32   : > { %v5619_v11 = vrot.slane %v5605_v0, %v12904_v5  ;;  %v5661_v14 = vrot.slane %v5653_v1, %v12904_v5  ;;  %v349_v18 = vcombine.high %v347_v2, %v347_v2  ;;  %v371_v19 = vrot.slane %v357_v3, %v12904_v5 }
  0x33   : > { %v5668_v20 = vrot.slane %v5654_v7, %v12904_v5  ;;  %v372_v21 = vcombine.high %v364_v10, %v364_v10  ;;  %v387_v16 = vrot.slane %v380_v17, %v12904_v5  ;;  %v1442_v25 = vunpack.i.h.s16 %v340_v63 }
  0x34   : > { %v5620_v22 = vcombine.low %v5612_v4, %v5619_v11  ;;  %v373_v23 = vcombine.high %v371_v19, %v371_v19  ;;  %v1444_v24 = vunpack.i.h.s16 %v347_v2  ;;  %v1446_v26 = vunpack.i.h.s16 %v348_v9 }
  0x35   : > { %v5669_v27 = vcombine.low %v5661_v14, %v5668_v20  ;;  %v1448_v28 = vunpack.i.h.s16 %v349_v18  ;;  %v1450_v29 = vunpack.i.h.s16 %v364_v10  ;;  %v1452_v30 = vunpack.i.h.s16 %v371_v19 }
  0x36   : > { %v7255_v31 = vshrl.u32 %v5620_v22, 16  ;;  %v7258_v32 = vshll.u32 %v5620_v22, 16  ;;  %v1454_v33 = vunpack.i.h.s16 %v372_v21  ;;  %v1456_v34 = vunpack.i.h.s16 %v373_v23 }
  0x37   : > { %v7262_v35 = vshrl.u32 %v5669_v27, 16  ;;  %v7265_v36 = vshll.u32 %v5669_v27, 16  ;;  %v1730_v37 = vpack.i.b16 %v1442_v25, %v1442_v25  ;;  %v11456_v38 = vpack.i.b16 %v347_v2, %v347_v2 }
  0x38   : > { %v7257_v39 = vrot.slane %v7255_v31, 7  ;;  %v1732_v17 = vpack.i.b16 %v1444_v24, %v1444_v24  ;;  %v11457_v40 = vpack.i.b16 %v348_v9, %v348_v9  ;;  %v1734_v41 = vpack.i.b16 %v1446_v26, %v1446_v26 }
  0x39   : > { %v13000_v42 = vrot.slane %v7262_v35, 7  ;;  %v11458_v44 = vpack.i.b16 %v349_v18, %v349_v18  ;;  %v1736_v45 = vpack.i.b16 %v1448_v28, %v1448_v28  ;;  %v11459_v46 = vpack.i.b16 %v364_v10, %v364_v10 }
  0x3a   : > { %v7260_v47 = vor.u32 %v7258_v32, %v7257_v39  ;;  %v1738_v48 = vpack.i.b16 %v1450_v29, %v1450_v29  ;;  %v11460_v49 = vpack.i.b16 %v371_v19, %v371_v19  ;;  %v1740_v50 = vpack.i.b16 %v1452_v30, %v1452_v30 }
  0x3b   : > { %v7267_v51 = vor.u32 %v7265_v36, %v13000_v42  ;;  %v11461_v52 = vpack.i.b16 %v372_v21, %v372_v21  ;;  %v1742_v53 = vpack.i.b16 %v1454_v33, %v1454_v33  ;;  %v11462_v54 = vpack.i.b16 %v373_v23, %v373_v23 }
  0x3c   : > { %v13012_v55 = vsel %vm13004_vm3, %v12912_v6, %v7260_v47  ;;  %v1744_v56 = vpack.i.b16 %v1456_v34, %v1456_v34  ;;  %v11463_v57 = vpack.i.b16 %v387_v16, %v387_v16  ;;  %v2021_v58 = vrot.slane %v1730_v37, %v12929_v15 }
  0x3d   : > { %v13016_v59 = vsel %vm7238_vm0, %v7257_v39, %v7267_v51  ;;  %v8032_v60 = vrot.slane %v13012_v55, 1  ;;  %v2025_v61 = vrot.slane %v11456_v38, %v12929_v15  ;;  %v2029_v62 = vrot.slane %v1732_v17, %v12929_v15 }
  0x3e   : > { %v8033_v63 = vrot.slane %v13016_v59, 1  ;;  %v2033_v0 = vrot.slane %v11457_v40, %v12929_v15  ;;  %v2037_v6 = vrot.slane %v1734_v41, %v12929_v15  ;;  %v2041_v1 = vrot.slane %v11458_v44, %v12929_v15 }
  0x3f   : > { %v2045_v2 = vrot.slane %v1736_v45, %v12929_v15  ;;  %v2049_v3 = vrot.slane %v11459_v46, %v12929_v15  ;;  %v2053_v4 = vrot.slane %v1738_v48, %v12929_v15  ;;  %v2057_v7 = vrot.slane %v11460_v49, %v12929_v15 }
  0x40   : > { %v8034_v9 = vsel %vm8026_vm2, %v8032_v60, %v8033_v63  ;;  %v2061_v10 = vrot.slane %v1740_v50, %v12929_v15  ;;  %v2065_v11 = vrot.slane %v11461_v52, %v12929_v15  ;;  %v2069_v14 = vrot.slane %v1742_v53, %v12929_v15 }
  0x41   : > { %8116 = vrot.lane.b32.xlu1 %v8034_v9, %s12861_s20  ;;  %v2073_v18 = vrot.slane %v11462_v54, %v12929_v15  ;;  %v2077_v19 = vrot.slane %v1744_v56, %v12929_v15  ;;  %v2081_v20 = vrot.slane %v11463_v57, %v12929_v15  ;;  %v3171_v21 = vpack.i.b16 %v2021_v58, %v2021_v58 }
  0x42   : > { %v3178_v16 = vpack.i.b16 %v2025_v61, %v2025_v61  ;;  %v3185_v25 = vpack.i.b16 %v2029_v62, %v2029_v62  ;;  %v3192_v22 = vpack.i.b16 %v2033_v0, %v2033_v0  ;;  %v3199_v23 = vpack.i.b16 %v2037_v6, %v2037_v6 }
  0x43   : > { %v3176_v24 = vrot.slane %v3171_v21, %v12929_v15  ;;  %v3206_v26 = vpack.i.b16 %v2041_v1, %v2041_v1  ;;  %v3213_v27 = vpack.i.b16 %v2045_v2, %v2045_v2  ;;  %v3220_v28 = vpack.i.b16 %v2049_v3, %v2049_v3 }
  0x44   : > { %v3183_v29 = vrot.slane %v3178_v16, %v12929_v15  ;;  %v3190_v30 = vrot.slane %v3185_v25, %v12929_v15  ;;  %v3197_v31 = vrot.slane %v3192_v22, %v12929_v15  ;;  %v3204_v32 = vrot.slane %v3199_v23, %v12929_v15  ;;  %v13071_v22 = vld [vmem:[%s12909_s19 + $0x18] sm:$0xf] }
  0x45   : > { %v3211_v33 = vrot.slane %v3206_v26, %v12929_v15  ;;  %v3218_v34 = vrot.slane %v3213_v27, %v12929_v15  ;;  %v3225_v35 = vrot.slane %v3220_v28, %v12929_v15  ;;  %v3227_v36 = vpack.i.b16 %v2053_v4, %v2053_v4 }
  0x46   : > { %v3234_v37 = vpack.i.b16 %v2057_v7, %v2057_v7  ;;  %v3241_v38 = vpack.i.b16 %v2061_v10, %v2061_v10  ;;  %v3248_v39 = vpack.i.b16 %v2065_v11, %v2065_v11  ;;  %v3255_v17 = vpack.i.b16 %v2069_v14, %v2069_v14 }
  0x47   : > { %v3232_v40 = vrot.slane %v3227_v36, %v12929_v15  ;;  %v3262_v41 = vpack.i.b16 %v2073_v18, %v2073_v18  ;;  %v3269_v44 = vpack.i.b16 %v2077_v19, %v2077_v19  ;;  %v3276_v45 = vpack.i.b16 %v2081_v20, %v2081_v20 }
  0x48   : > { %v3239_v46 = vrot.slane %v3234_v37, %v12929_v15  ;;  %v3246_v47 = vrot.slane %v3241_v38, %v12929_v15  ;;  %v3253_v48 = vrot.slane %v3248_v39, %v12929_v15  ;;  %v3260_v49 = vrot.slane %v3255_v17, %v12929_v15 }
  0x49   : > { %v3267_v50 = vrot.slane %v3262_v41, %v12929_v15  ;;  %v3274_v51 = vrot.slane %v3269_v44, %v12929_v15  ;;  %v3281_v52 = vrot.slane %v3276_v45, %v12929_v15  ;;  %v5474_v53 = vcombine.low %v3176_v24, %v3183_v29  ;;  %v13093_v44 = vld [vmem:[%s12909_s19 + $0x20] sm:$0x1] }
  0x4a   : > { %v5475_v54 = vcombine.low %v3190_v30, %v3197_v31  ;;  %v5476_v56 = vcombine.low %v3204_v32, %v3211_v33  ;;  %v5477_v57 = vcombine.low %v3218_v34, %v3225_v35  ;;  %v5523_v58 = vcombine.low %v3232_v40, %v3239_v46 }
  0x4b   : > { %v5484_v60 = vrot.slane %v5474_v53, %v12904_v5  ;;  %v5524_v61 = vcombine.low %v3246_v47, %v3253_v48  ;;  %v5525_v62 = vcombine.low %v3260_v49, %v3267_v50  ;;  %v5526_v0 = vcombine.low %v3274_v51, %v3281_v52 }
  0x4c   : > { %v5491_v6 = vrot.slane %v5475_v54, %v12904_v5  ;;  %v5498_v1 = vrot.slane %v5476_v56, %v12904_v5  ;;  %v5505_v2 = vrot.slane %v5477_v57, %v12904_v5  ;;  %v5533_v3 = vrot.slane %v5523_v58, %v12904_v5 }
  0x4d   : > { %v5540_v4 = vrot.slane %v5524_v61, %v12904_v5  ;;  %v5547_v7 = vrot.slane %v5525_v62, %v12904_v5  ;;  %v5554_v9 = vrot.slane %v5526_v0, %v12904_v5  ;;  %v7566_v10 = vsel %vm13004_vm3, %v13000_v42, %v12916_v8  ;;  %v11440_v42 = vld.sshfl [vmem:[%s12909_s19 + $0x1c] sm:$0x33 pattern:$0x75316420] }
  0x4e   : > { %v5506_v11 = vcombine.low %v5484_v60, %v5491_v6  ;;  %v5507_v14 = vcombine.low %v5498_v1, %v5505_v2  ;;  %v7612_v18 = vshll.u32 %v13016_v59, 16  ;;  %v7616_v19 = vshrl.u32 %v13016_v59, 16 }
  0x4f   : > { %v5555_v20 = vcombine.low %v5533_v3, %v5540_v4  ;;  %v5556_v21 = vcombine.low %v5547_v7, %v5554_v9  ;;  %v7620_v16 = vshll.u32 %v7566_v10, 16  ;;  %v7605_v25 = vshrl.u32 %v13012_v55, 16 }
  0x50   : > { %v5514_v23 = vrot.slane %v5506_v11, %v12904_v5  ;;  %v5521_v24 = vrot.slane %v5507_v14, %v12904_v5  ;;  %v7614_v26 = vrot.slane %v7612_v18, 1  ;;  %v7607_v8 = vshll.u32 %v13012_v55, 16 }
  0x51   : > { %v5563_v27 = vrot.slane %v5555_v20, %v12904_v5  ;;  %v5570_v28 = vrot.slane %v5556_v21, %v12904_v5  ;;  %v7622_v29 = vrot.slane %v7620_v16, 1  ;;  %v8035_v30 = vrot.slane %v7566_v10, 1 }
  0x52   : > { %v5522_v31 = vcombine.low %v5514_v23, %v5521_v24  ;;  %v7618_v32 = vor.u32 %v7616_v19, %v7614_v26  ;;  %v7609_v33 = vrot.slane %v7607_v8, 1  ;;  %v456_v34 = vrot.slane %v13071_v22, %v12904_v5 }
  0x53   : > { %v5571_v35 = vcombine.low %v5563_v27, %v5570_v28  ;;  %v13084_v36 = vsel %vm8026_vm2, %v8033_v63, %v8035_v30  ;;  %v481_v37 = vcombine.high %v11440_v42, %v11440_v42  ;;  %v13087_v38 = vrot.slane %v11440_v42, %v12904_v5 }
  0x54   : > { %v7240_v39 = vshrl.u32 %v5522_v31, 16  ;;  %v7243_v17 = vshll.u32 %v5522_v31, 16  ;;  %v13090_v40 = vsel %vm7583_vm4, %v7618_v32, %v7622_v29  ;;  %v7610_v41 = vor.u32 %v7609_v33, %v7605_v25 }
  0x55   : > { %v7247_v45 = vshrl.u32 %v5571_v35, 16  ;;  %v7250_v46 = vshll.u32 %v5571_v35, 16  ;;  %v457_v47 = vcombine.high %v456_v34, %v456_v34  ;;  %v464_v48 = vrot.slane %v456_v34, %v12904_v5 }
  0x56   : > { %v7242_v49 = vrot.slane %v7240_v39, 7  ;;  %v13097_v63 = vsel %vm7583_vm4, %v7610_v41, %v7614_v26  ;;  %v13100_v50 = vrot.slane %v481_v37, %v12904_v5  ;;  %v13104_v51 = vcombine.high %v13087_v38, %v13087_v38 }
  0x57   : > { %v7249_v52 = vrot.slane %v7247_v45, 7  ;;  %v471_v53 = vrot.slane %v457_v47, %v12904_v5  ;;  %v472_v54 = vcombine.high %v464_v48, %v464_v48  ;;  %v504_v56 = vrot.slane %v13093_v44, %v12904_v5 }
  0x58   : > { %v7245_v57 = vor.u32 %v7243_v17, %v7242_v49  ;;  %v13111_v58 = vcombine.high %v13100_v50, %v13100_v50  ;;  %v1474_v60 = vunpack.i.h.s16 %v464_v48  ;;  %v1482_v61 = vunpack.i.h.s16 %v13087_v38 }
  0x59   : > { %v7252_v62 = vor.u32 %v7250_v46, %v7249_v52  ;;  %v7565_v0 = vsel %vm13004_vm3, %v7249_v52, %v12925_v13  ;;  %v473_v6 = vcombine.high %v471_v53, %v471_v53  ;;  %v13118_v1 = vrot.slane %v504_v56, %v12904_v5 }
  0x5a   : > { %v13123_v2 = vsel %vm13004_vm3, %v12922_v12, %v7245_v57  ;;  %v7600_v3 = vshll.u32 %v7565_v0, 16  ;;  %v8030_v4 = vrot.slane %v7565_v0, 1  ;;  %v1476_v7 = vunpack.i.h.s16 %v471_v53 }
  0x5b   : > { %v13126_v9 = vsel %vm7238_vm0, %v7242_v49, %v7252_v62  ;;  %v8027_v10 = vrot.slane %v13123_v2, 1  ;;  %v7585_v11 = vshrl.u32 %v13123_v2, 16  ;;  %v7587_v13 = vshll.u32 %v13123_v2, 16 }
  0x5c   : > { %v8028_v14 = vrot.slane %v13126_v9, 1  ;;  %v7592_v18 = vshll.u32 %v13126_v9, 16  ;;  %v7596_v19 = vshrl.u32 %v13126_v9, 16  ;;  %v7602_v12 = vrot.slane %v7600_v3, 1 }
  0x5d   : > { %v7589_v20 = vrot.slane %v7587_v13, 1  ;;  %v1478_v21 = vunpack.i.h.s16 %v472_v54  ;;  %v1480_v16 = vunpack.i.h.s16 %v473_v6  ;;  %v1484_v25 = vunpack.i.h.s16 %v13100_v50 }
  0x5e   : > { %v8029_v23 = vsel %vm8026_vm2, %v8027_v10, %v8028_v14  ;;  %v7594_v24 = vrot.slane %v7592_v18, 1  ;;  %v8031_v26 = vsel %vm8026_vm2, %v8028_v14, %v8030_v4  ;;  %v1486_v8 = vunpack.i.h.s16 %v13104_v51 }
  0x5f   : > { %8112 = vrot.lane.b32.xlu0 %v8029_v23, %s12861_s20  ;;  %v7590_v42 = vor.u32 %v7589_v20, %v7585_v11  ;;  %v1488_v27 = vunpack.i.h.s16 %v13111_v58  ;;  %v1762_v28 = vpack.i.b16 %v1474_v60, %v1474_v60  ;;  %v11472_v29 = vpack.i.b16 %v471_v53, %v471_v53 }
  0x60   : > { %v7598_v30 = vor.u32 %v7596_v19, %v7594_v24  ;;  %v1764_v31 = vpack.i.b16 %v1476_v7, %v1476_v7  ;;  %v11473_v32 = vpack.i.b16 %v472_v54, %v472_v54  ;;  %v1766_v33 = vpack.i.b16 %v1478_v21, %v1478_v21 }
  0x61   : > { %v7595_v34 = vsel %vm7583_vm4, %v7590_v42, %v7594_v24  ;;  %v11474_v35 = vpack.i.b16 %v473_v6, %v473_v6  ;;  %v1768_v37 = vpack.i.b16 %v1480_v16, %v1480_v16  ;;  %v11475_v39 = vpack.i.b16 %v13087_v38, %v13087_v38 }
  0x62   : > { %v7603_v17 = vsel %vm7583_vm4, %v7598_v30, %v7602_v12  ;;  %v1770_v41 = vpack.i.b16 %v1482_v61, %v1482_v61  ;;  %v11476_v45 = vpack.i.b16 %v13100_v50, %v13100_v50  ;;  %v1772_v46 = vpack.i.b16 %v1484_v25, %v1484_v25 }
  0x63   : > { %7926 = vrot.lane.b32.xlu1 %v7603_v17, %s12862_s21  ;;  %7924 = vrot.lane.b32.xlu0 %v7595_v34, %s12862_s21  ;;  %v11477_v47 = vpack.i.b16 %v13104_v51, %v13104_v51  ;;  %v1774_v48 = vpack.i.b16 %v1486_v8, %v1486_v8  ;;  %v11478_v49 = vpack.i.b16 %v13111_v58, %v13111_v58 }
  0x64   : > { %v1776_v38 = vpack.i.b16 %v1488_v27, %v1488_v27  ;;  %v11479_v52 = vpack.i.b16 %v13118_v1, %v13118_v1  ;;  %v2149_v53 = vrot.slane %v1762_v28, %v12929_v15  ;;  %v2153_v50 = vrot.slane %v11472_v29, %v12929_v15 }
  0x65   : > { %v2157_v54 = vrot.slane %v1764_v31, %v12929_v15  ;;  %v2161_v56 = vrot.slane %v11473_v32, %v12929_v15  ;;  %v2165_v57 = vrot.slane %v1766_v33, %v12929_v15  ;;  %v2169_v51 = vrot.slane %v11474_v35, %v12929_v15 }
  0x66   : > { %v2173_v60 = vrot.slane %v1768_v37, %v12929_v15  ;;  %v2177_v58 = vrot.slane %v11475_v39, %v12929_v15  ;;  %v2181_v61 = vrot.slane %v1770_v41, %v12929_v15  ;;  %v2185_v62 = vrot.slane %v11476_v45, %v12929_v15 }
  0x67   : > { %7930 = vrot.lane.b32.xlu1 %v13090_v40, %s12862_s21  ;;  %7928 = vrot.lane.b32.xlu0 %v13097_v63, %s12862_s21  ;;  %v2189_v0 = vrot.slane %v1772_v46, %v12929_v15  ;;  %v2193_v6 = vrot.slane %v11477_v47, %v12929_v15  ;;  %v2197_v1 = vrot.slane %v1774_v48, %v12929_v15 }
  0x68   : > { %v2201_v3 = vrot.slane %v11478_v49, %v12929_v15  ;;  %v2205_v4 = vrot.slane %v1776_v38, %v12929_v15  ;;  %v2209_v7 = vrot.slane %v11479_v52, %v12929_v15  ;;  %v3395_v10 = vpack.i.b16 %v2149_v53, %v2149_v53 }
  0x69   : > { %v3402_v11 = vpack.i.b16 %v2153_v50, %v2153_v50  ;;  %v3409_v13 = vpack.i.b16 %v2157_v54, %v2157_v54  ;;  %v3416_v14 = vpack.i.b16 %v2161_v56, %v2161_v56  ;;  %v3423_v40 = vpack.i.b16 %v2165_v57, %v2165_v57  ;;  %v13194_v50 = vld [vmem:[%s12909_s19 + $0x24] sm:$0xf]  ;;  %v11441_v54 = vld.sshfl [vmem:[%s12909_s19 + $0x28] sm:$0x33 pattern:$0x75316420] }
  0x6a   : > { %v3400_v18 = vrot.slane %v3395_v10, %v12929_v15  ;;  %v3430_v63 = vpack.i.b16 %v2169_v51, %v2169_v51  ;;  %v3437_v19 = vpack.i.b16 %v2173_v60, %v2173_v60  ;;  %v3444_v12 = vpack.i.b16 %v2177_v58, %v2177_v58  ;;  %v13202_v58 = vld [vmem:[%s12909_s19 + $0x2c] sm:$0x1] }
  0x6b   : > { %8118 = vrot.lane.b32.xlu1 %v13084_v36, %s12861_s20  ;;  %8114 = vrot.lane.b32.xlu0 %v8031_v26, %s12861_s20  ;;  %v3407_v20 = vrot.slane %v3402_v11, %v12929_v15  ;;  %v3414_v21 = vrot.slane %v3409_v13, %v12929_v15  ;;  %v3421_v16 = vrot.slane %v3416_v14, %v12929_v15 }
  0x6c   : > { %v3428_v25 = vrot.slane %v3423_v40, %v12929_v15  ;;  %v3435_v23 = vrot.slane %v3430_v63, %v12929_v15  ;;  %v3442_v24 = vrot.slane %v3437_v19, %v12929_v15  ;;  %v3449_v8 = vrot.slane %v3444_v12, %v12929_v15 }
  0x6d   : > { %v3451_v42 = vpack.i.b16 %v2181_v61, %v2181_v61  ;;  %v3458_v27 = vpack.i.b16 %v2185_v62, %v2185_v62  ;;  %v3465_v28 = vpack.i.b16 %v2189_v0, %v2189_v0  ;;  %v3472_v36 = vpack.i.b16 %v2193_v6, %v2193_v6 }
  0x6e   : > { %v3479_v29 = vpack.i.b16 %v2197_v1, %v2197_v1  ;;  %v3486_v26 = vpack.i.b16 %v2201_v3, %v2201_v3  ;;  %v3493_v30 = vpack.i.b16 %v2205_v4, %v2205_v4  ;;  %v3500_v31 = vpack.i.b16 %v2209_v7, %v2209_v7 }
  0x6f   : > { %v3456_v32 = vrot.slane %v3451_v42, %v12929_v15  ;;  %v3463_v33 = vrot.slane %v3458_v27, %v12929_v15  ;;  %v3470_v34 = vrot.slane %v3465_v28, %v12929_v15  ;;  %v3477_v35 = vrot.slane %v3472_v36, %v12929_v15 }
  0x70   : > { %v3484_v37 = vrot.slane %v3479_v29, %v12929_v15  ;;  %v3491_v39 = vrot.slane %v3486_v26, %v12929_v15  ;;  %v3498_v17 = vrot.slane %v3493_v30, %v12929_v15  ;;  %v3505_v41 = vrot.slane %v3500_v31, %v12929_v15 }
  0x71   : > { %v5670_v45 = vcombine.low %v3400_v18, %v3407_v20  ;;  %v5671_v46 = vcombine.low %v3414_v21, %v3421_v16  ;;  %v5672_v47 = vcombine.low %v3428_v25, %v3435_v23  ;;  %v5673_v48 = vcombine.low %v3442_v24, %v3449_v8 }
  0x72   : > { %v5719_v49 = vcombine.low %v3456_v32, %v3463_v33  ;;  %v5720_v38 = vcombine.low %v3470_v34, %v3477_v35  ;;  %v5721_v52 = vcombine.low %v3484_v37, %v3491_v39  ;;  %v5722_v53 = vcombine.low %v3498_v17, %v3505_v41 }
  0x73   : > { %v5680_v56 = vrot.slane %v5670_v45, %v12904_v5  ;;  %v5687_v57 = vrot.slane %v5671_v46, %v12904_v5  ;;  %v5694_v51 = vrot.slane %v5672_v47, %v12904_v5  ;;  %v5701_v60 = vrot.slane %v5673_v48, %v12904_v5 }
  0x74   : > { %v5729_v61 = vrot.slane %v5719_v49, %v12904_v5  ;;  %v5736_v62 = vrot.slane %v5720_v38, %v12904_v5  ;;  %v5743_v0 = vrot.slane %v5721_v52, %v12904_v5  ;;  %v5750_v6 = vrot.slane %v5722_v53, %v12904_v5 }
  0x75   : > { %v5702_v1 = vcombine.low %v5680_v56, %v5687_v57  ;;  %v5703_v3 = vcombine.low %v5694_v51, %v5701_v60  ;;  %v518_v4 = vrot.slane %v13194_v50, %v12904_v5  ;;  %v543_v7 = vcombine.high %v11441_v54, %v11441_v54 }
  0x76   : > { %v5751_v10 = vcombine.low %v5729_v61, %v5736_v62  ;;  %v5752_v11 = vcombine.low %v5743_v0, %v5750_v6  ;;  %v13211_v13 = vrot.slane %v11441_v54, %v12904_v5  ;;  %v566_v14 = vrot.slane %v13202_v58, %v12904_v5 }
  0x77   : > { %v5710_v40 = vrot.slane %v5702_v1, %v12904_v5  ;;  %v5717_v18 = vrot.slane %v5703_v3, %v12904_v5  ;;  %v519_v63 = vcombine.high %v518_v4, %v518_v4  ;;  %v526_v19 = vrot.slane %v518_v4, %v12904_v5 }
  0x78   : > { %v5759_v12 = vrot.slane %v5751_v10, %v12904_v5  ;;  %v5766_v20 = vrot.slane %v5752_v11, %v12904_v5  ;;  %v13221_v21 = vrot.slane %v543_v7, %v12904_v5  ;;  %v13225_v16 = vcombine.high %v13211_v13, %v13211_v13 }
  0x79   : > { %v5718_v25 = vcombine.low %v5710_v40, %v5717_v18  ;;  %v533_v23 = vrot.slane %v519_v63, %v12904_v5  ;;  %v534_v24 = vcombine.high %v526_v19, %v526_v19  ;;  %v13229_v8 = vrot.slane %v566_v14, %v12904_v5 }
  0x7a   : > { %v5767_v42 = vcombine.low %v5759_v12, %v5766_v20  ;;  %v13233_v27 = vcombine.high %v13221_v21, %v13221_v21  ;;  %v1490_v28 = vunpack.i.h.s16 %v526_v19  ;;  %v1498_v36 = vunpack.i.h.s16 %v13211_v13 }
  0x7b   : > { %v7270_v29 = vshrl.u32 %v5718_v25, 16  ;;  %v7273_v26 = vshll.u32 %v5718_v25, 16  ;;  %v535_v30 = vcombine.high %v533_v23, %v533_v23  ;;  %v1492_v31 = vunpack.i.h.s16 %v533_v23 }
  0x7c   : > { %v7277_v32 = vshrl.u32 %v5767_v42, 16  ;;  %v7280_v33 = vshll.u32 %v5767_v42, 16  ;;  %v1494_v34 = vunpack.i.h.s16 %v534_v24  ;;  %v1500_v35 = vunpack.i.h.s16 %v13221_v21 }
  0x7d   : > { %v7272_v37 = vrot.slane %v7270_v29, 7  ;;  %v1496_v39 = vunpack.i.h.s16 %v535_v30  ;;  %v1502_v17 = vunpack.i.h.s16 %v13225_v16  ;;  %v1504_v41 = vunpack.i.h.s16 %v13233_v27 }
  0x7e   : > { %v7279_v45 = vrot.slane %v7277_v32, 7  ;;  %v1778_v46 = vpack.i.b16 %v1490_v28, %v1490_v28  ;;  %v11480_v47 = vpack.i.b16 %v533_v23, %v533_v23  ;;  %v1780_v48 = vpack.i.b16 %v1492_v31, %v1492_v31 }
  0x7f   : > { %v7275_v49 = vor.u32 %v7273_v26, %v7272_v37  ;;  %v11481_v38 = vpack.i.b16 %v534_v24, %v534_v24  ;;  %v1782_v52 = vpack.i.b16 %v1494_v34, %v1494_v34  ;;  %v11482_v53 = vpack.i.b16 %v535_v30, %v535_v30 }
  0x80   : > { %v7282_v54 = vor.u32 %v7280_v33, %v7279_v45  ;;  %v7567_v56 = vsel %vm13004_vm3, %v7279_v45, %v13093_v44  ;;  %v1784_v57 = vpack.i.b16 %v1496_v39, %v1496_v39  ;;  %v11483_v51 = vpack.i.b16 %v13211_v13, %v13211_v13 }
  0x81   : > { %v13247_v60 = vsel %vm13004_vm3, %v13071_v22, %v7275_v49  ;;  %v7640_v61 = vshll.u32 %v7567_v56, 16  ;;  %v8040_v62 = vrot.slane %v7567_v56, 1  ;;  %v1786_v0 = vpack.i.b16 %v1498_v36, %v1498_v36 }
  0x82   : > { %v13250_v6 = vsel %vm7238_vm0, %v7272_v37, %v7282_v54  ;;  %v7625_v1 = vshrl.u32 %v13247_v60, 16  ;;  %v7627_v3 = vshll.u32 %v13247_v60, 16  ;;  %v8037_v44 = vrot.slane %v13247_v60, 1 }
  0x83   : > { %v7632_v4 = vshll.u32 %v13250_v6, 16  ;;  %v7636_v7 = vshrl.u32 %v13250_v6, 16  ;;  %v7642_v10 = vrot.slane %v7640_v61, 1  ;;  %v8038_v22 = vrot.slane %v13250_v6, 1 }
  0x84   : > { %v7629_v11 = vrot.slane %v7627_v3, 1  ;;  %v11484_v13 = vpack.i.b16 %v13221_v21, %v13221_v21  ;;  %v1788_v14 = vpack.i.b16 %v1500_v35, %v1500_v35  ;;  %v11485_v40 = vpack.i.b16 %v13225_v16, %v13225_v16 }
  0x85   : > { %v7634_v18 = vrot.slane %v7632_v4, 1  ;;  %v8039_v63 = vsel %vm8026_vm2, %v8037_v44, %v8038_v22  ;;  %v8041_v19 = vsel %vm8026_vm2, %v8038_v22, %v8040_v62  ;;  %v1790_v12 = vpack.i.b16 %v1502_v17, %v1502_v17 }
  0x86   : > { %v7630_v20 = vor.u32 %v7629_v11, %v7625_v1  ;;  %v11486_v25 = vpack.i.b16 %v13233_v27, %v13233_v27  ;;  %v1792_v23 = vpack.i.b16 %v1504_v41, %v1504_v41  ;;  %v11487_v24 = vpack.i.b16 %v13229_v8, %v13229_v8 }
  0x87   : > { %v7638_v42 = vor.u32 %v7636_v7, %v7634_v18  ;;  %v2213_v21 = vrot.slane %v1778_v46, %v12929_v15  ;;  %v2217_v28 = vrot.slane %v11480_v47, %v12929_v15  ;;  %v2221_v16 = vrot.slane %v1780_v48, %v12929_v15 }
  0x88   : > { %v7635_v36 = vsel %vm7583_vm4, %v7630_v20, %v7634_v18  ;;  %v2225_v29 = vrot.slane %v11481_v38, %v12929_v15  ;;  %v2229_v26 = vrot.slane %v1782_v52, %v12929_v15  ;;  %v2233_v30 = vrot.slane %v11482_v53, %v12929_v15 }
  0x89   : > { %7932 = vrot.lane.b32.xlu0 %v7635_v36, %s12862_s21  ;;  %v7643_v27 = vsel %vm7583_vm4, %v7638_v42, %v7642_v10  ;;  %v2237_v8 = vrot.slane %v1784_v57, %v12929_v15  ;;  %v2241_v31 = vrot.slane %v11483_v51, %v12929_v15  ;;  %v2245_v32 = vrot.slane %v1786_v0, %v12929_v15 }
  0x8a   : > { %7934 = vrot.lane.b32.xlu1 %v7643_v27, %s12862_s21  ;;  %v2249_v33 = vrot.slane %v11484_v13, %v12929_v15  ;;  %v2253_v34 = vrot.slane %v1788_v14, %v12929_v15  ;;  %v2257_v35 = vrot.slane %v11485_v40, %v12929_v15  ;;  %v2261_v37 = vrot.slane %v1790_v12, %v12929_v15  ;;  %v11442_v27 = vld.sshfl [vmem:[%s12909_s19 + $0x34] sm:$0x33 pattern:$0x75316420] }
  0x8b   : > { %v2265_v39 = vrot.slane %v11486_v25, %v12929_v15  ;;  %v2269_v17 = vrot.slane %v1792_v23, %v12929_v15  ;;  %v2273_v41 = vrot.slane %v11487_v24, %v12929_v15  ;;  %v3507_v45 = vpack.i.b16 %v2213_v21, %v2213_v21 }
  0x8c   : > { %v3514_v46 = vpack.i.b16 %v2217_v28, %v2217_v28  ;;  %v3521_v47 = vpack.i.b16 %v2221_v16, %v2221_v16  ;;  %v3528_v48 = vpack.i.b16 %v2225_v29, %v2225_v29  ;;  %v3535_v49 = vpack.i.b16 %v2229_v26, %v2229_v26  ;;  %v13307_v16 = vld [vmem:[%s12909_s19 + $0x30] sm:$0xf] }
  0x8d   : > { %8120 = vrot.lane.b32.xlu0 %v8039_v63, %s12861_s20  ;;  %v3512_v38 = vrot.slane %v3507_v45, %v12929_v15  ;;  %v3542_v52 = vpack.i.b16 %v2233_v30, %v2233_v30  ;;  %v3549_v53 = vpack.i.b16 %v2237_v8, %v2237_v8  ;;  %v3556_v54 = vpack.i.b16 %v2241_v31, %v2241_v31 }
  0x8e   : > { %8122 = vrot.lane.b32.xlu1 %v8041_v19, %s12861_s20  ;;  %v3519_v56 = vrot.slane %v3514_v46, %v12929_v15  ;;  %v3526_v57 = vrot.slane %v3521_v47, %v12929_v15  ;;  %v3533_v51 = vrot.slane %v3528_v48, %v12929_v15  ;;  %v3540_v61 = vrot.slane %v3535_v49, %v12929_v15  ;;  %v13324_v49 = vld [vmem:[%s12909_s19 + $0x38] sm:$0x1] }
  0x8f   : > { %v3547_v62 = vrot.slane %v3542_v52, %v12929_v15  ;;  %v3554_v0 = vrot.slane %v3549_v53, %v12929_v15  ;;  %v3561_v1 = vrot.slane %v3556_v54, %v12929_v15  ;;  %v3563_v3 = vpack.i.b16 %v2245_v32, %v2245_v32 }
  0x90   : > { %v3570_v44 = vpack.i.b16 %v2249_v33, %v2249_v33  ;;  %v3577_v4 = vpack.i.b16 %v2253_v34, %v2253_v34  ;;  %v3584_v7 = vpack.i.b16 %v2257_v35, %v2257_v35  ;;  %v3591_v10 = vpack.i.b16 %v2261_v37, %v2261_v37 }
  0x91   : > { %v3568_v22 = vrot.slane %v3563_v3, %v12929_v15  ;;  %v3598_v11 = vpack.i.b16 %v2265_v39, %v2265_v39  ;;  %v3605_v13 = vpack.i.b16 %v2269_v17, %v2269_v17  ;;  %v3612_v14 = vpack.i.b16 %v2273_v41, %v2273_v41 }
  0x92   : > { %v3575_v40 = vrot.slane %v3570_v44, %v12929_v15  ;;  %v3582_v18 = vrot.slane %v3577_v4, %v12929_v15  ;;  %v3589_v63 = vrot.slane %v3584_v7, %v12929_v15  ;;  %v3596_v19 = vrot.slane %v3591_v10, %v12929_v15 }
  0x93   : > { %v3603_v12 = vrot.slane %v3598_v11, %v12929_v15  ;;  %v3610_v20 = vrot.slane %v3605_v13, %v12929_v15  ;;  %v3617_v25 = vrot.slane %v3612_v14, %v12929_v15  ;;  %v5768_v23 = vcombine.low %v3512_v38, %v3519_v56 }
  0x94   : > { %v5769_v24 = vcombine.low %v3526_v57, %v3533_v51  ;;  %v5770_v42 = vcombine.low %v3540_v61, %v3547_v62  ;;  %v5771_v21 = vcombine.low %v3554_v0, %v3561_v1  ;;  %v5817_v28 = vcombine.low %v3568_v22, %v3575_v40 }
  0x95   : > { %v5778_v36 = vrot.slane %v5768_v23, %v12904_v5  ;;  %v5818_v29 = vcombine.low %v3582_v18, %v3589_v63  ;;  %v5819_v26 = vcombine.low %v3596_v19, %v3603_v12  ;;  %v5820_v30 = vcombine.low %v3610_v20, %v3617_v25 }
  0x96   : > { %v5785_v8 = vrot.slane %v5769_v24, %v12904_v5  ;;  %v5792_v31 = vrot.slane %v5770_v42, %v12904_v5  ;;  %v5799_v32 = vrot.slane %v5771_v21, %v12904_v5  ;;  %v5827_v33 = vrot.slane %v5817_v28, %v12904_v5 }
  0x97   : > { %v5834_v34 = vrot.slane %v5818_v29, %v12904_v5  ;;  %v5841_v35 = vrot.slane %v5819_v26, %v12904_v5  ;;  %v5848_v37 = vrot.slane %v5820_v30, %v12904_v5  ;;  %v580_v39 = vrot.slane %v13307_v16, %v12904_v5 }
  0x98   : > { %v5800_v17 = vcombine.low %v5778_v36, %v5785_v8  ;;  %v5801_v41 = vcombine.low %v5792_v31, %v5799_v32  ;;  %v605_v45 = vcombine.high %v11442_v27, %v11442_v27  ;;  %v13321_v46 = vrot.slane %v11442_v27, %v12904_v5 }
  0x99   : > { %v5849_v47 = vcombine.low %v5827_v33, %v5834_v34  ;;  %v5850_v48 = vcombine.low %v5841_v35, %v5848_v37  ;;  %v581_v38 = vcombine.high %v580_v39, %v580_v39  ;;  %v588_v52 = vrot.slane %v580_v39, %v12904_v5 }
  0x9a   : > { %v5808_v53 = vrot.slane %v5800_v17, %v12904_v5  ;;  %v5815_v54 = vrot.slane %v5801_v41, %v12904_v5  ;;  %v13330_v56 = vrot.slane %v605_v45, %v12904_v5  ;;  %v13334_v57 = vcombine.high %v13321_v46, %v13321_v46 }
  0x9b   : > { %v5857_v51 = vrot.slane %v5849_v47, %v12904_v5  ;;  %v5864_v61 = vrot.slane %v5850_v48, %v12904_v5  ;;  %v595_v62 = vrot.slane %v581_v38, %v12904_v5  ;;  %v596_v0 = vcombine.high %v588_v52, %v588_v52 }
  0x9c   : > { %v5816_v1 = vcombine.low %v5808_v53, %v5815_v54  ;;  %v13341_v3 = vcombine.high %v13330_v56, %v13330_v56  ;;  %v628_v44 = vrot.slane %v13324_v49, %v12904_v5  ;;  %v1506_v4 = vunpack.i.h.s16 %v588_v52 }
  0x9d   : > { %v5865_v7 = vcombine.low %v5857_v51, %v5864_v61  ;;  %v597_v10 = vcombine.high %v595_v62, %v595_v62  ;;  %v1508_v22 = vunpack.i.h.s16 %v595_v62  ;;  %v1510_v11 = vunpack.i.h.s16 %v596_v0 }
  0x9e   : > { %v7285_v13 = vshrl.u32 %v5816_v1, 16  ;;  %v7288_v14 = vshll.u32 %v5816_v1, 16  ;;  %v13346_v40 = vrot.slane %v628_v44, %v12904_v5  ;;  %v1514_v18 = vunpack.i.h.s16 %v13321_v46 }
  0x9f   : > { %v7292_v63 = vshrl.u32 %v5865_v7, 16  ;;  %v7295_v19 = vshll.u32 %v5865_v7, 16  ;;  %v1512_v12 = vunpack.i.h.s16 %v597_v10  ;;  %v1516_v20 = vunpack.i.h.s16 %v13330_v56 }
  0xa0   : > { %v7287_v25 = vrot.slane %v7285_v13, 7  ;;  %v1518_v23 = vunpack.i.h.s16 %v13334_v57  ;;  %v1520_v24 = vunpack.i.h.s16 %v13341_v3  ;;  %v1794_v42 = vpack.i.b16 %v1506_v4, %v1506_v4 }
  0xa1   : > { %v7294_v21 = vrot.slane %v7292_v63, 7  ;;  %v11488_v28 = vpack.i.b16 %v595_v62, %v595_v62  ;;  %v1796_v36 = vpack.i.b16 %v1508_v22, %v1508_v22  ;;  %v11489_v29 = vpack.i.b16 %v596_v0, %v596_v0 }
  0xa2   : > { %v7290_v26 = vor.u32 %v7288_v14, %v7287_v25  ;;  %v1798_v30 = vpack.i.b16 %v1510_v11, %v1510_v11  ;;  %v11490_v27 = vpack.i.b16 %v597_v10, %v597_v10  ;;  %v1800_v8 = vpack.i.b16 %v1512_v12, %v1512_v12 }
  0xa3   : > { %v7297_v31 = vor.u32 %v7295_v19, %v7294_v21  ;;  %v7568_v32 = vsel %vm13004_vm3, %v7294_v21, %v13202_v58  ;;  %v11491_v33 = vpack.i.b16 %v13321_v46, %v13321_v46  ;;  %v1802_v34 = vpack.i.b16 %v1514_v18, %v1514_v18 }
  0xa4   : > { %v13360_v35 = vsel %vm13004_vm3, %v13194_v50, %v7290_v26  ;;  %v7660_v37 = vshll.u32 %v7568_v32, 16  ;;  %v8045_v39 = vrot.slane %v7568_v32, 1  ;;  %v11492_v17 = vpack.i.b16 %v13330_v56, %v13330_v56 }
  0xa5   : > { %v13365_v41 = vsel %vm7238_vm0, %v7287_v25, %v7297_v31  ;;  %v7645_v45 = vshrl.u32 %v13360_v35, 16  ;;  %v7647_v58 = vshll.u32 %v13360_v35, 16  ;;  %v8042_v46 = vrot.slane %v13360_v35, 1 }
  0xa6   : > { %v7652_v47 = vshll.u32 %v13365_v41, 16  ;;  %v7656_v48 = vshrl.u32 %v13365_v41, 16  ;;  %v7662_v50 = vrot.slane %v7660_v37, 1  ;;  %v8043_v38 = vrot.slane %v13365_v41, 1 }
  0xa7   : > { %v7649_v52 = vrot.slane %v7647_v58, 1  ;;  %v1804_v53 = vpack.i.b16 %v1516_v20, %v1516_v20  ;;  %v11493_v54 = vpack.i.b16 %v13334_v57, %v13334_v57  ;;  %v1806_v56 = vpack.i.b16 %v1518_v23, %v1518_v23 }
  0xa8   : > { %v7654_v51 = vrot.slane %v7652_v47, 1  ;;  %v8044_v61 = vsel %vm8026_vm2, %v8042_v46, %v8043_v38  ;;  %v8046_v62 = vsel %vm8026_vm2, %v8043_v38, %v8045_v39  ;;  %v11494_v0 = vpack.i.b16 %v13341_v3, %v13341_v3 }
  0xa9   : > { %v7650_v1 = vor.u32 %v7649_v52, %v7645_v45  ;;  %v1808_v44 = vpack.i.b16 %v1520_v24, %v1520_v24  ;;  %v11495_v4 = vpack.i.b16 %v13346_v40, %v13346_v40  ;;  %v2277_v7 = vrot.slane %v1794_v42, %v12929_v15 }
  0xaa   : > { %v7658_v10 = vor.u32 %v7656_v48, %v7654_v51  ;;  %v2281_v22 = vrot.slane %v11488_v28, %v12929_v15  ;;  %v2285_v57 = vrot.slane %v1796_v36, %v12929_v15  ;;  %v2289_v11 = vrot.slane %v11489_v29, %v12929_v15 }
  0xab   : > { %v7655_v13 = vsel %vm7583_vm4, %v7650_v1, %v7654_v51  ;;  %v2293_v14 = vrot.slane %v1798_v30, %v12929_v15  ;;  %v2297_v3 = vrot.slane %v11490_v27, %v12929_v15  ;;  %v2301_v18 = vrot.slane %v1800_v8, %v12929_v15 }
  0xac   : > { %7936 = vrot.lane.b32.xlu0 %v7655_v13, %s12862_s21  ;;  %v7663_v40 = vsel %vm7583_vm4, %v7658_v10, %v7662_v50  ;;  %v2305_v63 = vrot.slane %v11491_v33, %v12929_v15  ;;  %v2309_v19 = vrot.slane %v1802_v34, %v12929_v15  ;;  %v2313_v12 = vrot.slane %v11492_v17, %v12929_v15 }
  0xad   : > { %7938 = vrot.lane.b32.xlu1 %v7663_v40, %s12862_s21  ;;  %v2317_v20 = vrot.slane %v1804_v53, %v12929_v15  ;;  %v2321_v25 = vrot.slane %v11493_v54, %v12929_v15  ;;  %v2325_v23 = vrot.slane %v1806_v56, %v12929_v15  ;;  %v2329_v24 = vrot.slane %v11494_v0, %v12929_v15 }
  0xae   : > { %v2333_v42 = vrot.slane %v1808_v44, %v12929_v15  ;;  %v2337_v21 = vrot.slane %v11495_v4, %v12929_v15  ;;  %v3619_v28 = vpack.i.b16 %v2277_v7, %v2277_v7  ;;  %v3626_v36 = vpack.i.b16 %v2281_v22, %v2281_v22 }
  0xaf   : > { %v3633_v29 = vpack.i.b16 %v2285_v57, %v2285_v57  ;;  %v3640_v26 = vpack.i.b16 %v2289_v11, %v2289_v11  ;;  %v3647_v30 = vpack.i.b16 %v2293_v14, %v2293_v14  ;;  %v3654_v27 = vpack.i.b16 %v2297_v3, %v2297_v3  ;;  %v13420_v14 = vld [vmem:[%s12909_s19 + $0x3c] sm:$0xf] }
  0xb0   : > { %8124 = vrot.lane.b32.xlu0 %v8044_v61, %s12861_s20  ;;  %v3624_v8 = vrot.slane %v3619_v28, %v12929_v15  ;;  %v3631_v31 = vrot.slane %v3626_v36, %v12929_v15  ;;  %v3661_v32 = vpack.i.b16 %v2301_v18, %v2301_v18  ;;  %v3668_v33 = vpack.i.b16 %v2305_v63, %v2305_v63 }
  0xb1   : > { %8126 = vrot.lane.b32.xlu1 %v8046_v62, %s12861_s20  ;;  %v3638_v34 = vrot.slane %v3633_v29, %v12929_v15  ;;  %v3645_v37 = vrot.slane %v3640_v26, %v12929_v15  ;;  %v3652_v39 = vrot.slane %v3647_v30, %v12929_v15  ;;  %v3659_v17 = vrot.slane %v3654_v27, %v12929_v15  ;;  %v13434_v26 = vld [vmem:[%s12909_s19 + $0x44] sm:$0x1] }
  0xb2   : > { %v3666_v45 = vrot.slane %v3661_v32, %v12929_v15  ;;  %v3673_v58 = vrot.slane %v3668_v33, %v12929_v15  ;;  %v3675_v46 = vpack.i.b16 %v2309_v19, %v2309_v19  ;;  %v3682_v47 = vpack.i.b16 %v2313_v12, %v2313_v12  ;;  %v11443_v19 = vld.sshfl [vmem:[%s12909_s19 + $0x40] sm:$0x33 pattern:$0x75316420] }
  0xb3   : > { %v3689_v48 = vpack.i.b16 %v2317_v20, %v2317_v20  ;;  %v3696_v50 = vpack.i.b16 %v2321_v25, %v2321_v25  ;;  %v3703_v38 = vpack.i.b16 %v2325_v23, %v2325_v23  ;;  %v3710_v52 = vpack.i.b16 %v2329_v24, %v2329_v24 }
  0xb4   : > { %v3680_v53 = vrot.slane %v3675_v46, %v12929_v15  ;;  %v3687_v54 = vrot.slane %v3682_v47, %v12929_v15  ;;  %v3717_v56 = vpack.i.b16 %v2333_v42, %v2333_v42  ;;  %v3724_v51 = vpack.i.b16 %v2337_v21, %v2337_v21 }
  0xb5   : > { %v3694_v61 = vrot.slane %v3689_v48, %v12929_v15  ;;  %v3701_v62 = vrot.slane %v3696_v50, %v12929_v15  ;;  %v3708_v0 = vrot.slane %v3703_v38, %v12929_v15  ;;  %v3715_v1 = vrot.slane %v3710_v52, %v12929_v15 }
  0xb6   : > { %v3722_v44 = vrot.slane %v3717_v56, %v12929_v15  ;;  %v3729_v4 = vrot.slane %v3724_v51, %v12929_v15  ;;  %v5866_v7 = vcombine.low %v3624_v8, %v3631_v31  ;;  %v5867_v10 = vcombine.low %v3638_v34, %v3645_v37 }
  0xb7   : > { %v5868_v22 = vcombine.low %v3652_v39, %v3659_v17  ;;  %v5869_v57 = vcombine.low %v3666_v45, %v3673_v58  ;;  %v5915_v11 = vcombine.low %v3680_v53, %v3687_v54  ;;  %v5916_v13 = vcombine.low %v3694_v61, %v3701_v62 }
  0xb8   : > { %v5876_v3 = vrot.slane %v5866_v7, %v12904_v5  ;;  %v5883_v18 = vrot.slane %v5867_v10, %v12904_v5  ;;  %v5917_v40 = vcombine.low %v3708_v0, %v3715_v1  ;;  %v5918_v63 = vcombine.low %v3722_v44, %v3729_v4 }
  0xb9   : > { %v5890_v12 = vrot.slane %v5868_v22, %v12904_v5  ;;  %v5897_v20 = vrot.slane %v5869_v57, %v12904_v5  ;;  %v5925_v25 = vrot.slane %v5915_v11, %v12904_v5  ;;  %v5932_v23 = vrot.slane %v5916_v13, %v12904_v5 }
  0xba   : > { %v5898_v24 = vcombine.low %v5876_v3, %v5883_v18  ;;  %v5939_v42 = vrot.slane %v5917_v40, %v12904_v5  ;;  %v5946_v21 = vrot.slane %v5918_v63, %v12904_v5  ;;  %v642_v28 = vrot.slane %v13420_v14, %v12904_v5 }
  0xbb   : > { %v5899_v36 = vcombine.low %v5890_v12, %v5897_v20  ;;  %v5947_v29 = vcombine.low %v5925_v25, %v5932_v23  ;;  %v667_v30 = vcombine.high %v11443_v19, %v11443_v19  ;;  %v13437_v27 = vrot.slane %v11443_v19, %v12904_v5 }
  0xbc   : > { %v5906_v8 = vrot.slane %v5898_v24, %v12904_v5  ;;  %v5948_v31 = vcombine.low %v5939_v42, %v5946_v21  ;;  %v643_v32 = vcombine.high %v642_v28, %v642_v28  ;;  %v650_v33 = vrot.slane %v642_v28, %v12904_v5 }
  0xbd   : > { %v5913_v34 = vrot.slane %v5899_v36, %v12904_v5  ;;  %v5955_v37 = vrot.slane %v5947_v29, %v12904_v5  ;;  %v13444_v39 = vrot.slane %v667_v30, %v12904_v5  ;;  %v13448_v17 = vcombine.high %v13437_v27, %v13437_v27 }
  0xbe   : > { %v5962_v45 = vrot.slane %v5948_v31, %v12904_v5  ;;  %v657_v58 = vrot.slane %v643_v32, %v12904_v5  ;;  %v658_v46 = vcombine.high %v650_v33, %v650_v33  ;;  %v690_v47 = vrot.slane %v13434_v26, %v12904_v5 }
  0xbf   : > { %v5914_v48 = vcombine.low %v5906_v8, %v5913_v34  ;;  %v13456_v50 = vcombine.high %v13444_v39, %v13444_v39  ;;  %v1522_v38 = vunpack.i.h.s16 %v650_v33  ;;  %v1530_v52 = vunpack.i.h.s16 %v13437_v27 }
  0xc0   : > { %v5963_v53 = vcombine.low %v5955_v37, %v5962_v45  ;;  %v659_v54 = vcombine.high %v657_v58, %v657_v58  ;;  %v13460_v56 = vrot.slane %v690_v47, %v12904_v5  ;;  %v1524_v51 = vunpack.i.h.s16 %v657_v58 }
  0xc1   : > { %v7300_v61 = vshrl.u32 %v5914_v48, 16  ;;  %v7303_v62 = vshll.u32 %v5914_v48, 16  ;;  %v1526_v0 = vunpack.i.h.s16 %v658_v46  ;;  %v1532_v1 = vunpack.i.h.s16 %v13444_v39 }
  0xc2   : > { %v7307_v44 = vshrl.u32 %v5963_v53, 16  ;;  %v7310_v4 = vshll.u32 %v5963_v53, 16  ;;  %v1528_v7 = vunpack.i.h.s16 %v659_v54  ;;  %v1534_v10 = vunpack.i.h.s16 %v13448_v17 }
  0xc3   : > { %v7302_v22 = vrot.slane %v7300_v61, 7  ;;  %v1536_v57 = vunpack.i.h.s16 %v13456_v50  ;;  %v1810_v11 = vpack.i.b16 %v1522_v38, %v1522_v38  ;;  %v11496_v13 = vpack.i.b16 %v657_v58, %v657_v58 }
  0xc4   : > { %v7309_v3 = vrot.slane %v7307_v44, 7  ;;  %v1812_v18 = vpack.i.b16 %v1524_v51, %v1524_v51  ;;  %v11497_v40 = vpack.i.b16 %v658_v46, %v658_v46  ;;  %v1814_v63 = vpack.i.b16 %v1526_v0, %v1526_v0 }
  0xc5   : > { %v7305_v19 = vor.u32 %v7303_v62, %v7302_v22  ;;  %v11498_v12 = vpack.i.b16 %v659_v54, %v659_v54  ;;  %v1816_v20 = vpack.i.b16 %v1528_v7, %v1528_v7  ;;  %v11499_v25 = vpack.i.b16 %v13437_v27, %v13437_v27 }
  0xc6   : > { %v7312_v23 = vor.u32 %v7310_v4, %v7309_v3  ;;  %v7569_v24 = vsel %vm13004_vm3, %v7309_v3, %v13324_v49  ;;  %v1818_v42 = vpack.i.b16 %v1530_v52, %v1530_v52  ;;  %v11500_v21 = vpack.i.b16 %v13444_v39, %v13444_v39 }
  0xc7   : > { %v13475_v28 = vsel %vm13004_vm3, %v13307_v16, %v7305_v19  ;;  %v7680_v36 = vshll.u32 %v7569_v24, 16  ;;  %v8050_v29 = vrot.slane %v7569_v24, 1  ;;  %v1820_v30 = vpack.i.b16 %v1532_v1, %v1532_v1 }
  0xc8   : > { %v13478_v8 = vsel %vm7238_vm0, %v7302_v22, %v7312_v23  ;;  %v7665_v27 = vshrl.u32 %v13475_v28, 16  ;;  %v7667_v31 = vshll.u32 %v13475_v28, 16  ;;  %v8047_v49 = vrot.slane %v13475_v28, 1 }
  0xc9   : > { %v7672_v32 = vshll.u32 %v13478_v8, 16  ;;  %v7676_v33 = vshrl.u32 %v13478_v8, 16  ;;  %v7682_v34 = vrot.slane %v7680_v36, 1  ;;  %v8048_v16 = vrot.slane %v13478_v8, 1 }
  0xca   : > { %v7669_v37 = vrot.slane %v7667_v31, 1  ;;  %v11501_v39 = vpack.i.b16 %v13448_v17, %v13448_v17  ;;  %v1822_v45 = vpack.i.b16 %v1534_v10, %v1534_v10  ;;  %v11502_v58 = vpack.i.b16 %v13456_v50, %v13456_v50 }
  0xcb   : > { %v7674_v46 = vrot.slane %v7672_v32, 1  ;;  %v8049_v47 = vsel %vm8026_vm2, %v8047_v49, %v8048_v16  ;;  %v8051_v48 = vsel %vm8026_vm2, %v8048_v16, %v8050_v29  ;;  %v1824_v38 = vpack.i.b16 %v1536_v57, %v1536_v57 }
  0xcc   : > { %v7670_v52 = vor.u32 %v7669_v37, %v7665_v27  ;;  %v11503_v53 = vpack.i.b16 %v13460_v56, %v13460_v56  ;;  %v2341_v54 = vrot.slane %v1810_v11, %v12929_v15  ;;  %v2345_v51 = vrot.slane %v11496_v13, %v12929_v15 }
  0xcd   : > { %v7678_v61 = vor.u32 %v7676_v33, %v7674_v46  ;;  %v2349_v17 = vrot.slane %v1812_v18, %v12929_v15  ;;  %v2353_v62 = vrot.slane %v11497_v40, %v12929_v15  ;;  %v2357_v50 = vrot.slane %v1814_v63, %v12929_v15 }
  0xce   : > { %v7675_v0 = vsel %vm7583_vm4, %v7670_v52, %v7674_v46  ;;  %v2361_v1 = vrot.slane %v11498_v12, %v12929_v15  ;;  %v2365_v44 = vrot.slane %v1816_v20, %v12929_v15  ;;  %v2369_v4 = vrot.slane %v11499_v25, %v12929_v15 }
  0xcf   : > { %7940 = vrot.lane.b32.xlu0 %v7675_v0, %s12862_s21  ;;  %v7683_v56 = vsel %vm7583_vm4, %v7678_v61, %v7682_v34  ;;  %v2373_v7 = vrot.slane %v1818_v42, %v12929_v15  ;;  %v2377_v10 = vrot.slane %v11500_v21, %v12929_v15  ;;  %v2381_v22 = vrot.slane %v1820_v30, %v12929_v15 }
  0xd0   : > { %7942 = vrot.lane.b32.xlu1 %v7683_v56, %s12862_s21  ;;  %v2385_v57 = vrot.slane %v11501_v39, %v12929_v15  ;;  %v2389_v11 = vrot.slane %v1822_v45, %v12929_v15  ;;  %v2393_v13 = vrot.slane %v11502_v58, %v12929_v15  ;;  %v2397_v3 = vrot.slane %v1824_v38, %v12929_v15  ;;  %v11444_v56 = vld.sshfl [vmem:[%s12909_s19 + $0x4c] sm:$0x33 pattern:$0x75316420] }
  0xd1   : > { %v2401_v18 = vrot.slane %v11503_v53, %v12929_v15  ;;  %v3731_v40 = vpack.i.b16 %v2341_v54, %v2341_v54  ;;  %v3738_v63 = vpack.i.b16 %v2345_v51, %v2345_v51  ;;  %v3745_v19 = vpack.i.b16 %v2349_v17, %v2349_v17 }
  0xd2   : > { %v3752_v12 = vpack.i.b16 %v2353_v62, %v2353_v62  ;;  %v3759_v20 = vpack.i.b16 %v2357_v50, %v2357_v50  ;;  %v3766_v25 = vpack.i.b16 %v2361_v1, %v2361_v1  ;;  %v3773_v23 = vpack.i.b16 %v2365_v44, %v2365_v44 }
  0xd3   : > { %8128 = vrot.lane.b32.xlu0 %v8049_v47, %s12861_s20  ;;  %v3736_v24 = vrot.slane %v3731_v40, %v12929_v15  ;;  %v3743_v42 = vrot.slane %v3738_v63, %v12929_v15  ;;  %v3750_v21 = vrot.slane %v3745_v19, %v12929_v15  ;;  %v3780_v36 = vpack.i.b16 %v2369_v4, %v2369_v4  ;;  %v13533_v4 = vld [vmem:[%s12909_s19 + $0x48] sm:$0xf] }
  0xd4   : > { %8130 = vrot.lane.b32.xlu1 %v8051_v48, %s12861_s20  ;;  %v3757_v29 = vrot.slane %v3752_v12, %v12929_v15  ;;  %v3764_v30 = vrot.slane %v3759_v20, %v12929_v15  ;;  %v3771_v27 = vrot.slane %v3766_v25, %v12929_v15  ;;  %v3778_v31 = vrot.slane %v3773_v23, %v12929_v15 }
  0xd5   : > { %v3785_v49 = vrot.slane %v3780_v36, %v12929_v15  ;;  %v3787_v32 = vpack.i.b16 %v2373_v7, %v2373_v7  ;;  %v3794_v33 = vpack.i.b16 %v2377_v10, %v2377_v10  ;;  %v3801_v34 = vpack.i.b16 %v2381_v22, %v2381_v22 }
  0xd6   : > { %v3808_v16 = vpack.i.b16 %v2385_v57, %v2385_v57  ;;  %v3815_v37 = vpack.i.b16 %v2389_v11, %v2389_v11  ;;  %v3822_v39 = vpack.i.b16 %v2393_v13, %v2393_v13  ;;  %v3829_v45 = vpack.i.b16 %v2397_v3, %v2397_v3  ;;  %v13540_v11 = vld [vmem:[%s12909_s19 + $0x50] sm:$0x1] }
  0xd7   : > { %v3792_v58 = vrot.slane %v3787_v32, %v12929_v15  ;;  %v3799_v46 = vrot.slane %v3794_v33, %v12929_v15  ;;  %v3806_v47 = vrot.slane %v3801_v34, %v12929_v15  ;;  %v3836_v48 = vpack.i.b16 %v2401_v18, %v2401_v18 }
  0xd8   : > { %v3813_v38 = vrot.slane %v3808_v16, %v12929_v15  ;;  %v3820_v52 = vrot.slane %v3815_v37, %v12929_v15  ;;  %v3827_v53 = vrot.slane %v3822_v39, %v12929_v15  ;;  %v3834_v54 = vrot.slane %v3829_v45, %v12929_v15 }
  0xd9   : > { %v3841_v51 = vrot.slane %v3836_v48, %v12929_v15  ;;  %v5964_v61 = vcombine.low %v3736_v24, %v3743_v42  ;;  %v5965_v17 = vcombine.low %v3750_v21, %v3757_v29  ;;  %v5966_v62 = vcombine.low %v3764_v30, %v3771_v27 }
  0xda   : > { %v5967_v50 = vcombine.low %v3778_v31, %v3785_v49  ;;  %v6013_v0 = vcombine.low %v3792_v58, %v3799_v46  ;;  %v6014_v1 = vcombine.low %v3806_v47, %v3813_v38  ;;  %v6015_v44 = vcombine.low %v3820_v52, %v3827_v53 }
  0xdb   : > { %v5974_v7 = vrot.slane %v5964_v61, %v12904_v5  ;;  %v5981_v10 = vrot.slane %v5965_v17, %v12904_v5  ;;  %v5988_v22 = vrot.slane %v5966_v62, %v12904_v5  ;;  %v6016_v57 = vcombine.low %v3834_v54, %v3841_v51 }
  0xdc   : > { %v5995_v13 = vrot.slane %v5967_v50, %v12904_v5  ;;  %v6023_v3 = vrot.slane %v6013_v0, %v12904_v5  ;;  %v6030_v18 = vrot.slane %v6014_v1, %v12904_v5  ;;  %v6037_v40 = vrot.slane %v6015_v44, %v12904_v5 }
  0xdd   : > { %v5996_v63 = vcombine.low %v5974_v7, %v5981_v10  ;;  %v6044_v19 = vrot.slane %v6016_v57, %v12904_v5  ;;  %v704_v12 = vrot.slane %v13533_v4, %v12904_v5  ;;  %v729_v20 = vcombine.high %v11444_v56, %v11444_v56 }
  0xde   : > { %v5997_v25 = vcombine.low %v5988_v22, %v5995_v13  ;;  %v6045_v23 = vcombine.low %v6023_v3, %v6030_v18  ;;  %v13550_v24 = vrot.slane %v11444_v56, %v12904_v5  ;;  %v752_v42 = vrot.slane %v13540_v11, %v12904_v5 }
  0xdf   : > { %v6004_v21 = vrot.slane %v5996_v63, %v12904_v5  ;;  %v6046_v36 = vcombine.low %v6037_v40, %v6044_v19  ;;  %v705_v29 = vcombine.high %v704_v12, %v704_v12  ;;  %v712_v30 = vrot.slane %v704_v12, %v12904_v5 }
  0xe0   : > { %v6011_v27 = vrot.slane %v5997_v25, %v12904_v5  ;;  %v6053_v31 = vrot.slane %v6045_v23, %v12904_v5  ;;  %v13559_v49 = vrot.slane %v729_v20, %v12904_v5  ;;  %v13563_v32 = vcombine.high %v13550_v24, %v13550_v24 }
  0xe1   : > { %v6060_v33 = vrot.slane %v6046_v36, %v12904_v5  ;;  %v719_v34 = vrot.slane %v705_v29, %v12904_v5  ;;  %v720_v16 = vcombine.high %v712_v30, %v712_v30  ;;  %v13568_v37 = vrot.slane %v752_v42, %v12904_v5 }
  0xe2   : > { %v6012_v39 = vcombine.low %v6004_v21, %v6011_v27  ;;  %v13572_v45 = vcombine.high %v13559_v49, %v13559_v49  ;;  %v1538_v58 = vunpack.i.h.s16 %v712_v30  ;;  %v1546_v46 = vunpack.i.h.s16 %v13550_v24 }
  0xe3   : > { %v6061_v47 = vcombine.low %v6053_v31, %v6060_v33  ;;  %v721_v48 = vcombine.high %v719_v34, %v719_v34  ;;  %v1540_v38 = vunpack.i.h.s16 %v719_v34  ;;  %v1542_v52 = vunpack.i.h.s16 %v720_v16 }
  0xe4   : > { %v7315_v53 = vshrl.u32 %v6012_v39, 16  ;;  %v7318_v54 = vshll.u32 %v6012_v39, 16  ;;  %v1548_v51 = vunpack.i.h.s16 %v13559_v49  ;;  %v1550_v61 = vunpack.i.h.s16 %v13563_v32 }
  0xe5   : > { %v7322_v17 = vshrl.u32 %v6061_v47, 16  ;;  %v7325_v62 = vshll.u32 %v6061_v47, 16  ;;  %v1544_v50 = vunpack.i.h.s16 %v721_v48  ;;  %v1552_v0 = vunpack.i.h.s16 %v13572_v45 }
  0xe6   : > { %v7317_v1 = vrot.slane %v7315_v53, 7  ;;  %v1826_v44 = vpack.i.b16 %v1538_v58, %v1538_v58  ;;  %v11504_v56 = vpack.i.b16 %v719_v34, %v719_v34  ;;  %v1828_v7 = vpack.i.b16 %v1540_v38, %v1540_v38 }
  0xe7   : > { %v7324_v10 = vrot.slane %v7322_v17, 7  ;;  %v11505_v22 = vpack.i.b16 %v720_v16, %v720_v16  ;;  %v1830_v57 = vpack.i.b16 %v1542_v52, %v1542_v52  ;;  %v11506_v13 = vpack.i.b16 %v721_v48, %v721_v48 }
  0xe8   : > { %v7320_v3 = vor.u32 %v7318_v54, %v7317_v1  ;;  %v1832_v18 = vpack.i.b16 %v1544_v50, %v1544_v50  ;;  %v11507_v40 = vpack.i.b16 %v13550_v24, %v13550_v24  ;;  %v1834_v63 = vpack.i.b16 %v1546_v46, %v1546_v46 }
  0xe9   : > { %v7327_v19 = vor.u32 %v7325_v62, %v7324_v10  ;;  %v7570_v12 = vsel %vm13004_vm3, %v7324_v10, %v13434_v26  ;;  %v11508_v20 = vpack.i.b16 %v13559_v49, %v13559_v49  ;;  %v1836_v25 = vpack.i.b16 %v1548_v51, %v1548_v51 }
  0xea   : > { %v13588_v23 = vsel %vm13004_vm3, %v13420_v14, %v7320_v3  ;;  %v7700_v42 = vshll.u32 %v7570_v12, 16  ;;  %v8055_v21 = vrot.slane %v7570_v12, 1  ;;  %v11509_v24 = vpack.i.b16 %v13563_v32, %v13563_v32 }
  0xeb   : > { %v13593_v36 = vsel %vm7238_vm0, %v7317_v1, %v7327_v19  ;;  %v7685_v29 = vshrl.u32 %v13588_v23, 16  ;;  %v7687_v26 = vshll.u32 %v13588_v23, 16  ;;  %v8052_v30 = vrot.slane %v13588_v23, 1 }
  0xec   : > { %v7692_v27 = vshll.u32 %v13593_v36, 16  ;;  %v7696_v31 = vshrl.u32 %v13593_v36, 16  ;;  %v7702_v14 = vrot.slane %v7700_v42, 1  ;;  %v8053_v49 = vrot.slane %v13593_v36, 1 }
  0xed   : > { %v7689_v33 = vrot.slane %v7687_v26, 1  ;;  %v1838_v34 = vpack.i.b16 %v1550_v61, %v1550_v61  ;;  %v11510_v32 = vpack.i.b16 %v13572_v45, %v13572_v45  ;;  %v1840_v16 = vpack.i.b16 %v1552_v0, %v1552_v0 }
  0xee   : > { %v7694_v39 = vrot.slane %v7692_v27, 1  ;;  %v8054_v58 = vsel %vm8026_vm2, %v8052_v30, %v8053_v49  ;;  %v8056_v46 = vsel %vm8026_vm2, %v8053_v49, %v8055_v21  ;;  %v11511_v47 = vpack.i.b16 %v13568_v37, %v13568_v37 }
  0xef   : > { %v7690_v48 = vor.u32 %v7689_v33, %v7685_v29  ;;  %v2405_v38 = vrot.slane %v1826_v44, %v12929_v15  ;;  %v2409_v52 = vrot.slane %v11504_v56, %v12929_v15  ;;  %v2413_v53 = vrot.slane %v1828_v7, %v12929_v15 }
  0xf0   : > { %v7698_v54 = vor.u32 %v7696_v31, %v7694_v39  ;;  %v2417_v51 = vrot.slane %v11505_v22, %v12929_v15  ;;  %v2421_v45 = vrot.slane %v1830_v57, %v12929_v15  ;;  %v2425_v61 = vrot.slane %v11506_v13, %v12929_v15 }
  0xf1   : > { %v7695_v17 = vsel %vm7583_vm4, %v7690_v48, %v7694_v39  ;;  %v2429_v62 = vrot.slane %v1832_v18, %v12929_v15  ;;  %v2433_v37 = vrot.slane %v11507_v40, %v12929_v15  ;;  %v2437_v50 = vrot.slane %v1834_v63, %v12929_v15 }
  0xf2   : > { %7944 = vrot.lane.b32.xlu0 %v7695_v17, %s12862_s21  ;;  %v7703_v0 = vsel %vm7583_vm4, %v7698_v54, %v7702_v14  ;;  %v2441_v1 = vrot.slane %v11508_v20, %v12929_v15  ;;  %v2445_v44 = vrot.slane %v1836_v25, %v12929_v15  ;;  %v2449_v56 = vrot.slane %v11509_v24, %v12929_v15 }
  0xf3   : > { %7946 = vrot.lane.b32.xlu1 %v7703_v0, %s12862_s21  ;;  %v2453_v7 = vrot.slane %v1838_v34, %v12929_v15  ;;  %v2457_v10 = vrot.slane %v11510_v32, %v12929_v15  ;;  %v2461_v22 = vrot.slane %v1840_v16, %v12929_v15  ;;  %v2465_v57 = vrot.slane %v11511_v47, %v12929_v15 }
  0xf4   : > { %v3843_v13 = vpack.i.b16 %v2405_v38, %v2405_v38  ;;  %v3850_v3 = vpack.i.b16 %v2409_v52, %v2409_v52  ;;  %v3857_v18 = vpack.i.b16 %v2413_v53, %v2413_v53  ;;  %v3864_v40 = vpack.i.b16 %v2417_v51, %v2417_v51 }
  0xf5   : > { %v3871_v63 = vpack.i.b16 %v2421_v45, %v2421_v45  ;;  %v3878_v19 = vpack.i.b16 %v2425_v61, %v2425_v61  ;;  %v3885_v12 = vpack.i.b16 %v2429_v62, %v2429_v62  ;;  %v3892_v20 = vpack.i.b16 %v2433_v37, %v2433_v37 }
  0xf6   : > { %8132 = vrot.lane.b32.xlu0 %v8054_v58, %s12861_s20  ;;  %v3848_v25 = vrot.slane %v3843_v13, %v12929_v15  ;;  %v3855_v42 = vrot.slane %v3850_v3, %v12929_v15  ;;  %v3862_v21 = vrot.slane %v3857_v18, %v12929_v15  ;;  %v3869_v24 = vrot.slane %v3864_v40, %v12929_v15 }
  0xf7   : > { %8134 = vrot.lane.b32.xlu1 %v8056_v46, %s12861_s20  ;;  %v3876_v29 = vrot.slane %v3871_v63, %v12929_v15  ;;  %v3883_v26 = vrot.slane %v3878_v19, %v12929_v15  ;;  %v3890_v30 = vrot.slane %v3885_v12, %v12929_v15  ;;  %v3897_v27 = vrot.slane %v3892_v20, %v12929_v15 }
  0xf8   : > { %v3899_v31 = vpack.i.b16 %v2437_v50, %v2437_v50  ;;  %v3906_v14 = vpack.i.b16 %v2441_v1, %v2441_v1  ;;  %v3913_v49 = vpack.i.b16 %v2445_v44, %v2445_v44  ;;  %v3920_v33 = vpack.i.b16 %v2449_v56, %v2449_v56  ;;  %v13646_v1 = vld [vmem:[%s12909_s19 + $0x54] sm:$0xf]  ;;  %v11445_v44 = vld.sshfl [vmem:[%s12909_s19 + $0x58] sm:$0x33 pattern:$0x75316420] }
  0xf9   : > { %v3927_v34 = vpack.i.b16 %v2453_v7, %v2453_v7  ;;  %v3934_v32 = vpack.i.b16 %v2457_v10, %v2457_v10  ;;  %v3941_v16 = vpack.i.b16 %v2461_v22, %v2461_v22  ;;  %v3948_v39 = vpack.i.b16 %v2465_v57, %v2465_v57  ;;  %v13654_v57 = vld [vmem:[%s12909_s19 + $0x5c] sm:$0x1] }
  0xfa   : > { %v3904_v58 = vrot.slane %v3899_v31, %v12929_v15  ;;  %v3911_v46 = vrot.slane %v3906_v14, %v12929_v15  ;;  %v3918_v47 = vrot.slane %v3913_v49, %v12929_v15  ;;  %v3925_v48 = vrot.slane %v3920_v33, %v12929_v15 }
  0xfb   : > { %v3932_v38 = vrot.slane %v3927_v34, %v12929_v15  ;;  %v3939_v52 = vrot.slane %v3934_v32, %v12929_v15  ;;  %v3946_v53 = vrot.slane %v3941_v16, %v12929_v15  ;;  %v3953_v54 = vrot.slane %v3948_v39, %v12929_v15 }
  0xfc   : > { %v6062_v51 = vcombine.low %v3848_v25, %v3855_v42  ;;  %v6063_v45 = vcombine.low %v3862_v21, %v3869_v24  ;;  %v6064_v61 = vcombine.low %v3876_v29, %v3883_v26  ;;  %v6065_v17 = vcombine.low %v3890_v30, %v3897_v27 }
  0xfd   : > { %v6111_v62 = vcombine.low %v3904_v58, %v3911_v46  ;;  %v6112_v37 = vcombine.low %v3918_v47, %v3925_v48  ;;  %v6113_v50 = vcombine.low %v3932_v38, %v3939_v52  ;;  %v6114_v0 = vcombine.low %v3946_v53, %v3953_v54 }
  0xfe   : > { %v6072_v56 = vrot.slane %v6062_v51, %v12904_v5  ;;  %v6079_v7 = vrot.slane %v6063_v45, %v12904_v5  ;;  %v6086_v10 = vrot.slane %v6064_v61, %v12904_v5  ;;  %v6093_v22 = vrot.slane %v6065_v17, %v12904_v5 }
  0xff   : > { %v6121_v13 = vrot.slane %v6111_v62, %v12904_v5  ;;  %v6128_v3 = vrot.slane %v6112_v37, %v12904_v5  ;;  %v6135_v18 = vrot.slane %v6113_v50, %v12904_v5  ;;  %v6142_v40 = vrot.slane %v6114_v0, %v12904_v5 }
 0x100   : > { %v6094_v63 = vcombine.low %v6072_v56, %v6079_v7  ;;  %v6095_v19 = vcombine.low %v6086_v10, %v6093_v22  ;;  %v766_v12 = vrot.slane %v13646_v1, %v12904_v5  ;;  %v791_v20 = vcombine.high %v11445_v44, %v11445_v44 }
 0x101   : > { %v6143_v25 = vcombine.low %v6121_v13, %v6128_v3  ;;  %v6144_v42 = vcombine.low %v6135_v18, %v6142_v40  ;;  %v13663_v21 = vrot.slane %v11445_v44, %v12904_v5  ;;  %v814_v24 = vrot.slane %v13654_v57, %v12904_v5 }
 0x102   : > { %v6102_v29 = vrot.slane %v6094_v63, %v12904_v5  ;;  %v6109_v26 = vrot.slane %v6095_v19, %v12904_v5  ;;  %v767_v30 = vcombine.high %v766_v12, %v766_v12  ;;  %v774_v27 = vrot.slane %v766_v12, %v12904_v5 }
 0x103   : > { %v6151_v31 = vrot.slane %v6143_v25, %v12904_v5  ;;  %v6158_v14 = vrot.slane %v6144_v42, %v12904_v5  ;;  %v13673_v49 = vrot.slane %v791_v20, %v12904_v5  ;;  %v13677_v33 = vcombine.high %v13663_v21, %v13663_v21 }
 0x104   : > { %v6110_v34 = vcombine.low %v6102_v29, %v6109_v26  ;;  %v781_v32 = vrot.slane %v767_v30, %v12904_v5  ;;  %v782_v16 = vcombine.high %v774_v27, %v774_v27  ;;  %v13681_v39 = vrot.slane %v814_v24, %v12904_v5 }
 0x105   : > { %v6159_v58 = vcombine.low %v6151_v31, %v6158_v14  ;;  %v13685_v46 = vcombine.high %v13673_v49, %v13673_v49  ;;  %v1554_v47 = vunpack.i.h.s16 %v774_v27  ;;  %v1562_v48 = vunpack.i.h.s16 %v13663_v21 }
 0x106   : > { %v7330_v38 = vshrl.u32 %v6110_v34, 16  ;;  %v7333_v52 = vshll.u32 %v6110_v34, 16  ;;  %v783_v53 = vcombine.high %v781_v32, %v781_v32  ;;  %v1556_v54 = vunpack.i.h.s16 %v781_v32 }
 0x107   : > { %v7337_v51 = vshrl.u32 %v6159_v58, 16  ;;  %v7340_v45 = vshll.u32 %v6159_v58, 16  ;;  %v1558_v61 = vunpack.i.h.s16 %v782_v16  ;;  %v1564_v17 = vunpack.i.h.s16 %v13673_v49 }
 0x108   : > { %v7332_v62 = vrot.slane %v7330_v38, 7  ;;  %v1560_v37 = vunpack.i.h.s16 %v783_v53  ;;  %v1566_v50 = vunpack.i.h.s16 %v13677_v33  ;;  %v1568_v0 = vunpack.i.h.s16 %v13685_v46 }
 0x109   : > { %v7339_v44 = vrot.slane %v7337_v51, 7  ;;  %v1842_v56 = vpack.i.b16 %v1554_v47, %v1554_v47  ;;  %v11512_v7 = vpack.i.b16 %v781_v32, %v781_v32  ;;  %v1844_v10 = vpack.i.b16 %v1556_v54, %v1556_v54 }
 0x10a   : > { %v7335_v22 = vor.u32 %v7333_v52, %v7332_v62  ;;  %v11513_v13 = vpack.i.b16 %v782_v16, %v782_v16  ;;  %v1846_v3 = vpack.i.b16 %v1558_v61, %v1558_v61  ;;  %v11514_v18 = vpack.i.b16 %v783_v53, %v783_v53 }
 0x10b   : > { %v7342_v40 = vor.u32 %v7340_v45, %v7339_v44  ;;  %v7571_v63 = vsel %vm13004_vm3, %v7339_v44, %v13540_v11  ;;  %v1848_v19 = vpack.i.b16 %v1560_v37, %v1560_v37  ;;  %v11515_v12 = vpack.i.b16 %v13663_v21, %v13663_v21 }
 0x10c   : > { %v13699_v20 = vsel %vm13004_vm3, %v13533_v4, %v7335_v22  ;;  %v7720_v25 = vshll.u32 %v7571_v63, 16  ;;  %v8060_v42 = vrot.slane %v7571_v63, 1  ;;  %v1850_v24 = vpack.i.b16 %v1562_v48, %v1562_v48 }
 0x10d   : > { %v13702_v29 = vsel %vm7238_vm0, %v7332_v62, %v7342_v40  ;;  %v7705_v26 = vshrl.u32 %v13699_v20, 16  ;;  %v7707_v30 = vshll.u32 %v13699_v20, 16  ;;  %v8057_v11 = vrot.slane %v13699_v20, 1 }
 0x10e   : > { %v7712_v27 = vshll.u32 %v13702_v29, 16  ;;  %v7716_v21 = vshrl.u32 %v13702_v29, 16  ;;  %v7722_v31 = vrot.slane %v7720_v25, 1  ;;  %v8058_v4 = vrot.slane %v13702_v29, 1 }
 0x10f   : > { %v7709_v14 = vrot.slane %v7707_v30, 1  ;;  %v11516_v34 = vpack.i.b16 %v13673_v49, %v13673_v49  ;;  %v1852_v32 = vpack.i.b16 %v1564_v17, %v1564_v17  ;;  %v11517_v16 = vpack.i.b16 %v13677_v33, %v13677_v33 }
 0x110   : > { %v7714_v58 = vrot.slane %v7712_v27, 1  ;;  %v8059_v47 = vsel %vm8026_vm2, %v8057_v11, %v8058_v4  ;;  %v8061_v48 = vsel %vm8026_vm2, %v8058_v4, %v8060_v42  ;;  %v1854_v38 = vpack.i.b16 %v1566_v50, %v1566_v50 }
 0x111   : > { %v7710_v52 = vor.u32 %v7709_v14, %v7705_v26  ;;  %v11518_v53 = vpack.i.b16 %v13685_v46, %v13685_v46  ;;  %v1856_v54 = vpack.i.b16 %v1568_v0, %v1568_v0  ;;  %v11519_v51 = vpack.i.b16 %v13681_v39, %v13681_v39 }
 0x112   : > { %v7718_v45 = vor.u32 %v7716_v21, %v7714_v58  ;;  %v2469_v49 = vrot.slane %v1842_v56, %v12929_v15  ;;  %v2473_v61 = vrot.slane %v11512_v7, %v12929_v15  ;;  %v2477_v33 = vrot.slane %v1844_v10, %v12929_v15 }
 0x113   : > { %v7715_v17 = vsel %vm7583_vm4, %v7710_v52, %v7714_v58  ;;  %v2481_v62 = vrot.slane %v11513_v13, %v12929_v15  ;;  %v2485_v37 = vrot.slane %v1846_v3, %v12929_v15  ;;  %v2489_v50 = vrot.slane %v11514_v18, %v12929_v15 }
 0x114   : > { %7948 = vrot.lane.b32.xlu0 %v7715_v17, %s12862_s21  ;;  %v7723_v46 = vsel %vm7583_vm4, %v7718_v45, %v7722_v31  ;;  %v2493_v39 = vrot.slane %v1848_v19, %v12929_v15  ;;  %v2497_v0 = vrot.slane %v11515_v12, %v12929_v15  ;;  %v2501_v44 = vrot.slane %v1850_v24, %v12929_v15 }
 0x115   : > { %7950 = vrot.lane.b32.xlu1 %v7723_v46, %s12862_s21  ;;  %v2505_v56 = vrot.slane %v11516_v34, %v12929_v15  ;;  %v2509_v7 = vrot.slane %v1852_v32, %v12929_v15  ;;  %v2513_v10 = vrot.slane %v11517_v16, %v12929_v15  ;;  %v2517_v22 = vrot.slane %v1854_v38, %v12929_v15 }
 0x116   : > { %v2521_v13 = vrot.slane %v11518_v53, %v12929_v15  ;;  %v2525_v3 = vrot.slane %v1856_v54, %v12929_v15  ;;  %v2529_v18 = vrot.slane %v11519_v51, %v12929_v15  ;;  %v3955_v40 = vpack.i.b16 %v2469_v49, %v2469_v49 }
 0x117   : > { %v3962_v63 = vpack.i.b16 %v2473_v61, %v2473_v61  ;;  %v3969_v19 = vpack.i.b16 %v2477_v33, %v2477_v33  ;;  %v3976_v12 = vpack.i.b16 %v2481_v62, %v2481_v62  ;;  %v3983_v25 = vpack.i.b16 %v2485_v37, %v2485_v37 }
 0x118   : > { %8136 = vrot.lane.b32.xlu0 %v8059_v47, %s12861_s20  ;;  %v3960_v42 = vrot.slane %v3955_v40, %v12929_v15  ;;  %v3990_v24 = vpack.i.b16 %v2489_v50, %v2489_v50  ;;  %v3997_v26 = vpack.i.b16 %v2493_v39, %v2493_v39  ;;  %v4004_v30 = vpack.i.b16 %v2497_v0, %v2497_v0 }
 0x119   : > { %8138 = vrot.lane.b32.xlu1 %v8061_v48, %s12861_s20  ;;  %v3967_v11 = vrot.slane %v3962_v63, %v12929_v15  ;;  %v3974_v27 = vrot.slane %v3969_v19, %v12929_v15  ;;  %v3981_v21 = vrot.slane %v3976_v12, %v12929_v15  ;;  %v3988_v31 = vrot.slane %v3983_v25, %v12929_v15 }
 0x11a   : > { %v3995_v4 = vrot.slane %v3990_v24, %v12929_v15  ;;  %v4002_v14 = vrot.slane %v3997_v26, %v12929_v15  ;;  %v4009_v34 = vrot.slane %v4004_v30, %v12929_v15  ;;  %v4011_v32 = vpack.i.b16 %v2501_v44, %v2501_v44  ;;  %v13759_v44 = vld [vmem:[%s12909_s19 + $0x60] sm:$0xf] }
 0x11b   : > { %v4018_v16 = vpack.i.b16 %v2505_v56, %v2505_v56  ;;  %v4025_v58 = vpack.i.b16 %v2509_v7, %v2509_v7  ;;  %v4032_v47 = vpack.i.b16 %v2513_v10, %v2513_v10  ;;  %v4039_v38 = vpack.i.b16 %v2517_v22, %v2517_v22 }
 0x11c   : > { %v4016_v48 = vrot.slane %v4011_v32, %v12929_v15  ;;  %v4046_v52 = vpack.i.b16 %v2521_v13, %v2521_v13  ;;  %v4053_v53 = vpack.i.b16 %v2525_v3, %v2525_v3  ;;  %v4060_v54 = vpack.i.b16 %v2529_v18, %v2529_v18  ;;  %v11446_v13 = vld.sshfl [vmem:[%s12909_s19 + $0x64] sm:$0x33 pattern:$0x75316420] }
 0x11d   : > { %v4023_v51 = vrot.slane %v4018_v16, %v12929_v15  ;;  %v4030_v45 = vrot.slane %v4025_v58, %v12929_v15  ;;  %v4037_v49 = vrot.slane %v4032_v47, %v12929_v15  ;;  %v4044_v61 = vrot.slane %v4039_v38, %v12929_v15 }
 0x11e   : > { %v4051_v33 = vrot.slane %v4046_v52, %v12929_v15  ;;  %v4058_v17 = vrot.slane %v4053_v53, %v12929_v15  ;;  %v4065_v62 = vrot.slane %v4060_v54, %v12929_v15  ;;  %v6160_v37 = vcombine.low %v3960_v42, %v3967_v11 }
 0x11f   : > { %v6161_v50 = vcombine.low %v3974_v27, %v3981_v21  ;;  %v6162_v46 = vcombine.low %v3988_v31, %v3995_v4  ;;  %v6163_v39 = vcombine.low %v4002_v14, %v4009_v34  ;;  %v6209_v0 = vcombine.low %v4016_v48, %v4023_v51  ;;  %v13776_v31 = vld [vmem:[%s12909_s19 + $0x68] sm:$0x1] }
 0x120   : > { %v6170_v56 = vrot.slane %v6160_v37, %v12904_v5  ;;  %v6210_v7 = vcombine.low %v4030_v45, %v4037_v49  ;;  %v6211_v10 = vcombine.low %v4044_v61, %v4051_v33  ;;  %v6212_v22 = vcombine.low %v4058_v17, %v4065_v62 }
 0x121   : > { %v6177_v3 = vrot.slane %v6161_v50, %v12904_v5  ;;  %v6184_v18 = vrot.slane %v6162_v46, %v12904_v5  ;;  %v6191_v40 = vrot.slane %v6163_v39, %v12904_v5  ;;  %v6219_v63 = vrot.slane %v6209_v0, %v12904_v5 }
 0x122   : > { %v6226_v19 = vrot.slane %v6210_v7, %v12904_v5  ;;  %v6233_v12 = vrot.slane %v6211_v10, %v12904_v5  ;;  %v6240_v25 = vrot.slane %v6212_v22, %v12904_v5  ;;  %v828_v42 = vrot.slane %v13759_v44, %v12904_v5 }
 0x123   : > { %v6192_v24 = vcombine.low %v6170_v56, %v6177_v3  ;;  %v6193_v26 = vcombine.low %v6184_v18, %v6191_v40  ;;  %v853_v30 = vcombine.high %v11446_v13, %v11446_v13  ;;  %v13773_v11 = vrot.slane %v11446_v13, %v12904_v5 }
 0x124   : > { %v6241_v27 = vcombine.low %v6219_v63, %v6226_v19  ;;  %v6242_v21 = vcombine.low %v6233_v12, %v6240_v25  ;;  %v829_v4 = vcombine.high %v828_v42, %v828_v42  ;;  %v836_v14 = vrot.slane %v828_v42, %v12904_v5 }
 0x125   : > { %v6200_v34 = vrot.slane %v6192_v24, %v12904_v5  ;;  %v6207_v32 = vrot.slane %v6193_v26, %v12904_v5  ;;  %v13782_v16 = vrot.slane %v853_v30, %v12904_v5  ;;  %v13786_v58 = vcombine.high %v13773_v11, %v13773_v11 }
 0x126   : > { %v6249_v47 = vrot.slane %v6241_v27, %v12904_v5  ;;  %v6256_v38 = vrot.slane %v6242_v21, %v12904_v5  ;;  %v843_v48 = vrot.slane %v829_v4, %v12904_v5  ;;  %v844_v52 = vcombine.high %v836_v14, %v836_v14 }
 0x127   : > { %v6208_v53 = vcombine.low %v6200_v34, %v6207_v32  ;;  %v13793_v54 = vcombine.high %v13782_v16, %v13782_v16  ;;  %v876_v51 = vrot.slane %v13776_v31, %v12904_v5  ;;  %v1570_v45 = vunpack.i.h.s16 %v836_v14 }
 0x128   : > { %v6257_v49 = vcombine.low %v6249_v47, %v6256_v38  ;;  %v845_v61 = vcombine.high %v843_v48, %v843_v48  ;;  %v1572_v33 = vunpack.i.h.s16 %v843_v48  ;;  %v1574_v17 = vunpack.i.h.s16 %v844_v52 }
 0x129   : > { %v7345_v62 = vshrl.u32 %v6208_v53, 16  ;;  %v7348_v37 = vshll.u32 %v6208_v53, 16  ;;  %v13798_v50 = vrot.slane %v876_v51, %v12904_v5  ;;  %v1578_v46 = vunpack.i.h.s16 %v13773_v11 }
 0x12a   : > { %v7352_v39 = vshrl.u32 %v6257_v49, 16  ;;  %v7355_v0 = vshll.u32 %v6257_v49, 16  ;;  %v1576_v56 = vunpack.i.h.s16 %v845_v61  ;;  %v1580_v7 = vunpack.i.h.s16 %v13782_v16 }
 0x12b   : > { %v7347_v10 = vrot.slane %v7345_v62, 7  ;;  %v1582_v22 = vunpack.i.h.s16 %v13786_v58  ;;  %v1584_v13 = vunpack.i.h.s16 %v13793_v54  ;;  %v1858_v3 = vpack.i.b16 %v1570_v45, %v1570_v45 }
 0x12c   : > { %v7354_v18 = vrot.slane %v7352_v39, 7  ;;  %v11520_v40 = vpack.i.b16 %v843_v48, %v843_v48  ;;  %v1860_v63 = vpack.i.b16 %v1572_v33, %v1572_v33  ;;  %v11521_v19 = vpack.i.b16 %v844_v52, %v844_v52 }
 0x12d   : > { %v7350_v12 = vor.u32 %v7348_v37, %v7347_v10  ;;  %v1862_v25 = vpack.i.b16 %v1574_v17, %v1574_v17  ;;  %v11522_v42 = vpack.i.b16 %v845_v61, %v845_v61  ;;  %v1864_v24 = vpack.i.b16 %v1576_v56, %v1576_v56 }
 0x12e   : > { %v7357_v26 = vor.u32 %v7355_v0, %v7354_v18  ;;  %v7572_v30 = vsel %vm13004_vm3, %v7354_v18, %v13654_v57  ;;  %v11523_v27 = vpack.i.b16 %v13773_v11, %v13773_v11  ;;  %v1866_v21 = vpack.i.b16 %v1578_v46, %v1578_v46  ;;  %v13831_v46 = vpop.permute.xlu1 %8116 }
 0x12f   : > { %v13812_v4 = vsel %vm13004_vm3, %v13646_v1, %v7350_v12  ;;  %v7740_v14 = vshll.u32 %v7572_v30, 16  ;;  %v8065_v34 = vrot.slane %v7572_v30, 1  ;;  %v11524_v32 = vpack.i.b16 %v13782_v16, %v13782_v16  ;;  %v13840_v12 = vpop.permute.xlu0 %8112 }
 0x130   : > { %v13817_v47 = vsel %vm7238_vm0, %v7347_v10, %v7357_v26  ;;  %v7725_v38 = vshrl.u32 %v13812_v4, 16  ;;  %v7727_v57 = vshll.u32 %v13812_v4, 16  ;;  %v8062_v11 = vrot.slane %v13812_v4, 1 }
 0x131   : > { %v7732_v48 = vshll.u32 %v13817_v47, 16  ;;  %v7736_v52 = vshrl.u32 %v13817_v47, 16  ;;  %v7742_v1 = vrot.slane %v7740_v14, 1  ;;  %v8063_v53 = vrot.slane %v13817_v47, 1 }
 0x132   : > { %v7729_v51 = vrot.slane %v7727_v57, 1  ;;  %v1868_v45 = vpack.i.b16 %v1580_v7, %v1580_v7  ;;  %v11525_v16 = vpack.i.b16 %v13786_v58, %v13786_v58  ;;  %v1870_v49 = vpack.i.b16 %v1582_v22, %v1582_v22 }
 0x133   : > { %v7734_v61 = vrot.slane %v7732_v48, 1  ;;  %v8064_v33 = vsel %vm8026_vm2, %v8062_v11, %v8063_v53  ;;  %v8066_v17 = vsel %vm8026_vm2, %v8063_v53, %v8065_v34  ;;  %v11526_v62 = vpack.i.b16 %v13793_v54, %v13793_v54  ;;  %v7927_v11 = vpop.permute.xlu1 %7926 }
 0x134   : > { %v7730_v37 = vor.u32 %v7729_v51, %v7725_v38  ;;  %v1872_v39 = vpack.i.b16 %v1584_v13, %v1584_v13  ;;  %v11527_v0 = vpack.i.b16 %v13798_v50, %v13798_v50  ;;  %v2533_v56 = vrot.slane %v1858_v3, %v12929_v15 }
 0x135   : > { %v7738_v7 = vor.u32 %v7736_v52, %v7734_v61  ;;  %v2537_v58 = vrot.slane %v11520_v40, %v12929_v15  ;;  %v2541_v10 = vrot.slane %v1860_v63, %v12929_v15  ;;  %v2545_v22 = vrot.slane %v11521_v19, %v12929_v15 }
 0x136   : > { %v7735_v18 = vsel %vm7583_vm4, %v7730_v37, %v7734_v61  ;;  %v2549_v54 = vrot.slane %v1862_v25, %v12929_v15  ;;  %v2553_v13 = vrot.slane %v11522_v42, %v12929_v15  ;;  %v2557_v26 = vrot.slane %v1864_v24, %v12929_v15  ;;  %v7925_v61 = vpop.permute.xlu0 %7924 }
 0x137   : > { %7952 = vrot.lane.b32.xlu0 %v7735_v18, %s12862_s21  ;;  %v7743_v50 = vsel %vm7583_vm4, %v7738_v7, %v7742_v1  ;;  %v2561_v3 = vrot.slane %v11523_v27, %v12929_v15  ;;  %v2565_v40 = vrot.slane %v1866_v21, %v12929_v15  ;;  %v2569_v63 = vrot.slane %v11524_v32, %v12929_v15 }
 0x138   : > { %7954 = vrot.lane.b32.xlu1 %v7743_v50, %s12862_s21  ;;  %v2573_v19 = vrot.slane %v1868_v45, %v12929_v15  ;;  %v2577_v25 = vrot.slane %v11525_v16, %v12929_v15  ;;  %v2581_v42 = vrot.slane %v1870_v49, %v12929_v15  ;;  %v2585_v24 = vrot.slane %v11526_v62, %v12929_v15 }
 0x139   : > { %v2589_v30 = vrot.slane %v1872_v39, %v12929_v15  ;;  %v2593_v14 = vrot.slane %v11527_v0, %v12929_v15  ;;  %v4067_v34 = vpack.i.b16 %v2533_v56, %v2533_v56  ;;  %v4074_v27 = vpack.i.b16 %v2537_v58, %v2537_v58 }
 0x13a   : > { %v4081_v38 = vpack.i.b16 %v2541_v10, %v2541_v10  ;;  %v4088_v21 = vpack.i.b16 %v2545_v22, %v2545_v22  ;;  %v4095_v57 = vpack.i.b16 %v2549_v54, %v2549_v54  ;;  %v4102_v32 = vpack.i.b16 %v2553_v13, %v2553_v13 }
 0x13b   : > { %8140 = vrot.lane.b32.xlu0 %v8064_v33, %s12861_s20  ;;  %v4072_v48 = vrot.slane %v4067_v34, %v12929_v15  ;;  %v4079_v52 = vrot.slane %v4074_v27, %v12929_v15  ;;  %v4109_v1 = vpack.i.b16 %v2557_v26, %v2557_v26  ;;  %v4116_v53 = vpack.i.b16 %v2561_v3, %v2561_v3  ;;  %v7931_v3 = vpop.permute.xlu1 %7930 }
 0x13c   : > { %8142 = vrot.lane.b32.xlu1 %v8066_v17, %s12861_s20  ;;  %v4086_v51 = vrot.slane %v4081_v38, %v12929_v15  ;;  %v4093_v45 = vrot.slane %v4088_v21, %v12929_v15  ;;  %v4100_v16 = vrot.slane %v4095_v57, %v12929_v15  ;;  %v4107_v49 = vrot.slane %v4102_v32, %v12929_v15 }
 0x13d   : > { %v4114_v62 = vrot.slane %v4109_v1, %v12929_v15  ;;  %v4121_v33 = vrot.slane %v4116_v53, %v12929_v15  ;;  %v4123_v37 = vpack.i.b16 %v2565_v40, %v2565_v40  ;;  %v4130_v39 = vpack.i.b16 %v2569_v63, %v2569_v63 }
 0x13e   : > { %v4137_v0 = vpack.i.b16 %v2573_v19, %v2573_v19  ;;  %v4144_v56 = vpack.i.b16 %v2577_v25, %v2577_v25  ;;  %v4151_v7 = vpack.i.b16 %v2581_v42, %v2581_v42  ;;  %v4158_v58 = vpack.i.b16 %v2585_v24, %v2585_v24 }
 0x13f   : > { %v4128_v17 = vrot.slane %v4123_v37, %v12929_v15  ;;  %v4135_v10 = vrot.slane %v4130_v39, %v12929_v15  ;;  %v4165_v22 = vpack.i.b16 %v2589_v30, %v2589_v30  ;;  %v4172_v18 = vpack.i.b16 %v2593_v14, %v2593_v14  ;;  %v7929_v14 = vpop.permute.xlu0 %7928  ;;  %v12833_v37 = vld [vmem:[%s16969_s1 + $0x8] sm:$0x3f]   ;;  %v12834_v39 = vld [vmem:[%s16969_s1] sm:$0x3f]  }
 0x140   : > { %v4142_v54 = vrot.slane %v4137_v0, %v12929_v15  ;;  %v4149_v13 = vrot.slane %v4144_v56, %v12929_v15  ;;  %v4156_v26 = vrot.slane %v4151_v7, %v12929_v15  ;;  %v4163_v50 = vrot.slane %v4158_v58, %v12929_v15  ;;  %v8119_v0 = vpop.permute.xlu1 %8118  ;;  %12653 = vmatprep.subr.msk.bf16.mxu1 %vm8393_vm8, %v12833_v37 }
 0x141   : > { %v4170_v40 = vrot.slane %v4165_v22, %v12929_v15  ;;  %v4177_v63 = vrot.slane %v4172_v18, %v12929_v15  ;;  %v6258_v19 = vcombine.low %v4072_v48, %v4079_v52  ;;  %v6259_v25 = vcombine.low %v4086_v51, %v4093_v45  ;;  %12654 = vmatprep.subr.msk.bf16.mxu0 %vm8393_vm8, %v12834_v39 }
 0x142   : > { %v6260_v42 = vcombine.low %v4100_v16, %v4107_v49  ;;  %v6261_v24 = vcombine.low %v4114_v62, %v4121_v33  ;;  %v6307_v34 = vcombine.low %v4128_v17, %v4135_v10  ;;  %v6308_v30 = vcombine.low %v4142_v54, %v4149_v13  ;;  %v13904_v10 = vld [vmem:[%s12909_s19 + $0x6c] sm:$0xf]  ;;  %v11447_v13 = vld.sshfl [vmem:[%s12909_s19 + $0x70] sm:$0x33 pattern:$0x75316420] }
 0x143   : > { %v6268_v27 = vrot.slane %v6258_v19, %v12904_v5  ;;  %v6275_v38 = vrot.slane %v6259_v25, %v12904_v5  ;;  %v6309_v21 = vcombine.low %v4156_v26, %v4163_v50  ;;  %v6310_v57 = vcombine.low %v4170_v40, %v4177_v63  ;;  %v8115_v17 = vpop.permute.xlu0 %8114  ;;  %v13925_v63 = vld [vmem:[%s12909_s19 + $0x74] sm:$0x1] }
 0x144   : > { %v6282_v32 = vrot.slane %v6260_v42, %v12904_v5  ;;  %v6289_v1 = vrot.slane %v6261_v24, %v12904_v5  ;;  %v6317_v53 = vrot.slane %v6307_v34, %v12904_v5  ;;  %v6324_v48 = vrot.slane %v6308_v30, %v12904_v5 }
 0x145   : > { %v6290_v52 = vcombine.low %v6268_v27, %v6275_v38  ;;  %v6331_v51 = vrot.slane %v6309_v21, %v12904_v5  ;;  %v6338_v45 = vrot.slane %v6310_v57, %v12904_v5  ;;  %v8184_v62 = vsel %vm8180_vm5, %v13126_v9, %v7927_v11  ;;  %v12835_v9 = vld [vmem:[%s16969_s1 + $0x10] sm:$0x3f]  }
 0x146   : > { %v6291_v16 = vcombine.low %v6282_v32, %v6289_v1  ;;  %v6339_v49 = vcombine.low %v6317_v53, %v6324_v48  ;;  %v8182_v33 = vsel %vm8180_vm5, %v13123_v2, %v7925_v61  ;;  %v8188_v58 = vsel %vm8180_vm5, %v13016_v59, %v7931_v3 }
 0x147   : > { %v6298_v56 = vrot.slane %v6290_v52, %v12904_v5  ;;  %v6340_v7 = vcombine.low %v6331_v51, %v6338_v45  ;;  %v8251_v61 = vsel %vm8249_vm6, %v8182_v33, %v13840_v12  ;;  %v8186_v18 = vsel %vm8180_vm5, %v13012_v55, %v7929_v14 }
 0x148   : > { %v6305_v2 = vrot.slane %v6291_v16, %v12904_v5  ;;  %v6347_v11 = vrot.slane %v6339_v49, %v12904_v5  ;;  %12137 = vmatprep.mubr.msk.bf16.mxu0 %vm8328_vm7, %v8251_v61  ;;  %v13911_v54 = vsel %vm8249_vm6, %v8188_v58, %v8119_v0  ;;  %v13916_v59 = vsel %vm8249_vm6, %v8186_v18, %v13831_v46 }
 0x149   : > { %v6354_v22 = vrot.slane %v6340_v7, %v12904_v5  ;;  %v8395_v26 = vsel %vm8393_vm8, %v12833_v37, 0  ;;  %v8952_v50 = vsel %vm8393_vm8, %v12834_v39, 0  ;;  %v8253_v55 = vsel %vm8249_vm6, %v8184_v62, %v8115_v17  ;;  %12007 = vmatprep.mubr.msk.bf16.mxu1 %vm8328_vm7, %v13916_v59 }
 0x14a   : > { %v6306_v12 = vcombine.low %v6298_v56, %v6305_v2  ;;  %12006 = vmatpush3.bf16.msra.mxu1 %v8395_v26  ;;  %12136 = vmatpush3.bf16.msra.mxu0 %v8952_v50  ;;  %v9555_v40 = vsel %vm8393_vm8, %v12835_v9, 0  ;;  %v890_v46 = vrot.slane %v13904_v10, %v12904_v5  ;;  %v915_v42 = vcombine.high %v11447_v13, %v11447_v13 }
 0x14b   : > { %v6355_v3 = vcombine.low %v6347_v11, %v6354_v22  ;;  %12655 = vmatprep.subr.msk.bf16.mxu1 %vm8393_vm8, %v12834_v39  ;;  %v13933_v24 = vrot.slane %v11447_v13, %v12904_v5  ;;  %12656 = vmatprep.subr.msk.bf16.mxu0 %vm8393_vm8, %v12835_v9  ;;  %v938_v32 = vrot.slane %v13925_v63, %v12904_v5 }
 0x14c   : > { %v7360_v19 = vshrl.u32 %v6306_v12, 16  ;;  %v7363_v25 = vshll.u32 %v6306_v12, 16  ;;  %v891_v14 = vcombine.high %v890_v46, %v890_v46  ;;  %v898_v27 = vrot.slane %v890_v46, %v12904_v5 }
 0x14d   : > { %v7367_v34 = vshrl.u32 %v6355_v3, 16  ;;  %v7370_v30 = vshll.u32 %v6355_v3, 16  ;;  %12008 = vmatmul.mubr.msk.bf16.vlgmr.msra.gmra.mrb[0].mxu1 %vm8328_vm7, %v13911_v54  ;;  %12138 = vmatmul.mubr.msk.bf16.vlgmr.msra.gmra.mrb[0].mxu0 %vm8328_vm7, %v8253_v55  ;;  %v13941_v21 = vrot.slane %v915_v42, %v12904_v5  ;;  %v13945_v57 = vcombine.high %v13933_v24, %v13933_v24 }
 0x14e   : > { %v7362_v38 = vrot.slane %v7360_v19, 7  ;;  %12396 = vmatpush3.bf16.msra.mxu1 %v8952_v50  ;;  %12266 = vmatpush3.bf16.msra.mxu0 %v9555_v40  ;;  %v905_v53 = vrot.slane %v891_v14, %v12904_v5  ;;  %v906_v48 = vcombine.high %v898_v27, %v898_v27  ;;  %v1586_v52 = vunpack.i.h.s16 %v898_v27 }
 0x14f   : > { %v7369_v1 = vrot.slane %v7367_v34, 7  ;;  %12011 = vmatprep.mubr.msk.bf16.mxu1 %vm8328_vm7, %v13916_v59  ;;  %12141 = vmatprep.mubr.msk.bf16.mxu0 %vm8328_vm7, %v13916_v59  ;;  %v13956_v45 = vcombine.high %v13941_v21, %v13941_v21  ;;  %v13959_v16 = vrot.slane %v938_v32, %v12904_v5  ;;  %v1594_v49 = vunpack.i.h.s16 %v13933_v24 }
 0x150   : > { %v7365_v51 = vor.u32 %v7363_v25, %v7362_v38  ;;  %v907_v37 = vcombine.high %v905_v53, %v905_v53  ;;  %v1588_v39 = vunpack.i.h.s16 %v905_v53  ;;  %v1590_v9 = vunpack.i.h.s16 %v906_v48 }
 0x151   : > { %v7372_v62 = vor.u32 %v7370_v30, %v7369_v1  ;;  %v7573_v33 = vsel %vm13004_vm3, %v7369_v1, %v13776_v31  ;;  %v1596_v12 = vunpack.i.h.s16 %v13941_v21  ;;  %v1598_v26 = vunpack.i.h.s16 %v13945_v57 }
 0x152   : > { %v13968_v0 = vsel %vm13004_vm3, %v13759_v44, %v7365_v51  ;;  %v7760_v56 = vshll.u32 %v7573_v33, 16  ;;  %v8070_v7 = vrot.slane %v7573_v33, 1  ;;  %v1592_v13 = vunpack.i.h.s16 %v907_v37 }
 0x153   : > { %v13971_v2 = vsel %vm7238_vm0, %v7362_v38, %v7372_v62  ;;  %v7745_v11 = vshrl.u32 %v13968_v0, 16  ;;  %v7747_v61 = vshll.u32 %v13968_v0, 16  ;;  %v8067_v58 = vrot.slane %v13968_v0, 1 }
 0x154   : > { %v7752_v31 = vshll.u32 %v13971_v2, 16  ;;  %v7756_v17 = vshrl.u32 %v13971_v2, 16  ;;  %v7762_v22 = vrot.slane %v7760_v56, 1  ;;  %v8068_v44 = vrot.slane %v13971_v2, 1 }
 0x155   : > { %v7749_v18 = vrot.slane %v7747_v61, 1  ;;  %v1600_v40 = vunpack.i.h.s16 %v13956_v45  ;;  %12012 = vmatmul.mubr.msk.bf16.gmra.mrb[4].mxu1 %vm8328_vm7, %v13911_v54  ;;  %12142 = vmatmul.mubr.msk.bf16.gmra.mrb[4].mxu0 %vm8328_vm7, %v13911_v54  ;;  %v1874_v19 = vpack.i.b16 %v1586_v52, %v1586_v52  ;;  %v11528_v25 = vpack.i.b16 %v905_v53, %v905_v53 }
 0x156   : > { %v7754_v50 = vrot.slane %v7752_v31, 1  ;;  %v8069_v3 = vsel %vm8026_vm2, %v8067_v58, %v8068_v44  ;;  %v8071_v55 = vsel %vm8026_vm2, %v8068_v44, %v8070_v7  ;;  %v1876_v42 = vpack.i.b16 %v1588_v39, %v1588_v39  ;;  %12145 = vmatprep.mubr.msk.bf16.mxu0 %vm8328_vm7, %v13916_v59 }
 0x157   : > { %v7750_v46 = vor.u32 %v7749_v18, %v7745_v11  ;;  %v11529_v30 = vpack.i.b16 %v906_v48, %v906_v48  ;;  %v1878_v14 = vpack.i.b16 %v1590_v9, %v1590_v9  ;;  %v11530_v27 = vpack.i.b16 %v907_v37, %v907_v37 }
 0x158   : > { %v7758_v34 = vor.u32 %v7756_v17, %v7754_v50  ;;  %v1880_v32 = vpack.i.b16 %v1592_v13, %v1592_v13  ;;  %v11531_v1 = vpack.i.b16 %v13933_v24, %v13933_v24  ;;  %v1882_v51 = vpack.i.b16 %v1594_v49, %v1594_v49 }
 0x159   : > { %v7755_v38 = vsel %vm7583_vm4, %v7750_v46, %v7754_v50  ;;  %v11532_v53 = vpack.i.b16 %v13941_v21, %v13941_v21  ;;  %v1884_v62 = vpack.i.b16 %v1596_v12, %v1596_v12  ;;  %v11533_v48 = vpack.i.b16 %v13945_v57, %v13945_v57 }
 0x15a   : > { %7956 = vrot.lane.b32.xlu0 %v7755_v38, %s12862_s21  ;;  %v7763_v52 = vsel %vm7583_vm4, %v7758_v34, %v7762_v22  ;;  %v1886_v33 = vpack.i.b16 %v1598_v26, %v1598_v26  ;;  %v11534_v37 = vpack.i.b16 %v13956_v45, %v13956_v45  ;;  %v1888_v39 = vpack.i.b16 %v1600_v40, %v1600_v40 }
 0x15b   : > { %7958 = vrot.lane.b32.xlu1 %v7763_v52, %s12862_s21  ;;  %v11535_v24 = vpack.i.b16 %v13959_v16, %v13959_v16  ;;  %v2597_v49 = vrot.slane %v1874_v19, %v12929_v15  ;;  %v2601_v56 = vrot.slane %v11528_v25, %v12929_v15  ;;  %v2605_v21 = vrot.slane %v1876_v42, %v12929_v15 }
 0x15c   : > { %v2609_v7 = vrot.slane %v11529_v30, %v12929_v15  ;;  %v2613_v57 = vrot.slane %v1878_v14, %v12929_v15  ;;  %v2617_v9 = vrot.slane %v11530_v27, %v12929_v15  ;;  %v2621_v11 = vrot.slane %v1880_v32, %v12929_v15 }
 0x15d   : > { %v2625_v45 = vrot.slane %v11531_v1, %v12929_v15  ;;  %v2629_v16 = vrot.slane %v1882_v51, %v12929_v15  ;;  %v2633_v61 = vrot.slane %v11532_v53, %v12929_v15  ;;  %v2637_v58 = vrot.slane %v1884_v62, %v12929_v15  ;;  %12146 = vmatmul.mubr.msk.bf16.gmra.mrb[8].mxu0 %vm8328_vm7, %v13911_v54  ;;  %v7933_v53 = vpop.permute.xlu0 %7932  ;;  %v7935_v62 = vpop.permute.xlu1 %7934 }
 0x15e   : > { %8144 = vrot.lane.b32.xlu0 %v8069_v3, %s12861_s20  ;;  %v2641_v31 = vrot.slane %v11533_v48, %v12929_v15  ;;  %v2645_v17 = vrot.slane %v1886_v33, %v12929_v15  ;;  %v2649_v22 = vrot.slane %v11534_v37, %v12929_v15  ;;  %v2653_v44 = vrot.slane %v1888_v39, %v12929_v15 }
 0x15f   : > { %8146 = vrot.lane.b32.xlu1 %v8071_v55, %s12861_s20  ;;  %v2657_v18 = vrot.slane %v11535_v24, %v12929_v15  ;;  %v4179_v13 = vpack.i.b16 %v2597_v49, %v2597_v49  ;;  %v4186_v12 = vpack.i.b16 %v2601_v56, %v2601_v56  ;;  %v4193_v26 = vpack.i.b16 %v2605_v21, %v2605_v21 }
 0x160   : > { %v4200_v50 = vpack.i.b16 %v2609_v7, %v2609_v7  ;;  %v4207_v3 = vpack.i.b16 %v2613_v57, %v2613_v57  ;;  %v4214_v40 = vpack.i.b16 %v2617_v9, %v2617_v9  ;;  %v4221_v46 = vpack.i.b16 %v2621_v11, %v2621_v11 }
 0x161   : > { %v4228_v19 = vpack.i.b16 %v2625_v45, %v2625_v45  ;;  %v4184_v55 = vrot.slane %v4179_v13, %v12929_v15  ;;  %v4191_v25 = vrot.slane %v4186_v12, %v12929_v15  ;;  %v4198_v42 = vrot.slane %v4193_v26, %v12929_v15 }
 0x162   : > { %v4205_v34 = vrot.slane %v4200_v50, %v12929_v15  ;;  %v4212_v30 = vrot.slane %v4207_v3, %v12929_v15  ;;  %v4219_v14 = vrot.slane %v4214_v40, %v12929_v15  ;;  %v4226_v27 = vrot.slane %v4221_v46, %v12929_v15  ;;  %v8121_v50 = vpop.permute.xlu0 %8120  ;;  %v8123_v3 = vpop.permute.xlu1 %8122 }
 0x163   : > { %v4233_v38 = vrot.slane %v4228_v19, %v12929_v15  ;;  %v4235_v32 = vpack.i.b16 %v2629_v16, %v2629_v16  ;;  %v4242_v1 = vpack.i.b16 %v2633_v61, %v2633_v61  ;;  %v4249_v51 = vpack.i.b16 %v2637_v58, %v2637_v58 }
 0x164   : > { %v4256_v52 = vpack.i.b16 %v2641_v31, %v2641_v31  ;;  %v4263_v48 = vpack.i.b16 %v2645_v17, %v2645_v17  ;;  %v4270_v33 = vpack.i.b16 %v2649_v22, %v2649_v22  ;;  %v4277_v37 = vpack.i.b16 %v2653_v44, %v2653_v44 }
 0x165   : > { %v4284_v39 = vpack.i.b16 %v2657_v18, %v2657_v18  ;;  %v4240_v24 = vrot.slane %v4235_v32, %v12929_v15  ;;  %v4247_v49 = vrot.slane %v4242_v1, %v12929_v15  ;;  %v4254_v56 = vrot.slane %v4249_v51, %v12929_v15 }
 0x166   : > { %v4261_v21 = vrot.slane %v4256_v52, %v12929_v15  ;;  %v4268_v7 = vrot.slane %v4263_v48, %v12929_v15  ;;  %v4275_v57 = vrot.slane %v4270_v33, %v12929_v15  ;;  %v4282_v9 = vrot.slane %v4277_v37, %v12929_v15  ;;  %v14063_v52 = vld [vmem:[%s12909_s19 + $0x80] sm:$0x1] }
 0x167   : > { %v4289_v11 = vrot.slane %v4284_v39, %v12929_v15  ;;  %v6356_v45 = vcombine.low %v4184_v55, %v4191_v25  ;;  %v6357_v16 = vcombine.low %v4198_v42, %v4205_v34  ;;  %v6358_v61 = vcombine.low %v4212_v30, %v4219_v14  ;;  %v14049_v25 = vld [vmem:[%s12909_s19 + $0x78] sm:$0xf] }
 0x168   : > { %v6359_v58 = vcombine.low %v4226_v27, %v4233_v38  ;;  %v6405_v31 = vcombine.low %v4240_v24, %v4247_v49  ;;  %v6406_v17 = vcombine.low %v4254_v56, %v4261_v21  ;;  %v6407_v22 = vcombine.low %v4268_v7, %v4275_v57  ;;  %v11448_v27 = vld.sshfl [vmem:[%s12909_s19 + $0x7c] sm:$0x33 pattern:$0x75316420] }
 0x169   : > { %v6408_v44 = vcombine.low %v4282_v9, %v4289_v11  ;;  %v6366_v18 = vrot.slane %v6356_v45, %v12904_v5  ;;  %v6373_v13 = vrot.slane %v6357_v16, %v12904_v5  ;;  %v6380_v12 = vrot.slane %v6358_v61, %v12904_v5 }
 0x16a   : > { %v6387_v26 = vrot.slane %v6359_v58, %v12904_v5  ;;  %v6415_v40 = vrot.slane %v6405_v31, %v12904_v5  ;;  %v6422_v46 = vrot.slane %v6406_v17, %v12904_v5  ;;  %v6429_v19 = vrot.slane %v6407_v22, %v12904_v5 }
 0x16b   : > { %v6436_v55 = vrot.slane %v6408_v44, %v12904_v5  ;;  %v6388_v42 = vcombine.low %v6366_v18, %v6373_v13  ;;  %v8190_v30 = vsel %vm8180_vm5, %v13247_v60, %v7933_v53  ;;  %v8192_v14 = vsel %vm8180_vm5, %v13250_v6, %v7935_v62 }
 0x16c   : > { %v6389_v34 = vcombine.low %v6380_v12, %v6387_v26  ;;  %v6437_v38 = vcombine.low %v6415_v40, %v6422_v46  ;;  %v14057_v1 = vsel %vm8249_vm6, %v8190_v30, %v8121_v50  ;;  %v14060_v51 = vsel %vm8249_vm6, %v8192_v14, %v8123_v3 }
 0x16d   : > { %v6438_v32 = vcombine.low %v6429_v19, %v6436_v55  ;;  %v6396_v48 = vrot.slane %v6388_v42, %v12904_v5  ;;  %12015 = vmatprep.mubr.msk.bf16.mxu1 %vm8328_vm7, %v14057_v1  ;;  %12149 = vmatprep.mubr.msk.bf16.mxu0 %vm8328_vm7, %v14057_v1  ;;  %v952_v60 = vrot.slane %v14049_v25, %v12904_v5 }
 0x16e   : > { %v6403_v33 = vrot.slane %v6389_v34, %v12904_v5  ;;  %v6445_v6 = vrot.slane %v6437_v38, %v12904_v5  ;;  %12016 = vmatmul.mubr.msk.bf16.gmra.mrb[8].mxu1 %vm8328_vm7, %v14060_v51  ;;  %v977_v62 = vcombine.high %v11448_v27, %v11448_v27  ;;  %v14078_v37 = vrot.slane %v11448_v27, %v12904_v5 }
 0x16f   : > { %v6452_v53 = vrot.slane %v6438_v32, %v12904_v5  ;;  %12019 = vmatprep.mubr.msk.bf16.mxu1 %vm8328_vm7, %v14057_v1  ;;  %v953_v24 = vcombine.high %v952_v60, %v952_v60  ;;  %v960_v49 = vrot.slane %v952_v60, %v12904_v5  ;;  %v1000_v56 = vrot.slane %v14063_v52, %v12904_v5 }
 0x170   : > { %v6404_v39 = vcombine.low %v6396_v48, %v6403_v33  ;;  %v14086_v7 = vrot.slane %v977_v62, %v12904_v5  ;;  %v14090_v57 = vcombine.high %v14078_v37, %v14078_v37  ;;  %v1610_v9 = vunpack.i.h.s16 %v14078_v37  ;;  %12150 = vmatmul.mubr.msk.bf16.gmra.mrb[12].mxu0 %vm8328_vm7, %v14060_v51 }
 0x171   : > { %v6453_v21 = vcombine.low %v6445_v6, %v6452_v53  ;;  %v967_v16 = vrot.slane %v953_v24, %v12904_v5  ;;  %v968_v61 = vcombine.high %v960_v49, %v960_v49  ;;  %12153 = vmatprep.mubr.msk.bf16.mxu0 %vm8328_vm7, %v14057_v1  ;;  %v14103_v22 = vrot.slane %v1000_v56, %v12904_v5 }
 0x172   : > { %v7375_v11 = vshrl.u32 %v6404_v39, 16  ;;  %v7378_v45 = vshll.u32 %v6404_v39, 16  ;;  %v14100_v17 = vcombine.high %v14086_v7, %v14086_v7  ;;  %v1602_v13 = vunpack.i.h.s16 %v960_v49 }
 0x173   : > { %v7382_v58 = vshrl.u32 %v6453_v21, 16  ;;  %v7385_v31 = vshll.u32 %v6453_v21, 16  ;;  %v969_v18 = vcombine.high %v967_v16, %v967_v16  ;;  %v1604_v12 = vunpack.i.h.s16 %v967_v16 }
 0x174   : > { %v7377_v44 = vrot.slane %v7375_v11, 7  ;;  %v1606_v50 = vunpack.i.h.s16 %v968_v61  ;;  %v1612_v3 = vunpack.i.h.s16 %v14086_v7  ;;  %v1614_v40 = vunpack.i.h.s16 %v14090_v57 }
 0x175   : > { %v7384_v26 = vrot.slane %v7382_v58, 7  ;;  %v1608_v19 = vunpack.i.h.s16 %v969_v18  ;;  %v1616_v55 = vunpack.i.h.s16 %v14100_v17  ;;  %v1890_v42 = vpack.i.b16 %v1602_v13, %v1602_v13 }
 0x176   : > { %v7380_v46 = vor.u32 %v7378_v45, %v7377_v44  ;;  %v11536_v14 = vpack.i.b16 %v967_v16, %v967_v16  ;;  %v1892_v27 = vpack.i.b16 %v1604_v12, %v1604_v12  ;;  %12020 = vmatmul.mubr.msk.bf16.gmra.mrb[12].mxu1 %vm8328_vm7, %v14060_v51  ;;  %v11537_v33 = vpack.i.b16 %v968_v61, %v968_v61 }
 0x177   : > { %v7387_v34 = vor.u32 %v7385_v31, %v7384_v26  ;;  %v7574_v30 = vsel %vm13004_vm3, %v7384_v26, %v13925_v63  ;;  %v1894_v56 = vpack.i.b16 %v1606_v50, %v1606_v50  ;;  %v11538_v21 = vpack.i.b16 %v969_v18, %v969_v18 }
 0x178   : > { %v14116_v38 = vsel %vm13004_vm3, %v13904_v10, %v7380_v46  ;;  %v7780_v32 = vshll.u32 %v7574_v30, 16  ;;  %v8075_v48 = vrot.slane %v7574_v30, 1  ;;  %12154 = vmatmul.mubr.msk.bf16.gmra.mrb[16].mxu0 %vm8328_vm7, %v14060_v51  ;;  %v1896_v11 = vpack.i.b16 %v1608_v19, %v1608_v19 }
 0x179   : > { %v14119_v60 = vsel %vm7238_vm0, %v7377_v44, %v7387_v34  ;;  %v7765_v6 = vshrl.u32 %v14116_v38, 16  ;;  %v7767_v63 = vshll.u32 %v14116_v38, 16  ;;  %v8072_v53 = vrot.slane %v14116_v38, 1 }
 0x17a   : > { %v7772_v62 = vshll.u32 %v14119_v60, 16  ;;  %v7776_v10 = vshrl.u32 %v14119_v60, 16  ;;  %v7782_v39 = vrot.slane %v7780_v32, 1  ;;  %v8073_v24 = vrot.slane %v14119_v60, 1 }
 0x17b   : > { %v7769_v49 = vrot.slane %v7767_v63, 1  ;;  %v11539_v58 = vpack.i.b16 %v14078_v37, %v14078_v37  ;;  %v1898_v44 = vpack.i.b16 %v1610_v9, %v1610_v9  ;;  %v11540_v13 = vpack.i.b16 %v14086_v7, %v14086_v7 }
 0x17c   : > { %v7774_v45 = vrot.slane %v7772_v62, 1  ;;  %v8074_v16 = vsel %vm8026_vm2, %v8072_v53, %v8073_v24  ;;  %v8076_v61 = vsel %vm8026_vm2, %v8073_v24, %v8075_v48  ;;  %v1900_v12 = vpack.i.b16 %v1612_v3, %v1612_v3 }
 0x17d   : > { %v7770_v31 = vor.u32 %v7769_v49, %v7765_v6  ;;  %v11541_v50 = vpack.i.b16 %v14090_v57, %v14090_v57  ;;  %v1902_v18 = vpack.i.b16 %v1614_v40, %v1614_v40  ;;  %v11542_v46 = vpack.i.b16 %v14100_v17, %v14100_v17 }
 0x17e   : > { %v7778_v26 = vor.u32 %v7776_v10, %v7774_v45  ;;  %v1904_v34 = vpack.i.b16 %v1616_v55, %v1616_v55  ;;  %v11543_v37 = vpack.i.b16 %v14103_v22, %v14103_v22  ;;  %v2661_v9 = vrot.slane %v1890_v42, %v12929_v15 }
 0x17f   : > { %v7775_v19 = vsel %vm7583_vm4, %v7770_v31, %v7774_v45  ;;  %v2665_v3 = vrot.slane %v11536_v14, %v12929_v15  ;;  %v2669_v57 = vrot.slane %v1892_v27, %v12929_v15  ;;  %v2673_v40 = vrot.slane %v11537_v33, %v12929_v15 }
 0x180   : > { %7960 = vrot.lane.b32.xlu0 %v7775_v19, %s12862_s21  ;;  %v7783_v7 = vsel %vm7583_vm4, %v7778_v26, %v7782_v39  ;;  %v2677_v17 = vrot.slane %v1894_v56, %v12929_v15  ;;  %v2681_v55 = vrot.slane %v11538_v21, %v12929_v15  ;;  %v2685_v22 = vrot.slane %v1896_v11, %v12929_v15  ;;  %v7939_v19 = vpop.permute.xlu1 %7938 }
 0x181   : > { %7962 = vrot.lane.b32.xlu1 %v7783_v7, %s12862_s21  ;;  %v2689_v42 = vrot.slane %v11539_v58, %v12929_v15  ;;  %v2693_v30 = vrot.slane %v1898_v44, %v12929_v15  ;;  %v2697_v32 = vrot.slane %v11540_v13, %v12929_v15  ;;  %v2701_v14 = vrot.slane %v1900_v12, %v12929_v15 }
 0x182   : > { %v2705_v27 = vrot.slane %v11541_v50, %v12929_v15  ;;  %v2709_v48 = vrot.slane %v1902_v18, %v12929_v15  ;;  %v2713_v33 = vrot.slane %v11542_v46, %v12929_v15  ;;  %v2717_v6 = vrot.slane %v1904_v34, %v12929_v15  ;;  %v7937_v46 = vpop.permute.xlu0 %7936 }
 0x183   : > { %v2721_v63 = vrot.slane %v11543_v37, %v12929_v15  ;;  %v4291_v53 = vpack.i.b16 %v2661_v9, %v2661_v9  ;;  %v4298_v62 = vpack.i.b16 %v2665_v3, %v2665_v3  ;;  %v4305_v10 = vpack.i.b16 %v2669_v57, %v2669_v57 }
 0x184   : > { %8148 = vrot.lane.b32.xlu0 %v8074_v16, %s12861_s20  ;;  %v4312_v39 = vpack.i.b16 %v2673_v40, %v2673_v40  ;;  %v4319_v24 = vpack.i.b16 %v2677_v17, %v2677_v17  ;;  %v4326_v49 = vpack.i.b16 %v2681_v55, %v2681_v55  ;;  %v4333_v56 = vpack.i.b16 %v2685_v22, %v2685_v22 }
 0x185   : > { %8150 = vrot.lane.b32.xlu1 %v8076_v61, %s12861_s20  ;;  %v4340_v21 = vpack.i.b16 %v2689_v42, %v2689_v42  ;;  %v4296_v11 = vrot.slane %v4291_v53, %v12929_v15  ;;  %v4303_v45 = vrot.slane %v4298_v62, %v12929_v15  ;;  %v4310_v58 = vrot.slane %v4305_v10, %v12929_v15 }
 0x186   : > { %v4317_v31 = vrot.slane %v4312_v39, %v12929_v15  ;;  %v4324_v16 = vrot.slane %v4319_v24, %v12929_v15  ;;  %v4331_v44 = vrot.slane %v4326_v49, %v12929_v15  ;;  %v4338_v13 = vrot.slane %v4333_v56, %v12929_v15  ;;  %v8125_v49 = vpop.permute.xlu0 %8124  ;;  %v8127_v56 = vpop.permute.xlu1 %8126 }
 0x187   : > { %v4345_v61 = vrot.slane %v4340_v21, %v12929_v15  ;;  %v4347_v12 = vpack.i.b16 %v2693_v30, %v2693_v30  ;;  %v4354_v26 = vpack.i.b16 %v2697_v32, %v2697_v32  ;;  %v4361_v50 = vpack.i.b16 %v2701_v14, %v2701_v14 }
 0x188   : > { %v4368_v18 = vpack.i.b16 %v2705_v27, %v2705_v27  ;;  %v4375_v34 = vpack.i.b16 %v2709_v48, %v2709_v48  ;;  %v4382_v37 = vpack.i.b16 %v2713_v33, %v2713_v33  ;;  %v4389_v9 = vpack.i.b16 %v2717_v6, %v2717_v6 }
 0x189   : > { %v4396_v7 = vpack.i.b16 %v2721_v63, %v2721_v63  ;;  %v4352_v3 = vrot.slane %v4347_v12, %v12929_v15  ;;  %v4359_v57 = vrot.slane %v4354_v26, %v12929_v15  ;;  %v4366_v40 = vrot.slane %v4361_v50, %v12929_v15  ;;  %v11449_v12 = vld.sshfl [vmem:[%s12909_s19 + $0x88] sm:$0x33 pattern:$0x75316420] }
 0x18a   : > { %v4373_v17 = vrot.slane %v4368_v18, %v12929_v15  ;;  %v4380_v55 = vrot.slane %v4375_v34, %v12929_v15  ;;  %v4387_v22 = vrot.slane %v4382_v37, %v12929_v15  ;;  %v4394_v42 = vrot.slane %v4389_v9, %v12929_v15  ;;  %v14202_v37 = vld [vmem:[%s12909_s19 + $0x8c] sm:$0x1] }
 0x18b   : > { %v4401_v30 = vrot.slane %v4396_v7, %v12929_v15  ;;  %v6454_v32 = vcombine.low %v4296_v11, %v4303_v45  ;;  %v6455_v14 = vcombine.low %v4310_v58, %v4317_v31  ;;  %v6456_v27 = vcombine.low %v4324_v16, %v4331_v44  ;;  %v14188_v31 = vld [vmem:[%s12909_s19 + $0x84] sm:$0xf] }
 0x18c   : > { %v6457_v48 = vcombine.low %v4338_v13, %v4345_v61  ;;  %v6503_v33 = vcombine.low %v4352_v3, %v4359_v57  ;;  %v6504_v6 = vcombine.low %v4366_v40, %v4373_v17  ;;  %v6505_v63 = vcombine.low %v4380_v55, %v4387_v22 }
 0x18d   : > { %v6506_v53 = vcombine.low %v4394_v42, %v4401_v30  ;;  %v6464_v62 = vrot.slane %v6454_v32, %v12904_v5  ;;  %v6471_v10 = vrot.slane %v6455_v14, %v12904_v5  ;;  %v6478_v39 = vrot.slane %v6456_v27, %v12904_v5 }
 0x18e   : > { %v6485_v24 = vrot.slane %v6457_v48, %v12904_v5  ;;  %v6513_v21 = vrot.slane %v6503_v33, %v12904_v5  ;;  %v6520_v11 = vrot.slane %v6504_v6, %v12904_v5  ;;  %v6527_v45 = vrot.slane %v6505_v63, %v12904_v5 }
 0x18f   : > { %v6534_v58 = vrot.slane %v6506_v53, %v12904_v5  ;;  %v6486_v16 = vcombine.low %v6464_v62, %v6471_v10  ;;  %v8194_v13 = vsel %vm8180_vm5, %v13360_v35, %v7937_v46  ;;  %v8196_v61 = vsel %vm8180_vm5, %v13365_v41, %v7939_v19 }
 0x190   : > { %v6487_v44 = vcombine.low %v6478_v39, %v6485_v24  ;;  %v6535_v26 = vcombine.low %v6513_v21, %v6520_v11  ;;  %v14196_v18 = vsel %vm8249_vm6, %v8194_v13, %v8125_v49  ;;  %v14199_v34 = vsel %vm8249_vm6, %v8196_v61, %v8127_v56 }
 0x191   : > { %v6536_v50 = vcombine.low %v6527_v45, %v6534_v58  ;;  %v6494_v9 = vrot.slane %v6486_v16, %v12904_v5  ;;  %12023 = vmatprep.mubr.msk.bf16.mxu1 %vm8328_vm7, %v14196_v18  ;;  %12157 = vmatprep.mubr.msk.bf16.mxu0 %vm8328_vm7, %v14196_v18  ;;  %v1014_v35 = vrot.slane %v14188_v31, %v12904_v5 }
 0x192   : > { %v6501_v7 = vrot.slane %v6487_v44, %v12904_v5  ;;  %v6543_v41 = vrot.slane %v6535_v26, %v12904_v5  ;;  %12024 = vmatmul.mubr.msk.bf16.gmra.mrb[16].mxu1 %vm8328_vm7, %v14199_v34  ;;  %v1039_v19 = vcombine.high %v11449_v12, %v11449_v12  ;;  %v14217_v3 = vrot.slane %v11449_v12, %v12904_v5 }
 0x193   : > { %v6550_v46 = vrot.slane %v6536_v50, %v12904_v5  ;;  %12027 = vmatprep.mubr.msk.bf16.mxu1 %vm8328_vm7, %v14196_v18  ;;  %v1015_v40 = vcombine.high %v1014_v35, %v1014_v35  ;;  %v1022_v17 = vrot.slane %v1014_v35, %v12904_v5  ;;  %v1062_v55 = vrot.slane %v14202_v37, %v12904_v5 }
 0x194   : > { %v6502_v57 = vcombine.low %v6494_v9, %v6501_v7  ;;  %v14225_v42 = vrot.slane %v1039_v19, %v12904_v5  ;;  %v14229_v30 = vcombine.high %v14217_v3, %v14217_v3  ;;  %v1626_v32 = vunpack.i.h.s16 %v14217_v3  ;;  %12158 = vmatmul.mubr.msk.bf16.gmra.mrb[20].mxu0 %vm8328_vm7, %v14199_v34 }
 0x195   : > { %v6551_v22 = vcombine.low %v6543_v41, %v6550_v46  ;;  %v1029_v48 = vrot.slane %v1015_v40, %v12904_v5  ;;  %v1030_v33 = vcombine.high %v1022_v17, %v1022_v17  ;;  %12161 = vmatprep.mubr.msk.bf16.mxu0 %vm8328_vm7, %v14196_v18  ;;  %v14242_v62 = vrot.slane %v1062_v55, %v12904_v5 }
 0x196   : > { %v7390_v14 = vshrl.u32 %v6502_v57, 16  ;;  %v7393_v27 = vshll.u32 %v6502_v57, 16  ;;  %v14239_v53 = vcombine.high %v14225_v42, %v14225_v42  ;;  %v1618_v24 = vunpack.i.h.s16 %v1022_v17 }
 0x197   : > { %v7397_v6 = vshrl.u32 %v6551_v22, 16  ;;  %v7400_v63 = vshll.u32 %v6551_v22, 16  ;;  %v1031_v39 = vcombine.high %v1029_v48, %v1029_v48  ;;  %v1620_v49 = vunpack.i.h.s16 %v1029_v48 }
 0x198   : > { %v7392_v10 = vrot.slane %v7390_v14, 7  ;;  %v1622_v21 = vunpack.i.h.s16 %v1030_v33  ;;  %v1628_v11 = vunpack.i.h.s16 %v14225_v42  ;;  %v1630_v45 = vunpack.i.h.s16 %v14229_v30 }
 0x199   : > { %v7399_v56 = vrot.slane %v7397_v6, 7  ;;  %v1624_v16 = vunpack.i.h.s16 %v1031_v39  ;;  %v1632_v44 = vunpack.i.h.s16 %v14239_v53  ;;  %v1906_v13 = vpack.i.b16 %v1618_v24, %v1618_v24 }
 0x19a   : > { %v7395_v58 = vor.u32 %v7393_v27, %v7392_v10  ;;  %v11544_v26 = vpack.i.b16 %v1029_v48, %v1029_v48  ;;  %v1908_v50 = vpack.i.b16 %v1620_v49, %v1620_v49  ;;  %12028 = vmatmul.mubr.msk.bf16.gmra.mrb[20].mxu1 %vm8328_vm7, %v14199_v34  ;;  %v11545_v41 = vpack.i.b16 %v1030_v33, %v1030_v33 }
 0x19b   : > { %v7402_v61 = vor.u32 %v7400_v63, %v7399_v56  ;;  %v7575_v12 = vsel %vm13004_vm3, %v7399_v56, %v14063_v52  ;;  %v1910_v14 = vpack.i.b16 %v1622_v21, %v1622_v21  ;;  %v11546_v27 = vpack.i.b16 %v1031_v39, %v1031_v39 }
 0x19c   : > { %v14255_v9 = vsel %vm13004_vm3, %v14049_v25, %v7395_v58  ;;  %v7800_v7 = vshll.u32 %v7575_v12, 16  ;;  %v8080_v35 = vrot.slane %v7575_v12, 1  ;;  %12162 = vmatmul.mubr.msk.bf16.gmra.mrb[24].mxu0 %vm8328_vm7, %v14199_v34  ;;  %v1912_v48 = vpack.i.b16 %v1624_v16, %v1624_v16 }
 0x19d   : > { %v14258_v46 = vsel %vm7238_vm0, %v7392_v10, %v7402_v61  ;;  %v7785_v19 = vshrl.u32 %v14255_v9, 16  ;;  %v7787_v52 = vshll.u32 %v14255_v9, 16  ;;  %v8077_v57 = vrot.slane %v14255_v9, 1 }
 0x19e   : > { %v7792_v40 = vshll.u32 %v14258_v46, 16  ;;  %v7796_v25 = vshrl.u32 %v14258_v46, 16  ;;  %v7802_v17 = vrot.slane %v7800_v7, 1  ;;  %v8078_v55 = vrot.slane %v14258_v46, 1 }
 0x19f   : > { %v7789_v22 = vrot.slane %v7787_v52, 1  ;;  %v11547_v10 = vpack.i.b16 %v14217_v3, %v14217_v3  ;;  %v1914_v49 = vpack.i.b16 %v1626_v32, %v1626_v32  ;;  %v11548_v56 = vpack.i.b16 %v14225_v42, %v14225_v42 }
 0x1a0   : > { %v7794_v33 = vrot.slane %v7792_v40, 1  ;;  %v8079_v6 = vsel %vm8026_vm2, %v8077_v57, %v8078_v55  ;;  %v8081_v63 = vsel %vm8026_vm2, %v8078_v55, %v8080_v35  ;;  %v1916_v58 = vpack.i.b16 %v1628_v11, %v1628_v11 }
 0x1a1   : > { %v7790_v24 = vor.u32 %v7789_v22, %v7785_v19  ;;  %v11549_v21 = vpack.i.b16 %v14229_v30, %v14229_v30  ;;  %v1918_v39 = vpack.i.b16 %v1630_v45, %v1630_v45  ;;  %v11550_v16 = vpack.i.b16 %v14239_v53, %v14239_v53 }
 0x1a2   : > { %v7798_v61 = vor.u32 %v7796_v25, %v7794_v33  ;;  %v1920_v7 = vpack.i.b16 %v1632_v44, %v1632_v44  ;;  %v11551_v3 = vpack.i.b16 %v14242_v62, %v14242_v62  ;;  %v2725_v32 = vrot.slane %v1906_v13, %v12929_v15 }
 0x1a3   : > { %v7795_v12 = vsel %vm7583_vm4, %v7790_v24, %v7794_v33  ;;  %v2729_v11 = vrot.slane %v11544_v26, %v12929_v15  ;;  %v2733_v30 = vrot.slane %v1908_v50, %v12929_v15  ;;  %v2737_v45 = vrot.slane %v11545_v41, %v12929_v15 }
 0x1a4   : > { %7964 = vrot.lane.b32.xlu0 %v7795_v12, %s12862_s21  ;;  %v7803_v42 = vsel %vm7583_vm4, %v7798_v61, %v7802_v17  ;;  %v2741_v53 = vrot.slane %v1910_v14, %v12929_v15  ;;  %v2745_v44 = vrot.slane %v11546_v27, %v12929_v15  ;;  %v2749_v62 = vrot.slane %v1912_v48, %v12929_v15 }
 0x1a5   : > { %7966 = vrot.lane.b32.xlu1 %v7803_v42, %s12862_s21  ;;  %v2753_v13 = vrot.slane %v11547_v10, %v12929_v15  ;;  %v2757_v35 = vrot.slane %v1914_v49, %v12929_v15  ;;  %v2761_v19 = vrot.slane %v11548_v56, %v12929_v15  ;;  %v2765_v26 = vrot.slane %v1916_v58, %v12929_v15 }
 0x1a6   : > { %v2769_v50 = vrot.slane %v11549_v21, %v12929_v15  ;;  %v2773_v41 = vrot.slane %v1918_v39, %v12929_v15  ;;  %v2777_v52 = vrot.slane %v11550_v16, %v12929_v15  ;;  %v2781_v57 = vrot.slane %v1920_v7, %v12929_v15  ;;  %v7941_v7 = vpop.permute.xlu0 %7940 }
 0x1a7   : > { %v2785_v40 = vrot.slane %v11551_v3, %v12929_v15  ;;  %v4403_v25 = vpack.i.b16 %v2725_v32, %v2725_v32  ;;  %v4410_v17 = vpack.i.b16 %v2729_v11, %v2729_v11  ;;  %v4417_v55 = vpack.i.b16 %v2733_v30, %v2733_v30  ;;  %v7943_v3 = vpop.permute.xlu1 %7942 }
 0x1a8   : > { %8152 = vrot.lane.b32.xlu0 %v8079_v6, %s12861_s20  ;;  %v4424_v22 = vpack.i.b16 %v2737_v45, %v2737_v45  ;;  %v4431_v14 = vpack.i.b16 %v2741_v53, %v2741_v53  ;;  %v4438_v27 = vpack.i.b16 %v2745_v44, %v2745_v44  ;;  %v4445_v48 = vpack.i.b16 %v2749_v62, %v2749_v62 }
 0x1a9   : > { %8154 = vrot.lane.b32.xlu1 %v8081_v63, %s12861_s20  ;;  %v4452_v33 = vpack.i.b16 %v2753_v13, %v2753_v13  ;;  %v4408_v10 = vrot.slane %v4403_v25, %v12929_v15  ;;  %v4415_v24 = vrot.slane %v4410_v17, %v12929_v15  ;;  %v4422_v49 = vrot.slane %v4417_v55, %v12929_v15 }
 0x1aa   : > { %v4429_v56 = vrot.slane %v4424_v22, %v12929_v15  ;;  %v4436_v6 = vrot.slane %v4431_v14, %v12929_v15  ;;  %v4443_v58 = vrot.slane %v4438_v27, %v12929_v15  ;;  %v4450_v61 = vrot.slane %v4445_v48, %v12929_v15 }
 0x1ab   : > { %v4457_v63 = vrot.slane %v4452_v33, %v12929_v15  ;;  %v4459_v21 = vpack.i.b16 %v2757_v35, %v2757_v35  ;;  %v4466_v39 = vpack.i.b16 %v2761_v19, %v2761_v19  ;;  %v4473_v16 = vpack.i.b16 %v2765_v26, %v2765_v26  ;;  %v8129_v33 = vpop.permute.xlu0 %8128 }
 0x1ac   : > { %v4480_v12 = vpack.i.b16 %v2769_v50, %v2769_v50  ;;  %v4487_v32 = vpack.i.b16 %v2773_v41, %v2773_v41  ;;  %v4494_v42 = vpack.i.b16 %v2777_v52, %v2777_v52  ;;  %v4501_v11 = vpack.i.b16 %v2781_v57, %v2781_v57 }
 0x1ad   : > { %v4508_v30 = vpack.i.b16 %v2785_v40, %v2785_v40  ;;  %v4464_v45 = vrot.slane %v4459_v21, %v12929_v15  ;;  %v4471_v53 = vrot.slane %v4466_v39, %v12929_v15  ;;  %v4478_v44 = vrot.slane %v4473_v16, %v12929_v15  ;;  %v11450_v16 = vld.sshfl [vmem:[%s12909_s19 + $0x94] sm:$0x33 pattern:$0x75316420] }
 0x1ae   : > { %v4485_v62 = vrot.slane %v4480_v12, %v12929_v15  ;;  %v4492_v13 = vrot.slane %v4487_v32, %v12929_v15  ;;  %v4499_v35 = vrot.slane %v4494_v42, %v12929_v15  ;;  %v4506_v19 = vrot.slane %v4501_v11, %v12929_v15 }
 0x1af   : > { %v4513_v26 = vrot.slane %v4508_v30, %v12929_v15  ;;  %v6552_v50 = vcombine.low %v4408_v10, %v4415_v24  ;;  %v6553_v41 = vcombine.low %v4422_v49, %v4429_v56  ;;  %v6554_v52 = vcombine.low %v4436_v6, %v4443_v58  ;;  %v8131_v10 = vpop.permute.xlu1 %8130  ;;  %v14327_v58 = vld [vmem:[%s12909_s19 + $0x90] sm:$0xf]  ;;  %v14341_v30 = vld [vmem:[%s12909_s19 + $0x98] sm:$0x1] }
 0x1b0   : > { %v6555_v57 = vcombine.low %v4450_v61, %v4457_v63  ;;  %v6601_v40 = vcombine.low %v4464_v45, %v4471_v53  ;;  %v6602_v25 = vcombine.low %v4478_v44, %v4485_v62  ;;  %v6603_v17 = vcombine.low %v4492_v13, %v4499_v35 }
 0x1b1   : > { %v6604_v55 = vcombine.low %v4506_v19, %v4513_v26  ;;  %v6562_v22 = vrot.slane %v6552_v50, %v12904_v5  ;;  %v6569_v14 = vrot.slane %v6553_v41, %v12904_v5  ;;  %v6576_v27 = vrot.slane %v6554_v52, %v12904_v5 }
 0x1b2   : > { %v6583_v48 = vrot.slane %v6555_v57, %v12904_v5  ;;  %v6611_v24 = vrot.slane %v6601_v40, %v12904_v5  ;;  %v6618_v49 = vrot.slane %v6602_v25, %v12904_v5  ;;  %v6625_v56 = vrot.slane %v6603_v17, %v12904_v5 }
 0x1b3   : > { %v6632_v6 = vrot.slane %v6604_v55, %v12904_v5  ;;  %v6584_v61 = vcombine.low %v6562_v22, %v6569_v14  ;;  %v8198_v21 = vsel %vm8180_vm5, %v13475_v28, %v7941_v7  ;;  %v8200_v39 = vsel %vm8180_vm5, %v13478_v8, %v7943_v3 }
 0x1b4   : > { %v6585_v63 = vcombine.low %v6576_v27, %v6583_v48  ;;  %v6633_v12 = vcombine.low %v6611_v24, %v6618_v49  ;;  %v14335_v42 = vsel %vm8249_vm6, %v8198_v21, %v8129_v33  ;;  %v14338_v11 = vsel %vm8249_vm6, %v8200_v39, %v8131_v10 }
 0x1b5   : > { %v6634_v32 = vcombine.low %v6625_v56, %v6632_v6  ;;  %v6592_v45 = vrot.slane %v6584_v61, %v12904_v5  ;;  %12031 = vmatprep.mubr.msk.bf16.mxu1 %vm8328_vm7, %v14335_v42  ;;  %12165 = vmatprep.mubr.msk.bf16.mxu0 %vm8328_vm7, %v14335_v42  ;;  %v1076_v28 = vrot.slane %v14327_v58, %v12904_v5 }
 0x1b6   : > { %v6599_v53 = vrot.slane %v6585_v63, %v12904_v5  ;;  %v6641_v8 = vrot.slane %v6633_v12, %v12904_v5  ;;  %12032 = vmatmul.mubr.msk.bf16.gmra.mrb[24].mxu1 %vm8328_vm7, %v14338_v11  ;;  %v1101_v3 = vcombine.high %v11450_v16, %v11450_v16  ;;  %v14356_v44 = vrot.slane %v11450_v16, %v12904_v5 }
 0x1b7   : > { %v6648_v7 = vrot.slane %v6634_v32, %v12904_v5  ;;  %12035 = vmatprep.mubr.msk.bf16.mxu1 %vm8328_vm7, %v14335_v42  ;;  %v1077_v13 = vcombine.high %v1076_v28, %v1076_v28  ;;  %v1084_v35 = vrot.slane %v1076_v28, %v12904_v5  ;;  %v1124_v19 = vrot.slane %v14341_v30, %v12904_v5 }
 0x1b8   : > { %v6600_v62 = vcombine.low %v6592_v45, %v6599_v53  ;;  %v14364_v50 = vrot.slane %v1101_v3, %v12904_v5  ;;  %v14368_v41 = vcombine.high %v14356_v44, %v14356_v44  ;;  %v1642_v52 = vunpack.i.h.s16 %v14356_v44  ;;  %12166 = vmatmul.mubr.msk.bf16.gmra.mrb[28].mxu0 %vm8328_vm7, %v14338_v11 }
 0x1b9   : > { %v6649_v26 = vcombine.low %v6641_v8, %v6648_v7  ;;  %v1091_v25 = vrot.slane %v1077_v13, %v12904_v5  ;;  %v1092_v17 = vcombine.high %v1084_v35, %v1084_v35  ;;  %12169 = vmatprep.mubr.msk.bf16.mxu0 %vm8328_vm7, %v14335_v42  ;;  %v14381_v27 = vrot.slane %v1124_v19, %v12904_v5 }
 0x1ba   : > { %v7405_v57 = vshrl.u32 %v6600_v62, 16  ;;  %v7408_v40 = vshll.u32 %v6600_v62, 16  ;;  %v14378_v14 = vcombine.high %v14364_v50, %v14364_v50  ;;  %v1634_v10 = vunpack.i.h.s16 %v1084_v35 }
 0x1bb   : > { %v7412_v55 = vshrl.u32 %v6649_v26, 16  ;;  %v7415_v22 = vshll.u32 %v6649_v26, 16  ;;  %v1093_v33 = vcombine.high %v1091_v25, %v1091_v25  ;;  %v1636_v24 = vunpack.i.h.s16 %v1091_v25 }
 0x1bc   : > { %v7407_v48 = vrot.slane %v7405_v57, 7  ;;  %v1638_v56 = vunpack.i.h.s16 %v1092_v17  ;;  %v1644_v6 = vunpack.i.h.s16 %v14364_v50  ;;  %v1646_v61 = vunpack.i.h.s16 %v14368_v41 }
 0x1bd   : > { %v7414_v49 = vrot.slane %v7412_v55, 7  ;;  %v1640_v21 = vunpack.i.h.s16 %v1093_v33  ;;  %v1648_v39 = vunpack.i.h.s16 %v14378_v14  ;;  %v1922_v16 = vpack.i.b16 %v1634_v10, %v1634_v10 }
 0x1be   : > { %v7410_v63 = vor.u32 %v7408_v40, %v7407_v48  ;;  %v11552_v45 = vpack.i.b16 %v1091_v25, %v1091_v25  ;;  %v1924_v53 = vpack.i.b16 %v1636_v24, %v1636_v24  ;;  %12036 = vmatmul.mubr.msk.bf16.gmra.mrb[28].mxu1 %vm8328_vm7, %v14338_v11  ;;  %v11553_v3 = vpack.i.b16 %v1092_v17, %v1092_v17 }
 0x1bf   : > { %v7417_v12 = vor.u32 %v7415_v22, %v7414_v49  ;;  %v7576_v32 = vsel %vm13004_vm3, %v7414_v49, %v14202_v37  ;;  %v1926_v25 = vpack.i.b16 %v1638_v56, %v1638_v56  ;;  %v11554_v17 = vpack.i.b16 %v1093_v33, %v1093_v33 }
 0x1c0   : > { %v14394_v28 = vsel %vm13004_vm3, %v14188_v31, %v7410_v63  ;;  %v7820_v8 = vshll.u32 %v7576_v32, 16  ;;  %v8085_v7 = vrot.slane %v7576_v32, 1  ;;  %12170 = vmatmul.mubr.msk.bf16.gmra.mrb[32].mxu0 %vm8328_vm7, %v14338_v11  ;;  %v1928_v55 = vpack.i.b16 %v1640_v21, %v1640_v21 }
 0x1c1   : > { %v14397_v62 = vsel %vm7238_vm0, %v7407_v48, %v7417_v12  ;;  %v7805_v13 = vshrl.u32 %v14394_v28, 16  ;;  %v7807_v37 = vshll.u32 %v14394_v28, 16  ;;  %v8082_v35 = vrot.slane %v14394_v28, 1 }
 0x1c2   : > { %v7812_v19 = vshll.u32 %v14397_v62, 16  ;;  %v7816_v31 = vshrl.u32 %v14397_v62, 16  ;;  %v7822_v26 = vrot.slane %v7820_v8, 1  ;;  %v8083_v57 = vrot.slane %v14397_v62, 1 }
 0x1c3   : > { %v7809_v40 = vrot.slane %v7807_v37, 1  ;;  %v11555_v24 = vpack.i.b16 %v14356_v44, %v14356_v44  ;;  %v1930_v63 = vpack.i.b16 %v1642_v52, %v1642_v52  ;;  %v11556_v12 = vpack.i.b16 %v14364_v50, %v14364_v50 }
 0x1c4   : > { %v7814_v22 = vrot.slane %v7812_v19, 1  ;;  %v8084_v48 = vsel %vm8026_vm2, %v8082_v35, %v8083_v57  ;;  %v8086_v10 = vsel %vm8026_vm2, %v8083_v57, %v8085_v7  ;;  %v1932_v32 = vpack.i.b16 %v1644_v6, %v1644_v6 }
 0x1c5   : > { %v7810_v49 = vor.u32 %v7809_v40, %v7805_v13  ;;  %v11557_v56 = vpack.i.b16 %v14368_v41, %v14368_v41  ;;  %v1934_v33 = vpack.i.b16 %v1646_v61, %v1646_v61  ;;  %v11558_v21 = vpack.i.b16 %v14378_v14, %v14378_v14 }
 0x1c6   : > { %v7818_v8 = vor.u32 %v7816_v31, %v7814_v22  ;;  %v1936_v7 = vpack.i.b16 %v1648_v39, %v1648_v39  ;;  %v11559_v44 = vpack.i.b16 %v14381_v27, %v14381_v27  ;;  %v2789_v52 = vrot.slane %v1922_v16, %v12929_v15 }
 0x1c7   : > { %v7815_v37 = vsel %vm7583_vm4, %v7810_v49, %v7814_v22  ;;  %v2793_v6 = vrot.slane %v11552_v45, %v12929_v15  ;;  %v2797_v41 = vrot.slane %v1924_v53, %v12929_v15  ;;  %v2801_v61 = vrot.slane %v11553_v3, %v12929_v15 }
 0x1c8   : > { %7968 = vrot.lane.b32.xlu0 %v7815_v37, %s12862_s21  ;;  %v7823_v50 = vsel %vm7583_vm4, %v7818_v8, %v7822_v26  ;;  %v2805_v14 = vrot.slane %v1926_v25, %v12929_v15  ;;  %v2809_v39 = vrot.slane %v11554_v17, %v12929_v15  ;;  %v2813_v27 = vrot.slane %v1928_v55, %v12929_v15 }
 0x1c9   : > { %7970 = vrot.lane.b32.xlu1 %v7823_v50, %s12862_s21  ;;  %v2817_v16 = vrot.slane %v11555_v24, %v12929_v15  ;;  %v2821_v13 = vrot.slane %v1930_v63, %v12929_v15  ;;  %v2825_v35 = vrot.slane %v11556_v12, %v12929_v15  ;;  %v2829_v45 = vrot.slane %v1932_v32, %v12929_v15  ;;  %v7947_v50 = vpop.permute.xlu1 %7946 }
 0x1ca   : > { %v2833_v53 = vrot.slane %v11557_v56, %v12929_v15  ;;  %v2837_v3 = vrot.slane %v1934_v33, %v12929_v15  ;;  %v2841_v19 = vrot.slane %v11558_v21, %v12929_v15  ;;  %v2845_v31 = vrot.slane %v1936_v7, %v12929_v15 }
 0x1cb   : > { %v2849_v26 = vrot.slane %v11559_v44, %v12929_v15  ;;  %v4515_v57 = vpack.i.b16 %v2789_v52, %v2789_v52  ;;  %v4522_v40 = vpack.i.b16 %v2793_v6, %v2793_v6  ;;  %v4529_v25 = vpack.i.b16 %v2797_v41, %v2797_v41  ;;  %v7945_v52 = vpop.permute.xlu0 %7944 }
 0x1cc   : > { %8156 = vrot.lane.b32.xlu0 %v8084_v48, %s12861_s20  ;;  %v4536_v17 = vpack.i.b16 %v2801_v61, %v2801_v61  ;;  %v4543_v55 = vpack.i.b16 %v2805_v14, %v2805_v14  ;;  %v4550_v22 = vpack.i.b16 %v2809_v39, %v2809_v39  ;;  %v4557_v24 = vpack.i.b16 %v2813_v27, %v2813_v27 }
 0x1cd   : > { %8158 = vrot.lane.b32.xlu1 %v8086_v10, %s12861_s20  ;;  %v4564_v49 = vpack.i.b16 %v2817_v16, %v2817_v16  ;;  %v4520_v63 = vrot.slane %v4515_v57, %v12929_v15  ;;  %v4527_v12 = vrot.slane %v4522_v40, %v12929_v15  ;;  %v4534_v32 = vrot.slane %v4529_v25, %v12929_v15 }
 0x1ce   : > { %v4541_v8 = vrot.slane %v4536_v17, %v12929_v15  ;;  %v4548_v48 = vrot.slane %v4543_v55, %v12929_v15  ;;  %v4555_v56 = vrot.slane %v4550_v22, %v12929_v15  ;;  %v4562_v33 = vrot.slane %v4557_v24, %v12929_v15 }
 0x1cf   : > { %v4569_v10 = vrot.slane %v4564_v49, %v12929_v15  ;;  %v4571_v21 = vpack.i.b16 %v2821_v13, %v2821_v13  ;;  %v4578_v37 = vpack.i.b16 %v2825_v35, %v2825_v35  ;;  %v4585_v7 = vpack.i.b16 %v2829_v45, %v2829_v45 }
 0x1d0   : > { %v4592_v44 = vpack.i.b16 %v2833_v53, %v2833_v53  ;;  %v4599_v6 = vpack.i.b16 %v2837_v3, %v2837_v3  ;;  %v4606_v41 = vpack.i.b16 %v2841_v19, %v2841_v19  ;;  %v4613_v61 = vpack.i.b16 %v2845_v31, %v2845_v31 }
 0x1d1   : > { %v4620_v14 = vpack.i.b16 %v2849_v26, %v2849_v26  ;;  %v4576_v39 = vrot.slane %v4571_v21, %v12929_v15  ;;  %v4583_v27 = vrot.slane %v4578_v37, %v12929_v15  ;;  %v4590_v16 = vrot.slane %v4585_v7, %v12929_v15  ;;  %v8133_v37 = vpop.permute.xlu0 %8132 }
 0x1d2   : > { %v4597_v57 = vrot.slane %v4592_v44, %v12929_v15  ;;  %v4604_v40 = vrot.slane %v4599_v6, %v12929_v15  ;;  %v4611_v13 = vrot.slane %v4606_v41, %v12929_v15  ;;  %v4618_v35 = vrot.slane %v4613_v61, %v12929_v15  ;;  %v11451_v6 = vld.sshfl [vmem:[%s12909_s19 + $0xa0] sm:$0x33 pattern:$0x75316420] }
 0x1d3   : > { %v4625_v45 = vrot.slane %v4620_v14, %v12929_v15  ;;  %v6650_v53 = vcombine.low %v4520_v63, %v4527_v12  ;;  %v6651_v3 = vcombine.low %v4534_v32, %v4541_v8  ;;  %v6652_v19 = vcombine.low %v4548_v48, %v4555_v56  ;;  %v8135_v63 = vpop.permute.xlu1 %8134  ;;  %v14466_v56 = vld [vmem:[%s12909_s19 + $0x9c] sm:$0xf] }
 0x1d4   : > { %v6653_v31 = vcombine.low %v4562_v33, %v4569_v10  ;;  %v6699_v26 = vcombine.low %v4576_v39, %v4583_v27  ;;  %v6700_v25 = vcombine.low %v4590_v16, %v4597_v57  ;;  %v6701_v17 = vcombine.low %v4604_v40, %v4611_v13  ;;  %v14480_v27 = vld [vmem:[%s12909_s19 + $0xa4] sm:$0x1] }
 0x1d5   : > { %v6702_v55 = vcombine.low %v4618_v35, %v4625_v45  ;;  %v6660_v22 = vrot.slane %v6650_v53, %v12904_v5  ;;  %v6667_v24 = vrot.slane %v6651_v3, %v12904_v5  ;;  %v6674_v49 = vrot.slane %v6652_v19, %v12904_v5 }
 0x1d6   : > { %v6681_v21 = vrot.slane %v6653_v31, %v12904_v5  ;;  %v6709_v12 = vrot.slane %v6699_v26, %v12904_v5  ;;  %v6716_v32 = vrot.slane %v6700_v25, %v12904_v5  ;;  %v6723_v8 = vrot.slane %v6701_v17, %v12904_v5 }
 0x1d7   : > { %v6730_v48 = vrot.slane %v6702_v55, %v12904_v5  ;;  %v6682_v33 = vcombine.low %v6660_v22, %v6667_v24  ;;  %v8202_v7 = vsel %vm8180_vm5, %v13588_v23, %v7945_v52  ;;  %v8204_v44 = vsel %vm8180_vm5, %v13593_v36, %v7947_v50 }
 0x1d8   : > { %v6683_v10 = vcombine.low %v6674_v49, %v6681_v21  ;;  %v6731_v41 = vcombine.low %v6709_v12, %v6716_v32  ;;  %v14474_v14 = vsel %vm8249_vm6, %v8202_v7, %v8133_v37  ;;  %v14477_v39 = vsel %vm8249_vm6, %v8204_v44, %v8135_v63 }
 0x1d9   : > { %v6732_v61 = vcombine.low %v6723_v8, %v6730_v48  ;;  %17063 = vst [vmem:[#allocation2_spill] sm:$0xff] %v14474_v14  ;;  %17064 = vst [vmem:[#allocation3_spill] sm:$0xff] %v14477_v39  ;;  %v6690_v16 = vrot.slane %v6682_v33, %v12904_v5  ;;  %12039 = vmatprep.mubr.msk.bf16.mxu1 %vm8328_vm7, %v14474_v14  ;;  %12173 = vmatprep.mubr.msk.bf16.mxu0 %vm8328_vm7, %v14474_v14 }
 0x1da   : > { %v6697_v57 = vrot.slane %v6683_v10, %v12904_v5  ;;  %v1138_v23 = vrot.slane %v14466_v56, %v12904_v5  ;;  %v6739_v36 = vrot.slane %v6731_v41, %v12904_v5  ;;  %12040 = vmatmul.mubr.msk.bf16.gmra.mrb[32].mxu1 %vm8328_vm7, %v14477_v39  ;;  %v1163_v50 = vcombine.high %v11451_v6, %v11451_v6 }
 0x1db   : > { %v6746_v52 = vrot.slane %v6732_v61, %v12904_v5  ;;  %v14495_v40 = vrot.slane %v11451_v6, %v12904_v5  ;;  %12043 = vmatprep.mubr.msk.bf16.mxu1 %vm8328_vm7, %v14474_v14  ;;  %v1186_v53 = vrot.slane %v14480_v27, %v12904_v5  ;;  %12174 = vmatmul.mubr.msk.bf16.gmra.mrb[36].mxu0 %vm8328_vm7, %v14477_v39 }
 0x1dc   : > { %v6698_v13 = vcombine.low %v6690_v16, %v6697_v57  ;;  %v1139_v35 = vcombine.high %v1138_v23, %v1138_v23  ;;  %v1146_v45 = vrot.slane %v1138_v23, %v12904_v5  ;;  %v14503_v19 = vrot.slane %v1163_v50, %v12904_v5  ;;  %12177 = vmatprep.mubr.msk.bf16.mxu0 %vm8328_vm7, %v14474_v14 }
 0x1dd   : > { %v6747_v3 = vcombine.low %v6739_v36, %v6746_v52  ;;  %v14507_v31 = vcombine.high %v14495_v40, %v14495_v40  ;;  %v1658_v26 = vunpack.i.h.s16 %v14495_v40  ;;  %v14520_v37 = vrot.slane %v1186_v53, %v12904_v5 }
 0x1de   : > { %v7420_v25 = vshrl.u32 %v6698_v13, 16  ;;  %v7423_v17 = vshll.u32 %v6698_v13, 16  ;;  %v1153_v55 = vrot.slane %v1139_v35, %v12904_v5  ;;  %v1154_v22 = vcombine.high %v1146_v45, %v1146_v45 }
 0x1df   : > { %v7427_v24 = vshrl.u32 %v6747_v3, 16  ;;  %v7430_v49 = vshll.u32 %v6747_v3, 16  ;;  %v14517_v21 = vcombine.high %v14503_v19, %v14503_v19  ;;  %v1650_v32 = vunpack.i.h.s16 %v1146_v45 }
 0x1e0   : > { %v7422_v63 = vrot.slane %v7420_v25, 7  ;;  %v1155_v12 = vcombine.high %v1153_v55, %v1153_v55  ;;  %v1652_v8 = vunpack.i.h.s16 %v1153_v55  ;;  %v1654_v33 = vunpack.i.h.s16 %v1154_v22 }
 0x1e1   : > { %v7429_v48 = vrot.slane %v7427_v24, 7  ;;  %v1660_v10 = vunpack.i.h.s16 %v14503_v19  ;;  %v1662_v7 = vunpack.i.h.s16 %v14507_v31  ;;  %v1664_v41 = vunpack.i.h.s16 %v14517_v21 }
 0x1e2   : > { %v7425_v44 = vor.u32 %v7423_v17, %v7422_v63  ;;  %v1656_v6 = vunpack.i.h.s16 %v1155_v12  ;;  %v1938_v61 = vpack.i.b16 %v1650_v32, %v1650_v32  ;;  %v11560_v23 = vpack.i.b16 %v1153_v55, %v1153_v55  ;;  %12044 = vmatmul.mubr.msk.bf16.gmra.mrb[36].mxu1 %vm8328_vm7, %v14477_v39 }
 0x1e3   : > { %v7432_v16 = vor.u32 %v7430_v49, %v7429_v48  ;;  %v7577_v57 = vsel %vm13004_vm3, %v7429_v48, %v14341_v30  ;;  %v1940_v36 = vpack.i.b16 %v1652_v8, %v1652_v8  ;;  %v11561_v35 = vpack.i.b16 %v1154_v22, %v1154_v22  ;;  %12178 = vmatmul.mubr.msk.bf16.gmra.mrb[40].mxu0 %vm8328_vm7, %v14477_v39 }
 0x1e4   : > { %v14533_v52 = vsel %vm13004_vm3, %v14327_v58, %v7425_v44  ;;  %v7840_v50 = vshll.u32 %v7577_v57, 16  ;;  %v8090_v13 = vrot.slane %v7577_v57, 1  ;;  %v1942_v24 = vpack.i.b16 %v1654_v33, %v1654_v33 }
 0x1e5   : > { %v14536_v45 = vsel %vm7238_vm0, %v7422_v63, %v7432_v16  ;;  %v7825_v53 = vshrl.u32 %v14533_v52, 16  ;;  %v7827_v30 = vshll.u32 %v14533_v52, 16  ;;  %v8087_v3 = vrot.slane %v14533_v52, 1 }
 0x1e6   : > { %v7832_v25 = vshll.u32 %v14536_v45, 16  ;;  %v7836_v58 = vshrl.u32 %v14536_v45, 16  ;;  %v7842_v17 = vrot.slane %v7840_v50, 1  ;;  %v8088_v55 = vrot.slane %v14536_v45, 1 }
 0x1e7   : > { %v7829_v22 = vrot.slane %v7827_v30, 1  ;;  %v11562_v49 = vpack.i.b16 %v1155_v12, %v1155_v12  ;;  %v1944_v63 = vpack.i.b16 %v1656_v6, %v1656_v6  ;;  %v11563_v44 = vpack.i.b16 %v14495_v40, %v14495_v40 }
 0x1e8   : > { %v7834_v32 = vrot.slane %v7832_v25, 1  ;;  %v8089_v8 = vsel %vm8026_vm2, %v8087_v3, %v8088_v55  ;;  %v8091_v48 = vsel %vm8026_vm2, %v8088_v55, %v8090_v13  ;;  %v1946_v57 = vpack.i.b16 %v1658_v26, %v1658_v26 }
 0x1e9   : > { %v7830_v16 = vor.u32 %v7829_v22, %v7825_v53  ;;  %v11564_v39 = vpack.i.b16 %v14503_v19, %v14503_v19  ;;  %v1948_v50 = vpack.i.b16 %v1660_v10, %v1660_v10  ;;  %v11565_v33 = vpack.i.b16 %v14507_v31, %v14507_v31 }
 0x1ea   : > { %v7838_v14 = vor.u32 %v7836_v58, %v7834_v32  ;;  %v1950_v12 = vpack.i.b16 %v1662_v7, %v1662_v7  ;;  %v11566_v6 = vpack.i.b16 %v14517_v21, %v14517_v21  ;;  %v1952_v13 = vpack.i.b16 %v1664_v41, %v1664_v41 }
 0x1eb   : > { %v7835_v30 = vsel %vm7583_vm4, %v7830_v16, %v7834_v32  ;;  %v11567_v40 = vpack.i.b16 %v14520_v37, %v14520_v37  ;;  %v2853_v26 = vrot.slane %v1938_v61, %v12929_v15  ;;  %v2857_v10 = vrot.slane %v11560_v23, %v12929_v15 }
 0x1ec   : > { %7972 = vrot.lane.b32.xlu0 %v7835_v30, %s12862_s21  ;;  %v7843_v19 = vsel %vm7583_vm4, %v7838_v14, %v7842_v17  ;;  %v2861_v31 = vrot.slane %v1940_v36, %v12929_v15  ;;  %v2865_v7 = vrot.slane %v11561_v35, %v12929_v15  ;;  %v2869_v21 = vrot.slane %v1942_v24, %v12929_v15 }
 0x1ed   : > { %7974 = vrot.lane.b32.xlu1 %v7843_v19, %s12862_s21  ;;  %v2873_v41 = vrot.slane %v11562_v49, %v12929_v15  ;;  %v2877_v37 = vrot.slane %v1944_v63, %v12929_v15  ;;  %v2881_v61 = vrot.slane %v11563_v44, %v12929_v15  ;;  %v2885_v53 = vrot.slane %v1946_v57, %v12929_v15  ;;  %v7951_v19 = vpop.permute.xlu1 %7950 }
 0x1ee   : > { %v2889_v14 = vrot.slane %v11564_v39, %v12929_v15  ;;  %v2893_v23 = vrot.slane %v1948_v50, %v12929_v15  ;;  %v2897_v36 = vrot.slane %v11565_v33, %v12929_v15  ;;  %v2901_v35 = vrot.slane %v1950_v12, %v12929_v15 }
 0x1ef   : > { %v2905_v3 = vrot.slane %v11566_v6, %v12929_v15  ;;  %v2909_v25 = vrot.slane %v1952_v13, %v12929_v15  ;;  %v2913_v58 = vrot.slane %v11567_v40, %v12929_v15  ;;  %v4627_v17 = vpack.i.b16 %v2853_v26, %v2853_v26  ;;  %v7949_v26 = vpop.permute.xlu0 %7948 }
 0x1f0   : > { %8160 = vrot.lane.b32.xlu0 %v8089_v8, %s12861_s20  ;;  %v4634_v55 = vpack.i.b16 %v2857_v10, %v2857_v10  ;;  %v4641_v22 = vpack.i.b16 %v2861_v31, %v2861_v31  ;;  %v4648_v24 = vpack.i.b16 %v2865_v7, %v2865_v7  ;;  %v4655_v39 = vpack.i.b16 %v2869_v21, %v2869_v21 }
 0x1f1   : > { %8162 = vrot.lane.b32.xlu1 %v8091_v48, %s12861_s20  ;;  %v4662_v49 = vpack.i.b16 %v2873_v41, %v2873_v41  ;;  %v4669_v63 = vpack.i.b16 %v2877_v37, %v2877_v37  ;;  %v4676_v32 = vpack.i.b16 %v2881_v61, %v2881_v61  ;;  %v4632_v44 = vrot.slane %v4627_v17, %v12929_v15 }
 0x1f2   : > { %v4639_v16 = vrot.slane %v4634_v55, %v12929_v15  ;;  %v4646_v57 = vrot.slane %v4641_v22, %v12929_v15  ;;  %v4653_v50 = vrot.slane %v4648_v24, %v12929_v15  ;;  %v4660_v8 = vrot.slane %v4655_v39, %v12929_v15 }
 0x1f3   : > { %v4667_v33 = vrot.slane %v4662_v49, %v12929_v15  ;;  %v4674_v12 = vrot.slane %v4669_v63, %v12929_v15  ;;  %v4681_v48 = vrot.slane %v4676_v32, %v12929_v15  ;;  %v4683_v6 = vpack.i.b16 %v2885_v53, %v2885_v53 }
 0x1f4   : > { %v4690_v30 = vpack.i.b16 %v2889_v14, %v2889_v14  ;;  %v4697_v13 = vpack.i.b16 %v2893_v23, %v2893_v23  ;;  %v4704_v40 = vpack.i.b16 %v2897_v36, %v2897_v36  ;;  %v4711_v10 = vpack.i.b16 %v2901_v35, %v2901_v35 }
 0x1f5   : > { %v4718_v31 = vpack.i.b16 %v2905_v3, %v2905_v3  ;;  %v4725_v7 = vpack.i.b16 %v2909_v25, %v2909_v25  ;;  %v4732_v21 = vpack.i.b16 %v2913_v58, %v2913_v58  ;;  %v4688_v41 = vrot.slane %v4683_v6, %v12929_v15 }
 0x1f6   : > { %v4695_v37 = vrot.slane %v4690_v30, %v12929_v15  ;;  %v4702_v61 = vrot.slane %v4697_v13, %v12929_v15  ;;  %v4709_v17 = vrot.slane %v4704_v40, %v12929_v15  ;;  %v4716_v55 = vrot.slane %v4711_v10, %v12929_v15  ;;  %v8137_v30 = vpop.permute.xlu0 %8136  ;;  %v11452_v10 = vld.sshfl [vmem:[%s12909_s19 + $0xac] sm:$0x33 pattern:$0x75316420] }
 0x1f7   : > { %v4723_v53 = vrot.slane %v4718_v31, %v12929_v15  ;;  %v4730_v14 = vrot.slane %v4725_v7, %v12929_v15  ;;  %v4737_v23 = vrot.slane %v4732_v21, %v12929_v15  ;;  %v6748_v36 = vcombine.low %v4632_v44, %v4639_v16  ;;  %v8139_v44 = vpop.permute.xlu1 %8138 }
 0x1f8   : > { %v6749_v35 = vcombine.low %v4646_v57, %v4653_v50  ;;  %v6750_v3 = vcombine.low %v4660_v8, %v4667_v33  ;;  %v6751_v25 = vcombine.low %v4674_v12, %v4681_v48  ;;  %v6797_v58 = vcombine.low %v4688_v41, %v4695_v37  ;;  %v14605_v33 = vld [vmem:[%s12909_s19 + $0xa8] sm:$0xf]  ;;  %v14619_v37 = vld [vmem:[%s12909_s19 + $0xb0] sm:$0x1] }
 0x1f9   : > { %v6798_v22 = vcombine.low %v4702_v61, %v4709_v17  ;;  %v6799_v24 = vcombine.low %v4716_v55, %v4723_v53  ;;  %v6800_v39 = vcombine.low %v4730_v14, %v4737_v23  ;;  %v6758_v49 = vrot.slane %v6748_v36, %v12904_v5 }
 0x1fa   : > { %v6765_v63 = vrot.slane %v6749_v35, %v12904_v5  ;;  %v6772_v32 = vrot.slane %v6750_v3, %v12904_v5  ;;  %v6779_v6 = vrot.slane %v6751_v25, %v12904_v5  ;;  %v6807_v16 = vrot.slane %v6797_v58, %v12904_v5 }
 0x1fb   : > { %v6814_v57 = vrot.slane %v6798_v22, %v12904_v5  ;;  %v6821_v50 = vrot.slane %v6799_v24, %v12904_v5  ;;  %v6828_v8 = vrot.slane %v6800_v39, %v12904_v5  ;;  %v8206_v13 = vsel %vm8180_vm5, %v13699_v20, %v7949_v26 }
 0x1fc   : > { %v6780_v12 = vcombine.low %v6758_v49, %v6765_v63  ;;  %v6781_v48 = vcombine.low %v6772_v32, %v6779_v6  ;;  %v8208_v40 = vsel %vm8180_vm5, %v13702_v29, %v7951_v19  ;;  %v14613_v21 = vsel %vm8249_vm6, %v8206_v13, %v8137_v30 }
 0x1fd   : > { %v6829_v31 = vcombine.low %v6807_v16, %v6814_v57  ;;  %v6830_v7 = vcombine.low %v6821_v50, %v6828_v8  ;;  %v14616_v41 = vsel %vm8249_vm6, %v8208_v40, %v8139_v44  ;;  %12047 = vmatprep.mubr.msk.bf16.mxu1 %vm8328_vm7, %v14613_v21  ;;  %12181 = vmatprep.mubr.msk.bf16.mxu0 %vm8328_vm7, %v14613_v21 }
 0x1fe   : > { %17065 = vst [vmem:[#allocation4_spill] sm:$0xff] %v14616_v41  ;;  %v6788_v61 = vrot.slane %v6780_v12, %v12904_v5  ;;  %v6795_v17 = vrot.slane %v6781_v48, %v12904_v5  ;;  %v1200_v20 = vrot.slane %v14605_v33, %v12904_v5  ;;  %12048 = vmatmul.mubr.msk.bf16.gmra.mrb[40].mxu1 %vm8328_vm7, %v14616_v41 }
 0x1ff   : > { %v6837_v29 = vrot.slane %v6829_v31, %v12904_v5  ;;  %v6844_v26 = vrot.slane %v6830_v7, %v12904_v5  ;;  %v1225_v19 = vcombine.high %v11452_v10, %v11452_v10  ;;  %v14634_v55 = vrot.slane %v11452_v10, %v12904_v5  ;;  %12051 = vmatprep.mubr.msk.bf16.mxu1 %vm8328_vm7, %v14613_v21 }
 0x200   : > { %v6796_v53 = vcombine.low %v6788_v61, %v6795_v17  ;;  %v1201_v14 = vcombine.high %v1200_v20, %v1200_v20  ;;  %v1208_v23 = vrot.slane %v1200_v20, %v12904_v5  ;;  %v1248_v36 = vrot.slane %v14619_v37, %v12904_v5  ;;  %12182 = vmatmul.mubr.msk.bf16.gmra.mrb[44].mxu0 %vm8328_vm7, %v14616_v41 }
 0x201   : > { %v6845_v35 = vcombine.low %v6837_v29, %v6844_v26  ;;  %v14642_v3 = vrot.slane %v1225_v19, %v12904_v5  ;;  %v14646_v25 = vcombine.high %v14634_v55, %v14634_v55  ;;  %v1674_v58 = vunpack.i.h.s16 %v14634_v55  ;;  %12185 = vmatprep.mubr.msk.bf16.mxu0 %vm8328_vm7, %v14613_v21 }
 0x202   : > { %v7435_v22 = vshrl.u32 %v6796_v53, 16  ;;  %v7438_v24 = vshll.u32 %v6796_v53, 16  ;;  %v1215_v39 = vrot.slane %v1201_v14, %v12904_v5  ;;  %v1216_v49 = vcombine.high %v1208_v23, %v1208_v23 }
 0x203   : > { %v7442_v63 = vshrl.u32 %v6845_v35, 16  ;;  %v7445_v32 = vshll.u32 %v6845_v35, 16  ;;  %v14656_v6 = vcombine.high %v14642_v3, %v14642_v3  ;;  %v14659_v30 = vrot.slane %v1248_v36, %v12904_v5 }
 0x204   : > { %v7437_v44 = vrot.slane %v7435_v22, 7  ;;  %v1217_v16 = vcombine.high %v1215_v39, %v1215_v39  ;;  %v1666_v57 = vunpack.i.h.s16 %v1208_v23  ;;  %v1668_v50 = vunpack.i.h.s16 %v1215_v39 }
 0x205   : > { %v7444_v8 = vrot.slane %v7442_v63, 7  ;;  %v1670_v12 = vunpack.i.h.s16 %v1216_v49  ;;  %v1676_v48 = vunpack.i.h.s16 %v14642_v3  ;;  %v1678_v13 = vunpack.i.h.s16 %v14646_v25 }
 0x206   : > { %v7440_v40 = vor.u32 %v7438_v24, %v7437_v44  ;;  %v1672_v10 = vunpack.i.h.s16 %v1217_v16  ;;  %v1680_v31 = vunpack.i.h.s16 %v14656_v6  ;;  %v1954_v7 = vpack.i.b16 %v1666_v57, %v1666_v57  ;;  %12052 = vmatmul.mubr.msk.bf16.gmra.mrb[44].mxu1 %vm8328_vm7, %v14616_v41 }
 0x207   : > { %v7447_v61 = vor.u32 %v7445_v32, %v7444_v8  ;;  %v7578_v17 = vsel %vm13004_vm3, %v7444_v8, %v14480_v27  ;;  %v11568_v20 = vpack.i.b16 %v1215_v39, %v1215_v39  ;;  %v1956_v29 = vpack.i.b16 %v1668_v50, %v1668_v50 }
 0x208   : > { %v14672_v26 = vsel %vm13004_vm3, %v14466_v56, %v7440_v40  ;;  %v7860_v19 = vshll.u32 %v7578_v17, 16  ;;  %v8095_v53 = vrot.slane %v7578_v17, 1  ;;  %v11569_v14 = vpack.i.b16 %v1216_v49, %v1216_v49  ;;  %12186 = vmatmul.mubr.msk.bf16.gmra.mrb[48].mxu0 %vm8328_vm7, %v14616_v41 }
 0x209   : > { %17066 = vst [vmem:[#allocation5_spill] sm:$0xff] %v14672_v26  ;;  %v14675_v23 = vsel %vm7238_vm0, %v7437_v44, %v7447_v61  ;;  %v7845_v36 = vshrl.u32 %v14672_v26, 16  ;;  %v7847_v27 = vshll.u32 %v14672_v26, 16  ;;  %v8092_v35 = vrot.slane %v14672_v26, 1 }
 0x20a   : > { %v7852_v22 = vshll.u32 %v14675_v23, 16  ;;  %v7856_v56 = vshrl.u32 %v14675_v23, 16  ;;  %v7862_v24 = vrot.slane %v7860_v19, 1  ;;  %v8093_v39 = vrot.slane %v14675_v23, 1 }
 0x20b   : > { %v7849_v49 = vrot.slane %v7847_v27, 1  ;;  %v1958_v63 = vpack.i.b16 %v1670_v12, %v1670_v12  ;;  %v11570_v32 = vpack.i.b16 %v1217_v16, %v1217_v16  ;;  %v1960_v44 = vpack.i.b16 %v1672_v10, %v1672_v10 }
 0x20c   : > { %v7854_v57 = vrot.slane %v7852_v22, 1  ;;  %v8094_v50 = vsel %vm8026_vm2, %v8092_v35, %v8093_v39  ;;  %v8096_v8 = vsel %vm8026_vm2, %v8093_v39, %v8095_v53  ;;  %v11571_v40 = vpack.i.b16 %v14634_v55, %v14634_v55 }
 0x20d   : > { %v7850_v61 = vor.u32 %v7849_v49, %v7845_v36  ;;  %v1962_v17 = vpack.i.b16 %v1674_v58, %v1674_v58  ;;  %v11572_v26 = vpack.i.b16 %v14642_v3, %v14642_v3  ;;  %v1964_v19 = vpack.i.b16 %v1676_v48, %v1676_v48 }
 0x20e   : > { %v7858_v41 = vor.u32 %v7856_v56, %v7854_v57  ;;  %v11573_v12 = vpack.i.b16 %v14646_v25, %v14646_v25  ;;  %v1966_v16 = vpack.i.b16 %v1678_v13, %v1678_v13  ;;  %v11574_v10 = vpack.i.b16 %v14656_v6, %v14656_v6 }
 0x20f   : > { %v7855_v27 = vsel %vm7583_vm4, %v7850_v61, %v7854_v57  ;;  %v1968_v53 = vpack.i.b16 %v1680_v31, %v1680_v31  ;;  %v11575_v55 = vpack.i.b16 %v14659_v30, %v14659_v30  ;;  %v2917_v58 = vrot.slane %v1954_v7, %v12929_v15 }
 0x210   : > { %7976 = vrot.lane.b32.xlu0 %v7855_v27, %s12862_s21  ;;  %v7863_v3 = vsel %vm7583_vm4, %v7858_v41, %v7862_v24  ;;  %v2921_v48 = vrot.slane %v11568_v20, %v12929_v15  ;;  %v2925_v25 = vrot.slane %v1956_v29, %v12929_v15  ;;  %v2929_v13 = vrot.slane %v11569_v14, %v12929_v15 }
 0x211   : > { %7978 = vrot.lane.b32.xlu1 %v7863_v3, %s12862_s21  ;;  %v2933_v6 = vrot.slane %v1958_v63, %v12929_v15  ;;  %v2937_v31 = vrot.slane %v11570_v32, %v12929_v15  ;;  %v2941_v30 = vrot.slane %v1960_v44, %v12929_v15  ;;  %v2945_v7 = vrot.slane %v11571_v40, %v12929_v15  ;;  %v7955_v3 = vpop.permute.xlu1 %7954 }
 0x212   : > { %v2949_v36 = vrot.slane %v1962_v17, %v12929_v15  ;;  %v2953_v41 = vrot.slane %v11572_v26, %v12929_v15  ;;  %v2957_v20 = vrot.slane %v1964_v19, %v12929_v15  ;;  %v2961_v29 = vrot.slane %v11573_v12, %v12929_v15 }
 0x213   : > { %v2965_v14 = vrot.slane %v1966_v16, %v12929_v15  ;;  %v2969_v35 = vrot.slane %v11574_v10, %v12929_v15  ;;  %v2973_v22 = vrot.slane %v1968_v53, %v12929_v15  ;;  %v2977_v56 = vrot.slane %v11575_v55, %v12929_v15 }
 0x214   : > { %8164 = vrot.lane.b32.xlu0 %v8094_v50, %s12861_s20  ;;  %v4739_v24 = vpack.i.b16 %v2917_v58, %v2917_v58  ;;  %v4746_v39 = vpack.i.b16 %v2921_v48, %v2921_v48  ;;  %v4753_v49 = vpack.i.b16 %v2925_v25, %v2925_v25  ;;  %v4760_v63 = vpack.i.b16 %v2929_v13, %v2929_v13  ;;  %v7953_v58 = vpop.permute.xlu0 %7952 }
 0x215   : > { %8166 = vrot.lane.b32.xlu1 %v8096_v8, %s12861_s20  ;;  %v4767_v26 = vpack.i.b16 %v2933_v6, %v2933_v6  ;;  %v4774_v32 = vpack.i.b16 %v2937_v31, %v2937_v31  ;;  %v4781_v44 = vpack.i.b16 %v2941_v30, %v2941_v30  ;;  %v4788_v57 = vpack.i.b16 %v2945_v7, %v2945_v7 }
 0x216   : > { %v4744_v40 = vrot.slane %v4739_v24, %v12929_v15  ;;  %v4751_v61 = vrot.slane %v4746_v39, %v12929_v15  ;;  %v4758_v17 = vrot.slane %v4753_v49, %v12929_v15  ;;  %v4765_v19 = vrot.slane %v4760_v63, %v12929_v15 }
 0x217   : > { %v4772_v50 = vrot.slane %v4767_v26, %v12929_v15  ;;  %v4779_v12 = vrot.slane %v4774_v32, %v12929_v15  ;;  %v4786_v16 = vrot.slane %v4781_v44, %v12929_v15  ;;  %v4793_v8 = vrot.slane %v4788_v57, %v12929_v15 }
 0x218   : > { %v4795_v10 = vpack.i.b16 %v2949_v36, %v2949_v36  ;;  %v4802_v27 = vpack.i.b16 %v2953_v41, %v2953_v41  ;;  %v4809_v53 = vpack.i.b16 %v2957_v20, %v2957_v20  ;;  %v4816_v55 = vpack.i.b16 %v2961_v29, %v2961_v29 }
 0x219   : > { %v4823_v48 = vpack.i.b16 %v2965_v14, %v2965_v14  ;;  %v4830_v25 = vpack.i.b16 %v2969_v35, %v2969_v35  ;;  %v4837_v13 = vpack.i.b16 %v2973_v22, %v2973_v22  ;;  %v4844_v6 = vpack.i.b16 %v2977_v56, %v2977_v56 }
 0x21a   : > { %v4800_v31 = vrot.slane %v4795_v10, %v12929_v15  ;;  %v4807_v30 = vrot.slane %v4802_v27, %v12929_v15  ;;  %v4814_v7 = vrot.slane %v4809_v53, %v12929_v15  ;;  %v4821_v24 = vrot.slane %v4816_v55, %v12929_v15  ;;  %v8141_v27 = vpop.permute.xlu0 %8140 }
 0x21b   : > { %v4828_v39 = vrot.slane %v4823_v48, %v12929_v15  ;;  %v4835_v36 = vrot.slane %v4830_v25, %v12929_v15  ;;  %v4842_v41 = vrot.slane %v4837_v13, %v12929_v15  ;;  %v4849_v20 = vrot.slane %v4844_v6, %v12929_v15  ;;  %v11453_v48 = vld.sshfl [vmem:[%s12909_s19 + $0xb8] sm:$0x33 pattern:$0x75316420] }
 0x21c   : > { %v6846_v29 = vcombine.low %v4744_v40, %v4751_v61  ;;  %v6847_v14 = vcombine.low %v4758_v17, %v4765_v19  ;;  %v6848_v35 = vcombine.low %v4772_v50, %v4779_v12  ;;  %v6849_v22 = vcombine.low %v4786_v16, %v4793_v8  ;;  %v8143_v40 = vpop.permute.xlu1 %8142  ;;  %v14744_v12 = vld [vmem:[%s12909_s19 + $0xb4] sm:$0xf] }
 0x21d   : > { %v6895_v56 = vcombine.low %v4800_v31, %v4807_v30  ;;  %v6896_v49 = vcombine.low %v4814_v7, %v4821_v24  ;;  %v6897_v63 = vcombine.low %v4828_v39, %v4835_v36  ;;  %v6898_v26 = vcombine.low %v4842_v41, %v4849_v20  ;;  %v14758_v30 = vld [vmem:[%s12909_s19 + $0xbc] sm:$0x1] }
 0x21e   : > { %v6856_v32 = vrot.slane %v6846_v29, %v12904_v5  ;;  %v6863_v44 = vrot.slane %v6847_v14, %v12904_v5  ;;  %v6870_v57 = vrot.slane %v6848_v35, %v12904_v5  ;;  %v6877_v10 = vrot.slane %v6849_v22, %v12904_v5 }
 0x21f   : > { %v6905_v61 = vrot.slane %v6895_v56, %v12904_v5  ;;  %v6912_v17 = vrot.slane %v6896_v49, %v12904_v5  ;;  %v6919_v19 = vrot.slane %v6897_v63, %v12904_v5  ;;  %v6926_v50 = vrot.slane %v6898_v26, %v12904_v5 }
 0x220   : > { %v6878_v16 = vcombine.low %v6856_v32, %v6863_v44  ;;  %v6879_v8 = vcombine.low %v6870_v57, %v6877_v10  ;;  %v8210_v53 = vsel %vm8180_vm5, %v13812_v4, %v7953_v58  ;;  %v8212_v55 = vsel %vm8180_vm5, %v13817_v47, %v7955_v3 }
 0x221   : > { %v6927_v25 = vcombine.low %v6905_v61, %v6912_v17  ;;  %v6928_v13 = vcombine.low %v6919_v19, %v6926_v50  ;;  %v14752_v6 = vsel %vm8249_vm6, %v8210_v53, %v8141_v27  ;;  %v14755_v31 = vsel %vm8249_vm6, %v8212_v55, %v8143_v40 }
 0x222   : > { %17067 = vst [vmem:[#allocation6_spill] sm:$0xff] %v14755_v31  ;;  %v6886_v7 = vrot.slane %v6878_v16, %v12904_v5  ;;  %v6893_v24 = vrot.slane %v6879_v8, %v12904_v5  ;;  %12055 = vmatprep.mubr.msk.bf16.mxu1 %vm8328_vm7, %v14752_v6  ;;  %12189 = vmatprep.mubr.msk.bf16.mxu0 %vm8328_vm7, %v14752_v6 }
 0x223   : > { %v1262_v4 = vrot.slane %v14744_v12, %v12904_v5  ;;  %v6935_v47 = vrot.slane %v6927_v25, %v12904_v5  ;;  %v6942_v58 = vrot.slane %v6928_v13, %v12904_v5  ;;  %12056 = vmatmul.mubr.msk.bf16.gmra.mrb[48].mxu1 %vm8328_vm7, %v14755_v31  ;;  %v1287_v3 = vcombine.high %v11453_v48, %v11453_v48 }
 0x224   : > { %v14773_v39 = vrot.slane %v11453_v48, %v12904_v5  ;;  %v6894_v36 = vcombine.low %v6886_v7, %v6893_v24  ;;  %12059 = vmatprep.mubr.msk.bf16.mxu1 %vm8328_vm7, %v14752_v6  ;;  %v1310_v29 = vrot.slane %v14758_v30, %v12904_v5  ;;  %12190 = vmatmul.mubr.msk.bf16.gmra.mrb[52].mxu0 %vm8328_vm7, %v14755_v31 }
 0x225   : > { %v1263_v41 = vcombine.high %v1262_v4, %v1262_v4  ;;  %v1270_v20 = vrot.slane %v1262_v4, %v12904_v5  ;;  %v6943_v14 = vcombine.low %v6935_v47, %v6942_v58  ;;  %v14781_v35 = vrot.slane %v1287_v3, %v12904_v5  ;;  %12193 = vmatprep.mubr.msk.bf16.mxu0 %vm8328_vm7, %v14752_v6 }
 0x226   : > { %v14785_v22 = vcombine.high %v14773_v39, %v14773_v39  ;;  %v1690_v56 = vunpack.i.h.s16 %v14773_v39  ;;  %v7450_v49 = vshrl.u32 %v6894_v36, 16  ;;  %v7453_v63 = vshll.u32 %v6894_v36, 16 }
 0x227   : > { %v1277_v26 = vrot.slane %v1263_v41, %v12904_v5  ;;  %v1278_v32 = vcombine.high %v1270_v20, %v1270_v20  ;;  %v7457_v44 = vshrl.u32 %v6943_v14, 16  ;;  %v7460_v57 = vshll.u32 %v6943_v14, 16 }
 0x228   : > { %v14795_v10 = vcombine.high %v14781_v35, %v14781_v35  ;;  %v14798_v27 = vrot.slane %v1310_v29, %v12904_v5  ;;  %v7452_v40 = vrot.slane %v7450_v49, 7  ;;  %v1682_v17 = vunpack.i.h.s16 %v1270_v20 }
 0x229   : > { %v1279_v61 = vcombine.high %v1277_v26, %v1277_v26  ;;  %v1684_v19 = vunpack.i.h.s16 %v1277_v26  ;;  %v7459_v50 = vrot.slane %v7457_v44, 7  ;;  %v1686_v16 = vunpack.i.h.s16 %v1278_v32 }
 0x22a   : > { %v1692_v8 = vunpack.i.h.s16 %v14781_v35  ;;  %v1694_v53 = vunpack.i.h.s16 %v14785_v22  ;;  %v7455_v55 = vor.u32 %v7453_v63, %v7452_v40  ;;  %v1696_v25 = vunpack.i.h.s16 %v14795_v10 }
 0x22b   : > { %v1688_v48 = vunpack.i.h.s16 %v1279_v61  ;;  %v1970_v13 = vpack.i.b16 %v1682_v17, %v1682_v17  ;;  %v7462_v7 = vor.u32 %v7460_v57, %v7459_v50  ;;  %v7579_v24 = vsel %vm13004_vm3, %v7459_v50, %v14619_v37  ;;  %12060 = vmatmul.mubr.msk.bf16.gmra.mrb[52].mxu1 %vm8328_vm7, %v14755_v31 }
 0x22c   : > { %v11576_v4 = vpack.i.b16 %v1277_v26, %v1277_v26  ;;  %v1972_v47 = vpack.i.b16 %v1684_v19, %v1684_v19  ;;  %v14811_v58 = vsel %vm13004_vm3, %v14605_v33, %v7455_v55  ;;  %v7880_v3 = vshll.u32 %v7579_v24, 16  ;;  %12194 = vmatmul.mubr.msk.bf16.gmra.mrb[56].mxu0 %vm8328_vm7, %v14755_v31 }
 0x22d   : > { %17068 = vst [vmem:[#allocation7_spill] sm:$0xff] %v14811_v58  ;;  %v8100_v36 = vrot.slane %v7579_v24, 1  ;;  %v11577_v41 = vpack.i.b16 %v1278_v32, %v1278_v32  ;;  %v14814_v20 = vsel %vm7238_vm0, %v7452_v40, %v7462_v7  ;;  %v7865_v29 = vshrl.u32 %v14811_v58, 16 }
 0x22e   : > { %v7867_v37 = vshll.u32 %v14811_v58, 16  ;;  %v8097_v14 = vrot.slane %v14811_v58, 1  ;;  %v7872_v49 = vshll.u32 %v14814_v20, 16  ;;  %v7876_v33 = vshrl.u32 %v14814_v20, 16 }
 0x22f   : > { %v7882_v63 = vrot.slane %v7880_v3, 1  ;;  %v8098_v26 = vrot.slane %v14814_v20, 1  ;;  %v1974_v44 = vpack.i.b16 %v1686_v16, %v1686_v16  ;;  %v11578_v57 = vpack.i.b16 %v1279_v61, %v1279_v61 }
 0x230   : > { %v7869_v32 = vrot.slane %v7867_v37, 1  ;;  %v1976_v40 = vpack.i.b16 %v1688_v48, %v1688_v48  ;;  %v7874_v17 = vrot.slane %v7872_v49, 1  ;;  %v11579_v55 = vpack.i.b16 %v14773_v39, %v14773_v39 }
 0x231   : > { %v8099_v19 = vsel %vm8026_vm2, %v8097_v14, %v8098_v26  ;;  %v8101_v50 = vsel %vm8026_vm2, %v8098_v26, %v8100_v36  ;;  %v1978_v24 = vpack.i.b16 %v1690_v56, %v1690_v56  ;;  %v11580_v58 = vpack.i.b16 %v14781_v35, %v14781_v35 }
 0x232   : > { %v7870_v7 = vor.u32 %v7869_v32, %v7865_v29  ;;  %v1980_v3 = vpack.i.b16 %v1692_v8, %v1692_v8  ;;  %v7878_v31 = vor.u32 %v7876_v33, %v7874_v17  ;;  %v11581_v16 = vpack.i.b16 %v14785_v22, %v14785_v22 }
 0x233   : > { %v1982_v61 = vpack.i.b16 %v1694_v53, %v1694_v53  ;;  %v11582_v48 = vpack.i.b16 %v14795_v10, %v14795_v10  ;;  %v1984_v36 = vpack.i.b16 %v1696_v25, %v1696_v25  ;;  %v11583_v39 = vpack.i.b16 %v14798_v27, %v14798_v27 }
 0x234   : > { %v7875_v37 = vsel %vm7583_vm4, %v7870_v7, %v7874_v17  ;;  %v2981_v56 = vrot.slane %v1970_v13, %v12929_v15  ;;  %v7883_v35 = vsel %vm7583_vm4, %v7878_v31, %v7882_v63  ;;  %v2985_v8 = vrot.slane %v11576_v4, %v12929_v15 }
 0x235   : > { %7980 = vrot.lane.b32.xlu0 %v7875_v37, %s12862_s21  ;;  %v2989_v22 = vrot.slane %v1972_v47, %v12929_v15  ;;  %v2993_v53 = vrot.slane %v11577_v41, %v12929_v15  ;;  %7982 = vrot.lane.b32.xlu1 %v7883_v35, %s12862_s21  ;;  %v2997_v10 = vrot.slane %v1974_v44, %v12929_v15  ;;  %v7959_v35 = vpop.permute.xlu1 %7958 }
 0x236   : > { %v3001_v25 = vrot.slane %v11578_v57, %v12929_v15  ;;  %v3005_v27 = vrot.slane %v1976_v40, %v12929_v15  ;;  %v3009_v13 = vrot.slane %v11579_v55, %v12929_v15  ;;  %v3013_v29 = vrot.slane %v1978_v24, %v12929_v15 }
 0x237   : > { %v3017_v31 = vrot.slane %v11580_v58, %v12929_v15  ;;  %v3021_v4 = vrot.slane %v1980_v3, %v12929_v15  ;;  %v3025_v47 = vrot.slane %v11581_v16, %v12929_v15  ;;  %v3029_v41 = vrot.slane %v1982_v61, %v12929_v15 }
 0x238   : > { %v3033_v14 = vrot.slane %v11582_v48, %v12929_v15  ;;  %v3037_v49 = vrot.slane %v1984_v36, %v12929_v15  ;;  %v3041_v33 = vrot.slane %v11583_v39, %v12929_v15  ;;  %v4851_v63 = vpack.i.b16 %v2981_v56, %v2981_v56  ;;  %v7957_v48 = vpop.permute.xlu0 %7956 }
 0x239   : > { %8168 = vrot.lane.b32.xlu0 %v8099_v19, %s12861_s20  ;;  %v4858_v26 = vpack.i.b16 %v2985_v8, %v2985_v8  ;;  %v4865_v32 = vpack.i.b16 %v2989_v22, %v2989_v22  ;;  %v4872_v44 = vpack.i.b16 %v2993_v53, %v2993_v53  ;;  %8170 = vrot.lane.b32.xlu1 %v8101_v50, %s12861_s20  ;;  %v14866_v8 = vpop.f32.mrb[0].mxu1 }
 0x23a   : > { %v4879_v58 = vpack.i.b16 %v2997_v10, %v2997_v10  ;;  %v4886_v57 = vpack.i.b16 %v3001_v25, %v3001_v25  ;;  %v4893_v40 = vpack.i.b16 %v3005_v27, %v3005_v27  ;;  %v4900_v17 = vpack.i.b16 %v3009_v13, %v3009_v13  ;;  %17069 = vst [vmem:[#allocation8_spill] sm:$0xff] %v14866_v8  ;;  %v14868_v27 = vpop.f32.mrb[1].mxu1 }
 0x23b   : > { %v4856_v55 = vrot.slane %v4851_v63, %v12929_v15  ;;  %v4863_v7 = vrot.slane %v4858_v26, %v12929_v15  ;;  %v4870_v24 = vrot.slane %v4865_v32, %v12929_v15  ;;  %v4877_v3 = vrot.slane %v4872_v44, %v12929_v15  ;;  %17070 = vst [vmem:[#allocation9_spill] sm:$0xff] %v14868_v27 }
 0x23c   : > { %v4884_v19 = vrot.slane %v4879_v58, %v12929_v15  ;;  %v4891_v16 = vrot.slane %v4886_v57, %v12929_v15  ;;  %v4898_v61 = vrot.slane %v4893_v40, %v12929_v15  ;;  %v4905_v50 = vrot.slane %v4900_v17, %v12929_v15 }
 0x23d   : > { %v4907_v37 = vpack.i.b16 %v3013_v29, %v3013_v29  ;;  %v4914_v36 = vpack.i.b16 %v3017_v31, %v3017_v31  ;;  %v4921_v39 = vpack.i.b16 %v3021_v4, %v3021_v4  ;;  %v4928_v56 = vpack.i.b16 %v3025_v47, %v3025_v47  ;;  %v14874_v31 = vpop.f32.mrb[2].mxu1 }
 0x23e   : > { %v4935_v22 = vpack.i.b16 %v3029_v41, %v3029_v41  ;;  %v4942_v53 = vpack.i.b16 %v3033_v14, %v3033_v14  ;;  %v4949_v10 = vpack.i.b16 %v3037_v49, %v3037_v49  ;;  %v4956_v25 = vpack.i.b16 %v3041_v33, %v3041_v33  ;;  %17071 = vst [vmem:[#allocation10_spill] sm:$0xff] %v14874_v31  ;;  %v14880_v49 = vpop.f32.mrb[3].mxu1 }
 0x23f   : > { %v4912_v13 = vrot.slane %v4907_v37, %v12929_v15  ;;  %v4919_v63 = vrot.slane %v4914_v36, %v12929_v15  ;;  %v4926_v26 = vrot.slane %v4921_v39, %v12929_v15  ;;  %v4933_v29 = vrot.slane %v4928_v56, %v12929_v15  ;;  %17072 = vst [vmem:[#allocation11_spill] sm:$0xff] %v14880_v49 }
 0x240   : > { %v4940_v4 = vrot.slane %v4935_v22, %v12929_v15  ;;  %v4947_v47 = vrot.slane %v4942_v53, %v12929_v15  ;;  %v4954_v41 = vrot.slane %v4949_v10, %v12929_v15  ;;  %v4961_v14 = vrot.slane %v4956_v25, %v12929_v15  ;;  %v8145_v53 = vpop.permute.xlu0 %8144 }
 0x241   : > { %v6944_v33 = vcombine.low %v4856_v55, %v4863_v7  ;;  %v6945_v32 = vcombine.low %v4870_v24, %v4877_v3  ;;  %v6946_v44 = vcombine.low %v4884_v19, %v4891_v16  ;;  %v6947_v58 = vcombine.low %v4898_v61, %v4905_v50  ;;  %v8147_v55 = vpop.permute.xlu1 %8146  ;;  %v14891_v16 = vld [vmem:[%s12909_s19 + $0xc0] sm:$0xf] }
 0x242   : > { %v6993_v57 = vcombine.low %v4912_v13, %v4919_v63  ;;  %v6994_v40 = vcombine.low %v4926_v26, %v4933_v29  ;;  %v6995_v17 = vcombine.low %v4940_v4, %v4947_v47  ;;  %v6996_v37 = vcombine.low %v4954_v41, %v4961_v14  ;;  %v11454_v13 = vld.sshfl [vmem:[%s12909_s19 + $0xc4] sm:$0x33 pattern:$0x75316420]  ;;  %v14905_v47 = vld [vmem:[%s12909_s19 + $0xc8] sm:$0x1] }
 0x243   : > { %v6954_v36 = vrot.slane %v6944_v33, %v12904_v5  ;;  %v6961_v39 = vrot.slane %v6945_v32, %v12904_v5  ;;  %v6968_v56 = vrot.slane %v6946_v44, %v12904_v5  ;;  %v6975_v22 = vrot.slane %v6947_v58, %v12904_v5 }
 0x244   : > { %v7003_v7 = vrot.slane %v6993_v57, %v12904_v5  ;;  %v7010_v24 = vrot.slane %v6994_v40, %v12904_v5  ;;  %v7017_v3 = vrot.slane %v6995_v17, %v12904_v5  ;;  %v7024_v19 = vrot.slane %v6996_v37, %v12904_v5 }
 0x245   : > { %v6976_v61 = vcombine.low %v6954_v36, %v6961_v39  ;;  %v6977_v50 = vcombine.low %v6968_v56, %v6975_v22  ;;  %v8214_v10 = vsel %vm8180_vm5, %v13968_v0, %v7957_v48  ;;  %v8216_v25 = vsel %vm8180_vm5, %v13971_v2, %v7959_v35 }
 0x246   : > { %v7025_v63 = vcombine.low %v7003_v7, %v7010_v24  ;;  %v7026_v26 = vcombine.low %v7017_v3, %v7024_v19  ;;  %v14899_v29 = vsel %vm8249_vm6, %v8214_v10, %v8145_v53  ;;  %v14902_v4 = vsel %vm8249_vm6, %v8216_v25, %v8147_v55 }
 0x247   : > { %v6984_v41 = vrot.slane %v6976_v61, %v12904_v5  ;;  %v6991_v14 = vrot.slane %v6977_v50, %v12904_v5  ;;  %12063 = vmatprep.mubr.msk.bf16.mxu1 %vm8328_vm7, %v14899_v29  ;;  %12197 = vmatprep.mubr.msk.bf16.mxu0 %vm8328_vm7, %v14899_v29  ;;  %v1324_v0 = vrot.slane %v14891_v16, %v12904_v5 }
 0x248   : > { %v7033_v2 = vrot.slane %v7025_v63, %v12904_v5  ;;  %v7040_v48 = vrot.slane %v7026_v26, %v12904_v5  ;;  %12064 = vmatmul.mubr.msk.bf16.gmra.mrb[56].mxu1 %vm8328_vm7, %v14902_v4  ;;  %v1349_v35 = vcombine.high %v11454_v13, %v11454_v13  ;;  %v14920_v33 = vrot.slane %v11454_v13, %v12904_v5 }
 0x249   : > { %v6992_v32 = vcombine.low %v6984_v41, %v6991_v14  ;;  %12067 = vmatprep.mubr.msk.bf16.mxu1 %vm8328_vm7, %v14899_v29  ;;  %v1325_v44 = vcombine.high %v1324_v0, %v1324_v0  ;;  %v1332_v58 = vrot.slane %v1324_v0, %v12904_v5  ;;  %v1372_v57 = vrot.slane %v14905_v47, %v12904_v5 }
 0x24a   : > { %v7041_v40 = vcombine.low %v7033_v2, %v7040_v48  ;;  %v14928_v17 = vrot.slane %v1349_v35, %v12904_v5  ;;  %v14932_v37 = vcombine.high %v14920_v33, %v14920_v33  ;;  %v1706_v36 = vunpack.i.h.s16 %v14920_v33  ;;  %12198 = vmatmul.mubr.msk.bf16.gmra.mrb[60].mxu0 %vm8328_vm7, %v14902_v4 }
 0x24b   : > { %v7465_v39 = vshrl.u32 %v6992_v32, 16  ;;  %v7468_v56 = vshll.u32 %v6992_v32, 16  ;;  %v14938_v22 = vrot.slane %v1325_v44, %v12904_v5  ;;  %v14940_v53 = vcombine.high %v1332_v58, %v1332_v58  ;;  %12267 = vmatprep.mubr.msk.bf16.mxu0 %vm8328_vm7, %v13916_v59 }
 0x24c   : > { %v7472_v55 = vshrl.u32 %v7041_v40, 16  ;;  %v7475_v7 = vshll.u32 %v7041_v40, 16  ;;  %v14946_v24 = vcombine.high %v14928_v17, %v14928_v17  ;;  %v14949_v3 = vrot.slane %v1372_v57, %v12904_v5 }
 0x24d   : > { %v7467_v19 = vrot.slane %v7465_v39, 7  ;;  %v14953_v61 = vcombine.high %v14938_v22, %v14938_v22  ;;  %v1698_v50 = vunpack.i.h.s16 %v1332_v58  ;;  %v1700_v10 = vunpack.i.h.s16 %v14938_v22  ;;  %v14975_v39 = vpop.f32.mrb[4].mxu1 }
 0x24e   : > { %v7474_v25 = vrot.slane %v7472_v55, 7  ;;  %v1702_v59 = vunpack.i.h.s16 %v14940_v53  ;;  %v1708_v13 = vunpack.i.h.s16 %v14928_v17  ;;  %v1710_v63 = vunpack.i.h.s16 %v14932_v37  ;;  %17073 = vst [vmem:[#allocation12_spill] sm:$0xff] %v14975_v39 }
 0x24f   : > { %v7470_v26 = vor.u32 %v7468_v56, %v7467_v19  ;;  %v1704_v41 = vunpack.i.h.s16 %v14953_v61  ;;  %v1712_v14 = vunpack.i.h.s16 %v14946_v24  ;;  %v1986_v0 = vpack.i.b16 %v1698_v50, %v1698_v50 }
 0x250   : > { %v7477_v2 = vor.u32 %v7475_v7, %v7474_v25  ;;  %v7580_v48 = vsel %vm13004_vm3, %v7474_v25, %v14758_v30  ;;  %v11584_v35 = vpack.i.b16 %v14938_v22, %v14938_v22  ;;  %v1988_v32 = vpack.i.b16 %v1700_v10, %v1700_v10  ;;  %12068 = vmatmul.mubr.msk.bf16.gmra.mrb[60].mxu1 %vm8328_vm7, %v14902_v4 }
 0x251   : > { %v14971_v44 = vsel %vm13004_vm3, %v14744_v12, %v7470_v26  ;;  %v7900_v58 = vshll.u32 %v7580_v48, 16  ;;  %v8105_v57 = vrot.slane %v7580_v48, 1  ;;  %v11585_v40 = vpack.i.b16 %v14940_v53, %v14940_v53  ;;  %v14985_v12 = vpop.f32.mrb[5].mxu1  ;;  %v14996_v48 = vpop.permute.xlu0 %7960 }
 0x252   : > { %v14978_v30 = vsel %vm7238_vm0, %v7467_v19, %v7477_v2  ;;  %v7885_v56 = vshrl.u32 %v14971_v44, 16  ;;  %v7887_v22 = vshll.u32 %v14971_v44, 16  ;;  %v8102_v55 = vrot.slane %v14971_v44, 1  ;;  %12268 = vmatmul.mubr.msk.bf16.vlgmr.msra.gmra.mrb[0].mxu0 %vm8328_vm7, %v13911_v54  ;;  %17074 = vst [vmem:[#allocation13_spill] sm:$0xff] %v14985_v12  ;;  %v14992_v19 = vpop.f32.mrb[6].mxu1 }
 0x253   : > { %v7892_v7 = vshll.u32 %v14978_v30, 16  ;;  %v7896_v53 = vshrl.u32 %v14978_v30, 16  ;;  %v7902_v50 = vrot.slane %v7900_v58, 1  ;;  %v8103_v10 = vrot.slane %v14978_v30, 1  ;;  %12271 = vmatprep.mubr.msk.bf16.mxu0 %vm8328_vm7, %v14057_v1  ;;  %17075 = vst [vmem:[#allocation14_spill] sm:$0xff] %v14992_v19  ;;  %v14998_v12 = vpop.f32.mrb[7].mxu1  ;;  %v15008_v19 = vpop.permute.xlu1 %7962 }
 0x254   : > { %v7889_v25 = vrot.slane %v7887_v22, 1  ;;  %v1990_v26 = vpack.i.b16 %v1702_v59, %v1702_v59  ;;  %v11586_v2 = vpack.i.b16 %v14953_v61, %v14953_v61  ;;  %v1992_v54 = vpack.i.b16 %v1704_v41, %v1704_v41  ;;  %v15004_v27 = vpop.f32.mrb[8].mxu1 }
 0x255   : > { %v7894_v39 = vrot.slane %v7892_v7, 1  ;;  %v8104_v58 = vsel %vm8026_vm2, %v8102_v55, %v8103_v10  ;;  %v8106_v49 = vsel %vm8026_vm2, %v8103_v10, %v8105_v57  ;;  %v11587_v31 = vpack.i.b16 %v14920_v33, %v14920_v33  ;;  %v15010_v8 = vpop.f32.mrb[9].mxu1 }
 0x256   : > { %v7890_v22 = vor.u32 %v7889_v25, %v7885_v56  ;;  %v1994_v59 = vpack.i.b16 %v1706_v36, %v1706_v36  ;;  %v11588_v61 = vpack.i.b16 %v14928_v17, %v14928_v17  ;;  %v1996_v41 = vpack.i.b16 %v1708_v13, %v1708_v13  ;;  %17076 = vst [vmem:[#allocation15_spill] sm:$0xff] %v15010_v8  ;;  %v15016_v10 = vpop.f32.mrb[10].mxu1 }
 0x257   : > { %v7898_v7 = vor.u32 %v7896_v53, %v7894_v39  ;;  %v11589_v55 = vpack.i.b16 %v14932_v37, %v14932_v37  ;;  %v1998_v57 = vpack.i.b16 %v1710_v63, %v1710_v63  ;;  %v11590_v33 = vpack.i.b16 %v14946_v24, %v14946_v24  ;;  %17077 = vst [vmem:[#allocation16_spill] sm:$0xff] %v15016_v10  ;;  %v15022_v25 = vpop.f32.mrb[11].mxu1 }
 0x258   : > { %v7895_v36 = vsel %vm7583_vm4, %v7890_v22, %v7894_v39  ;;  %v2000_v56 = vpack.i.b16 %v1712_v14, %v1712_v14  ;;  %v11591_v17 = vpack.i.b16 %v14949_v3, %v14949_v3  ;;  %v3045_v13 = vrot.slane %v1986_v0, %v12929_v15  ;;  %17078 = vst [vmem:[#allocation17_spill] sm:$0xff] %v15022_v25  ;;  %v15034_v22 = vpop.permute.xlu0 %8148 }
 0x259   : > { %7984 = vrot.lane.b32.xlu0 %v7895_v36, %s12862_s21  ;;  %v7903_v37 = vsel %vm7583_vm4, %v7898_v7, %v7902_v50  ;;  %v3049_v63 = vrot.slane %v11584_v35, %v12929_v15  ;;  %v3053_v24 = vrot.slane %v1988_v32, %v12929_v15  ;;  %v3057_v53 = vrot.slane %v11585_v40, %v12929_v15  ;;  %v15046_v7 = vpop.permute.xlu1 %8150 }
 0x25a   : > { %7986 = vrot.lane.b32.xlu1 %v7903_v37, %s12862_s21  ;;  %v3061_v14 = vrot.slane %v1990_v26, %v12929_v15  ;;  %v3065_v3 = vrot.slane %v11586_v2, %v12929_v15  ;;  %v3069_v0 = vrot.slane %v1992_v54, %v12929_v15  ;;  %v3073_v39 = vrot.slane %v11587_v31, %v12929_v15 }
 0x25b   : > { %v3077_v50 = vrot.slane %v1994_v59, %v12929_v15  ;;  %v3081_v35 = vrot.slane %v11588_v61, %v12929_v15  ;;  %v3085_v32 = vrot.slane %v1996_v41, %v12929_v15  ;;  %v3089_v40 = vrot.slane %v11589_v55, %v12929_v15  ;;  %12272 = vmatmul.mubr.msk.bf16.gmra.mrb[4].mxu0 %vm8328_vm7, %v14060_v51 }
 0x25c   : > { %v3093_v26 = vrot.slane %v1998_v57, %v12929_v15  ;;  %v3097_v2 = vrot.slane %v11590_v33, %v12929_v15  ;;  %v3101_v54 = vrot.slane %v2000_v56, %v12929_v15  ;;  %v3105_v31 = vrot.slane %v11591_v17, %v12929_v15  ;;  %12275 = vmatprep.mubr.msk.bf16.mxu0 %vm8328_vm7, %v14057_v1  ;;  %v15052_v56 = vpop.permute.xlu0 %7964 }
 0x25d   : > { %8172 = vrot.lane.b32.xlu0 %v8104_v58, %s12861_s20  ;;  %v4963_v59 = vpack.i.b16 %v3045_v13, %v3045_v13  ;;  %v4970_v61 = vpack.i.b16 %v3049_v63, %v3049_v63  ;;  %v4977_v41 = vpack.i.b16 %v3053_v24, %v3053_v24  ;;  %v4984_v55 = vpack.i.b16 %v3057_v53, %v3057_v53  ;;  %v15062_v53 = vpop.permute.xlu1 %7966 }
 0x25e   : > { %8174 = vrot.lane.b32.xlu1 %v8106_v49, %s12861_s20  ;;  %v4991_v57 = vpack.i.b16 %v3061_v14, %v3061_v14  ;;  %v4998_v36 = vpack.i.b16 %v3065_v3, %v3065_v3  ;;  %v5005_v33 = vpack.i.b16 %v3069_v0, %v3069_v0  ;;  %v5012_v37 = vpack.i.b16 %v3073_v39, %v3073_v39 }
 0x25f   : > { %v4968_v17 = vrot.slane %v4963_v59, %v12929_v15  ;;  %v4975_v25 = vrot.slane %v4970_v61, %v12929_v15  ;;  %v4982_v1 = vrot.slane %v4977_v41, %v12929_v15  ;;  %v4989_v58 = vrot.slane %v4984_v55, %v12929_v15 }
 0x260   : > { %v4996_v13 = vrot.slane %v4991_v57, %v12929_v15  ;;  %v5003_v63 = vrot.slane %v4998_v36, %v12929_v15  ;;  %v5010_v49 = vrot.slane %v5005_v33, %v12929_v15  ;;  %v5017_v24 = vrot.slane %v5012_v37, %v12929_v15 }
 0x261   : > { %v5019_v14 = vpack.i.b16 %v3077_v50, %v3077_v50  ;;  %v5026_v3 = vpack.i.b16 %v3081_v35, %v3081_v35  ;;  %v5033_v0 = vpack.i.b16 %v3085_v32, %v3085_v32  ;;  %v5040_v39 = vpack.i.b16 %v3089_v40, %v3089_v40 }
 0x262   : > { %v5047_v59 = vpack.i.b16 %v3093_v26, %v3093_v26  ;;  %v5054_v61 = vpack.i.b16 %v3097_v2, %v3097_v2  ;;  %v5061_v10 = vpack.i.b16 %v3101_v54, %v3101_v54  ;;  %v5068_v41 = vpack.i.b16 %v3105_v31, %v3105_v31  ;;  %v8153_v26 = vpop.permute.xlu0 %8152 }
 0x263   : > { %v5024_v55 = vrot.slane %v5019_v14, %v12929_v15  ;;  %v5031_v57 = vrot.slane %v5026_v3, %v12929_v15  ;;  %v5038_v36 = vrot.slane %v5033_v0, %v12929_v15  ;;  %v5045_v33 = vrot.slane %v5040_v39, %v12929_v15  ;;  %12276 = vmatmul.mubr.msk.bf16.gmra.mrb[8].mxu0 %vm8328_vm7, %v14060_v51  ;;  %v8155_v39 = vpop.permute.xlu1 %8154 }
 0x264   : > { %v5052_v50 = vrot.slane %v5047_v59, %v12929_v15  ;;  %v5059_v35 = vrot.slane %v5054_v61, %v12929_v15  ;;  %v5066_v32 = vrot.slane %v5061_v10, %v12929_v15  ;;  %v5073_v40 = vrot.slane %v5068_v41, %v12929_v15  ;;  %12279 = vmatprep.mubr.msk.bf16.mxu0 %vm8328_vm7, %v14196_v18 }
 0x265   : > { %v7042_v2 = vcombine.low %v4968_v17, %v4975_v25  ;;  %v7043_v54 = vcombine.low %v4982_v1, %v4989_v58  ;;  %v7044_v31 = vcombine.low %v4996_v13, %v5003_v63  ;;  %v7045_v37 = vcombine.low %v5010_v49, %v5017_v24 }
 0x266   : > { %v7091_v14 = vcombine.low %v5024_v55, %v5031_v57  ;;  %v7092_v3 = vcombine.low %v5038_v36, %v5045_v33  ;;  %v7093_v0 = vcombine.low %v5052_v50, %v5059_v35  ;;  %v7094_v51 = vcombine.low %v5066_v32, %v5073_v40  ;;  %v7969_v58 = vpop.permute.xlu0 %7968  ;;  %v11455_v40 = vld.sshfl [vmem:[%s12909_s19 + $0xd0] sm:$0x33 pattern:$0x75316420] }
 0x267   : > { %v7052_v59 = vrot.slane %v7042_v2, %v12904_v5  ;;  %v7059_v61 = vrot.slane %v7043_v54, %v12904_v5  ;;  %v7066_v10 = vrot.slane %v7044_v31, %v12904_v5  ;;  %v7073_v41 = vrot.slane %v7045_v37, %v12904_v5  ;;  %v7971_v33 = vpop.permute.xlu1 %7970 }
 0x268   : > { %v7101_v8 = vrot.slane %v7091_v14, %v12904_v5  ;;  %v7108_v25 = vrot.slane %v7092_v3, %v12904_v5  ;;  %v7115_v17 = vrot.slane %v7093_v0, %v12904_v5  ;;  %v7122_v1 = vrot.slane %v7094_v51, %v12904_v5 }
 0x269   : > { %v7074_v13 = vcombine.low %v7052_v59, %v7059_v61  ;;  %v7075_v63 = vcombine.low %v7066_v10, %v7073_v41  ;;  %v8218_v49 = vsel %vm8180_vm5, %v14116_v38, %v14996_v48  ;;  %v8220_v24 = vsel %vm8180_vm5, %v14119_v60, %v15008_v19  ;;  %v15111_v48 = vld [vmem:[%s12909_s19 + $0xcc] sm:$0xf]  ;;  %v15132_v59 = vld [vmem:[%s12909_s19 + $0xd4] sm:$0x1] }
 0x26a   : > { %v7123_v55 = vcombine.low %v7101_v8, %v7108_v25  ;;  %v7124_v57 = vcombine.low %v7115_v17, %v7122_v1  ;;  %v15092_v36 = vsel %vm8249_vm6, %v8218_v49, %v15034_v22  ;;  %v15098_v38 = vsel %vm8249_vm6, %v8220_v24, %v15046_v7  ;;  %v8157_v32 = vpop.permute.xlu0 %8156 }
 0x26b   : > { %v7082_v50 = vrot.slane %v7074_v13, %v12904_v5  ;;  %v7089_v35 = vrot.slane %v7075_v63, %v12904_v5  ;;  %12071 = vmatprep.mubr.msk.bf16.mxu1 %vm8328_vm7, %v15092_v36  ;;  %12280 = vmatmul.mubr.msk.bf16.gmra.mrb[12].mxu0 %vm8328_vm7, %v14199_v34  ;;  %v8222_v7 = vsel %vm8180_vm5, %v14255_v9, %v15052_v56  ;;  %v8159_v9 = vpop.permute.xlu1 %8158  ;;  %v15156_v13 = vpop.f32.mrb[12].mxu1 }
 0x26c   : > { %v7131_v60 = vrot.slane %v7123_v55, %v12904_v5  ;;  %v7138_v8 = vrot.slane %v7124_v57, %v12904_v5  ;;  %12072 = vmatmul.mubr.msk.bf16.gmra.mrb[64].mxu1 %vm8328_vm7, %v15098_v38  ;;  %12283 = vmatprep.mubr.msk.bf16.mxu0 %vm8328_vm7, %v14196_v18  ;;  %v8224_v31 = vsel %vm8180_vm5, %v14258_v46, %v15062_v53 }
 0x26d   : > { %v7090_v19 = vcombine.low %v7082_v50, %v7089_v35  ;;  %12075 = vmatprep.mubr.msk.bf16.mxu1 %vm8328_vm7, %v15092_v36  ;;  %v8226_v37 = vsel %vm8180_vm5, %v14394_v28, %v7969_v58  ;;  %v8228_v0 = vsel %vm8180_vm5, %v14397_v62, %v7971_v33  ;;  %v1386_v18 = vrot.slane %v15111_v48, %v12904_v5 }
 0x26e   : > { %v7139_v22 = vcombine.low %v7131_v60, %v7138_v8  ;;  %v15129_v51 = vsel %vm8249_vm6, %v8222_v7, %v8153_v26  ;;  %v1411_v61 = vcombine.high %v11455_v40, %v11455_v40  ;;  %v15135_v46 = vrot.slane %v11455_v40, %v12904_v5  ;;  %v7973_v10 = vpop.permute.xlu0 %7972 }
 0x26f   : > { %v7480_v2 = vshrl.u32 %v7090_v19, 16  ;;  %v7483_v54 = vshll.u32 %v7090_v19, 16  ;;  %v15138_v53 = vsel %vm8249_vm6, %v8224_v31, %v8155_v39  ;;  %v1387_v62 = vcombine.high %v1386_v18, %v1386_v18 }
 0x270   : > { %v7487_v14 = vshrl.u32 %v7139_v22, 16  ;;  %v7490_v3 = vshll.u32 %v7139_v22, 16  ;;  %v1394_v41 = vrot.slane %v1386_v18, %v12904_v5  ;;  %v15142_v17 = vsel %vm8249_vm6, %v8226_v37, %v8157_v32 }
 0x271   : > { %v7482_v56 = vrot.slane %v7480_v2, 7  ;;  %v15145_v26 = vsel %vm8249_vm6, %v8228_v0, %v8159_v9  ;;  %v15149_v1 = vsel %vm8180_vm5, %v14533_v52, %v7973_v10  ;;  %v15159_v63 = vrot.slane %v1387_v62, %v12904_v5 }
 0x272   : > { %v7489_v28 = vrot.slane %v7487_v14, 7  ;;  %v1434_v49 = vrot.slane %v15132_v59, %v12904_v5  ;;  %v15175_v55 = vrot.slane %v1411_v61, %v12904_v5  ;;  %v15179_v57 = vcombine.high %v15135_v46, %v15135_v46 }
 0x273   : > { %v7485_v25 = vor.u32 %v7483_v54, %v7482_v56  ;;  %12284 = vmatmul.mubr.msk.bf16.gmra.mrb[16].mxu0 %vm8328_vm7, %v14199_v34  ;;  %v1402_v35 = vcombine.high %v1394_v41, %v1394_v41  ;;  %v1403_v2 = vcombine.high %v15159_v63, %v15159_v63  ;;  %v1714_v31 = vunpack.i.h.s16 %v1394_v41 }
 0x274   : > { %v7492_v58 = vor.u32 %v7490_v3, %v7489_v28  ;;  %v7581_v39 = vsel %vm13004_vm3, %v7489_v28, %v14905_v47  ;;  %12076 = vmatmul.mubr.msk.bf16.gmra.mrb[68].mxu1 %vm8328_vm7, %v15098_v38  ;;  %v15172_v47 = vpop.f32.mrb[13].mxu1  ;;  %12287 = vmatprep.mubr.msk.bf16.mxu0 %vm8328_vm7, %v14335_v42  ;;  %v15201_v54 = vrot.slane %v1434_v49, %v12904_v5  ;;  %v1716_v9 = vunpack.i.h.s16 %v15159_v63 }
 0x275   : > { %v15166_v52 = vsel %vm13004_vm3, %v14891_v16, %v7485_v25  ;;  %v7920_v24 = vshll.u32 %v7581_v39, 16  ;;  %12079 = vmatprep.mubr.msk.bf16.mxu1 %vm8328_vm7, %v15129_v51  ;;  %v15188_v34 = vpop.f32.mrb[14].mxu1  ;;  %v8110_v3 = vrot.slane %v7581_v39, 1  ;;  %v1427_v61 = vcombine.high %v15175_v55, %v15175_v55 }
 0x276   : > { %v15182_v33 = vsel %vm7238_vm0, %v7482_v56, %v7492_v58  ;;  %v7905_v16 = vshrl.u32 %v15166_v52, 16  ;;  %v7907_v50 = vshll.u32 %v15166_v52, 16  ;;  %v8107_v19 = vrot.slane %v15166_v52, 1  ;;  %v15194_v7 = vpop.f32.mrb[15].mxu1 }
 0x277   : > { %v7912_v60 = vshll.u32 %v15182_v33, 16  ;;  %v7916_v8 = vshrl.u32 %v15182_v33, 16  ;;  %v8108_v22 = vrot.slane %v15182_v33, 1  ;;  %v15196_v40 = vpop.f32.mrb[16].mxu1  ;;  %v7922_v14 = vrot.slane %v7920_v24, 1 }
 0x278   : > { %v7909_v32 = vrot.slane %v7907_v50, 1  ;;  %v15203_v0 = vpop.f32.mrb[17].mxu1  ;;  %v1718_v28 = vunpack.i.h.s16 %v1402_v35  ;;  %v1720_v10 = vunpack.i.h.s16 %v1403_v2  ;;  %v1722_v41 = vunpack.i.h.s16 %v15135_v46 }
 0x279   : > { %v7914_v37 = vrot.slane %v7912_v60, 1  ;;  %v15206_v56 = vpop.f32.mrb[18].mxu1  ;;  %v8109_v25 = vsel %vm8026_vm2, %v8107_v19, %v8108_v22  ;;  %v1724_v39 = vunpack.i.h.s16 %v15175_v55  ;;  %v1726_v24 = vunpack.i.h.s16 %v15179_v57 }
 0x27a   : > { %v7910_v18 = vor.u32 %v7909_v32, %v7905_v16  ;;  %v15211_v58 = vpop.f32.mrb[19].mxu1  ;;  %v2002_v16 = vpack.i.b16 %v1714_v31, %v1714_v31  ;;  %v11592_v50 = vpack.i.b16 %v15159_v63, %v15159_v63  ;;  %v11593_v19 = vpack.i.b16 %v1402_v35, %v1402_v35 }
 0x27b   : > { %v7918_v62 = vor.u32 %v7916_v8, %v7914_v37  ;;  %17079 = vst [vmem:[#allocation18_spill] sm:$0xff] %v15211_v58  ;;  %v2004_v8 = vpack.i.b16 %v1716_v9, %v1716_v9  ;;  %12288 = vmatmul.mubr.msk.bf16.gmra.mrb[20].mxu0 %vm8328_vm7, %v14338_v11  ;;  %v2006_v32 = vpack.i.b16 %v1718_v28, %v1718_v28  ;;  %v15231_v63 = vpop.f32.mrb[20].mxu1 }
 0x27c   : > { %v7915_v49 = vsel %vm7583_vm4, %v7910_v18, %v7914_v37  ;;  %12080 = vmatmul.mubr.msk.bf16.gmra.mrb[72].mxu1 %vm8328_vm7, %v15138_v53  ;;  %v11594_v37 = vpack.i.b16 %v1403_v2, %v1403_v2  ;;  %v2008_v31 = vpack.i.b16 %v1720_v10, %v1720_v10  ;;  %v8111_v18 = vsel %vm8026_vm2, %v8108_v22, %v8110_v3  ;;  %v15239_v10 = vpop.f32.mrb[21].mxu1 }
 0x27d   : > { %7988 = vrot.lane.b32.xlu0 %v7915_v49, %s12862_s21  ;;  %v7923_v60 = vsel %vm7583_vm4, %v7918_v62, %v7922_v14  ;;  %12083 = vmatprep.mubr.msk.bf16.mxu1 %vm8328_vm7, %v15129_v51  ;;  %17080 = vst [vmem:[#allocation19_spill] sm:$0xff] %v15231_v63  ;;  %v1728_v14 = vunpack.i.h.s16 %v1427_v61  ;;  %v11595_v9 = vpack.i.b16 %v15135_v46, %v15135_v46  ;;  %17081 = vst [vmem:[#allocation20_spill] sm:$0xff] %v15239_v10 }
 0x27e   : > { %7990 = vrot.lane.b32.xlu1 %v7923_v60, %s12862_s21  ;;  %12291 = vmatprep.mubr.msk.bf16.mxu0 %vm8328_vm7, %v14335_v42  ;;  %v2010_v35 = vpack.i.b16 %v1722_v41, %v1722_v41  ;;  %v11596_v62 = vpack.i.b16 %v15175_v55, %v15175_v55  ;;  %v2012_v49 = vpack.i.b16 %v1724_v39, %v1724_v39  ;;  %v15245_v41 = vpop.f32.mrb[22].mxu1 }
 0x27f   : > { %v11597_v2 = vpack.i.b16 %v15179_v57, %v15179_v57  ;;  %v2014_v28 = vpack.i.b16 %v1726_v24, %v1726_v24  ;;  %v11598_v42 = vpack.i.b16 %v1427_v61, %v1427_v61  ;;  %v3109_v22 = vrot.slane %v2002_v16, %v12929_v15  ;;  %17082 = vst [vmem:[#allocation21_spill] sm:$0xff] %v15245_v41 }
 0x280   : > { %v3113_v3 = vrot.slane %v11592_v50, %v12929_v15  ;;  %v3117_v46 = vrot.slane %v2004_v8, %v12929_v15  ;;  %v3121_v55 = vrot.slane %v11593_v19, %v12929_v15  ;;  %v3125_v57 = vrot.slane %v2006_v32, %v12929_v15 }
 0x281   : > { %8176 = vrot.lane.b32.xlu0 %v8109_v25, %s12861_s20  ;;  %v3129_v39 = vrot.slane %v11594_v37, %v12929_v15  ;;  %v3133_v24 = vrot.slane %v2008_v31, %v12929_v15  ;;  %v15252_v25 = vpop.f32.mrb[23].mxu1  ;;  %v2016_v61 = vpack.i.b16 %v1728_v14, %v1728_v14  ;;  %v11599_v16 = vpack.i.b16 %v15201_v54, %v15201_v54 }
 0x282   : > { %8178 = vrot.lane.b32.xlu1 %v8111_v18, %s12861_s20  ;;  %17083 = vst [vmem:[#allocation22_spill] sm:$0xff] %v15252_v25  ;;  %v3137_v50 = vrot.slane %v11595_v9, %v12929_v15  ;;  %v3141_v60 = vrot.slane %v2010_v35, %v12929_v15  ;;  %v3145_v8 = vrot.slane %v11596_v62, %v12929_v15 }
 0x283   : > { %v3149_v19 = vrot.slane %v2012_v49, %v12929_v15  ;;  %v3153_v32 = vrot.slane %v11597_v2, %v12929_v15  ;;  %v3157_v37 = vrot.slane %v2014_v28, %v12929_v15  ;;  %v3161_v54 = vrot.slane %v11598_v42, %v12929_v15  ;;  %12292 = vmatmul.mubr.msk.bf16.gmra.mrb[24].mxu0 %vm8328_vm7, %v14338_v11  ;;  %v17084_v49 = vld [vmem:[#allocation2_spill] sm:$0xff] }
 0x284   : > { %12084 = vmatmul.mubr.msk.bf16.gmra.mrb[76].mxu1 %vm8328_vm7, %v15138_v53  ;;  %v5075_v31 = vpack.i.b16 %v3109_v22, %v3109_v22  ;;  %v5082_v18 = vpack.i.b16 %v3113_v3, %v3113_v3  ;;  %v5089_v14 = vpack.i.b16 %v3117_v46, %v3117_v46  ;;  %v5096_v9 = vpack.i.b16 %v3121_v55, %v3121_v55 }
 0x285   : > { %12087 = vmatprep.mubr.msk.bf16.mxu1 %vm8328_vm7, %v15142_v17  ;;  %v5103_v35 = vpack.i.b16 %v3125_v57, %v3125_v57  ;;  %v5110_v62 = vpack.i.b16 %v3129_v39, %v3129_v39  ;;  %v5117_v25 = vpack.i.b16 %v3133_v24, %v3133_v24  ;;  %12295 = vmatprep.mubr.msk.bf16.mxu0 %vm8328_vm7, %v17084_v49 }
 0x286   : > { %v3165_v2 = vrot.slane %v2016_v61, %v12929_v15  ;;  %v3169_v28 = vrot.slane %v11599_v16, %v12929_v15  ;;  %v5080_v41 = vrot.slane %v5075_v31, %v12929_v15  ;;  %v5124_v42 = vpack.i.b16 %v3137_v50, %v3137_v50 }
 0x287   : > { %v5087_v22 = vrot.slane %v5082_v18, %v12929_v15  ;;  %v5094_v3 = vrot.slane %v5089_v14, %v12929_v15  ;;  %v5101_v11 = vrot.slane %v5096_v9, %v12929_v15  ;;  %v5108_v46 = vrot.slane %v5103_v35, %v12929_v15 }
 0x288   : > { %v5115_v55 = vrot.slane %v5110_v62, %v12929_v15  ;;  %v5122_v57 = vrot.slane %v5117_v25, %v12929_v15  ;;  %v5129_v39 = vrot.slane %v5124_v42, %v12929_v15  ;;  %v5131_v24 = vpack.i.b16 %v3141_v60, %v3141_v60 }
 0x289   : > { %v5138_v61 = vpack.i.b16 %v3145_v8, %v3145_v8  ;;  %v5145_v16 = vpack.i.b16 %v3149_v19, %v3149_v19  ;;  %v5152_v10 = vpack.i.b16 %v3153_v32, %v3153_v32  ;;  %v5159_v31 = vpack.i.b16 %v3157_v37, %v3157_v37  ;;  %v15282_v58 = vpop.f32.mrb[24].mxu1 }
 0x28a   : > { %v5136_v50 = vrot.slane %v5131_v24, %v12929_v15  ;;  %v5166_v18 = vpack.i.b16 %v3161_v54, %v3161_v54  ;;  %v5173_v63 = vpack.i.b16 %v3165_v2, %v3165_v2  ;;  %v5180_v14 = vpack.i.b16 %v3169_v28, %v3169_v28  ;;  %v15290_v19 = vpop.f32.mrb[25].mxu1  ;;  %v17085_v2 = vld [vmem:[#allocation3_spill] sm:$0xff] }
 0x28b   : > { %v5143_v9 = vrot.slane %v5138_v61, %v12929_v15  ;;  %v5150_v25 = vrot.slane %v5145_v16, %v12929_v15  ;;  %v5157_v60 = vrot.slane %v5152_v10, %v12929_v15  ;;  %v5164_v8 = vrot.slane %v5159_v31, %v12929_v15  ;;  %v15297_v62 = vpop.f32.mrb[26].mxu1  ;;  %12296 = vmatmul.mubr.msk.bf16.gmra.mrb[28].mxu0 %vm8328_vm7, %v17085_v2  ;;  %v8161_v16 = vpop.permute.xlu0 %8160 }
 0x28c   : > { %12088 = vmatmul.mubr.msk.bf16.gmra.mrb[80].mxu1 %vm8328_vm7, %v15145_v26  ;;  %v5171_v32 = vrot.slane %v5166_v18, %v12929_v15  ;;  %v5178_v37 = vrot.slane %v5173_v63, %v12929_v15  ;;  %v5185_v54 = vrot.slane %v5180_v14, %v12929_v15  ;;  %v7140_v35 = vcombine.low %v5080_v41, %v5087_v22  ;;  %v15301_v61 = vpop.f32.mrb[27].mxu1 }
 0x28d   : > { %12091 = vmatprep.mubr.msk.bf16.mxu1 %vm8328_vm7, %v15142_v17  ;;  %v7141_v10 = vcombine.low %v5094_v3, %v5101_v11  ;;  %v7142_v28 = vcombine.low %v5108_v46, %v5115_v55  ;;  %v7143_v42 = vcombine.low %v5122_v57, %v5129_v39  ;;  %v7189_v24 = vcombine.low %v5136_v50, %v5143_v9 }
 0x28e   : > { %12299 = vmatprep.mubr.msk.bf16.mxu0 %vm8328_vm7, %v17084_v49  ;;  %v7150_v63 = vrot.slane %v7140_v35, %v12904_v5  ;;  %v7190_v31 = vcombine.low %v5150_v25, %v5157_v60  ;;  %v7191_v15 = vcombine.low %v5164_v8, %v5171_v32  ;;  %v7192_v41 = vcombine.low %v5178_v37, %v5185_v54  ;;  %v7975_v49 = vpop.permute.xlu1 %7974 }
 0x28f   : > { %v7157_v22 = vrot.slane %v7141_v10, %v12904_v5  ;;  %v7164_v18 = vrot.slane %v7142_v28, %v12904_v5  ;;  %v7171_v3 = vrot.slane %v7143_v42, %v12904_v5  ;;  %v7199_v11 = vrot.slane %v7189_v24, %v12904_v5 }
 0x290   : > { %v7206_v46 = vrot.slane %v7190_v31, %v12904_v5  ;;  %v7213_v55 = vrot.slane %v7191_v15, %v12904_v5  ;;  %v7220_v57 = vrot.slane %v7192_v41, %v12904_v5  ;;  %v15315_v39 = vsel %vm8249_vm6, %v15149_v1, %v8161_v16  ;;  %v7977_v15 = vpop.permute.xlu0 %7976 }
 0x291   : > { %v7172_v50 = vcombine.low %v7150_v63, %v7157_v22  ;;  %v7173_v14 = vcombine.low %v7164_v18, %v7171_v3  ;;  %v15317_v60 = vpop.f32.mrb[28].mxu1  ;;  %v8232_v24 = vsel %vm8180_vm5, %v14536_v45, %v7975_v49  ;;  %v17087_v49 = vld [vmem:[#allocation5_spill] sm:$0xff] }
 0x292   : > { %v7221_v9 = vcombine.low %v7199_v11, %v7206_v46  ;;  %v7222_v25 = vcombine.low %v7213_v55, %v7220_v57  ;;  %v15323_v37 = vpop.f32.mrb[29].mxu1  ;;  %v8163_v16 = vpop.permute.xlu1 %8162  ;;  %v17086_v46 = vld [vmem:[#allocation4_spill] sm:$0xff] }
 0x293   : > { %v7180_v8 = vrot.slane %v7172_v50, %v12904_v5  ;;  %v7187_v32 = vrot.slane %v7173_v14, %v12904_v5  ;;  %v15329_v35 = vpop.f32.mrb[30].mxu1  ;;  %12300 = vmatmul.mubr.msk.bf16.gmra.mrb[32].mxu0 %vm8328_vm7, %v17085_v2  ;;  %v15340_v18 = vsel %vm8249_vm6, %v8232_v24, %v8163_v16  ;;  %v8234_v50 = vsel %vm8180_vm5, %v17087_v49, %v7977_v15 }
 0x294   : > { %12092 = vmatmul.mubr.msk.bf16.gmra.mrb[84].mxu1 %vm8328_vm7, %v15145_v26  ;;  %v7229_v1 = vrot.slane %v7221_v9, %v12904_v5  ;;  %v7236_v54 = vrot.slane %v7222_v25, %v12904_v5  ;;  %v15333_v28 = vpop.f32.mrb[31].mxu1  ;;  %12303 = vmatprep.mubr.msk.bf16.mxu0 %vm8328_vm7, %v14613_v21  ;;  %v8165_v14 = vpop.permute.xlu0 %8164 }
 0x295   : > { %12095 = vmatprep.mubr.msk.bf16.mxu1 %vm8328_vm7, %v15315_v39  ;;  %v7188_v10 = vcombine.low %v7180_v8, %v7187_v32 }
 0x296   : > { %v7237_v42 = vcombine.low %v7229_v1, %v7236_v54  ;;  %v7979_v32 = vpop.permute.xlu1 %7978  ;;  %v15368_v1 = vsel %vm8249_vm6, %v8234_v50, %v8165_v14 }
 0x297   : > { %v7495_v63 = vshrl.u32 %v7188_v10, 16  ;;  %v7498_v31 = vshll.u32 %v7188_v10, 16 }
 0x298   : > { %v7502_v5 = vshrl.u32 %v7237_v42, 16  ;;  %v7505_v41 = vshll.u32 %v7237_v42, 16 }
 0x299   : > { %v7497_v22 = vrot.slane %v7495_v63, 7 }
 0x29a   : > { %v7504_v2 = vrot.slane %v7502_v5, 7 }
 0x29b   : > { %v7500_v3 = vor.u32 %v7498_v31, %v7497_v22  ;;  %12304 = vmatmul.mubr.msk.bf16.gmra.mrb[36].mxu0 %vm8328_vm7, %v17086_v46 }
 0x29c   : > { %12096 = vmatmul.mubr.msk.bf16.gmra.mrb[88].mxu1 %vm8328_vm7, %v15340_v18  ;;  %v7507_v11 = vor.u32 %v7505_v41, %v7504_v2  ;;  %v7582_v45 = vsel %vm13004_vm3, %v7504_v2, %v15132_v59  ;;  %12307 = vmatprep.mubr.msk.bf16.mxu0 %vm8328_vm7, %v14613_v21  ;;  %v8236_v41 = vsel %vm8180_vm5, %v14675_v23, %v7979_v32  ;;  %v17089_v23 = vld [vmem:[#allocation7_spill] sm:$0xff] }
 0x29d   : > { %12099 = vmatprep.mubr.msk.bf16.mxu1 %vm8328_vm7, %v15315_v39  ;;  %v15354_v55 = vsel %vm13004_vm3, %v15111_v48, %v7500_v3  ;;  %v9515_v57 = vshll.u32 %v7582_v45, 16  ;;  %v9528_v63 = vrot.slane %v7582_v45, 1  ;;  %v17088_v45 = vld [vmem:[#allocation6_spill] sm:$0xff] }
 0x29e   : > { %v15361_v9 = vsel %vm7238_vm0, %v7497_v22, %v7507_v11  ;;  %v9500_v59 = vshrl.u32 %v15354_v55, 16  ;;  %v9502_v25 = vshll.u32 %v15354_v55, 16  ;;  %v9525_v21 = vrot.slane %v15354_v55, 1  ;;  %v8167_v22 = vpop.permute.xlu1 %8166 }
 0x29f   : > { %v9507_v8 = vshll.u32 %v15361_v9, 16  ;;  %v9511_v43 = vshrl.u32 %v15361_v9, 16  ;;  %v9517_v10 = vrot.slane %v9515_v57, 1  ;;  %v9526_v24 = vrot.slane %v15361_v9, 1 }
 0x2a0   : > { %v9504_v48 = vrot.slane %v9502_v25, 1  ;;  %v15390_v11 = vsel %vm8249_vm6, %v8236_v41, %v8167_v22 }
 0x2a1   : > { %v9509_v54 = vrot.slane %v9507_v8, 1  ;;  %v9527_v5 = vsel %vm8026_vm2, %v9525_v21, %v9526_v24  ;;  %v9529_v2 = vsel %vm8026_vm2, %v9526_v24, %v9528_v63 }
 0x2a2   : > { %v9505_v42 = vor.u32 %v9504_v48, %v9500_v59 }
 0x2a3   : > { %v9513_v16 = vor.u32 %v9511_v43, %v9509_v54  ;;  %12308 = vmatmul.mubr.msk.bf16.gmra.mrb[40].mxu0 %vm8328_vm7, %v17086_v46 }
 0x2a4   : > { %12100 = vmatmul.mubr.msk.bf16.gmra.mrb[92].mxu1 %vm8328_vm7, %v15340_v18  ;;  %v9510_v31 = vsel %vm7583_vm4, %v9505_v42, %v9509_v54  ;;  %12311 = vmatprep.mubr.msk.bf16.mxu0 %vm8328_vm7, %v14752_v6 }
 0x2a5   : > { %12103 = vmatprep.mubr.msk.bf16.mxu1 %vm8328_vm7, %v15368_v1  ;;  %9519 = vrot.lane.b32.xlu0 %v9510_v31, %s12862_s21  ;;  %v9518_v15 = vsel %vm7583_vm4, %v9513_v16, %v9517_v10 }
 0x2a6   : > { %9521 = vrot.lane.b32.xlu1 %v9518_v15, %s12862_s21 }
 0x2a7   : > { %v7981_v3 = vpop.permute.xlu0 %7980  ;;  %v7983_v59 = vpop.permute.xlu1 %7982 }
 0x2a8   : > { %v8238_v46 = vsel %vm8180_vm5, %v17089_v23, %v7981_v3  ;;  %v8240_v43 = vsel %vm8180_vm5, %v14814_v20, %v7983_v59 }
 0x2a9   : > { %9530 = vrot.lane.b32.xlu0 %v9527_v5, %s12861_s20 }
 0x2aa   : > { %9532 = vrot.lane.b32.xlu1 %v9529_v2, %s12861_s20 }
 0x2ab   : > { %12312 = vmatmul.mubr.msk.bf16.gmra.mrb[44].mxu0 %vm8328_vm7, %v17088_v45  ;;  %v8169_v57 = vpop.permute.xlu0 %8168  ;;  %v8171_v48 = vpop.permute.xlu1 %8170 }
 0x2ac   : > { %12104 = vmatmul.mubr.msk.bf16.gmra.mrb[96].mxu1 %vm8328_vm7, %v15390_v11  ;;  %12315 = vmatprep.mubr.msk.bf16.mxu0 %vm8328_vm7, %v14752_v6  ;;  %v15410_v25 = vsel %vm8249_vm6, %v8238_v46, %v8169_v57  ;;  %v15433_v42 = vsel %vm8249_vm6, %v8240_v43, %v8171_v48 }
 0x2ad   : > { %12107 = vmatprep.mubr.msk.bf16.mxu1 %vm8328_vm7, %v15368_v1  ;;  %v15403_v49 = vpop.f32.mrb[32].mxu1 }
 0x2ae   : > { %v15405_v50 = vpop.f32.mrb[33].mxu1 }
 0x2af   : > { %v15407_v14 = vpop.f32.mrb[34].mxu1 }
 0x2b0   : > { %v15412_v8 = vpop.f32.mrb[35].mxu1 }
 0x2b3   : > { %12316 = vmatmul.mubr.msk.bf16.gmra.mrb[48].mxu0 %vm8328_vm7, %v17088_v45 }
 0x2b4   : > { %12108 = vmatmul.mubr.msk.bf16.gmra.mrb[100].mxu1 %vm8328_vm7, %v15390_v11  ;;  %12319 = vmatprep.mubr.msk.bf16.mxu0 %vm8328_vm7, %v14899_v29 }
 0x2b5   : > { %12111 = vmatprep.mubr.msk.bf16.mxu1 %vm8328_vm7, %v15410_v25  ;;  %v15422_v6 = vpop.f32.mrb[36].mxu1 }
 0x2b6   : > { %v15426_v32 = vpop.f32.mrb[37].mxu1 }
 0x2b7   : > { %v15428_v54 = vpop.f32.mrb[38].mxu1 }
 0x2b8   : > { %v15430_v10 = vpop.f32.mrb[39].mxu1 }
 0x2bb   : > { %12320 = vmatmul.mubr.msk.bf16.gmra.mrb[52].mxu0 %vm8328_vm7, %v14902_v4 }
 0x2bc   : > { %12112 = vmatmul.mubr.msk.bf16.gmra.mrb[104].mxu1 %vm8328_vm7, %v15433_v42  ;;  %12323 = vmatprep.mubr.msk.bf16.mxu0 %vm8328_vm7, %v14899_v29 }
 0x2bd   : > { %12115 = vmatprep.mubr.msk.bf16.mxu1 %vm8328_vm7, %v15410_v25 }
 0x2c3   : > { %12324 = vmatmul.mubr.msk.bf16.gmra.mrb[56].mxu0 %vm8328_vm7, %v14902_v4 }
 0x2c4   : > { %12116 = vmatmul.mubr.msk.bf16.gmra.mrb[108].mxu1 %vm8328_vm7, %v15433_v42  ;;  %12327 = vmatprep.mubr.msk.bf16.mxu0 %vm8328_vm7, %v15092_v36 }
 0x2cb   : > { %v7985_v20 = vpop.permute.xlu0 %7984  ;;  %12328 = vmatmul.mubr.msk.bf16.gmra.mrb[60].mxu0 %vm8328_vm7, %v15098_v38 }
 0x2cc   : > { %v7987_v21 = vpop.permute.xlu1 %7986  ;;  %v8242_v24 = vsel %vm8180_vm5, %v14971_v44, %v7985_v20  ;;  %12331 = vmatprep.mubr.msk.bf16.mxu0 %vm8328_vm7, %v15092_v36 }
 0x2cd   : > { %v8244_v16 = vsel %vm8180_vm5, %v14978_v30, %v7987_v21 }
 0x2cf   : > { %v8173_v63 = vpop.permute.xlu0 %8172 }
 0x2d0   : > { %v15458_v31 = vsel %vm8249_vm6, %v8242_v24, %v8173_v63  ;;  %v8175_v15 = vpop.permute.xlu1 %8174 }
 0x2d1   : > { %v15461_v5 = vsel %vm8249_vm6, %v8244_v16, %v8175_v15  ;;  %12119 = vmatprep.mubr.msk.bf16.mxu1 %vm8328_vm7, %v15458_v31  ;;  %v15469_v44 = vpop.f32.mrb[40].mxu1 }
 0x2d2   : > { %12120 = vmatmul.mubr.msk.bf16.gmra.mrb[112].mxu1 %vm8328_vm7, %v15461_v5  ;;  %v15471_v30 = vpop.f32.mrb[41].mxu1 }
 0x2d3   : > { %12123 = vmatprep.mubr.msk.bf16.mxu1 %vm8328_vm7, %v15458_v31  ;;  %v15473_v41 = vpop.f32.mrb[42].mxu1  ;;  %12332 = vmatmul.mubr.msk.bf16.gmra.mrb[64].mxu0 %vm8328_vm7, %v15098_v38 }
 0x2d4   : > { %v15477_v22 = vpop.f32.mrb[43].mxu1  ;;  %12335 = vmatprep.mubr.msk.bf16.mxu0 %vm8328_vm7, %v15129_v51 }
 0x2d5   : > { %17090 = vst [vmem:[#allocation2_spill] sm:$0xff] %v15477_v22 }
 0x2d9   : > { %v15483_v2 = vpop.f32.mrb[44].mxu1 }
 0x2da   : > { %12124 = vmatmul.mubr.msk.bf16.gmra.mrb[116].mxu1 %vm8328_vm7, %v15461_v5  ;;  %17091 = vst [vmem:[#allocation3_spill] sm:$0xff] %v15483_v2  ;;  %v15485_v3 = vpop.f32.mrb[45].mxu1 }
 0x2db   : > { %17092 = vst [vmem:[#allocation4_spill] sm:$0xff] %v15485_v3  ;;  %v15487_v45 = vpop.f32.mrb[46].mxu1  ;;  %12336 = vmatmul.mubr.msk.bf16.gmra.mrb[68].mxu0 %vm8328_vm7, %v15138_v53 }
 0x2dc   : > { %17093 = vst [vmem:[#allocation5_spill] sm:$0xff] %v15487_v45  ;;  %v15491_v23 = vpop.f32.mrb[47].mxu1  ;;  %12339 = vmatprep.mubr.msk.bf16.mxu0 %vm8328_vm7, %v15129_v51 }
 0x2dd   : > { %17094 = vst [vmem:[#allocation6_spill] sm:$0xff] %v15491_v23 }
 0x2e3   : > { %12340 = vmatmul.mubr.msk.bf16.gmra.mrb[72].mxu0 %vm8328_vm7, %v15138_v53 }
 0x2e4   : > { %12343 = vmatprep.mubr.msk.bf16.mxu0 %vm8328_vm7, %v15142_v17 }
 0x2eb   : > { %12344 = vmatmul.mubr.msk.bf16.gmra.mrb[76].mxu0 %vm8328_vm7, %v15145_v26 }
 0x2ec   : > { %12347 = vmatprep.mubr.msk.bf16.mxu0 %vm8328_vm7, %v15142_v17 }
 0x2ef   : > { %v7989_v46 = vpop.permute.xlu0 %7988 }
 0x2f0   : > { %v7991_v57 = vpop.permute.xlu1 %7990  ;;  %v8246_v59 = vsel %vm8180_vm5, %v15166_v52, %v7989_v46 }
 0x2f1   : > { %v8248_v43 = vsel %vm8180_vm5, %v15182_v33, %v7991_v57 }
 0x2f3   : > { %v8177_v48 = vpop.permute.xlu0 %8176  ;;  %12348 = vmatmul.mubr.msk.bf16.gmra.mrb[80].mxu0 %vm8328_vm7, %v15145_v26 }
 0x2f4   : > { %v15508_v20 = vsel %vm8249_vm6, %v8246_v59, %v8177_v48  ;;  %v8179_v21 = vpop.permute.xlu1 %8178  ;;  %12351 = vmatprep.mubr.msk.bf16.mxu0 %vm8328_vm7, %v15315_v39 }
 0x2f5   : > { %v15511_v24 = vsel %vm8249_vm6, %v8248_v43, %v8179_v21  ;;  %12127 = vmatprep.mubr.msk.bf16.mxu1 %vm8328_vm7, %v15508_v20 }
 0x2f6   : > { %12128 = vmatmul.mubr.msk.bf16.gmra.mrb[120].mxu1 %vm8328_vm7, %v15511_v24  ;;  %v15523_v52 = vpop.f32.mrb[48].mxu1 }
 0x2f7   : > { %12131 = vmatprep.mubr.msk.bf16.mxu1 %vm8328_vm7, %v15508_v20  ;;  %17095 = vst [vmem:[#allocation7_spill] sm:$0xff] %v15523_v52  ;;  %v15525_v33 = vpop.f32.mrb[49].mxu1 }
 0x2f8   : > { %17096 = vst [vmem:[#allocation23_spill] sm:$0xff] %v15525_v33  ;;  %v15527_v16 = vpop.f32.mrb[50].mxu1 }
 0x2f9   : > { %17097 = vst [vmem:[#allocation24_spill] sm:$0xff] %v15527_v16  ;;  %v15529_v63 = vpop.f32.mrb[51].mxu1  ;;  %v17117_v16 = vld [vmem:[#allocation14_spill] sm:$0xff] }
 0x2fa   : > { %17098 = vst [vmem:[#allocation25_spill] sm:$0xff] %v15529_v63 }
 0x2fb   : > { %12352 = vmatmul.mubr.msk.bf16.gmra.mrb[84].mxu0 %vm8328_vm7, %v15340_v18 }
 0x2fc   : > { %12355 = vmatprep.mubr.msk.bf16.mxu0 %vm8328_vm7, %v15315_v39 }
 0x2fe   : > { %12132 = vmatmul.mubr.msk.bf16.gmra.mrb[124].mxu1 %vm8328_vm7, %v15511_v24  ;;  %v15539_v15 = vpop.f32.mrb[52].mxu1 }
 0x2ff   : > { %12201 = vmatprep.mubr.msk.bf16.mxu1 %vm8328_vm7, %v14899_v29  ;;  %17099 = vst [vmem:[#allocation26_spill] sm:$0xff] %v15539_v15  ;;  %v15541_v46 = vpop.f32.mrb[53].mxu1 }
 0x300   : > { %17100 = vst [vmem:[#allocation27_spill] sm:$0xff] %v15541_v46  ;;  %v15543_v57 = vpop.f32.mrb[54].mxu1 }
 0x301   : > { %17101 = vst [vmem:[#allocation28_spill] sm:$0xff] %v15543_v57  ;;  %v15545_v59 = vpop.f32.mrb[55].mxu1  ;;  %v17114_v57 = vld [vmem:[#allocation11_spill] sm:$0xff] }
 0x302   : > { %17102 = vst [vmem:[#allocation29_spill] sm:$0xff] %v15545_v59 }
 0x303   : > { %12356 = vmatmul.mubr.msk.bf16.gmra.mrb[88].mxu0 %vm8328_vm7, %v15340_v18 }
 0x304   : > { %12359 = vmatprep.mubr.msk.bf16.mxu0 %vm8328_vm7, %v15368_v1 }
 0x306   : > { %12202 = vmatmul.mubr.msk.bf16.vlgmr.msra.gmra.mrb[64].mxu1 %vm8328_vm7, %v14902_v4 }
 0x307   : > { %12205 = vmatprep.mubr.msk.bf16.mxu1 %vm8328_vm7, %v15092_v36 }
 0x30b   : > { %12360 = vmatmul.mubr.msk.bf16.gmra.mrb[92].mxu0 %vm8328_vm7, %v15390_v11 }
 0x30c   : > { %12363 = vmatprep.mubr.msk.bf16.mxu0 %vm8328_vm7, %v15368_v1 }
 0x30e   : > { %12206 = vmatmul.mubr.msk.bf16.gmra.mrb[68].mxu1 %vm8328_vm7, %v15098_v38 }
 0x30f   : > { %12209 = vmatprep.mubr.msk.bf16.mxu1 %vm8328_vm7, %v15092_v36 }
 0x313   : > { %12364 = vmatmul.mubr.msk.bf16.gmra.mrb[96].mxu0 %vm8328_vm7, %v15390_v11 }
 0x314   : > { %12367 = vmatprep.mubr.msk.bf16.mxu0 %vm8328_vm7, %v15410_v25 }
 0x316   : > { %12210 = vmatmul.mubr.msk.bf16.gmra.mrb[72].mxu1 %vm8328_vm7, %v15098_v38 }
 0x317   : > { %12213 = vmatprep.mubr.msk.bf16.mxu1 %vm8328_vm7, %v15129_v51 }
 0x31b   : > { %v15571_v29 = vpop.f32.mrb[56].mxu1  ;;  %12368 = vmatmul.mubr.msk.bf16.gmra.mrb[100].mxu0 %vm8328_vm7, %v15433_v42 }
 0x31c   : > { %17103 = vst [vmem:[#allocation30_spill] sm:$0xff] %v15571_v29  ;;  %v15573_v4 = vpop.f32.mrb[57].mxu1  ;;  %12371 = vmatprep.mubr.msk.bf16.mxu0 %vm8328_vm7, %v15410_v25 }
 0x31d   : > { %17104 = vst [vmem:[#allocation31_spill] sm:$0xff] %v15573_v4  ;;  %v15575_v36 = vpop.f32.mrb[58].mxu1  ;;  %v17111_v4 = vld [vmem:[#allocation8_spill] sm:$0xff] }
 0x31e   : > { %17105 = vst [vmem:[#allocation32_spill] sm:$0xff] %v15575_v36  ;;  %12214 = vmatmul.mubr.msk.bf16.gmra.mrb[76].mxu1 %vm8328_vm7, %v15138_v53  ;;  %v15579_v43 = vpop.f32.mrb[59].mxu1 }
 0x31f   : > { %17106 = vst [vmem:[#allocation33_spill] sm:$0xff] %v15579_v43  ;;  %12217 = vmatprep.mubr.msk.bf16.mxu1 %vm8328_vm7, %v15129_v51 }
 0x323   : > { %v15587_v38 = vpop.f32.mrb[60].mxu1  ;;  %12372 = vmatmul.mubr.msk.bf16.gmra.mrb[104].mxu0 %vm8328_vm7, %v15433_v42 }
 0x324   : > { %17107 = vst [vmem:[#allocation34_spill] sm:$0xff] %v15587_v38  ;;  %v15589_v48 = vpop.f32.mrb[61].mxu1  ;;  %12375 = vmatprep.mubr.msk.bf16.mxu0 %vm8328_vm7, %v15458_v31 }
 0x325   : > { %17108 = vst [vmem:[#allocation35_spill] sm:$0xff] %v15589_v48  ;;  %v15591_v21 = vpop.f32.mrb[62].mxu1  ;;  %v12269_v36 = vpop.f32.mrb[0].mxu0 }
 0x326   : > { %17109 = vst [vmem:[#allocation36_spill] sm:$0xff] %v15591_v21  ;;  %12218 = vmatmul.mubr.msk.bf16.gmra.mrb[80].mxu1 %vm8328_vm7, %v15138_v53  ;;  %v15595_v43 = vpop.f32.mrb[63].mxu1  ;;  %v15600_v51 = vadd.f32 %v12269_v36, %v17111_v4  ;;  %v9591_v29 = vpop.f32.mrb[1].mxu0  ;;  %v17112_v21 = vld [vmem:[#allocation9_spill] sm:$0xff]  ;;  %v17113_v53 = vld [vmem:[#allocation10_spill] sm:$0xff] }
 0x327   : > { %17110 = vst [vmem:[#allocation37_spill] sm:$0xff] %v15595_v43  ;;  %12221 = vmatprep.mubr.msk.bf16.mxu1 %vm8328_vm7, %v15142_v17  ;;  %v15607_v48 = vadd.f32 %v9591_v29, %v17112_v21  ;;  %v12270_v38 = vpop.f32.mrb[2].mxu0 }
 0x328   : > { %v15610_v59 = vadd.f32 %v12270_v38, %v17113_v53  ;;  %v9594_v43 = vpop.f32.mrb[3].mxu0  ;;  %v10233_v63 = vsel %vm8249_vm6, %v15600_v51, 0.0 }
 0x329   : > { %v15613_v46 = vadd.f32 %v9594_v43, %v17114_v57  ;;  %v10230_v4 = vsel %vm8249_vm6, %v15607_v48, 0.0  ;;  %v17115_v43 = vld [vmem:[#allocation12_spill] sm:$0xff] }
 0x32a   : > { %v10235_v57 = vsel %vm8249_vm6, %v15610_v59, 0.0 }
 0x32b   : > { %v10231_v36 = vsel %vm8249_vm6, %v15613_v46, 0.0  ;;  %12376 = vmatmul.mubr.msk.bf16.gmra.mrb[108].mxu0 %vm8328_vm7, %v15461_v5 }
 0x32c   : > { %v10232_v15 = vadd.f32 %v10231_v36, %v10230_v4  ;;  %12379 = vmatprep.mubr.msk.bf16.mxu0 %vm8328_vm7, %v15458_v31  ;;  %v17116_v36 = vld [vmem:[#allocation13_spill] sm:$0xff] }
 0x32e   : > { %12222 = vmatmul.mubr.msk.bf16.gmra.mrb[84].mxu1 %vm8328_vm7, %v15145_v26  ;;  %v10234_v29 = vadd.f32 %v10233_v63, %v10232_v15  ;;  %v12273_v38 = vpop.f32.mrb[4].mxu0 }
 0x32f   : > { %12225 = vmatprep.mubr.msk.bf16.mxu1 %vm8328_vm7, %v15142_v17  ;;  %v15632_v21 = vadd.f32 %v12273_v38, %v17115_v43  ;;  %v9607_v53 = vpop.f32.mrb[5].mxu0 }
 0x330   : > { %v10236_v4 = vadd.f32 %v10235_v57, %v10234_v29  ;;  %v15635_v63 = vadd.f32 %v9607_v53, %v17116_v36  ;;  %v12274_v15 = vpop.f32.mrb[6].mxu0  ;;  %v17119_v57 = vld [vmem:[#allocation15_spill] sm:$0xff] }
 0x331   : > { %v15638_v33 = vadd.f32 %v12274_v15, %v17117_v16  ;;  %v9610_v52 = vpop.f32.mrb[7].mxu0  ;;  %v10241_v29 = vsel %vm8249_vm6, %v15632_v21, 0.0  ;;  %v17121_v15 = vld [vmem:[#allocation16_spill] sm:$0xff] }
 0x332   : > { %v10237_v17 = vsel %vm8249_vm6, %v15635_v63, 0.0  ;;  %v15643_v23 = vadd.f32 %v9610_v52, %v14998_v12 }
 0x333   : > { %v10238_v45 = vadd.f32 %v10237_v17, %v10236_v4  ;;  %12380 = vmatmul.mubr.msk.bf16.gmra.mrb[112].mxu0 %vm8328_vm7, %v15461_v5 }
 0x334   : > { %v10239_v38 = vsel %vm8249_vm6, %v15643_v23, 0.0  ;;  %12383 = vmatprep.mubr.msk.bf16.mxu0 %vm8328_vm7, %v15508_v20 }
 0x335   : > { %v10240_v43 = vadd.f32 %v10239_v38, %v10238_v45 }
 0x336   : > { %12226 = vmatmul.mubr.msk.bf16.gmra.mrb[88].mxu1 %vm8328_vm7, %v15145_v26  ;;  %v12277_v16 = vpop.f32.mrb[8].mxu0  ;;  %v10243_v26 = vsel %vm8249_vm6, %v15638_v33, 0.0 }
 0x337   : > { %12229 = vmatprep.mubr.msk.bf16.mxu1 %vm8328_vm7, %v15315_v39  ;;  %v10242_v12 = vadd.f32 %v10241_v29, %v10240_v43  ;;  %v15658_v52 = vadd.f32 %v12277_v16, %v15004_v27  ;;  %v9623_v45 = vpop.f32.mrb[9].mxu0  ;;  %v17123_v29 = vld [vmem:[#allocation17_spill] sm:$0xff]  ;;  %v9520_v16 = vpop.permute.xlu0 %9519 }
 0x338   : > { %v15663_v53 = vadd.f32 %v9623_v45, %v17119_v57  ;;  %v12278_v4 = vpop.f32.mrb[10].mxu0 }
 0x339   : > { %17118 = vst [vmem:[#allocation8_spill] sm:$0xff] %v15658_v52  ;;  %v10244_v36 = vadd.f32 %v10243_v26, %v10242_v12  ;;  %v15666_v17 = vadd.f32 %v12278_v4, %v17121_v15  ;;  %v9626_v38 = vpop.f32.mrb[11].mxu0  ;;  %v10249_v12 = vsel %vm8249_vm6, %v15658_v52, 0.0  ;;  %v9535_v15 = vsel %vm8180_vm5, %v15354_v55, %v9520_v16 }
 0x33a   : > { %17120 = vst [vmem:[#allocation9_spill] sm:$0xff] %v15663_v53  ;;  %v10245_v43 = vsel %vm8249_vm6, %v15663_v53, 0.0  ;;  %v15671_v3 = vadd.f32 %v9626_v38, %v17123_v29 }
 0x33b   : > { %17122 = vst [vmem:[#allocation10_spill] sm:$0xff] %v15666_v17  ;;  %v10246_v27 = vadd.f32 %v10245_v43, %v10244_v36  ;;  %12384 = vmatmul.mubr.msk.bf16.gmra.mrb[116].mxu0 %vm8328_vm7, %v15511_v24  ;;  %v10251_v26 = vsel %vm8249_vm6, %v15666_v17, 0.0  ;;  %v9531_v38 = vpop.permute.xlu0 %9530 }
 0x33c   : > { %17124 = vst [vmem:[#allocation11_spill] sm:$0xff] %v15671_v3  ;;  %v10247_v2 = vsel %vm8249_vm6, %v15671_v3, 0.0  ;;  %12387 = vmatprep.mubr.msk.bf16.mxu0 %vm8328_vm7, %v15508_v20 }
 0x33d   : > { %v10248_v22 = vadd.f32 %v10247_v2, %v10246_v27 }
 0x33e   : > { %12230 = vmatmul.mubr.msk.bf16.gmra.mrb[92].mxu1 %vm8328_vm7, %v15340_v18  ;;  %v12281_v2 = vpop.f32.mrb[12].mxu0 }
 0x33f   : > { %12233 = vmatprep.mubr.msk.bf16.mxu1 %vm8328_vm7, %v15315_v39  ;;  %v10250_v45 = vadd.f32 %v10249_v12, %v10248_v22  ;;  %v15688_v4 = vadd.f32 %v12281_v2, %v15156_v13  ;;  %v9639_v36 = vpop.f32.mrb[13].mxu0  ;;  %v9522_v13 = vpop.permute.xlu1 %9521 }
 0x340   : > { %v15693_v43 = vadd.f32 %v9639_v36, %v15172_v47  ;;  %v12282_v39 = vpop.f32.mrb[14].mxu0  ;;  %v9537_v36 = vsel %vm8180_vm5, %v15361_v9, %v9522_v13 }
 0x341   : > { %v10252_v57 = vadd.f32 %v10251_v26, %v10250_v45  ;;  %17125 = vst [vmem:[#allocation12_spill] sm:$0xff] %v15688_v4  ;;  %v15696_v22 = vadd.f32 %v12282_v39, %v15188_v34  ;;  %v9642_v29 = vpop.f32.mrb[15].mxu0  ;;  %v9539_v45 = vsel %vm8249_vm6, %v9535_v15, %v9531_v38 }
 0x342   : > { %17126 = vst [vmem:[#allocation13_spill] sm:$0xff] %v15693_v43  ;;  %v10253_v27 = vsel %vm8249_vm6, %v15693_v43, 0.0  ;;  %v15701_v12 = vadd.f32 %v9642_v29, %v15194_v7  ;;  %v10257_v7 = vsel %vm8249_vm6, %v15688_v4, 0.0 }
 0x343   : > { %17127 = vst [vmem:[#allocation14_spill] sm:$0xff] %v15696_v22  ;;  %v10254_v26 = vadd.f32 %v10253_v27, %v10252_v57  ;;  %12388 = vmatmul.mubr.msk.bf16.gmra.mrb[120].mxu0 %vm8328_vm7, %v15511_v24  ;;  %v10259_v57 = vsel %vm8249_vm6, %v15696_v22, 0.0  ;;  %v9533_v15 = vpop.permute.xlu1 %9532 }
 0x344   : > { %17128 = vst [vmem:[#allocation15_spill] sm:$0xff] %v15701_v12  ;;  %v10255_v47 = vsel %vm8249_vm6, %v15701_v12, 0.0  ;;  %12391 = vmatprep.mubr.msk.bf16.mxu0 %vm8328_vm7, %v9539_v45  ;;  %v9541_v9 = vsel %vm8249_vm6, %v9537_v36, %v9533_v15  ;;  %v17134_v36 = vld [vmem:[#allocation19_spill] sm:$0xff] }
 0x345   : > { %v10256_v34 = vadd.f32 %v10255_v47, %v10254_v26  ;;  %v17132_v26 = vld [vmem:[#allocation18_spill] sm:$0xff] }
 0x346   : > { %12234 = vmatmul.mubr.msk.bf16.gmra.mrb[96].mxu1 %vm8328_vm7, %v15340_v18  ;;  %v12285_v55 = vpop.f32.mrb[16].mxu0 }
 0x347   : > { %12237 = vmatprep.mubr.msk.bf16.mxu1 %vm8328_vm7, %v15368_v1  ;;  %v10258_v16 = vadd.f32 %v10257_v7, %v10256_v34  ;;  %v15716_v2 = vadd.f32 %v12285_v55, %v15196_v40  ;;  %v9655_v18 = vpop.f32.mrb[17].mxu0 }
 0x348   : > { %v15723_v38 = vadd.f32 %v9655_v18, %v15203_v0  ;;  %v12286_v39 = vpop.f32.mrb[18].mxu0 }
 0x349   : > { %17129 = vst [vmem:[#allocation16_spill] sm:$0xff] %v15716_v2  ;;  %v10260_v29 = vadd.f32 %v10259_v57, %v10258_v16  ;;  %v15726_v27 = vadd.f32 %v12286_v39, %v15206_v56  ;;  %v9658_v45 = vpop.f32.mrb[19].mxu0  ;;  %v10265_v7 = vsel %vm8249_vm6, %v15716_v2, 0.0 }
 0x34a   : > { %17130 = vst [vmem:[#allocation17_spill] sm:$0xff] %v15723_v38  ;;  %v10261_v40 = vsel %vm8249_vm6, %v15723_v38, 0.0  ;;  %v15731_v47 = vadd.f32 %v9658_v45, %v17132_v26  ;;  %v12685_v34 = vpack.i.bf16 %v15723_v38, %v15607_v48  ;;  %v17136_v45 = vld [vmem:[#allocation20_spill] sm:$0xff]  ;;  %v17138_v26 = vld [vmem:[#allocation21_spill] sm:$0xff] }
 0x34b   : > { %17131 = vst [vmem:[#allocation38_spill] sm:$0xff] %v15726_v27  ;;  %v10262_v13 = vadd.f32 %v10261_v40, %v10260_v29  ;;  %12392 = vmatmul.mubr.msk.bf16.gmra.mrb[124].mxu0 %vm8328_vm7, %v9541_v9  ;;  %v10267_v57 = vsel %vm8249_vm6, %v15726_v27, 0.0 }
 0x34c   : > { %17133 = vst [vmem:[#allocation18_spill] sm:$0xff] %v15731_v47  ;;  %v10263_v0 = vsel %vm8249_vm6, %v15731_v47, 0.0  ;;  %12686 = vxpose.xlu0.b32.start [1/16] (narrow) %v12685_v34, 8  ;;  %v12687_v18 = vpack.i.bf16 %v15731_v47, %v15613_v46 }
 0x34d   : > { %v10264_v56 = vadd.f32 %v10263_v0, %v10262_v13  ;;  %v17140_v0 = vld [vmem:[#allocation22_spill] sm:$0xff] }
 0x34e   : > { %12238 = vmatmul.mubr.msk.bf16.gmra.mrb[100].mxu1 %vm8328_vm7, %v15390_v11  ;;  %v12289_v16 = vpop.f32.mrb[20].mxu0 }
 0x34f   : > { %12241 = vmatprep.mubr.msk.bf16.mxu1 %vm8328_vm7, %v15368_v1  ;;  %v10266_v55 = vadd.f32 %v10265_v7, %v10264_v56  ;;  %v15750_v15 = vadd.f32 %v12289_v16, %v17134_v36  ;;  %v9671_v39 = vpop.f32.mrb[21].mxu0  ;;  %v12689_v7 = vpack.i.bf16 %v15716_v2, %v15600_v51 }
 0x350   : > { %v15753_v1 = vadd.f32 %v9671_v39, %v17136_v45  ;;  %12688 = vxpose.xlu0.b32.cont [2/16] (narrow) %v12687_v18, 8  ;;  %v12290_v40 = vpop.f32.mrb[22].mxu0  ;;  %v12691_v39 = vpack.i.bf16 %v15726_v27, %v15610_v59 }
 0x351   : > { %17135 = vst [vmem:[#allocation19_spill] sm:$0xff] %v15750_v15  ;;  %v10268_v29 = vadd.f32 %v10267_v57, %v10266_v55  ;;  %v15756_v34 = vadd.f32 %v12290_v40, %v17138_v26  ;;  %v9674_v9 = vpop.f32.mrb[23].mxu0  ;;  %v10273_v57 = vsel %vm8249_vm6, %v15750_v15, 0.0 }
 0x352   : > { %17137 = vst [vmem:[#allocation20_spill] sm:$0xff] %v15753_v1  ;;  %v10269_v13 = vsel %vm8249_vm6, %v15753_v1, 0.0  ;;  %v15761_v56 = vadd.f32 %v9674_v9, %v17140_v0 }
 0x353   : > { %17139 = vst [vmem:[#allocation21_spill] sm:$0xff] %v15756_v34  ;;  %v10270_v55 = vadd.f32 %v10269_v13, %v10268_v29  ;;  %v10275_v29 = vsel %vm8249_vm6, %v15756_v34, 0.0 }
 0x354   : > { %17141 = vst [vmem:[#allocation22_spill] sm:$0xff] %v15761_v56  ;;  %v10271_v16 = vsel %vm8249_vm6, %v15761_v56, 0.0  ;;  %12690 = vxpose.xlu0.b32.cont [3/16] (narrow) %v12689_v7, 8 }
 0x355   : > { %v10272_v18 = vadd.f32 %v10271_v16, %v10270_v55  ;;  %v12693_v16 = vpack.i.bf16 %v15753_v1, %v15635_v63 }
 0x356   : > { %12242 = vmatmul.mubr.msk.bf16.gmra.mrb[104].mxu1 %vm8328_vm7, %v15390_v11  ;;  %v12293_v36 = vpop.f32.mrb[24].mxu0 }
 0x357   : > { %12245 = vmatprep.mubr.msk.bf16.mxu1 %vm8328_vm7, %v15410_v25  ;;  %v10274_v45 = vadd.f32 %v10273_v57, %v10272_v18  ;;  %v15776_v40 = vadd.f32 %v12293_v36, %v15282_v58  ;;  %v9687_v11 = vpop.f32.mrb[25].mxu0  ;;  %v12695_v36 = vpack.i.bf16 %v15761_v56, %v15643_v23 }
 0x358   : > { %v15781_v26 = vadd.f32 %v9687_v11, %v15290_v19  ;;  %12692 = vxpose.xlu0.b32.cont [4/16] (narrow) %v12691_v39, 8  ;;  %v12294_v9 = vpop.f32.mrb[26].mxu0 }
 0x359   : > { %17142 = vst [vmem:[#allocation39_spill] sm:$0xff] %v15776_v40  ;;  %v10276_v13 = vadd.f32 %v10275_v29, %v10274_v45  ;;  %v15784_v0 = vadd.f32 %v12294_v9, %v15297_v62  ;;  %v9690_v7 = vpop.f32.mrb[27].mxu0  ;;  %v10281_v57 = vsel %vm8249_vm6, %v15776_v40, 0.0 }
 0x35a   : > { %17143 = vst [vmem:[#allocation40_spill] sm:$0xff] %v15781_v26  ;;  %v10277_v55 = vsel %vm8249_vm6, %v15781_v26, 0.0  ;;  %v15789_v58 = vadd.f32 %v9690_v7, %v15301_v61 }
 0x35b   : > { %17144 = vst [vmem:[#allocation41_spill] sm:$0xff] %v15784_v0  ;;  %v10278_v19 = vadd.f32 %v10277_v55, %v10276_v13 }
 0x35c   : > { %17145 = vst [vmem:[#allocation42_spill] sm:$0xff] %v15789_v58  ;;  %v10279_v62 = vsel %vm8249_vm6, %v15789_v58, 0.0  ;;  %12694 = vxpose.xlu0.b32.cont [5/16] (narrow) %v12693_v16, 8 }
 0x35d   : > { %v10280_v18 = vadd.f32 %v10279_v62, %v10278_v19  ;;  %v12697_v19 = vpack.i.bf16 %v15750_v15, %v15632_v21 }
 0x35e   : > { %12246 = vmatmul.mubr.msk.bf16.gmra.mrb[108].mxu1 %vm8328_vm7, %v15433_v42  ;;  %v12297_v61 = vpop.f32.mrb[28].mxu0 }
 0x35f   : > { %12249 = vmatprep.mubr.msk.bf16.mxu1 %vm8328_vm7, %v15410_v25  ;;  %v10282_v39 = vadd.f32 %v10281_v57, %v10280_v18  ;;  %v15804_v45 = vadd.f32 %v12297_v61, %v15317_v60  ;;  %v9703_v11 = vpop.f32.mrb[29].mxu0  ;;  %v10283_v25 = vsel %vm8249_vm6, %v15784_v0, 0.0  ;;  %v12699_v57 = vpack.i.bf16 %v15756_v34, %v15638_v33 }
 0x360   : > { %v15809_v29 = vadd.f32 %v9703_v11, %v15323_v37  ;;  %12696 = vxpose.xlu0.b32.cont [6/16] (narrow) %v12695_v36, 8  ;;  %v12298_v9 = vpop.f32.mrb[30].mxu0 }
 0x361   : > { %17146 = vst [vmem:[#allocation43_spill] sm:$0xff] %v15804_v45  ;;  %v10284_v13 = vadd.f32 %v10283_v25, %v10282_v39  ;;  %v15812_v7 = vadd.f32 %v12298_v9, %v15329_v35  ;;  %v9706_v55 = vpop.f32.mrb[31].mxu0  ;;  %v10289_v18 = vsel %vm8249_vm6, %v15804_v45, 0.0 }
 0x362   : > { %17147 = vst [vmem:[#allocation44_spill] sm:$0xff] %v15809_v29  ;;  %v10285_v16 = vsel %vm8249_vm6, %v15809_v29, 0.0  ;;  %v15817_v60 = vadd.f32 %v9706_v55, %v15333_v28 }
 0x363   : > { %17148 = vst [vmem:[#allocation45_spill] sm:$0xff] %v15812_v7  ;;  %v10286_v37 = vadd.f32 %v10285_v16, %v10284_v13  ;;  %v10291_v39 = vsel %vm8249_vm6, %v15812_v7, 0.0 }
 0x364   : > { %17149 = vst [vmem:[#allocation46_spill] sm:$0xff] %v15817_v60  ;;  %v10287_v35 = vsel %vm8249_vm6, %v15817_v60, 0.0  ;;  %12698 = vxpose.xlu0.b32.cont [7/16] (narrow) %v12697_v19, 8  ;;  %v12701_v19 = vpack.i.bf16 %v15781_v26, %v15663_v53 }
 0x365   : > { %v10288_v62 = vadd.f32 %v10287_v35, %v10286_v37 }
 0x366   : > { %12250 = vmatmul.mubr.msk.bf16.gmra.mrb[112].mxu1 %vm8328_vm7, %v15433_v42  ;;  %v12301_v28 = vpop.f32.mrb[32].mxu0 }
 0x367   : > { %12253 = vmatprep.mubr.msk.bf16.mxu1 %vm8328_vm7, %v15458_v31  ;;  %v10290_v61 = vadd.f32 %v10289_v18, %v10288_v62  ;;  %v15832_v36 = vadd.f32 %v12301_v28, %v15403_v49  ;;  %v9719_v42 = vpop.f32.mrb[33].mxu0  ;;  %v12703_v62 = vpack.i.bf16 %v15789_v58, %v15671_v3 }
 0x368   : > { %v15837_v11 = vadd.f32 %v9719_v42, %v15405_v50  ;;  %12700 = vxpose.xlu0.b32.cont [8/16] (narrow) %v12699_v57, 8  ;;  %v12302_v25 = vpop.f32.mrb[34].mxu0 }
 0x369   : > { %17150 = vst [vmem:[#allocation47_spill] sm:$0xff] %v15832_v36  ;;  %v10292_v9 = vadd.f32 %v10291_v39, %v10290_v61  ;;  %v15840_v13 = vadd.f32 %v12302_v25, %v15407_v14  ;;  %v9722_v55 = vpop.f32.mrb[35].mxu0  ;;  %v10297_v35 = vsel %vm8249_vm6, %v15832_v36, 0.0 }
 0x36a   : > { %17151 = vst [vmem:[#allocation48_spill] sm:$0xff] %v15837_v11  ;;  %v10293_v16 = vsel %vm8249_vm6, %v15837_v11, 0.0  ;;  %v15845_v49 = vadd.f32 %v9722_v55, %v15412_v8 }
 0x36b   : > { %17152 = vst [vmem:[#allocation49_spill] sm:$0xff] %v15840_v13  ;;  %v10294_v50 = vadd.f32 %v10293_v16, %v10292_v9  ;;  %v12705_v16 = vpack.i.bf16 %v15776_v40, %v15658_v52 }
 0x36c   : > { %17153 = vst [vmem:[#allocation50_spill] sm:$0xff] %v15845_v49  ;;  %v10295_v14 = vsel %vm8249_vm6, %v15845_v49, 0.0  ;;  %12702 = vxpose.xlu0.b32.cont [9/16] (narrow) %v12701_v19, 8 }
 0x36d   : > { %v10296_v37 = vadd.f32 %v10295_v14, %v10294_v50  ;;  %v12707_v14 = vpack.i.bf16 %v15784_v0, %v15666_v17  ;;  %v17193_v0 = vld [vmem:[#allocation33_spill] sm:$0xff] }
 0x36e   : > { %12254 = vmatmul.mubr.msk.bf16.gmra.mrb[116].mxu1 %vm8328_vm7, %v15461_v5  ;;  %v12305_v8 = vpop.f32.mrb[36].mxu0 }
 0x36f   : > { %12257 = vmatprep.mubr.msk.bf16.mxu1 %vm8328_vm7, %v15458_v31  ;;  %v10298_v18 = vadd.f32 %v10297_v35, %v10296_v37  ;;  %v15860_v28 = vadd.f32 %v12305_v8, %v15422_v6  ;;  %v9735_v57 = vpop.f32.mrb[37].mxu0  ;;  %v10299_v31 = vsel %vm8249_vm6, %v15840_v13, 0.0 }
 0x370   : > { %v15865_v61 = vadd.f32 %v9735_v57, %v15426_v32  ;;  %12704 = vxpose.xlu0.b32.cont [10/16] (narrow) %v12703_v62, 8  ;;  %v12306_v42 = vpop.f32.mrb[38].mxu0 }
 0x371   : > { %17154 = vst [vmem:[#allocation51_spill] sm:$0xff] %v15860_v28  ;;  %v10300_v39 = vadd.f32 %v10299_v31, %v10298_v18  ;;  %v15868_v25 = vadd.f32 %v12306_v42, %v15428_v54  ;;  %v9738_v9 = vpop.f32.mrb[39].mxu0  ;;  %v10305_v50 = vsel %vm8249_vm6, %v15860_v28, 0.0 }
 0x372   : > { %17155 = vst [vmem:[#allocation52_spill] sm:$0xff] %v15865_v61  ;;  %v10301_v55 = vsel %vm8249_vm6, %v15865_v61, 0.0  ;;  %v15873_v6 = vadd.f32 %v9738_v9, %v15430_v10  ;;  %v12709_v9 = vpack.i.bf16 %v15809_v29, %v15693_v43 }
 0x373   : > { %17156 = vst [vmem:[#allocation53_spill] sm:$0xff] %v15868_v25  ;;  %v10302_v32 = vadd.f32 %v10301_v55, %v10300_v39  ;;  %v17161_v39 = vld [vmem:[#allocation2_spill] sm:$0xff] }
 0x374   : > { %17157 = vst [vmem:[#allocation54_spill] sm:$0xff] %v15873_v6  ;;  %v10303_v54 = vsel %vm8249_vm6, %v15873_v6, 0.0  ;;  %12706 = vxpose.xlu0.b32.cont [11/16] (narrow) %v12705_v16, 8  ;;  %v12711_v16 = vpack.i.bf16 %v15817_v60, %v15701_v12  ;;  %v17185_v60 = vld [vmem:[#allocation29_spill] sm:$0xff] }
 0x375   : > { %v10304_v19 = vadd.f32 %v10303_v54, %v10302_v32  ;;  %v17163_v54 = vld [vmem:[#allocation3_spill] sm:$0xff] }
 0x376   : > { %12258 = vmatmul.mubr.msk.bf16.gmra.mrb[120].mxu1 %vm8328_vm7, %v15461_v5  ;;  %v12309_v10 = vpop.f32.mrb[40].mxu0 }
 0x377   : > { %12261 = vmatprep.mubr.msk.bf16.mxu1 %vm8328_vm7, %v15508_v20  ;;  %v10306_v37 = vadd.f32 %v10305_v50, %v10304_v19  ;;  %v15888_v35 = vadd.f32 %v12309_v10, %v15469_v44  ;;  %v9751_v5 = vpop.f32.mrb[41].mxu0  ;;  %v10307_v20 = vsel %vm8249_vm6, %v15868_v25, 0.0  ;;  %v17165_v10 = vld [vmem:[#allocation4_spill] sm:$0xff] }
 0x378   : > { %v15893_v8 = vadd.f32 %v9751_v5, %v15471_v30  ;;  %12708 = vxpose.xlu0.b32.cont [12/16] (narrow) %v12707_v14, 8  ;;  %v12310_v62 = vpop.f32.mrb[42].mxu0 }
 0x379   : > { %17158 = vst [vmem:[#allocation55_spill] sm:$0xff] %v15888_v35  ;;  %v10308_v18 = vadd.f32 %v10307_v20, %v10306_v37  ;;  %v15896_v57 = vadd.f32 %v12310_v62, %v15473_v41  ;;  %v9754_v31 = vpop.f32.mrb[43].mxu0  ;;  %v10313_v62 = vsel %vm8249_vm6, %v15888_v35, 0.0 }
 0x37a   : > { %17159 = vst [vmem:[#allocation56_spill] sm:$0xff] %v15893_v8  ;;  %v10309_v42 = vsel %vm8249_vm6, %v15893_v8, 0.0  ;;  %v15901_v44 = vadd.f32 %v9754_v31, %v17161_v39 }
 0x37b   : > { %17160 = vst [vmem:[#allocation57_spill] sm:$0xff] %v15896_v57  ;;  %v10310_v30 = vadd.f32 %v10309_v42, %v10308_v18  ;;  %v17169_v18 = vld [vmem:[#allocation6_spill] sm:$0xff]  ;;  %v12713_v42 = vpack.i.bf16 %v15804_v45, %v15688_v4 }
 0x37c   : > { %17162 = vst [vmem:[#allocation2_spill] sm:$0xff] %v15901_v44  ;;  %v10311_v55 = vsel %vm8249_vm6, %v15901_v44, 0.0  ;;  %12710 = vxpose.xlu0.b32.cont [13/16] (narrow) %v12709_v9, 8  ;;  %v10315_v9 = vsel %vm8249_vm6, %v15896_v57, 0.0 }
 0x37d   : > { %v10312_v32 = vadd.f32 %v10311_v55, %v10310_v30  ;;  %v12715_v55 = vpack.i.bf16 %v15812_v7, %v15696_v22  ;;  %v17181_v7 = vld [vmem:[#allocation27_spill] sm:$0xff] }
 0x37e   : > { %12262 = vmatmul.mubr.msk.bf16.gmra.mrb[124].mxu1 %vm8328_vm7, %v15511_v24  ;;  %v12313_v41 = vpop.f32.mrb[44].mxu0  ;;  %v17167_v24 = vld [vmem:[#allocation5_spill] sm:$0xff] }
 0x37f   : > { %v15912_v19 = vadd.f32 %v12313_v41, %v17163_v54  ;;  %v9767_v50 = vpop.f32.mrb[45].mxu0  ;;  %v10314_v39 = vadd.f32 %v10313_v62, %v10312_v32 }
 0x380   : > { %v15915_v14 = vadd.f32 %v9767_v50, %v17165_v10  ;;  %12712 = vxpose.xlu0.b32.cont [14/16] (narrow) %v12711_v16, 8  ;;  %v12314_v37 = vpop.f32.mrb[46].mxu0  ;;  %v17171_v16 = vld [vmem:[#allocation7_spill] sm:$0xff] }
 0x381   : > { %17164 = vst [vmem:[#allocation3_spill] sm:$0xff] %v15912_v19  ;;  %v15918_v5 = vadd.f32 %v12314_v37, %v17167_v24  ;;  %v9770_v20 = vpop.f32.mrb[47].mxu0  ;;  %v10316_v41 = vadd.f32 %v10315_v9, %v10314_v39  ;;  %v17173_v37 = vld [vmem:[#allocation23_spill] sm:$0xff] }
 0x382   : > { %17166 = vst [vmem:[#allocation4_spill] sm:$0xff] %v15915_v14  ;;  %v15923_v31 = vadd.f32 %v9770_v20, %v17169_v18  ;;  %v10317_v10 = vsel %vm8249_vm6, %v15915_v14, 0.0  ;;  %v17175_v20 = vld [vmem:[#allocation24_spill] sm:$0xff] }
 0x383   : > { %17168 = vst [vmem:[#allocation5_spill] sm:$0xff] %v15918_v5  ;;  %v10318_v9 = vadd.f32 %v10317_v10, %v10316_v41 }
 0x384   : > { %17170 = vst [vmem:[#allocation6_spill] sm:$0xff] %v15923_v31  ;;  %12714 = vxpose.xlu0.b32.cont [15/16] (narrow) %v12713_v42, 8  ;;  %v17177_v42 = vld [vmem:[#allocation25_spill] sm:$0xff] }
 0x386   : > { %v12317_v30 = vpop.f32.mrb[48].mxu0 }
 0x387   : > { %v15932_v54 = vadd.f32 %v12317_v30, %v17171_v16  ;;  %v9783_v50 = vpop.f32.mrb[49].mxu0  ;;  %v10319_v30 = vsel %vm8249_vm6, %v15923_v31, 0.0 }
 0x388   : > { %v15937_v24 = vadd.f32 %v9783_v50, %v17173_v37  ;;  %12716 = vxpose.xlu0.b32.end [16/16] (narrow) %v12715_v55, 8  ;;  %v12318_v32 = vpop.f32.mrb[50].mxu0  ;;  %v10320_v50 = vadd.f32 %v10319_v30, %v10318_v9  ;;  %v17179_v37 = vld [vmem:[#allocation26_spill] sm:$0xff] }
 0x389   : > { %17172 = vst [vmem:[#allocation7_spill] sm:$0xff] %v15932_v54  ;;  %v15940_v62 = vadd.f32 %v12318_v32, %v17175_v20  ;;  %v9786_v18 = vpop.f32.mrb[51].mxu0  ;;  %v12726_v9 = vpack.i.bf16 %v15932_v54, %v15832_v36 }
 0x38a   : > { %17174 = vst [vmem:[#allocation23_spill] sm:$0xff] %v15937_v24  ;;  %v15943_v45 = vadd.f32 %v9786_v18, %v17177_v42  ;;  %v12722_v39 = vpack.i.bf16 %v15937_v24, %v15837_v11  ;;  %v17183_v11 = vld [vmem:[#allocation28_spill] sm:$0xff] }
 0x38b   : > { %17176 = vst [vmem:[#allocation24_spill] sm:$0xff] %v15940_v62 }
 0x38c   : > { %17178 = vst [vmem:[#allocation25_spill] sm:$0xff] %v15943_v45  ;;  %12723 = vxpose.xlu1.b32.start [1/16] (narrow) %v12722_v39, 8  ;;  %v12724_v55 = vpack.i.bf16 %v15943_v45, %v15845_v49  ;;  %v10321_v39 = vsel %vm8249_vm6, %v15912_v19, 0.0 }
 0x38d   : > { %v10322_v30 = vadd.f32 %v10321_v39, %v10320_v50  ;;  %v17191_v39 = vld [vmem:[#allocation32_spill] sm:$0xff] }
 0x38e   : > { %v12321_v16 = vpop.f32.mrb[52].mxu0 }
 0x38f   : > { %v15952_v32 = vadd.f32 %v12321_v16, %v17179_v37  ;;  %v9799_v20 = vpop.f32.mrb[53].mxu0  ;;  %v17187_v37 = vld [vmem:[#allocation30_spill] sm:$0xff] }
 0x390   : > { %v15955_v18 = vadd.f32 %v9799_v20, %v17181_v7  ;;  %12725 = vxpose.xlu1.b32.cont [2/16] (narrow) %v12724_v55, 8  ;;  %v12322_v42 = vpop.f32.mrb[54].mxu0  ;;  %v10323_v7 = vsel %vm8249_vm6, %v15918_v5, 0.0 }
 0x391   : > { %17180 = vst [vmem:[#allocation26_spill] sm:$0xff] %v15952_v32  ;;  %v15958_v41 = vadd.f32 %v12322_v42, %v17183_v11  ;;  %v9802_v10 = vpop.f32.mrb[55].mxu0  ;;  %v12728_v11 = vpack.i.bf16 %v15940_v62, %v15840_v13  ;;  %v10324_v55 = vadd.f32 %v10323_v7, %v10322_v30 }
 0x392   : > { %17182 = vst [vmem:[#allocation27_spill] sm:$0xff] %v15955_v18  ;;  %v15963_v29 = vadd.f32 %v9802_v10, %v17185_v60  ;;  %v10325_v60 = vsel %vm8249_vm6, %v15937_v24, 0.0  ;;  %v17189_v10 = vld [vmem:[#allocation31_spill] sm:$0xff]  ;;  %v12730_v30 = vpack.i.bf16 %v15955_v18, %v15865_v61  ;;  %v17199_v61 = vld [vmem:[#allocation36_spill] sm:$0xff] }
 0x393   : > { %17184 = vst [vmem:[#allocation28_spill] sm:$0xff] %v15958_v41  ;;  %v10326_v7 = vadd.f32 %v10325_v60, %v10324_v55  ;;  %v17197_v24 = vld [vmem:[#allocation35_spill] sm:$0xff] }
 0x394   : > { %17186 = vst [vmem:[#allocation29_spill] sm:$0xff] %v15963_v29  ;;  %12727 = vxpose.xlu1.b32.cont [3/16] (narrow) %v12726_v9, 8 }
 0x396   : > { %v12325_v16 = vpop.f32.mrb[56].mxu0 }
 0x397   : > { %v15972_v20 = vadd.f32 %v12325_v16, %v17187_v37  ;;  %v9815_v42 = vpop.f32.mrb[57].mxu0  ;;  %v10327_v16 = vsel %vm8249_vm6, %v15943_v45, 0.0  ;;  %v17201_v45 = vld [vmem:[#allocation37_spill] sm:$0xff] }
 0x398   : > { %v15977_v49 = vadd.f32 %v9815_v42, %v17189_v10  ;;  %12729 = vxpose.xlu1.b32.cont [4/16] (narrow) %v12728_v11, 8  ;;  %v12326_v50 = vpop.f32.mrb[58].mxu0  ;;  %v12732_v11 = vpack.i.bf16 %v15963_v29, %v15873_v6  ;;  %v10328_v42 = vadd.f32 %v10327_v16, %v10326_v7  ;;  %v17195_v10 = vld [vmem:[#allocation34_spill] sm:$0xff]  ;;  %v12734_v7 = vpack.i.bf16 %v15952_v32, %v15860_v28 }
 0x399   : > { %17188 = vst [vmem:[#allocation30_spill] sm:$0xff] %v15972_v20  ;;  %v15980_v9 = vadd.f32 %v12326_v50, %v17191_v39  ;;  %v9818_v36 = vpop.f32.mrb[59].mxu0 }
 0x39a   : > { %17190 = vst [vmem:[#allocation31_spill] sm:$0xff] %v15977_v49  ;;  %v15983_v40 = vadd.f32 %v9818_v36, %v17193_v0 }
 0x39b   : > { %17192 = vst [vmem:[#allocation32_spill] sm:$0xff] %v15980_v9 }
 0x39c   : > { %17194 = vst [vmem:[#allocation33_spill] sm:$0xff] %v15983_v40  ;;  %12731 = vxpose.xlu1.b32.cont [5/16] (narrow) %v12730_v30, 8  ;;  %v10329_v30 = vsel %vm8249_vm6, %v15932_v54, 0.0 }
 0x39d   : > { %v10330_v16 = vadd.f32 %v10329_v30, %v10328_v42  ;;  %v12738_v42 = vpack.i.bf16 %v15977_v49, %v15893_v8  ;;  %v10335_v30 = vsel %vm8249_vm6, %v15963_v29, 0.0  ;;  %v10339_v29 = vsel %vm8249_vm6, %v15958_v41, 0.0 }
 0x39e   : > { %v12329_v37 = vpop.f32.mrb[60].mxu0 }
 0x39f   : > { %v15992_v50 = vadd.f32 %v12329_v37, %v17195_v10  ;;  %v9831_v39 = vpop.f32.mrb[61].mxu0 }
 0x3a0   : > { %v15995_v0 = vadd.f32 %v9831_v39, %v17197_v24  ;;  %12733 = vxpose.xlu1.b32.cont [6/16] (narrow) %v12732_v11, 8  ;;  %v12330_v36 = vpop.f32.mrb[62].mxu0  ;;  %v10331_v24 = vsel %vm8249_vm6, %v15940_v62, 0.0 }
 0x3a1   : > { %17196 = vst [vmem:[#allocation34_spill] sm:$0xff] %v15992_v50  ;;  %v15998_v55 = vadd.f32 %v12330_v36, %v17199_v61  ;;  %v9834_v60 = vpop.f32.mrb[63].mxu0  ;;  %v12736_v61 = vpack.i.bf16 %v15958_v41, %v15868_v25  ;;  %v10332_v11 = vadd.f32 %v10331_v24, %v10330_v16  ;;  %v12740_v16 = vpack.i.bf16 %v15983_v40, %v15901_v44 }
 0x3a2   : > { %17198 = vst [vmem:[#allocation35_spill] sm:$0xff] %v15995_v0  ;;  %v16003_v13 = vadd.f32 %v9834_v60, %v17201_v45  ;;  %v10333_v45 = vsel %vm8249_vm6, %v15955_v18, 0.0  ;;  %v10341_v44 = vsel %vm8249_vm6, %v15977_v49, 0.0 }
 0x3a3   : > { %17200 = vst [vmem:[#allocation36_spill] sm:$0xff] %v15998_v55  ;;  %v10334_v60 = vadd.f32 %v10333_v45, %v10332_v11  ;;  %v10337_v11 = vsel %vm8249_vm6, %v15952_v32, 0.0  ;;  %v12742_v45 = vpack.i.bf16 %v15972_v20, %v15888_v35 }
 0x3a4   : > { %17202 = vst [vmem:[#allocation37_spill] sm:$0xff] %v16003_v13  ;;  %12735 = vxpose.xlu1.b32.cont [7/16] (narrow) %v12734_v7, 8 }
 0x3a5   : > { %v10336_v24 = vadd.f32 %v10335_v30, %v10334_v60  ;;  %v12744_v60 = vpack.i.bf16 %v15980_v9, %v15896_v57 }
 0x3a6   : > { %v16009_v37 = vpop.f32.mrb[64].mxu0 }
 0x3a7   : > { %v16013_v10 = vpop.f32.mrb[65].mxu0 }
 0x3a8   : > { %12737 = vxpose.xlu1.b32.cont [8/16] (narrow) %v12736_v61, 8  ;;  %v16017_v39 = vpop.f32.mrb[66].mxu0 }
 0x3a9   : > { %v16019_v36 = vpop.f32.mrb[67].mxu0 }
 0x3ac   : > { %12739 = vxpose.xlu1.b32.cont [9/16] (narrow) %v12738_v42, 8  ;;  %v10338_v42 = vadd.f32 %v10337_v11, %v10336_v24  ;;  %v12746_v24 = vpack.i.bf16 %v15995_v0, %v15915_v14  ;;  %v10349_v14 = vsel %vm8249_vm6, %v15995_v0, 0.0 }
 0x3ae   : > { %v16025_v7 = vpop.f32.mrb[68].mxu0  ;;  %v10340_v30 = vadd.f32 %v10339_v29, %v10338_v42  ;;  %v12748_v29 = vpack.i.bf16 %v16003_v13, %v15923_v31 }
 0x3af   : > { %v16029_v18 = vpop.f32.mrb[69].mxu0 }
 0x3b0   : > { %12741 = vxpose.xlu1.b32.cont [10/16] (narrow) %v12740_v16, 8  ;;  %v16031_v61 = vpop.f32.mrb[70].mxu0  ;;  %v10342_v11 = vadd.f32 %v10341_v44, %v10340_v30  ;;  %v10345_v44 = vsel %vm8249_vm6, %v15972_v20, 0.0  ;;  %v12750_v30 = vpack.i.bf16 %v15992_v50, %v15912_v19 }
 0x3b1   : > { %v16033_v62 = vpop.f32.mrb[71].mxu0 }
 0x3b4   : > { %12743 = vxpose.xlu1.b32.cont [11/16] (narrow) %v12742_v45, 8  ;;  %v10343_v45 = vsel %vm8249_vm6, %v15983_v40, 0.0  ;;  %v10347_v40 = vsel %vm8249_vm6, %v15980_v9, 0.0 }
 0x3b5   : > { %v10344_v42 = vadd.f32 %v10343_v45, %v10342_v11  ;;  %v12752_v11 = vpack.i.bf16 %v15998_v55, %v15918_v5  ;;  %v10355_v5 = vsel %vm8249_vm6, %v15998_v55, 0.0 }
 0x3b6   : > { %v16041_v54 = vpop.f32.mrb[72].mxu0 }
 0x3b7   : > { %v16045_v16 = vpop.f32.mrb[73].mxu0 }
 0x3b8   : > { %12745 = vxpose.xlu1.b32.cont [12/16] (narrow) %v12744_v60, 8  ;;  %v16049_v32 = vpop.f32.mrb[74].mxu0 }
 0x3b9   : > { %v16051_v35 = vpop.f32.mrb[75].mxu0 }
 0x3bc   : > { %12747 = vxpose.xlu1.b32.cont [13/16] (narrow) %v12746_v24, 8  ;;  %v10346_v24 = vadd.f32 %v10345_v44, %v10344_v42  ;;  %v10351_v44 = vsel %vm8249_vm6, %v16003_v13, 0.0 }
 0x3be   : > { %v16057_v41 = vpop.f32.mrb[76].mxu0  ;;  %v10348_v45 = vadd.f32 %v10347_v40, %v10346_v24 }
 0x3bf   : > { %v16061_v49 = vpop.f32.mrb[77].mxu0 }
 0x3c0   : > { %12749 = vxpose.xlu1.b32.cont [14/16] (narrow) %v12748_v29, 8  ;;  %v16063_v60 = vpop.f32.mrb[78].mxu0  ;;  %v10350_v42 = vadd.f32 %v10349_v14, %v10348_v45 }
 0x3c1   : > { %v16065_v57 = vpop.f32.mrb[79].mxu0 }
 0x3c2   : > { %v10352_v9 = vadd.f32 %v10351_v44, %v10350_v42 }
 0x3c4   : > { %12751 = vxpose.xlu1.b32.cont [15/16] (narrow) %v12750_v30, 8 }
 0x3c6   : > { %v16073_v31 = vpop.f32.mrb[80].mxu0 }
 0x3c7   : > { %v16077_v29 = vpop.f32.mrb[81].mxu0 }
 0x3c8   : > { %12753 = vxpose.xlu1.b32.end [16/16] (narrow) %v12752_v11, 8  ;;  %v16081_v20 = vpop.f32.mrb[82].mxu0  ;;  %v10353_v11 = vsel %vm8249_vm6, %v15992_v50, 0.0 }
 0x3c9   : > { %v16083_v19 = vpop.f32.mrb[83].mxu0  ;;  %v10354_v0 = vadd.f32 %v10353_v11, %v10352_v9 }
 0x3cb   : > { %v10356_v13 = vadd.f32 %v10355_v5, %v10354_v0 }
 0x3ce   : > { %v16087_v30 = vpop.f32.mrb[84].mxu0 }
 0x3cf   : > { %v16089_v8 = vpop.f32.mrb[85].mxu0 }
 0x3d0   : > { %v16091_v40 = vpop.f32.mrb[86].mxu0 }
 0x3d1   : > { %v16093_v24 = vpop.f32.mrb[87].mxu0 }
 0x3d6   : > { %v16099_v45 = vpop.f32.mrb[88].mxu0 }
 0x3d7   : > { %v16104_v44 = vpop.f32.mrb[89].mxu0 }
 0x3d8   : > { %v16109_v58 = vpop.f32.mrb[90].mxu0 }
 0x3d9   : > { %v12203_v14 = vpop.f32.mrb[64].mxu1  ;;  %v16114_v55 = vpop.f32.mrb[91].mxu0 }
 0x3da   : > { %v16102_v25 = vadd.f32 %v16009_v37, %v12203_v14  ;;  %v9244_v42 = vpop.f32.mrb[65].mxu1 }
 0x3db   : > { %v16107_v28 = vadd.f32 %v16013_v10, %v9244_v42  ;;  %v12204_v6 = vpop.f32.mrb[66].mxu1 }
 0x3dc   : > { %17203 = vst [vmem:[#allocation58_spill] sm:$0xff] %v16102_v25  ;;  %v16112_v9 = vadd.f32 %v16017_v39, %v12204_v6  ;;  %v9247_v11 = vpop.f32.mrb[67].mxu1  ;;  %v10361_v42 = vsel %vm8249_vm6, %v16102_v25, 0.0 }
 0x3dd   : > { %17204 = vst [vmem:[#allocation59_spill] sm:$0xff] %v16107_v28  ;;  %v10357_v5 = vsel %vm8249_vm6, %v16107_v28, 0.0  ;;  %v16119_v0 = vadd.f32 %v16019_v36, %v9247_v11 }
 0x3de   : > { %17205 = vst [vmem:[#allocation60_spill] sm:$0xff] %v16112_v9  ;;  %v10358_v37 = vadd.f32 %v10357_v5, %v10356_v13  ;;  %v16125_v6 = vpop.f32.mrb[92].mxu0  ;;  %v10363_v13 = vsel %vm8249_vm6, %v16112_v9, 0.0 }
 0x3df   : > { %17206 = vst [vmem:[#allocation61_spill] sm:$0xff] %v16119_v0  ;;  %v10359_v10 = vsel %vm8249_vm6, %v16119_v0, 0.0  ;;  %v16130_v15 = vpop.f32.mrb[93].mxu0 }
 0x3e0   : > { %v10360_v14 = vadd.f32 %v10359_v10, %v10358_v37  ;;  %v16137_v5 = vpop.f32.mrb[94].mxu0 }
 0x3e1   : > { %v12207_v50 = vpop.f32.mrb[68].mxu1 }
 0x3e2   : > { %v10362_v39 = vadd.f32 %v10361_v42, %v10360_v14  ;;  %v16128_v26 = vadd.f32 %v16025_v7, %v12207_v50  ;;  %v9260_v34 = vpop.f32.mrb[69].mxu1  ;;  %v16142_v42 = vpop.f32.mrb[95].mxu0 }
 0x3e3   : > { %v16135_v36 = vadd.f32 %v16029_v18, %v9260_v34  ;;  %v12208_v11 = vpop.f32.mrb[70].mxu1 }
 0x3e4   : > { %17207 = vst [vmem:[#allocation62_spill] sm:$0xff] %v16128_v26  ;;  %v10364_v37 = vadd.f32 %v10363_v13, %v10362_v39  ;;  %v16140_v10 = vadd.f32 %v16031_v61, %v12208_v11  ;;  %v9263_v14 = vpop.f32.mrb[71].mxu1  ;;  %v10369_v39 = vsel %vm8249_vm6, %v16128_v26, 0.0 }
 0x3e5   : > { %17208 = vst [vmem:[#allocation63_spill] sm:$0xff] %v16135_v36  ;;  %v10365_v50 = vsel %vm8249_vm6, %v16135_v36, 0.0  ;;  %v16147_v7 = vadd.f32 %v16033_v62, %v9263_v14 }
 0x3e6   : > { %17209 = vst [vmem:[#allocation64_spill] sm:$0xff] %v16140_v10  ;;  %v10366_v56 = vadd.f32 %v10365_v50, %v10364_v37  ;;  %v16153_v61 = vpop.f32.mrb[96].mxu0  ;;  %v10371_v62 = vsel %vm8249_vm6, %v16140_v10, 0.0 }
 0x3e7   : > { %17210 = vst [vmem:[#allocation65_spill] sm:$0xff] %v16147_v7  ;;  %v10367_v34 = vsel %vm8249_vm6, %v16147_v7, 0.0  ;;  %v16158_v2 = vpop.f32.mrb[97].mxu0 }
 0x3e8   : > { %v10368_v18 = vadd.f32 %v10367_v34, %v10366_v56  ;;  %v16165_v14 = vpop.f32.mrb[98].mxu0 }
 0x3e9   : > { %v12211_v13 = vpop.f32.mrb[72].mxu1 }
 0x3ea   : > { %v10370_v11 = vadd.f32 %v10369_v39, %v10368_v18  ;;  %v16156_v1 = vadd.f32 %v16041_v54, %v12211_v13  ;;  %v9276_v27 = vpop.f32.mrb[73].mxu1  ;;  %v16170_v39 = vpop.f32.mrb[99].mxu0 }
 0x3eb   : > { %v16163_v37 = vadd.f32 %v16045_v16, %v9276_v27  ;;  %v12212_v56 = vpop.f32.mrb[74].mxu1 }
 0x3ec   : > { %v10372_v50 = vadd.f32 %v10371_v62, %v10370_v11  ;;  %v16168_v34 = vadd.f32 %v16049_v32, %v12212_v56  ;;  %v9279_v18 = vpop.f32.mrb[75].mxu1  ;;  %v10377_v11 = vsel %vm8249_vm6, %v16156_v1, 0.0 }
 0x3ed   : > { %17211 = vst [vmem:[#allocation66_spill] sm:$0xff] %v16163_v37  ;;  %v10373_v54 = vsel %vm8249_vm6, %v16163_v37, 0.0  ;;  %v16175_v13 = vadd.f32 %v16051_v35, %v9279_v18 }
 0x3ee   : > { %v10374_v47 = vadd.f32 %v10373_v54, %v10372_v50  ;;  %v16181_v32 = vpop.f32.mrb[100].mxu0  ;;  %v10379_v35 = vsel %vm8249_vm6, %v16168_v34, 0.0 }
 0x3ef   : > { %17212 = vst [vmem:[#allocation67_spill] sm:$0xff] %v16175_v13  ;;  %v10375_v27 = vsel %vm8249_vm6, %v16175_v13, 0.0  ;;  %v16186_v4 = vpop.f32.mrb[101].mxu0 }
 0x3f0   : > { %v10376_v16 = vadd.f32 %v10375_v27, %v10374_v47  ;;  %v16193_v18 = vpop.f32.mrb[102].mxu0 }
 0x3f1   : > { %v12215_v62 = vpop.f32.mrb[76].mxu1 }
 0x3f2   : > { %v10378_v56 = vadd.f32 %v10377_v11, %v10376_v16  ;;  %v16184_v38 = vadd.f32 %v16057_v41, %v12215_v62  ;;  %v9292_v22 = vpop.f32.mrb[77].mxu1  ;;  %v16198_v11 = vpop.f32.mrb[103].mxu0 }
 0x3f3   : > { %v16191_v50 = vadd.f32 %v16061_v49, %v9292_v22  ;;  %v12216_v47 = vpop.f32.mrb[78].mxu1 }
 0x3f4   : > { %v10380_v54 = vadd.f32 %v10379_v35, %v10378_v56  ;;  %v16196_v27 = vadd.f32 %v16063_v60, %v12216_v47  ;;  %v9295_v16 = vpop.f32.mrb[79].mxu1  ;;  %v10385_v56 = vsel %vm8249_vm6, %v16184_v38, 0.0 }
 0x3f5   : > { %v10381_v41 = vsel %vm8249_vm6, %v16191_v50, 0.0  ;;  %v16203_v62 = vadd.f32 %v16065_v57, %v9295_v16 }
 0x3f6   : > { %v10382_v12 = vadd.f32 %v10381_v41, %v10380_v54  ;;  %v16209_v60 = vpop.f32.mrb[104].mxu0  ;;  %v10387_v57 = vsel %vm8249_vm6, %v16196_v27, 0.0 }
 0x3f7   : > { %v10383_v22 = vsel %vm8249_vm6, %v16203_v62, 0.0  ;;  %v16214_v52 = vpop.f32.mrb[105].mxu0 }
 0x3f8   : > { %v10384_v49 = vadd.f32 %v10383_v22, %v10382_v12  ;;  %v16221_v16 = vpop.f32.mrb[106].mxu0 }
 0x3f9   : > { %v12219_v35 = vpop.f32.mrb[80].mxu1 }
 0x3fa   : > { %v10386_v47 = vadd.f32 %v10385_v56, %v10384_v49  ;;  %v16212_v43 = vadd.f32 %v16073_v31, %v12219_v35  ;;  %v9308_v17 = vpop.f32.mrb[81].mxu1  ;;  %v16226_v56 = vpop.f32.mrb[107].mxu0 }
 0x3fb   : > { %v16219_v54 = vadd.f32 %v16077_v29, %v9308_v17  ;;  %v12220_v12 = vpop.f32.mrb[82].mxu1 }
 0x3fc   : > { %17213 = vst [vmem:[#allocation68_spill] sm:$0xff] %v16212_v43  ;;  %v10388_v41 = vadd.f32 %v10387_v57, %v10386_v47  ;;  %v16224_v22 = vadd.f32 %v16081_v20, %v12220_v12  ;;  %v9311_v49 = vpop.f32.mrb[83].mxu1  ;;  %v10393_v20 = vsel %vm8249_vm6, %v16212_v43, 0.0 }
 0x3fd   : > { %17214 = vst [vmem:[#allocation69_spill] sm:$0xff] %v16219_v54  ;;  %v10389_v31 = vsel %vm8249_vm6, %v16219_v54, 0.0  ;;  %v16231_v35 = vadd.f32 %v16083_v19, %v9311_v49  ;;  %v12759_v17 = vpack.i.bf16 %v16219_v54, %v16107_v28 }
 0x3fe   : > { %17215 = vst [vmem:[#allocation70_spill] sm:$0xff] %v16224_v22  ;;  %v10390_v29 = vadd.f32 %v10389_v31, %v10388_v41  ;;  %v16241_v53 = vpop.f32.mrb[108].mxu0  ;;  %v10395_v31 = vsel %vm8249_vm6, %v16224_v22, 0.0 }
 0x3ff   : > { %17216 = vst [vmem:[#allocation71_spill] sm:$0xff] %v16231_v35  ;;  %v10391_v3 = vsel %vm8249_vm6, %v16231_v35, 0.0  ;;  %12760 = vxpose.xlu0.b32.start [1/16] (narrow) %v12759_v17, 8  ;;  %v12761_v12 = vpack.i.bf16 %v16231_v35, %v16119_v0  ;;  %v16246_v41 = vpop.f32.mrb[109].mxu0 }
 0x400   : > { %v10392_v47 = vadd.f32 %v10391_v3, %v10390_v29  ;;  %v16253_v29 = vpop.f32.mrb[110].mxu0 }
 0x401   : > { %v12223_v57 = vpop.f32.mrb[84].mxu1 }
 0x402   : > { %v10394_v19 = vadd.f32 %v10393_v20, %v10392_v47  ;;  %v16244_v49 = vadd.f32 %v16087_v30, %v12223_v57  ;;  %v9324_v54 = vpop.f32.mrb[85].mxu1  ;;  %v16258_v30 = vpop.f32.mrb[111].mxu0 }
 0x403   : > { %v16251_v3 = vadd.f32 %v16089_v8, %v9324_v54  ;;  %12762 = vxpose.xlu0.b32.cont [2/16] (narrow) %v12761_v12, 8  ;;  %v12224_v17 = vpop.f32.mrb[86].mxu1  ;;  %v12763_v8 = vpack.i.bf16 %v16212_v43, %v16102_v25 }
 0x404   : > { %17217 = vst [vmem:[#allocation72_spill] sm:$0xff] %v16244_v49  ;;  %v10396_v35 = vadd.f32 %v10395_v31, %v10394_v19  ;;  %v16256_v0 = vadd.f32 %v16091_v40, %v12224_v17  ;;  %v9327_v47 = vpop.f32.mrb[87].mxu1  ;;  %v10401_v40 = vsel %vm8249_vm6, %v16244_v49, 0.0  ;;  %v12765_v17 = vpack.i.bf16 %v16224_v22, %v16112_v9 }
 0x405   : > { %17218 = vst [vmem:[#allocation73_spill] sm:$0xff] %v16251_v3  ;;  %v10397_v20 = vsel %vm8249_vm6, %v16251_v3, 0.0  ;;  %v16263_v57 = vadd.f32 %v16093_v24, %v9327_v47 }
 0x406   : > { %17219 = vst [vmem:[#allocation74_spill] sm:$0xff] %v16256_v0  ;;  %v10398_v54 = vadd.f32 %v10397_v20, %v10396_v35  ;;  %v16273_v28 = vpop.f32.mrb[112].mxu0  ;;  %v10403_v20 = vsel %vm8249_vm6, %v16256_v0, 0.0 }
 0x407   : > { %17220 = vst [vmem:[#allocation75_spill] sm:$0xff] %v16263_v57  ;;  %v10399_v12 = vsel %vm8249_vm6, %v16263_v57, 0.0  ;;  %12764 = vxpose.xlu0.b32.cont [3/16] (narrow) %v12763_v8, 8  ;;  %v16278_v35 = vpop.f32.mrb[113].mxu0 }
 0x408   : > { %v10400_v19 = vadd.f32 %v10399_v12, %v10398_v54  ;;  %v16285_v12 = vpop.f32.mrb[114].mxu0 }
 0x409   : > { %v12227_v31 = vpop.f32.mrb[88].mxu1 }
 0x40a   : > { %v10402_v24 = vadd.f32 %v10401_v40, %v10400_v19  ;;  %v16276_v47 = vadd.f32 %v16099_v45, %v12227_v31  ;;  %v9340_v43 = vpop.f32.mrb[89].mxu1  ;;  %v16290_v45 = vpop.f32.mrb[115].mxu0 }
 0x40b   : > { %v16283_v8 = vadd.f32 %v16104_v44, %v9340_v43  ;;  %12766 = vxpose.xlu0.b32.cont [4/16] (narrow) %v12765_v17, 8  ;;  %v12228_v54 = vpop.f32.mrb[90].mxu1  ;;  %v12767_v43 = vpack.i.bf16 %v16251_v3, %v16135_v36 }
 0x40c   : > { %17221 = vst [vmem:[#allocation76_spill] sm:$0xff] %v16276_v47  ;;  %v10404_v22 = vadd.f32 %v10403_v20, %v10402_v24  ;;  %v16288_v9 = vadd.f32 %v16109_v58, %v12228_v54  ;;  %v9343_v19 = vpop.f32.mrb[91].mxu1  ;;  %v10409_v58 = vsel %vm8249_vm6, %v16276_v47, 0.0  ;;  %v12769_v54 = vpack.i.bf16 %v16263_v57, %v16147_v7 }
 0x40d   : > { %17222 = vst [vmem:[#allocation77_spill] sm:$0xff] %v16283_v8  ;;  %v10405_v40 = vsel %vm8249_vm6, %v16283_v8, 0.0  ;;  %v16295_v31 = vadd.f32 %v16114_v55, %v9343_v19 }
 0x40e   : > { %v10406_v44 = vadd.f32 %v10405_v40, %v10404_v22  ;;  %v16305_v25 = vpop.f32.mrb[116].mxu0  ;;  %v10411_v40 = vsel %vm8249_vm6, %v16288_v9, 0.0 }
 0x40f   : > { %17223 = vst [vmem:[#allocation78_spill] sm:$0xff] %v16295_v31  ;;  %v10407_v17 = vsel %vm8249_vm6, %v16295_v31, 0.0  ;;  %12768 = vxpose.xlu0.b32.cont [5/16] (narrow) %v12767_v43, 8  ;;  %v16310_v22 = vpop.f32.mrb[117].mxu0 }
 0x410   : > { %v10408_v24 = vadd.f32 %v10407_v17, %v10406_v44  ;;  %v16317_v17 = vpop.f32.mrb[118].mxu0 }
 0x411   : > { %v12231_v20 = vpop.f32.mrb[92].mxu1 }
 0x412   : > { %v10410_v55 = vadd.f32 %v10409_v58, %v10408_v24  ;;  %v16308_v19 = vadd.f32 %v16125_v6, %v12231_v20  ;;  %v9356_v3 = vpop.f32.mrb[93].mxu1  ;;  %v16322_v6 = vpop.f32.mrb[119].mxu0 }
 0x413   : > { %v16315_v43 = vadd.f32 %v16130_v15, %v9356_v3  ;;  %12770 = vxpose.xlu0.b32.cont [6/16] (narrow) %v12769_v54, 8  ;;  %v12232_v44 = vpop.f32.mrb[94].mxu1  ;;  %v12771_v15 = vpack.i.bf16 %v16244_v49, %v16128_v26 }
 0x414   : > { %v10412_v57 = vadd.f32 %v10411_v40, %v10410_v55  ;;  %v16320_v7 = vadd.f32 %v16137_v5, %v12232_v44  ;;  %v9359_v24 = vpop.f32.mrb[95].mxu1  ;;  %v10417_v5 = vsel %vm8249_vm6, %v16308_v19, 0.0  ;;  %v12773_v44 = vpack.i.bf16 %v16256_v0, %v16140_v10 }
 0x415   : > { %v10413_v58 = vsel %vm8249_vm6, %v16315_v43, 0.0  ;;  %v16327_v20 = vadd.f32 %v16142_v42, %v9359_v24 }
 0x416   : > { %v10414_v3 = vadd.f32 %v10413_v58, %v10412_v57  ;;  %v16337_v36 = vpop.f32.mrb[120].mxu0  ;;  %v10419_v58 = vsel %vm8249_vm6, %v16320_v7, 0.0 }
 0x417   : > { %v10415_v54 = vsel %vm8249_vm6, %v16327_v20, 0.0  ;;  %12772 = vxpose.xlu0.b32.cont [7/16] (narrow) %v12771_v15, 8  ;;  %v16342_v57 = vpop.f32.mrb[121].mxu0 }
 0x418   : > { %v10416_v55 = vadd.f32 %v10415_v54, %v10414_v3  ;;  %v16349_v54 = vpop.f32.mrb[122].mxu0 }
 0x419   : > { %v12235_v40 = vpop.f32.mrb[96].mxu1 }
 0x41a   : > { %v10418_v42 = vadd.f32 %v10417_v5, %v10416_v55  ;;  %v16340_v24 = vadd.f32 %v16153_v61, %v12235_v40  ;;  %v9372_v49 = vpop.f32.mrb[97].mxu1  ;;  %v16354_v61 = vpop.f32.mrb[123].mxu0 }
 0x41b   : > { %v16347_v15 = vadd.f32 %v16158_v2, %v9372_v49  ;;  %12774 = vxpose.xlu0.b32.cont [8/16] (narrow) %v12773_v44, 8  ;;  %v12236_v3 = vpop.f32.mrb[98].mxu1  ;;  %v12775_v2 = vpack.i.bf16 %v16283_v8, %v16163_v37 }
 0x41c   : > { %v10420_v0 = vadd.f32 %v10419_v58, %v10418_v42  ;;  %v16352_v10 = vadd.f32 %v16165_v14, %v12236_v3  ;;  %v9375_v55 = vpop.f32.mrb[99].mxu1  ;;  %v10425_v14 = vsel %vm8249_vm6, %v16340_v24, 0.0  ;;  %v12777_v3 = vpack.i.bf16 %v16295_v31, %v16175_v13 }
 0x41d   : > { %v10421_v5 = vsel %vm8249_vm6, %v16347_v15, 0.0  ;;  %v16359_v40 = vadd.f32 %v16170_v39, %v9375_v55 }
 0x41e   : > { %v10422_v49 = vadd.f32 %v10421_v5, %v10420_v0  ;;  %v16369_v26 = vpop.f32.mrb[124].mxu0  ;;  %v10427_v5 = vsel %vm8249_vm6, %v16352_v10, 0.0 }
 0x41f   : > { %v10423_v44 = vsel %vm8249_vm6, %v16359_v40, 0.0  ;;  %12776 = vxpose.xlu0.b32.cont [9/16] (narrow) %v12775_v2, 8  ;;  %v16374_v0 = vpop.f32.mrb[125].mxu0 }
 0x420   : > { %v10424_v42 = vadd.f32 %v10423_v44, %v10422_v49  ;;  %v16381_v44 = vpop.f32.mrb[126].mxu0 }
 0x421   : > { %v12239_v58 = vpop.f32.mrb[100].mxu1 }
 0x422   : > { %v10426_v39 = vadd.f32 %v10425_v14, %v10424_v42  ;;  %v16372_v55 = vadd.f32 %v16181_v32, %v12239_v58  ;;  %v9388_v8 = vpop.f32.mrb[101].mxu1  ;;  %v16386_v32 = vpop.f32.mrb[127].mxu0 }
 0x423   : > { %v16379_v2 = vadd.f32 %v16186_v4, %v9388_v8  ;;  %12778 = vxpose.xlu0.b32.cont [10/16] (narrow) %v12777_v3, 8  ;;  %v12240_v49 = vpop.f32.mrb[102].mxu1  ;;  %v12779_v4 = vpack.i.bf16 %v16276_v47, %v16156_v1 }
 0x424   : > { %v10428_v31 = vadd.f32 %v10427_v5, %v10426_v39  ;;  %v16384_v13 = vadd.f32 %v16193_v18, %v12240_v49  ;;  %v9391_v42 = vpop.f32.mrb[103].mxu1  ;;  %v10433_v18 = vsel %vm8249_vm6, %v16372_v55, 0.0  ;;  %v12781_v49 = vpack.i.bf16 %v16288_v9, %v16168_v34 }
 0x425   : > { %v10429_v14 = vsel %vm8249_vm6, %v16379_v2, 0.0  ;;  %v16391_v58 = vadd.f32 %v16198_v11, %v9391_v42 }
 0x426   : > { %v10430_v8 = vadd.f32 %v10429_v14, %v10428_v31  ;;  %v10435_v31 = vsel %vm8249_vm6, %v16384_v13, 0.0 }
 0x427   : > { %v10431_v3 = vsel %vm8249_vm6, %v16391_v58, 0.0  ;;  %12780 = vxpose.xlu0.b32.cont [11/16] (narrow) %v12779_v4, 8 }
 0x428   : > { %v10432_v39 = vadd.f32 %v10431_v3, %v10430_v8 }
 0x429   : > { %v12243_v5 = vpop.f32.mrb[104].mxu1 }
 0x42a   : > { %v10434_v37 = vadd.f32 %v10433_v18, %v10432_v39  ;;  %v16402_v11 = vadd.f32 %v16209_v60, %v12243_v5  ;;  %v9404_v42 = vpop.f32.mrb[105].mxu1  ;;  %v12783_v18 = vpack.i.bf16 %v16315_v43, %v16191_v50 }
 0x42b   : > { %v16407_v14 = vadd.f32 %v16214_v52, %v9404_v42  ;;  %12782 = vxpose.xlu0.b32.cont [12/16] (narrow) %v12781_v49, 8  ;;  %v12244_v4 = vpop.f32.mrb[106].mxu1  ;;  %v12785_v42 = vpack.i.bf16 %v16327_v20, %v16203_v62 }
 0x42c   : > { %v10436_v8 = vadd.f32 %v10435_v31, %v10434_v37  ;;  %v16410_v3 = vadd.f32 %v16221_v16, %v12244_v4  ;;  %v9407_v47 = vpop.f32.mrb[107].mxu1  ;;  %v10441_v37 = vsel %vm8249_vm6, %v16402_v11, 0.0 }
 0x42d   : > { %v10437_v39 = vsel %vm8249_vm6, %v16407_v14, 0.0  ;;  %v16415_v60 = vadd.f32 %v16226_v56, %v9407_v47 }
 0x42e   : > { %v10438_v5 = vadd.f32 %v10437_v39, %v10436_v8  ;;  %v10443_v4 = vsel %vm8249_vm6, %v16410_v3, 0.0 }
 0x42f   : > { %v10439_v52 = vsel %vm8249_vm6, %v16415_v60, 0.0  ;;  %12784 = vxpose.xlu0.b32.cont [13/16] (narrow) %v12783_v18, 8 }
 0x430   : > { %v10440_v49 = vadd.f32 %v10439_v52, %v10438_v5 }
 0x431   : > { %v12247_v16 = vpop.f32.mrb[108].mxu1 }
 0x432   : > { %v10442_v31 = vadd.f32 %v10441_v37, %v10440_v49  ;;  %v16426_v56 = vadd.f32 %v16241_v53, %v12247_v16  ;;  %v9420_v47 = vpop.f32.mrb[109].mxu1  ;;  %v12787_v37 = vpack.i.bf16 %v16308_v19, %v16184_v38 }
 0x433   : > { %v16431_v8 = vadd.f32 %v16246_v41, %v9420_v47  ;;  %12786 = vxpose.xlu0.b32.cont [14/16] (narrow) %v12785_v42, 8  ;;  %v12248_v39 = vpop.f32.mrb[110].mxu1  ;;  %v12789_v47 = vpack.i.bf16 %v16320_v7, %v16196_v27 }
 0x434   : > { %v10444_v18 = vadd.f32 %v10443_v4, %v10442_v31  ;;  %v16434_v5 = vadd.f32 %v16253_v29, %v12248_v39  ;;  %v9423_v52 = vpop.f32.mrb[111].mxu1  ;;  %v10449_v29 = vsel %vm8249_vm6, %v16426_v56, 0.0 }
 0x435   : > { %v10445_v49 = vsel %vm8249_vm6, %v16431_v8, 0.0  ;;  %v16439_v53 = vadd.f32 %v16258_v30, %v9423_v52 }
 0x436   : > { %v10446_v16 = vadd.f32 %v10445_v49, %v10444_v18  ;;  %v10451_v18 = vsel %vm8249_vm6, %v16434_v5, 0.0 }
 0x437   : > { %v10447_v41 = vsel %vm8249_vm6, %v16439_v53, 0.0  ;;  %12788 = vxpose.xlu0.b32.cont [15/16] (narrow) %v12787_v37, 8 }
 0x438   : > { %v10448_v42 = vadd.f32 %v10447_v41, %v10446_v16 }
 0x439   : > { %v12251_v31 = vpop.f32.mrb[112].mxu1 }
 0x43a   : > { %v10450_v4 = vadd.f32 %v10449_v29, %v10448_v42  ;;  %v16450_v30 = vadd.f32 %v16273_v28, %v12251_v31  ;;  %v9436_v39 = vpop.f32.mrb[113].mxu1 }
 0x43b   : > { %v16455_v52 = vadd.f32 %v16278_v35, %v9436_v39  ;;  %12790 = vxpose.xlu0.b32.end [16/16] (narrow) %v12789_v47, 8  ;;  %v12252_v49 = vpop.f32.mrb[114].mxu1 }
 0x43c   : > { %17224 = vst [vmem:[#allocation79_spill] sm:$0xff] %v16450_v30  ;;  %v10452_v37 = vadd.f32 %v10451_v18, %v10450_v4  ;;  %v16458_v16 = vadd.f32 %v16285_v12, %v12252_v49  ;;  %v9439_v41 = vpop.f32.mrb[115].mxu1  ;;  %v10457_v12 = vsel %vm8249_vm6, %v16450_v30, 0.0 }
 0x43d   : > { %v10453_v42 = vsel %vm8249_vm6, %v16455_v52, 0.0  ;;  %v16463_v28 = vadd.f32 %v16290_v45, %v9439_v41  ;;  %v12796_v29 = vpack.i.bf16 %v16455_v52, %v16347_v15 }
 0x43e   : > { %17225 = vst [vmem:[#allocation80_spill] sm:$0xff] %v16458_v16  ;;  %v10454_v31 = vadd.f32 %v10453_v42, %v10452_v37  ;;  %v10459_v37 = vsel %vm8249_vm6, %v16458_v16, 0.0 }
 0x43f   : > { %v10455_v35 = vsel %vm8249_vm6, %v16463_v28, 0.0  ;;  %12797 = vxpose.xlu1.b32.start [1/16] (narrow) %v12796_v29, 8  ;;  %v12798_v39 = vpack.i.bf16 %v16463_v28, %v16359_v40 }
 0x440   : > { %v10456_v47 = vadd.f32 %v10455_v35, %v10454_v31 }
 0x441   : > { %v12255_v4 = vpop.f32.mrb[116].mxu1 }
 0x442   : > { %v10458_v18 = vadd.f32 %v10457_v12, %v10456_v47  ;;  %v16474_v45 = vadd.f32 %v16305_v25, %v12255_v4  ;;  %v9452_v49 = vpop.f32.mrb[117].mxu1  ;;  %v12800_v12 = vpack.i.bf16 %v16450_v30, %v16340_v24 }
 0x443   : > { %v16479_v41 = vadd.f32 %v16310_v22, %v9452_v49  ;;  %12799 = vxpose.xlu1.b32.cont [2/16] (narrow) %v12798_v39, 8  ;;  %v12256_v42 = vpop.f32.mrb[118].mxu1  ;;  %v12802_v49 = vpack.i.bf16 %v16458_v16, %v16352_v10 }
 0x444   : > { %v10460_v29 = vadd.f32 %v10459_v37, %v10458_v18  ;;  %v16482_v31 = vadd.f32 %v16317_v17, %v12256_v42  ;;  %v9455_v35 = vpop.f32.mrb[119].mxu1  ;;  %v10465_v17 = vsel %vm8249_vm6, %v16474_v45, 0.0 }
 0x445   : > { %v10461_v47 = vsel %vm8249_vm6, %v16479_v41, 0.0  ;;  %v16487_v25 = vadd.f32 %v16322_v6, %v9455_v35 }
 0x446   : > { %v10462_v4 = vadd.f32 %v10461_v47, %v10460_v29  ;;  %v10467_v29 = vsel %vm8249_vm6, %v16482_v31, 0.0 }
 0x447   : > { %v10463_v22 = vsel %vm8249_vm6, %v16487_v25, 0.0  ;;  %12801 = vxpose.xlu1.b32.cont [3/16] (narrow) %v12800_v12, 8 }
 0x448   : > { %v10464_v39 = vadd.f32 %v10463_v22, %v10462_v4 }
 0x449   : > { %v12259_v18 = vpop.f32.mrb[120].mxu1 }
 0x44a   : > { %v10466_v37 = vadd.f32 %v10465_v17, %v10464_v39  ;;  %v16498_v6 = vadd.f32 %v16337_v36, %v12259_v18  ;;  %v9468_v42 = vpop.f32.mrb[121].mxu1  ;;  %v12804_v36 = vpack.i.bf16 %v16479_v41, %v16379_v2 }
 0x44b   : > { %v12518_v35 = vadd.f32 %v16342_v57, %v9468_v42  ;;  %12803 = vxpose.xlu1.b32.cont [4/16] (narrow) %v12802_v49, 8  ;;  %v12260_v47 = vpop.f32.mrb[122].mxu1 }
 0x44c   : > { %v10468_v12 = vadd.f32 %v10467_v29, %v10466_v37  ;;  %v12519_v4 = vadd.f32 %v16349_v54, %v12260_v47  ;;  %v9471_v22 = vpop.f32.mrb[123].mxu1  ;;  %v10473_v57 = vsel %vm8249_vm6, %v16498_v6, 0.0  ;;  %v12806_v54 = vpack.i.bf16 %v16487_v25, %v16391_v58 }
 0x44d   : > { %v10469_v30 = vsel %vm8249_vm6, %v12518_v35, 0.0  ;;  %v12520_v16 = vadd.f32 %v16354_v61, %v9471_v22 }
 0x44e   : > { %v10470_v39 = vadd.f32 %v10469_v30, %v10468_v12  ;;  %v10475_v61 = vsel %vm8249_vm6, %v12519_v4, 0.0 }
 0x44f   : > { %v10471_v17 = vsel %vm8249_vm6, %v12520_v16, 0.0  ;;  %12805 = vxpose.xlu1.b32.cont [5/16] (narrow) %v12804_v36, 8 }
 0x450   : > { %v10472_v18 = vadd.f32 %v10471_v17, %v10470_v39 }
 0x451   : > { %v12263_v49 = vpop.f32.mrb[124].mxu1 }
 0x452   : > { %v10474_v37 = vadd.f32 %v10473_v57, %v10472_v18  ;;  %v12521_v42 = vadd.f32 %v16369_v26, %v12263_v49  ;;  %v9484_v29 = vpop.f32.mrb[125].mxu1  ;;  %v12808_v18 = vpack.i.bf16 %v16474_v45, %v16372_v55 }
 0x453   : > { %v12522_v47 = vadd.f32 %v16374_v0, %v9484_v29  ;;  %12807 = vxpose.xlu1.b32.cont [6/16] (narrow) %v12806_v54, 8  ;;  %v12264_v30 = vpop.f32.mrb[126].mxu1  ;;  %v12810_v54 = vpack.i.bf16 %v16482_v31, %v16384_v13 }
 0x454   : > { %v10476_v12 = vadd.f32 %v10475_v61, %v10474_v37  ;;  %v12523_v22 = vadd.f32 %v16381_v44, %v12264_v30  ;;  %v9487_v36 = vpop.f32.mrb[127].mxu1  ;;  %v10481_v0 = vsel %vm8249_vm6, %v12521_v42, 0.0  ;;  %v12814_v61 = vpack.i.bf16 %v12520_v16, %v16415_v60 }
 0x455   : > { %v10477_v39 = vsel %vm8249_vm6, %v12522_v47, 0.0  ;;  %v12524_v17 = vadd.f32 %v16386_v32, %v9487_v36  ;;  %v12812_v32 = vpack.i.bf16 %v12518_v35, %v16407_v14  ;;  %v12816_v30 = vpack.i.bf16 %v16498_v6, %v16402_v11 }
 0x456   : > { %v10478_v57 = vadd.f32 %v10477_v39, %v10476_v12  ;;  %v10483_v44 = vsel %vm8249_vm6, %v12523_v22, 0.0  ;;  %v12818_v12 = vpack.i.bf16 %v12519_v4, %v16410_v3  ;;  %v12820_v36 = vpack.i.bf16 %v12522_v47, %v16431_v8 }
 0x457   : > { %v10479_v26 = vsel %vm8249_vm6, %v12524_v17, 0.0  ;;  %12809 = vxpose.xlu1.b32.cont [7/16] (narrow) %v12808_v18, 8  ;;  %v12822_v18 = vpack.i.bf16 %v12524_v17, %v16439_v53 }
 0x458   : > { %v10480_v49 = vadd.f32 %v10479_v26, %v10478_v57  ;;  %v12824_v26 = vpack.i.bf16 %v12521_v42, %v16426_v56 }
 0x45a   : > { %v10482_v37 = vadd.f32 %v10481_v0, %v10480_v49  ;;  %v12826_v0 = vpack.i.bf16 %v12523_v22, %v16434_v5 }
 0x45b   : > { %12811 = vxpose.xlu1.b32.cont [8/16] (narrow) %v12810_v54, 8 }
 0x45c   : > { %v10484_v29 = vadd.f32 %v10483_v44, %v10482_v37 }
 0x45e   : > { %v10485_v39 = vrot.slane %v10484_v29, 4 }
 0x45f   : > { %12813 = vxpose.xlu1.b32.cont [9/16] (narrow) %v12812_v32, 8 }
 0x460   : > { %v10486_v57 = vadd.f32 %v10485_v39, %v10484_v29 }
 0x462   : > { %v10487_v49 = vrot.slane %v10486_v57, 2 }
 0x463   : > { %12815 = vxpose.xlu1.b32.cont [10/16] (narrow) %v12814_v61, 8 }
 0x464   : > { %v10488_v54 = vadd.f32 %v10487_v49, %v10486_v57 }
 0x466   : > { %v10489_v37 = vrot.slane %v10488_v54, 1 }
 0x467   : > { %12817 = vxpose.xlu1.b32.cont [11/16] (narrow) %v12816_v30, 8 }
 0x468   : > { %v16535_v44 = vadd.f32 %v10489_v37, %v10488_v54 }
 0x46a   : > { %v16538_v32 = vmul.f32 0.0009765625, %v16535_v44 }
 0x46b   : > { %12819 = vxpose.xlu1.b32.cont [12/16] (narrow) %v12818_v12, 8 }
 0x46c   : > { %v16541_v61 = vsub.f32 %v12518_v35, %v16538_v32  ;;  %v16544_v29 = vsub.f32 %v12520_v16, %v16538_v32  ;;  %v16548_v30 = vsub.f32 %v16498_v6, %v16538_v32  ;;  %v16551_v12 = vsub.f32 %v12519_v4, %v16538_v32 }
 0x46d   : > { %v16557_v39 = vsub.f32 %v12524_v17, %v16538_v32  ;;  %v16563_v35 = vsub.f32 %v12523_v22, %v16538_v32  ;;  %v10492_v16 = vsub.f32 %v15607_v48, %v16538_v32  ;;  %v10493_v6 = vsub.f32 %v15613_v46, %v16538_v32 }
 0x46e   : > { %v10494_v4 = vsub.f32 %v15600_v51, %v16538_v32  ;;  %v10497_v22 = vsub.f32 %v15643_v23, %v16538_v32  ;;  %v10498_v51 = vsub.f32 %v15632_v21, %v16538_v32  ;;  %v17227_v21 = vld [vmem:[#allocation11_spill] sm:$0xff] }
 0x46f   : > { %12821 = vxpose.xlu1.b32.cont [13/16] (narrow) %v12820_v36, 8  ;;  %v16554_v36 = vsub.f32 %v12522_v47, %v16538_v32  ;;  %v10495_v47 = vsub.f32 %v15610_v59, %v16538_v32  ;;  %v10620_v17 = vmul.f32 %v10492_v16, %v10492_v16  ;;  %v10621_v57 = vmul.f32 %v10493_v6, %v10493_v6 }
 0x470   : > { %v10625_v16 = vmul.f32 %v10497_v22, %v10497_v22 }
 0x471   : > { %v10623_v49 = vmul.f32 %v10495_v47, %v10495_v47  ;;  %v10748_v48 = vsel %vm8249_vm6, %v10620_v17, 0.0  ;;  %v10749_v46 = vsel %vm8249_vm6, %v10621_v57, 0.0  ;;  %v10626_v17 = vmul.f32 %v10498_v51, %v10498_v51 }
 0x473   : > { %12823 = vxpose.xlu1.b32.cont [14/16] (narrow) %v12822_v18, 8  ;;  %v16560_v18 = vsub.f32 %v12521_v42, %v16538_v32  ;;  %v10496_v42 = vsub.f32 %v15635_v63, %v16538_v32  ;;  %v10499_v63 = vsub.f32 %v15638_v33, %v16538_v32  ;;  %v10753_v6 = vsel %vm8249_vm6, %v10623_v49, 0.0  ;;  %v17228_v33 = vld [vmem:[#allocation8_spill] sm:$0xff] }
 0x474   : > { %v10502_v22 = vsub.f32 %v17228_v33, %v16538_v32  ;;  %v10759_v49 = vsel %vm8249_vm6, %v10626_v17, 0.0 }
 0x475   : > { %v10624_v54 = vmul.f32 %v10496_v42, %v10496_v42  ;;  %v10501_v42 = vsub.f32 %v17227_v21, %v16538_v32 }
 0x476   : > { %v10630_v21 = vmul.f32 %v10502_v22, %v10502_v22 }
 0x477   : > { %12825 = vxpose.xlu1.b32.cont [15/16] (narrow) %v12824_v26, 8  ;;  %v10622_v26 = vmul.f32 %v10494_v4, %v10494_v4  ;;  %v17226_v4 = vld [vmem:[#allocation9_spill] sm:$0xff]  ;;  %v10755_v57 = vsel %vm8249_vm6, %v10624_v54, 0.0 }
 0x478   : > { %v10500_v47 = vsub.f32 %v17226_v4, %v16538_v32  ;;  %v10629_v4 = vmul.f32 %v10501_v42, %v10501_v42 }
 0x479   : > { %v10751_v59 = vsel %vm8249_vm6, %v10622_v26, 0.0  ;;  %v10757_v26 = vsel %vm8249_vm6, %v10625_v16, 0.0 }
 0x47a   : > { %v10765_v17 = vsel %vm8249_vm6, %v10629_v4, 0.0 }
 0x47b   : > { %12827 = vxpose.xlu1.b32.end [16/16] (narrow) %v12826_v0, 8  ;;  %v10750_v0 = vadd.f32 %v10749_v46, %v10748_v48  ;;  %v10627_v46 = vmul.f32 %v10499_v63, %v10499_v63 }
 0x47d   : > { %v10752_v37 = vadd.f32 %v10751_v59, %v10750_v0  ;;  %v10628_v59 = vmul.f32 %v10500_v47, %v10500_v47  ;;  %v10761_v54 = vsel %vm8249_vm6, %v10627_v46, 0.0  ;;  %v10767_v46 = vsel %vm8249_vm6, %v10630_v21, 0.0 }
 0x47f   : > { %v10754_v23 = vadd.f32 %v10753_v6, %v10752_v37  ;;  %v17229_v6 = vld [vmem:[#allocation10_spill] sm:$0xff]  ;;  %v10763_v16 = vsel %vm8249_vm6, %v10628_v59, 0.0 }
 0x480   : > { %v10503_v51 = vsub.f32 %v17229_v6, %v16538_v32 }
 0x481   : > { %v10756_v48 = vadd.f32 %v10755_v57, %v10754_v23  ;;  %v17230_v57 = vld [vmem:[#allocation13_spill] sm:$0xff] }
 0x482   : > { %v10504_v63 = vsub.f32 %v17230_v57, %v16538_v32  ;;  %v10631_v33 = vmul.f32 %v10503_v51, %v10503_v51 }
 0x483   : > { %v10758_v0 = vadd.f32 %v10757_v26, %v10756_v48  ;;  %v17231_v26 = vld [vmem:[#allocation15_spill] sm:$0xff] }
 0x484   : > { %v10505_v47 = vsub.f32 %v17231_v26, %v16538_v32  ;;  %v10632_v6 = vmul.f32 %v10504_v63, %v10504_v63  ;;  %v10769_v59 = vsel %vm8249_vm6, %v10631_v33, 0.0 }
 0x485   : > { %v10760_v37 = vadd.f32 %v10759_v49, %v10758_v0  ;;  %v17232_v49 = vld [vmem:[#allocation12_spill] sm:$0xff] }
 0x486   : > { %v10506_v42 = vsub.f32 %v17232_v49, %v16538_v32  ;;  %v10633_v57 = vmul.f32 %v10505_v47, %v10505_v47  ;;  %v10771_v4 = vsel %vm8249_vm6, %v10632_v6, 0.0 }
 0x487   : > { %v10762_v23 = vadd.f32 %v10761_v54, %v10760_v37  ;;  %v17233_v54 = vld [vmem:[#allocation14_spill] sm:$0xff] }
 0x488   : > { %v10507_v22 = vsub.f32 %v17233_v54, %v16538_v32  ;;  %v10634_v26 = vmul.f32 %v10506_v42, %v10506_v42  ;;  %v10773_v21 = vsel %vm8249_vm6, %v10633_v57, 0.0 }
 0x489   : > { %v10764_v48 = vadd.f32 %v10763_v16, %v10762_v23  ;;  %v17234_v16 = vld [vmem:[#allocation17_spill] sm:$0xff] }
 0x48a   : > { %v10508_v51 = vsub.f32 %v17234_v16, %v16538_v32  ;;  %v10635_v49 = vmul.f32 %v10507_v22, %v10507_v22  ;;  %v10775_v33 = vsel %vm8249_vm6, %v10634_v26, 0.0 }
 0x48b   : > { %v10766_v0 = vadd.f32 %v10765_v17, %v10764_v48  ;;  %v17235_v17 = vld [vmem:[#allocation18_spill] sm:$0xff] }
 0x48c   : > { %v10509_v63 = vsub.f32 %v17235_v17, %v16538_v32  ;;  %v10636_v54 = vmul.f32 %v10508_v51, %v10508_v51  ;;  %v10777_v6 = vsel %vm8249_vm6, %v10635_v49, 0.0 }
 0x48d   : > { %v10768_v37 = vadd.f32 %v10767_v46, %v10766_v0  ;;  %v17236_v46 = vld [vmem:[#allocation16_spill] sm:$0xff] }
 0x48e   : > { %v10510_v47 = vsub.f32 %v17236_v46, %v16538_v32  ;;  %v10637_v16 = vmul.f32 %v10509_v63, %v10509_v63  ;;  %v10779_v57 = vsel %vm8249_vm6, %v10636_v54, 0.0 }
 0x48f   : > { %v10770_v23 = vadd.f32 %v10769_v59, %v10768_v37  ;;  %v17237_v59 = vld [vmem:[#allocation38_spill] sm:$0xff] }
 0x490   : > { %v10511_v42 = vsub.f32 %v17237_v59, %v16538_v32  ;;  %v10638_v17 = vmul.f32 %v10510_v47, %v10510_v47  ;;  %v10781_v26 = vsel %vm8249_vm6, %v10637_v16, 0.0 }
 0x491   : > { %v10772_v48 = vadd.f32 %v10771_v4, %v10770_v23  ;;  %v17238_v4 = vld [vmem:[#allocation20_spill] sm:$0xff] }
 0x492   : > { %v10512_v22 = vsub.f32 %v17238_v4, %v16538_v32  ;;  %v10639_v46 = vmul.f32 %v10511_v42, %v10511_v42  ;;  %v10783_v49 = vsel %vm8249_vm6, %v10638_v17, 0.0 }
 0x493   : > { %v10774_v0 = vadd.f32 %v10773_v21, %v10772_v48  ;;  %v17239_v21 = vld [vmem:[#allocation22_spill] sm:$0xff] }
 0x494   : > { %v10513_v51 = vsub.f32 %v17239_v21, %v16538_v32  ;;  %v10640_v59 = vmul.f32 %v10512_v22, %v10512_v22  ;;  %v10785_v54 = vsel %vm8249_vm6, %v10639_v46, 0.0 }
 0x495   : > { %v10776_v37 = vadd.f32 %v10775_v33, %v10774_v0  ;;  %v17240_v33 = vld [vmem:[#allocation19_spill] sm:$0xff] }
 0x496   : > { %v10514_v63 = vsub.f32 %v17240_v33, %v16538_v32  ;;  %v10641_v4 = vmul.f32 %v10513_v51, %v10513_v51  ;;  %v10787_v16 = vsel %vm8249_vm6, %v10640_v59, 0.0 }
 0x497   : > { %v10778_v23 = vadd.f32 %v10777_v6, %v10776_v37  ;;  %v17241_v6 = vld [vmem:[#allocation21_spill] sm:$0xff] }
 0x498   : > { %v10515_v47 = vsub.f32 %v17241_v6, %v16538_v32  ;;  %v10642_v21 = vmul.f32 %v10514_v63, %v10514_v63  ;;  %v10789_v17 = vsel %vm8249_vm6, %v10641_v4, 0.0 }
 0x499   : > { %v10780_v48 = vadd.f32 %v10779_v57, %v10778_v23  ;;  %v17242_v57 = vld [vmem:[#allocation40_spill] sm:$0xff] }
 0x49a   : > { %v10516_v42 = vsub.f32 %v17242_v57, %v16538_v32  ;;  %v10643_v33 = vmul.f32 %v10515_v47, %v10515_v47  ;;  %v10791_v46 = vsel %vm8249_vm6, %v10642_v21, 0.0 }
 0x49b   : > { %v10782_v0 = vadd.f32 %v10781_v26, %v10780_v48  ;;  %v17243_v26 = vld [vmem:[#allocation42_spill] sm:$0xff] }
 0x49c   : > { %v10517_v22 = vsub.f32 %v17243_v26, %v16538_v32  ;;  %v10644_v6 = vmul.f32 %v10516_v42, %v10516_v42  ;;  %v10793_v59 = vsel %vm8249_vm6, %v10643_v33, 0.0 }
 0x49d   : > { %v10784_v37 = vadd.f32 %v10783_v49, %v10782_v0  ;;  %v17244_v49 = vld [vmem:[#allocation39_spill] sm:$0xff] }
 0x49e   : > { %v10518_v51 = vsub.f32 %v17244_v49, %v16538_v32  ;;  %v10645_v57 = vmul.f32 %v10517_v22, %v10517_v22  ;;  %v10795_v4 = vsel %vm8249_vm6, %v10644_v6, 0.0 }
 0x49f   : > { %v10786_v23 = vadd.f32 %v10785_v54, %v10784_v37  ;;  %v17245_v54 = vld [vmem:[#allocation41_spill] sm:$0xff] }
 0x4a0   : > { %v10519_v63 = vsub.f32 %v17245_v54, %v16538_v32  ;;  %v10646_v26 = vmul.f32 %v10518_v51, %v10518_v51  ;;  %v10797_v21 = vsel %vm8249_vm6, %v10645_v57, 0.0 }
 0x4a1   : > { %v10788_v48 = vadd.f32 %v10787_v16, %v10786_v23  ;;  %v17246_v16 = vld [vmem:[#allocation44_spill] sm:$0xff] }
 0x4a2   : > { %v10520_v47 = vsub.f32 %v17246_v16, %v16538_v32  ;;  %v10647_v49 = vmul.f32 %v10519_v63, %v10519_v63  ;;  %v10799_v33 = vsel %vm8249_vm6, %v10646_v26, 0.0 }
 0x4a3   : > { %v10790_v0 = vadd.f32 %v10789_v17, %v10788_v48  ;;  %v17247_v17 = vld [vmem:[#allocation46_spill] sm:$0xff] }
 0x4a4   : > { %v10521_v42 = vsub.f32 %v17247_v17, %v16538_v32  ;;  %v10648_v54 = vmul.f32 %v10520_v47, %v10520_v47  ;;  %v10801_v6 = vsel %vm8249_vm6, %v10647_v49, 0.0 }
 0x4a5   : > { %v10792_v37 = vadd.f32 %v10791_v46, %v10790_v0  ;;  %v17248_v46 = vld [vmem:[#allocation43_spill] sm:$0xff] }
 0x4a6   : > { %v10522_v22 = vsub.f32 %v17248_v46, %v16538_v32  ;;  %v10649_v16 = vmul.f32 %v10521_v42, %v10521_v42  ;;  %v10803_v57 = vsel %vm8249_vm6, %v10648_v54, 0.0 }
 0x4a7   : > { %v10794_v23 = vadd.f32 %v10793_v59, %v10792_v37  ;;  %v17249_v59 = vld [vmem:[#allocation45_spill] sm:$0xff] }
 0x4a8   : > { %v10523_v51 = vsub.f32 %v17249_v59, %v16538_v32  ;;  %v10650_v17 = vmul.f32 %v10522_v22, %v10522_v22  ;;  %v10805_v26 = vsel %vm8249_vm6, %v10649_v16, 0.0 }
 0x4a9   : > { %v10796_v48 = vadd.f32 %v10795_v4, %v10794_v23  ;;  %v17250_v4 = vld [vmem:[#allocation48_spill] sm:$0xff] }
 0x4aa   : > { %v10524_v63 = vsub.f32 %v17250_v4, %v16538_v32  ;;  %v10651_v46 = vmul.f32 %v10523_v51, %v10523_v51  ;;  %v10807_v49 = vsel %vm8249_vm6, %v10650_v17, 0.0 }
 0x4ab   : > { %v10798_v0 = vadd.f32 %v10797_v21, %v10796_v48  ;;  %v17251_v21 = vld [vmem:[#allocation50_spill] sm:$0xff] }
 0x4ac   : > { %v10525_v47 = vsub.f32 %v17251_v21, %v16538_v32  ;;  %v10652_v59 = vmul.f32 %v10524_v63, %v10524_v63  ;;  %v10809_v54 = vsel %vm8249_vm6, %v10651_v46, 0.0 }
 0x4ad   : > { %v10800_v37 = vadd.f32 %v10799_v33, %v10798_v0  ;;  %v17252_v33 = vld [vmem:[#allocation47_spill] sm:$0xff] }
 0x4ae   : > { %v10526_v42 = vsub.f32 %v17252_v33, %v16538_v32  ;;  %v10653_v4 = vmul.f32 %v10525_v47, %v10525_v47  ;;  %v10811_v16 = vsel %vm8249_vm6, %v10652_v59, 0.0 }
 0x4af   : > { %v10802_v23 = vadd.f32 %v10801_v6, %v10800_v37  ;;  %v17253_v6 = vld [vmem:[#allocation49_spill] sm:$0xff] }
 0x4b0   : > { %v10527_v22 = vsub.f32 %v17253_v6, %v16538_v32  ;;  %v10654_v21 = vmul.f32 %v10526_v42, %v10526_v42  ;;  %v10813_v17 = vsel %vm8249_vm6, %v10653_v4, 0.0 }
 0x4b1   : > { %v10804_v48 = vadd.f32 %v10803_v57, %v10802_v23  ;;  %v17254_v57 = vld [vmem:[#allocation52_spill] sm:$0xff] }
 0x4b2   : > { %v10528_v51 = vsub.f32 %v17254_v57, %v16538_v32  ;;  %v10655_v33 = vmul.f32 %v10527_v22, %v10527_v22  ;;  %v10815_v46 = vsel %vm8249_vm6, %v10654_v21, 0.0 }
 0x4b3   : > { %v10806_v0 = vadd.f32 %v10805_v26, %v10804_v48  ;;  %v17255_v26 = vld [vmem:[#allocation54_spill] sm:$0xff] }
 0x4b4   : > { %v10529_v63 = vsub.f32 %v17255_v26, %v16538_v32  ;;  %v10656_v6 = vmul.f32 %v10528_v51, %v10528_v51  ;;  %v10817_v59 = vsel %vm8249_vm6, %v10655_v33, 0.0 }
 0x4b5   : > { %v10808_v37 = vadd.f32 %v10807_v49, %v10806_v0  ;;  %v17256_v49 = vld [vmem:[#allocation51_spill] sm:$0xff] }
 0x4b6   : > { %v10530_v47 = vsub.f32 %v17256_v49, %v16538_v32  ;;  %v10657_v57 = vmul.f32 %v10529_v63, %v10529_v63  ;;  %v10819_v4 = vsel %vm8249_vm6, %v10656_v6, 0.0 }
 0x4b7   : > { %v10810_v23 = vadd.f32 %v10809_v54, %v10808_v37  ;;  %v17257_v54 = vld [vmem:[#allocation53_spill] sm:$0xff] }
 0x4b8   : > { %v10531_v42 = vsub.f32 %v17257_v54, %v16538_v32  ;;  %v10658_v26 = vmul.f32 %v10530_v47, %v10530_v47  ;;  %v10821_v21 = vsel %vm8249_vm6, %v10657_v57, 0.0 }
 0x4b9   : > { %v10812_v48 = vadd.f32 %v10811_v16, %v10810_v23  ;;  %v17258_v16 = vld [vmem:[#allocation56_spill] sm:$0xff] }
 0x4ba   : > { %v10532_v22 = vsub.f32 %v17258_v16, %v16538_v32  ;;  %v10659_v49 = vmul.f32 %v10531_v42, %v10531_v42  ;;  %v10823_v33 = vsel %vm8249_vm6, %v10658_v26, 0.0 }
 0x4bb   : > { %v10814_v0 = vadd.f32 %v10813_v17, %v10812_v48  ;;  %v17259_v17 = vld [vmem:[#allocation2_spill] sm:$0xff] }
 0x4bc   : > { %v10533_v51 = vsub.f32 %v17259_v17, %v16538_v32  ;;  %v10660_v54 = vmul.f32 %v10532_v22, %v10532_v22  ;;  %v10825_v6 = vsel %vm8249_vm6, %v10659_v49, 0.0 }
 0x4bd   : > { %v10816_v37 = vadd.f32 %v10815_v46, %v10814_v0  ;;  %v17260_v46 = vld [vmem:[#allocation55_spill] sm:$0xff] }
 0x4be   : > { %v10534_v63 = vsub.f32 %v17260_v46, %v16538_v32  ;;  %v10661_v16 = vmul.f32 %v10533_v51, %v10533_v51  ;;  %v10827_v57 = vsel %vm8249_vm6, %v10660_v54, 0.0 }
 0x4bf   : > { %v10818_v23 = vadd.f32 %v10817_v59, %v10816_v37  ;;  %v17261_v59 = vld [vmem:[#allocation57_spill] sm:$0xff] }
 0x4c0   : > { %v10535_v47 = vsub.f32 %v17261_v59, %v16538_v32  ;;  %v10662_v17 = vmul.f32 %v10534_v63, %v10534_v63  ;;  %v10829_v26 = vsel %vm8249_vm6, %v10661_v16, 0.0 }
 0x4c1   : > { %v10820_v48 = vadd.f32 %v10819_v4, %v10818_v23  ;;  %v17262_v4 = vld [vmem:[#allocation4_spill] sm:$0xff] }
 0x4c2   : > { %v10536_v42 = vsub.f32 %v17262_v4, %v16538_v32  ;;  %v10663_v46 = vmul.f32 %v10535_v47, %v10535_v47  ;;  %v10831_v49 = vsel %vm8249_vm6, %v10662_v17, 0.0 }
 0x4c3   : > { %v10822_v0 = vadd.f32 %v10821_v21, %v10820_v48  ;;  %v17263_v21 = vld [vmem:[#allocation6_spill] sm:$0xff] }
 0x4c4   : > { %v10537_v22 = vsub.f32 %v17263_v21, %v16538_v32  ;;  %v10664_v59 = vmul.f32 %v10536_v42, %v10536_v42  ;;  %v10833_v54 = vsel %vm8249_vm6, %v10663_v46, 0.0 }
 0x4c5   : > { %v10824_v37 = vadd.f32 %v10823_v33, %v10822_v0  ;;  %v17264_v33 = vld [vmem:[#allocation3_spill] sm:$0xff] }
 0x4c6   : > { %v10538_v51 = vsub.f32 %v17264_v33, %v16538_v32  ;;  %v10665_v4 = vmul.f32 %v10537_v22, %v10537_v22  ;;  %v10835_v16 = vsel %vm8249_vm6, %v10664_v59, 0.0 }
 0x4c7   : > { %v10826_v23 = vadd.f32 %v10825_v6, %v10824_v37  ;;  %v17265_v6 = vld [vmem:[#allocation5_spill] sm:$0xff] }
 0x4c8   : > { %v10539_v63 = vsub.f32 %v17265_v6, %v16538_v32  ;;  %v10666_v21 = vmul.f32 %v10538_v51, %v10538_v51  ;;  %v10837_v17 = vsel %vm8249_vm6, %v10665_v4, 0.0 }
 0x4c9   : > { %v10828_v48 = vadd.f32 %v10827_v57, %v10826_v23  ;;  %v17266_v57 = vld [vmem:[#allocation23_spill] sm:$0xff] }
 0x4ca   : > { %v10540_v47 = vsub.f32 %v17266_v57, %v16538_v32  ;;  %v10667_v33 = vmul.f32 %v10539_v63, %v10539_v63  ;;  %v10839_v46 = vsel %vm8249_vm6, %v10666_v21, 0.0 }
 0x4cb   : > { %v10830_v0 = vadd.f32 %v10829_v26, %v10828_v48  ;;  %v17267_v26 = vld [vmem:[#allocation25_spill] sm:$0xff] }
 0x4cc   : > { %v10541_v42 = vsub.f32 %v17267_v26, %v16538_v32  ;;  %v10668_v6 = vmul.f32 %v10540_v47, %v10540_v47  ;;  %v10841_v59 = vsel %vm8249_vm6, %v10667_v33, 0.0 }
 0x4cd   : > { %v10832_v37 = vadd.f32 %v10831_v49, %v10830_v0  ;;  %v17268_v49 = vld [vmem:[#allocation7_spill] sm:$0xff] }
 0x4ce   : > { %v10542_v22 = vsub.f32 %v17268_v49, %v16538_v32  ;;  %v10669_v57 = vmul.f32 %v10541_v42, %v10541_v42  ;;  %v10843_v4 = vsel %vm8249_vm6, %v10668_v6, 0.0 }
 0x4cf   : > { %v10834_v23 = vadd.f32 %v10833_v54, %v10832_v37  ;;  %v17269_v54 = vld [vmem:[#allocation24_spill] sm:$0xff] }
 0x4d0   : > { %v10543_v51 = vsub.f32 %v17269_v54, %v16538_v32  ;;  %v10670_v26 = vmul.f32 %v10542_v22, %v10542_v22  ;;  %v10845_v21 = vsel %vm8249_vm6, %v10669_v57, 0.0 }
 0x4d1   : > { %v10836_v48 = vadd.f32 %v10835_v16, %v10834_v23  ;;  %v17270_v16 = vld [vmem:[#allocation27_spill] sm:$0xff] }
 0x4d2   : > { %v10544_v63 = vsub.f32 %v17270_v16, %v16538_v32  ;;  %v10671_v49 = vmul.f32 %v10543_v51, %v10543_v51  ;;  %v10847_v33 = vsel %vm8249_vm6, %v10670_v26, 0.0 }
 0x4d3   : > { %v10838_v0 = vadd.f32 %v10837_v17, %v10836_v48  ;;  %v17271_v17 = vld [vmem:[#allocation29_spill] sm:$0xff] }
 0x4d4   : > { %v10545_v47 = vsub.f32 %v17271_v17, %v16538_v32  ;;  %v10672_v54 = vmul.f32 %v10544_v63, %v10544_v63  ;;  %v10849_v6 = vsel %vm8249_vm6, %v10671_v49, 0.0 }
 0x4d5   : > { %v10840_v37 = vadd.f32 %v10839_v46, %v10838_v0  ;;  %v17272_v46 = vld [vmem:[#allocation26_spill] sm:$0xff] }
 0x4d6   : > { %v10546_v42 = vsub.f32 %v17272_v46, %v16538_v32  ;;  %v10673_v16 = vmul.f32 %v10545_v47, %v10545_v47  ;;  %v10851_v57 = vsel %vm8249_vm6, %v10672_v54, 0.0 }
 0x4d7   : > { %v10842_v23 = vadd.f32 %v10841_v59, %v10840_v37  ;;  %v17273_v59 = vld [vmem:[#allocation28_spill] sm:$0xff] }
 0x4d8   : > { %v10547_v22 = vsub.f32 %v17273_v59, %v16538_v32  ;;  %v10674_v17 = vmul.f32 %v10546_v42, %v10546_v42  ;;  %v10853_v26 = vsel %vm8249_vm6, %v10673_v16, 0.0 }
 0x4d9   : > { %v10844_v48 = vadd.f32 %v10843_v4, %v10842_v23  ;;  %v17274_v4 = vld [vmem:[#allocation31_spill] sm:$0xff] }
 0x4da   : > { %v10548_v51 = vsub.f32 %v17274_v4, %v16538_v32  ;;  %v10675_v46 = vmul.f32 %v10547_v22, %v10547_v22  ;;  %v10855_v49 = vsel %vm8249_vm6, %v10674_v17, 0.0 }
 0x4db   : > { %v10846_v0 = vadd.f32 %v10845_v21, %v10844_v48  ;;  %v17275_v21 = vld [vmem:[#allocation33_spill] sm:$0xff] }
 0x4dc   : > { %v10549_v63 = vsub.f32 %v17275_v21, %v16538_v32  ;;  %v10676_v59 = vmul.f32 %v10548_v51, %v10548_v51  ;;  %v10857_v54 = vsel %vm8249_vm6, %v10675_v46, 0.0 }
 0x4dd   : > { %v10848_v37 = vadd.f32 %v10847_v33, %v10846_v0  ;;  %v17276_v33 = vld [vmem:[#allocation30_spill] sm:$0xff] }
 0x4de   : > { %v10550_v47 = vsub.f32 %v17276_v33, %v16538_v32  ;;  %v10677_v4 = vmul.f32 %v10549_v63, %v10549_v63  ;;  %v10859_v16 = vsel %vm8249_vm6, %v10676_v59, 0.0 }
 0x4df   : > { %v10850_v23 = vadd.f32 %v10849_v6, %v10848_v37  ;;  %v17277_v6 = vld [vmem:[#allocation32_spill] sm:$0xff] }
 0x4e0   : > { %v10551_v42 = vsub.f32 %v17277_v6, %v16538_v32  ;;  %v10678_v21 = vmul.f32 %v10550_v47, %v10550_v47  ;;  %v10861_v17 = vsel %vm8249_vm6, %v10677_v4, 0.0 }
 0x4e1   : > { %v10852_v48 = vadd.f32 %v10851_v57, %v10850_v23  ;;  %v17278_v57 = vld [vmem:[#allocation35_spill] sm:$0xff] }
 0x4e2   : > { %v10552_v22 = vsub.f32 %v17278_v57, %v16538_v32  ;;  %v10679_v33 = vmul.f32 %v10551_v42, %v10551_v42  ;;  %v10863_v46 = vsel %vm8249_vm6, %v10678_v21, 0.0 }
 0x4e3   : > { %v10854_v0 = vadd.f32 %v10853_v26, %v10852_v48  ;;  %v17279_v26 = vld [vmem:[#allocation37_spill] sm:$0xff] }
 0x4e4   : > { %v10553_v51 = vsub.f32 %v17279_v26, %v16538_v32  ;;  %v10680_v6 = vmul.f32 %v10552_v22, %v10552_v22  ;;  %v10865_v59 = vsel %vm8249_vm6, %v10679_v33, 0.0 }
 0x4e5   : > { %v10856_v37 = vadd.f32 %v10855_v49, %v10854_v0  ;;  %v17280_v49 = vld [vmem:[#allocation34_spill] sm:$0xff] }
 0x4e6   : > { %v10554_v63 = vsub.f32 %v17280_v49, %v16538_v32  ;;  %v10681_v57 = vmul.f32 %v10553_v51, %v10553_v51  ;;  %v10867_v4 = vsel %vm8249_vm6, %v10680_v6, 0.0 }
 0x4e7   : > { %v10858_v23 = vadd.f32 %v10857_v54, %v10856_v37  ;;  %v17281_v54 = vld [vmem:[#allocation36_spill] sm:$0xff] }
 0x4e8   : > { %v10555_v47 = vsub.f32 %v17281_v54, %v16538_v32  ;;  %v10682_v26 = vmul.f32 %v10554_v63, %v10554_v63  ;;  %v10869_v21 = vsel %vm8249_vm6, %v10681_v57, 0.0 }
 0x4e9   : > { %v10860_v48 = vadd.f32 %v10859_v16, %v10858_v23  ;;  %v17282_v16 = vld [vmem:[#allocation59_spill] sm:$0xff] }
 0x4ea   : > { %v10556_v42 = vsub.f32 %v17282_v16, %v16538_v32  ;;  %v10683_v49 = vmul.f32 %v10555_v47, %v10555_v47  ;;  %v10871_v33 = vsel %vm8249_vm6, %v10682_v26, 0.0 }
 0x4eb   : > { %v10862_v0 = vadd.f32 %v10861_v17, %v10860_v48  ;;  %v17283_v17 = vld [vmem:[#allocation61_spill] sm:$0xff] }
 0x4ec   : > { %v10557_v22 = vsub.f32 %v17283_v17, %v16538_v32  ;;  %v10684_v54 = vmul.f32 %v10556_v42, %v10556_v42  ;;  %v10873_v6 = vsel %vm8249_vm6, %v10683_v49, 0.0 }
 0x4ed   : > { %v10864_v37 = vadd.f32 %v10863_v46, %v10862_v0  ;;  %v17284_v46 = vld [vmem:[#allocation58_spill] sm:$0xff] }
 0x4ee   : > { %v10558_v51 = vsub.f32 %v17284_v46, %v16538_v32  ;;  %v10685_v16 = vmul.f32 %v10557_v22, %v10557_v22  ;;  %v10875_v57 = vsel %vm8249_vm6, %v10684_v54, 0.0  ;;  %v17290_v54 = vld [vmem:[#allocation66_spill] sm:$0xff] }
 0x4ef   : > { %v10866_v23 = vadd.f32 %v10865_v59, %v10864_v37  ;;  %v17285_v59 = vld [vmem:[#allocation60_spill] sm:$0xff] }
 0x4f0   : > { %v10559_v63 = vsub.f32 %v17285_v59, %v16538_v32  ;;  %v10686_v17 = vmul.f32 %v10558_v51, %v10558_v51  ;;  %v10877_v26 = vsel %vm8249_vm6, %v10685_v16, 0.0 }
 0x4f1   : > { %v10868_v48 = vadd.f32 %v10867_v4, %v10866_v23  ;;  %v17286_v4 = vld [vmem:[#allocation63_spill] sm:$0xff] }
 0x4f2   : > { %v10560_v47 = vsub.f32 %v17286_v4, %v16538_v32  ;;  %v10687_v46 = vmul.f32 %v10559_v63, %v10559_v63  ;;  %v10879_v49 = vsel %vm8249_vm6, %v10686_v17, 0.0  ;;  %v10566_v17 = vsub.f32 %v16156_v1, %v16538_v32 }
 0x4f3   : > { %v10870_v0 = vadd.f32 %v10869_v21, %v10868_v48  ;;  %v17287_v21 = vld [vmem:[#allocation65_spill] sm:$0xff] }
 0x4f4   : > { %v10561_v42 = vsub.f32 %v17287_v21, %v16538_v32  ;;  %v10688_v59 = vmul.f32 %v10560_v47, %v10560_v47 }
 0x4f5   : > { %v10872_v37 = vadd.f32 %v10871_v33, %v10870_v0  ;;  %v17288_v33 = vld [vmem:[#allocation62_spill] sm:$0xff] }
 0x4f6   : > { %v10562_v22 = vsub.f32 %v17288_v33, %v16538_v32  ;;  %v10689_v4 = vmul.f32 %v10561_v42, %v10561_v42  ;;  %v10883_v16 = vsel %vm8249_vm6, %v10688_v59, 0.0  ;;  %v10569_v59 = vsub.f32 %v16203_v62, %v16538_v32 }
 0x4f7   : > { %v10874_v23 = vadd.f32 %v10873_v6, %v10872_v37  ;;  %v17289_v6 = vld [vmem:[#allocation64_spill] sm:$0xff] }
 0x4f8   : > { %v10563_v51 = vsub.f32 %v17289_v6, %v16538_v32  ;;  %v10690_v21 = vmul.f32 %v10562_v22, %v10562_v22  ;;  %v10568_v22 = vsub.f32 %v16191_v50, %v16538_v32  ;;  %v10570_v50 = vsub.f32 %v16184_v38, %v16538_v32 }
 0x4f9   : > { %v10876_v48 = vadd.f32 %v10875_v57, %v10874_v23  ;;  %v10564_v23 = vsub.f32 %v17290_v54, %v16538_v32  ;;  %v10881_v57 = vsel %vm8249_vm6, %v10687_v46, 0.0  ;;  %v10567_v46 = vsub.f32 %v16168_v34, %v16538_v32 }
 0x4fa   : > { %v10887_v42 = vsel %vm8249_vm6, %v10690_v21, 0.0 }
 0x4fb   : > { %v10878_v0 = vadd.f32 %v10877_v26, %v10876_v48  ;;  %v17291_v48 = vld [vmem:[#allocation67_spill] sm:$0xff]  ;;  %v10692_v33 = vmul.f32 %v10564_v23, %v10564_v23  ;;  %v12754_v23 = vpop.trf.xlu1 }
 0x4fc   : > { %v10565_v26 = vsub.f32 %v17291_v48, %v16538_v32  ;;  %v12758_v21 = vunpack.i.h.bf16 %v12754_v23  ;;  %v10695_v48 = vmul.f32 %v10567_v46, %v10567_v46 }
 0x4fd   : > { %v10880_v37 = vadd.f32 %v10879_v49, %v10878_v0  ;;  %v10691_v0 = vmul.f32 %v10563_v51, %v10563_v51  ;;  %v10885_v49 = vsel %vm8249_vm6, %v10689_v4, 0.0  ;;  %v10891_v51 = vsel %vm8249_vm6, %v10692_v33, 0.0  ;;  %v12717_v4 = vpop.trf.xlu0 }
 0x4fe   : > { %v10693_v54 = vmul.f32 %v10565_v26, %v10565_v26  ;;  %v12721_v34 = vunpack.i.h.bf16 %v12717_v4  ;;  %v12718_v62 = vunpack.i.l.bf16 %v12717_v4  ;;  %v10696_v26 = vmul.f32 %v10568_v22, %v10568_v22 }
 0x4ff   : > { %v10882_v63 = vadd.f32 %v10881_v57, %v10880_v37  ;;  %v10694_v57 = vmul.f32 %v10566_v17, %v10566_v17  ;;  %v10889_v1 = vsel %vm8249_vm6, %v10691_v0, 0.0  ;;  %v10571_v4 = vsub.f32 %v16196_v27, %v16538_v32 }
 0x500   : > { %v10893_v17 = vsel %vm8249_vm6, %v10693_v54, 0.0  ;;  %v10697_v22 = vmul.f32 %v10569_v59, %v10569_v59  ;;  %v10897_v54 = vsel %vm8249_vm6, %v10695_v48, 0.0  ;;  %v17294_v48 = vld [vmem:[#allocation68_spill] sm:$0xff] }
 0x501   : > { %v10884_v47 = vadd.f32 %v10883_v16, %v10882_v63  ;;  %v12755_v16 = vunpack.i.l.bf16 %v12754_v23  ;;  %v10895_v0 = vsel %vm8249_vm6, %v10694_v57, 0.0 }
 0x502   : > { %v10901_v27 = vsel %vm8249_vm6, %v10697_v22, 0.0 }
 0x503   : > { %v10886_v6 = vadd.f32 %v10885_v49, %v10884_v47  ;;  %v11807_v33 = vpack.c.bf16 %v12758_v21, %v12755_v16  ;;  %v12828_v49 = vpop.trf.xlu1  ;;  %v17292_v16 = vld [vmem:[#allocation69_spill] sm:$0xff] }
 0x504   : > { %v12829_v38 = vunpack.i.l.bf16 %v12828_v49 }
 0x505   : > { %v10888_v37 = vadd.f32 %v10887_v42, %v10886_v6  ;;  %v12791_v6 = vpop.trf.xlu0  ;;  %11302 = vst [vmem:[%s204_s4 + $0x8] sm:$0xff] %v11807_v33 }
 0x506   : > { %v12795_v46 = vunpack.i.h.bf16 %v12791_v6  ;;  %v12792_v23 = vunpack.i.l.bf16 %v12791_v6  ;;  %v10574_v6 = vsub.f32 %v17294_v48, %v16538_v32 }
 0x507   : > { %v10890_v63 = vadd.f32 %v10889_v1, %v10888_v37  ;;  %v11806_v37 = vpack.c.bf16 %v12721_v34, %v12718_v62  ;;  %v12832_v1 = vunpack.i.h.bf16 %v12828_v49  ;;  %v10698_v34 = vmul.f32 %v10570_v50, %v10570_v50  ;;  %v17295_v50 = vld [vmem:[#allocation70_spill] sm:$0xff] }
 0x508   : > { %v11808_v21 = vpack.c.bf16 %v12795_v46, %v12792_v23  ;;  %v10899_v62 = vsel %vm8249_vm6, %v10696_v26, 0.0  ;;  %v10699_v49 = vmul.f32 %v10571_v4, %v10571_v4  ;;  %v10575_v26 = vsub.f32 %v17295_v50, %v16538_v32  ;;  %v17296_v23 = vld [vmem:[#allocation73_spill] sm:$0xff] }
 0x509   : > { %v10892_v47 = vadd.f32 %v10891_v51, %v10890_v63  ;;  %11301 = vst [vmem:[%s204_s4] sm:$0xff] %v11806_v37  ;;  %v11809_v63 = vpack.c.bf16 %v12832_v1, %v12829_v38  ;;  %v10903_v37 = vsel %vm8249_vm6, %v10698_v34, 0.0  ;;  %v10576_v4 = vsub.f32 %v17296_v23, %v16538_v32 }
 0x50a   : > { %11303 = vst [vmem:[%s204_s4 + $0x10] sm:$0xff] %v11808_v21  ;;  %v10905_v46 = vsel %vm8249_vm6, %v10699_v49, 0.0 }
 0x50b   : > { %v10894_v42 = vadd.f32 %v10893_v17, %v10892_v47  ;;  %v10572_v47 = vsub.f32 %v17292_v16, %v16538_v32  ;;  %11304 = vst [vmem:[%s204_s4 + $0x18] sm:$0xff] %v11809_v63  ;;  %v10703_v16 = vmul.f32 %v10575_v26, %v10575_v26 }
 0x50d   : > { %v10896_v51 = vadd.f32 %v10895_v0, %v10894_v42  ;;  %v17293_v0 = vld [vmem:[#allocation71_spill] sm:$0xff]  ;;  %v10700_v42 = vmul.f32 %v10572_v47, %v10572_v47 }
 0x50e   : > { %v10573_v33 = vsub.f32 %v17293_v0, %v16538_v32  ;;  %v10704_v0 = vmul.f32 %v10576_v4, %v10576_v4 }
 0x50f   : > { %v10898_v57 = vadd.f32 %v10897_v54, %v10896_v51  ;;  %v10702_v54 = vmul.f32 %v10574_v6, %v10574_v6  ;;  %v10907_v22 = vsel %vm8249_vm6, %v10700_v42, 0.0  ;;  %v10913_v6 = vsel %vm8249_vm6, %v10703_v16, 0.0 }
 0x510   : > { %v10701_v38 = vmul.f32 %v10573_v33, %v10573_v33  ;;  %v10915_v26 = vsel %vm8249_vm6, %v10704_v0, 0.0  ;;  %v10584_v0 = vsub.f32 %v16315_v43, %v16538_v32  ;;  %v10587_v43 = vsub.f32 %v16320_v7, %v16538_v32 }
 0x511   : > { %v10900_v17 = vadd.f32 %v10899_v62, %v10898_v57  ;;  %v17297_v57 = vld [vmem:[#allocation75_spill] sm:$0xff]  ;;  %v17298_v62 = vld [vmem:[#allocation72_spill] sm:$0xff]  ;;  %v10911_v33 = vsel %vm8249_vm6, %v10702_v54, 0.0  ;;  %v10590_v7 = vsub.f32 %v16340_v24, %v16538_v32  ;;  %v10593_v24 = vsub.f32 %v16391_v58, %v16538_v32 }
 0x512   : > { %v10577_v21 = vsub.f32 %v17297_v57, %v16538_v32  ;;  %v10909_v47 = vsel %vm8249_vm6, %v10701_v38, 0.0  ;;  %v10596_v58 = vsub.f32 %v16407_v14, %v16538_v32  ;;  %v10599_v14 = vsub.f32 %v16410_v3, %v16538_v32 }
 0x513   : > { %v10902_v59 = vadd.f32 %v10901_v27, %v10900_v17  ;;  %v10578_v17 = vsub.f32 %v17298_v62, %v16538_v32  ;;  %v17299_v27 = vld [vmem:[#allocation74_spill] sm:$0xff]  ;;  %v10602_v3 = vsub.f32 %v16426_v56, %v16538_v32  ;;  %v10605_v56 = vsub.f32 %v16463_v28, %v16538_v32 }
 0x514   : > { %v10705_v48 = vmul.f32 %v10577_v21, %v10577_v21  ;;  %v10608_v28 = vsub.f32 %v16479_v41, %v16538_v32  ;;  %v10611_v41 = vsub.f32 %v16482_v31, %v16538_v32  ;;  %v10741_v31 = vmul.f32 %v16544_v29, %v16544_v29 }
 0x515   : > { %v10904_v1 = vadd.f32 %v10903_v37, %v10902_v59  ;;  %v10579_v59 = vsub.f32 %v17299_v27, %v16538_v32  ;;  %v17300_v37 = vld [vmem:[#allocation77_spill] sm:$0xff]  ;;  %v10706_v50 = vmul.f32 %v10578_v17, %v10578_v17 }
 0x516   : > { %v10917_v4 = vsel %vm8249_vm6, %v10705_v48, 0.0 }
 0x517   : > { %v10906_v51 = vadd.f32 %v10905_v46, %v10904_v1  ;;  %v10580_v1 = vsub.f32 %v17300_v37, %v16538_v32  ;;  %v17301_v46 = vld [vmem:[#allocation78_spill] sm:$0xff]  ;;  %v10707_v23 = vmul.f32 %v10579_v59, %v10579_v59  ;;  %v10919_v21 = vsel %vm8249_vm6, %v10706_v50, 0.0 }
 0x518   : > { %v10585_v59 = vsub.f32 %v16327_v20, %v16538_v32  ;;  %v10712_v37 = vmul.f32 %v10584_v0, %v10584_v0  ;;  %v10588_v20 = vsub.f32 %v16347_v15, %v16538_v32  ;;  %v10591_v15 = vsub.f32 %v16352_v10, %v16538_v32 }
 0x519   : > { %v10908_v63 = vadd.f32 %v10907_v22, %v10906_v51  ;;  %v10581_v51 = vsub.f32 %v17301_v46, %v16538_v32  ;;  %v17302_v22 = vld [vmem:[#allocation76_spill] sm:$0xff]  ;;  %v10708_v57 = vmul.f32 %v10580_v1, %v10580_v1  ;;  %v10921_v62 = vsel %vm8249_vm6, %v10707_v23, 0.0 }
 0x51a   : > { %v10931_v23 = vsel %vm8249_vm6, %v10712_v37, 0.0  ;;  %v10594_v10 = vsub.f32 %v16372_v55, %v16538_v32  ;;  %v10597_v55 = vsub.f32 %v16415_v60, %v16538_v32  ;;  %v10600_v60 = vsub.f32 %v16431_v8, %v16538_v32 }
 0x51b   : > { %v10910_v34 = vadd.f32 %v10909_v47, %v10908_v63  ;;  %v10582_v63 = vsub.f32 %v17302_v22, %v16538_v32  ;;  %v10583_v47 = vsub.f32 %v16288_v9, %v16538_v32  ;;  %v10586_v9 = vsub.f32 %v16308_v19, %v16538_v32 }
 0x51c   : > { %v10589_v19 = vsub.f32 %v16359_v40, %v16538_v32  ;;  %v10592_v40 = vsub.f32 %v16379_v2, %v16538_v32  ;;  %v10595_v2 = vsub.f32 %v16384_v13, %v16538_v32  ;;  %v10598_v13 = vsub.f32 %v16402_v11, %v16538_v32 }
 0x51d   : > { %v10912_v49 = vadd.f32 %v10911_v33, %v10910_v34  ;;  %v10709_v34 = vmul.f32 %v10581_v51, %v10581_v51  ;;  %v10710_v33 = vmul.f32 %v10582_v63, %v10582_v63  ;;  %v10711_v48 = vmul.f32 %v10583_v47, %v10583_v47 }
 0x51e   : > { %v10714_v51 = vmul.f32 %v10586_v9, %v10586_v9  ;;  %v10717_v47 = vmul.f32 %v10589_v19, %v10589_v19  ;;  %v10721_v9 = vmul.f32 %v10593_v24, %v10593_v24  ;;  %v10725_v19 = vmul.f32 %v10597_v55, %v10597_v55 }
 0x51f   : > { %v10914_v42 = vadd.f32 %v10913_v6, %v10912_v49  ;;  %v10923_v49 = vsel %vm8249_vm6, %v10708_v57, 0.0  ;;  %v10925_v6 = vsel %vm8249_vm6, %v10709_v34, 0.0  ;;  %v10927_v1 = vsel %vm8249_vm6, %v10710_v33, 0.0 }
 0x520   : > { %v10716_v57 = vmul.f32 %v10588_v20, %v10588_v20  ;;  %v10601_v11 = vsub.f32 %v16439_v53, %v16538_v32  ;;  %v10603_v8 = vsub.f32 %v16434_v5, %v16538_v32  ;;  %v10604_v53 = vsub.f32 %v16455_v52, %v16538_v32  ;;  %v17303_v5 = vld [vmem:[#allocation79_spill] sm:$0xff]  ;;  %v17304_v52 = vld [vmem:[#allocation80_spill] sm:$0xff] }
 0x521   : > { %v10916_v38 = vadd.f32 %v10915_v26, %v10914_v42  ;;  %v10713_v26 = vmul.f32 %v10585_v59, %v10585_v59  ;;  %v10609_v55 = vsub.f32 %v16487_v25, %v16538_v32 }
 0x522   : > { %v10939_v0 = vsel %vm8249_vm6, %v10716_v57, 0.0 }
 0x523   : > { %v10918_v54 = vadd.f32 %v10917_v4, %v10916_v38  ;;  %v10929_v38 = vsel %vm8249_vm6, %v10711_v48, 0.0  ;;  %v10933_v22 = vsel %vm8249_vm6, %v10713_v26, 0.0  ;;  %v10720_v48 = vmul.f32 %v10592_v40, %v10592_v40 }
 0x524   : > { %v10729_v40 = vmul.f32 %v10601_v11, %v10601_v11 }
 0x525   : > { %v10920_v16 = vadd.f32 %v10919_v21, %v10918_v54  ;;  %v10715_v54 = vmul.f32 %v10587_v43, %v10587_v43  ;;  %v10935_v21 = vsel %vm8249_vm6, %v10714_v51, 0.0  ;;  %v10947_v43 = vsel %vm8249_vm6, %v10720_v48, 0.0 }
 0x526   : > { %v10724_v51 = vmul.f32 %v10596_v58, %v10596_v58  ;;  %v10606_v48 = vsub.f32 %v17303_v5, %v16538_v32 }
 0x527   : > { %v10922_v17 = vadd.f32 %v10921_v62, %v10920_v16  ;;  %v10937_v34 = vsel %vm8249_vm6, %v10715_v54, 0.0 }
 0x529   : > { %v10924_v27 = vadd.f32 %v10923_v49, %v10922_v17  ;;  %v10718_v17 = vmul.f32 %v10590_v7, %v10590_v7  ;;  %v10719_v49 = vmul.f32 %v10591_v15, %v10591_v15  ;;  %v10955_v7 = vsel %vm8249_vm6, %v10724_v51, 0.0 }
 0x52a   : > { %v10736_v51 = vmul.f32 %v10608_v28, %v10608_v28 }
 0x52b   : > { %v10926_v42 = vadd.f32 %v10925_v6, %v10924_v27  ;;  %v10941_v27 = vsel %vm8249_vm6, %v10717_v47, 0.0  ;;  %v10943_v6 = vsel %vm8249_vm6, %v10718_v17, 0.0  ;;  %v10945_v37 = vsel %vm8249_vm6, %v10719_v49, 0.0 }
 0x52c   : > { %v10728_v47 = vmul.f32 %v10600_v60, %v10600_v60  ;;  %v10979_v25 = vsel %vm8249_vm6, %v10736_v51, 0.0 }
 0x52d   : > { %v10928_v50 = vadd.f32 %v10927_v1, %v10926_v42 }
 0x52e   : > { %v10963_v24 = vsel %vm8249_vm6, %v10728_v47, 0.0 }
 0x52f   : > { %v10930_v46 = vadd.f32 %v10929_v38, %v10928_v50  ;;  %v10722_v50 = vmul.f32 %v10594_v10, %v10594_v10  ;;  %v10723_v38 = vmul.f32 %v10595_v2, %v10595_v2 }
 0x531   : > { %v10932_v4 = vadd.f32 %v10931_v23, %v10930_v46  ;;  %v10949_v46 = vsel %vm8249_vm6, %v10721_v9, 0.0  ;;  %v10951_v23 = vsel %vm8249_vm6, %v10722_v50, 0.0  ;;  %v10953_v54 = vsel %vm8249_vm6, %v10723_v38, 0.0 }
 0x532   : > { %v10607_v9 = vsub.f32 %v17304_v52, %v16538_v32  ;;  %v10734_v50 = vmul.f32 %v10606_v48, %v10606_v48 }
 0x533   : > { %v10934_v63 = vadd.f32 %v10933_v22, %v10932_v4 }
 0x534   : > { %v10735_v38 = vmul.f32 %v10607_v9, %v10607_v9 }
 0x535   : > { %v10936_v16 = vadd.f32 %v10935_v21, %v10934_v63  ;;  %v10726_v63 = vmul.f32 %v10598_v13, %v10598_v13  ;;  %v10727_v21 = vmul.f32 %v10599_v14, %v10599_v14  ;;  %v10610_v13 = vsub.f32 %v16474_v45, %v16538_v32 }
 0x536   : > { %v10737_v14 = vmul.f32 %v10609_v55, %v10609_v55  ;;  %v10740_v45 = vmul.f32 %v16541_v61, %v16541_v61  ;;  %v10989_v61 = vsel %vm8249_vm6, %v10741_v31, 0.0 }
 0x537   : > { %v10938_v62 = vadd.f32 %v10937_v34, %v10936_v16  ;;  %v10957_v16 = vsel %vm8249_vm6, %v10725_v19, 0.0  ;;  %v10959_v34 = vsel %vm8249_vm6, %v10726_v63, 0.0  ;;  %v10961_v17 = vsel %vm8249_vm6, %v10727_v21, 0.0 }
 0x538   : > { %v10977_v19 = vsel %vm8249_vm6, %v10735_v38, 0.0  ;;  %v10739_v63 = vmul.f32 %v10611_v41, %v10611_v41 }
 0x539   : > { %v10940_v33 = vadd.f32 %v10939_v0, %v10938_v62 }
 0x53a   : > { %v10985_v32 = vsel %vm8249_vm6, %v10739_v63, 0.0 }
 0x53b   : > { %v10942_v59 = vadd.f32 %v10941_v27, %v10940_v33  ;;  %v10730_v33 = vmul.f32 %v10602_v3, %v10602_v3  ;;  %v10731_v27 = vmul.f32 %v10603_v8, %v10603_v8  ;;  %v10987_v3 = vsel %vm8249_vm6, %v10740_v45, 0.0 }
 0x53c   : > { %v10744_v8 = vmul.f32 %v16554_v36, %v16554_v36 }
 0x53d   : > { %v10944_v42 = vadd.f32 %v10943_v6, %v10942_v59  ;;  %v10965_v59 = vsel %vm8249_vm6, %v10729_v40, 0.0  ;;  %v10732_v6 = vmul.f32 %v10604_v53, %v10604_v53  ;;  %v10746_v53 = vmul.f32 %v16560_v18, %v16560_v18 }
 0x53f   : > { %v10946_v1 = vadd.f32 %v10945_v37, %v10944_v42  ;;  %v10967_v42 = vsel %vm8249_vm6, %v10730_v33, 0.0  ;;  %v10733_v37 = vmul.f32 %v10605_v56, %v10605_v56  ;;  %v10999_v56 = vsel %vm8249_vm6, %v10746_v53, 0.0 }
 0x541   : > { %v10948_v26 = vadd.f32 %v10947_v43, %v10946_v1  ;;  %v10969_v1 = vsel %vm8249_vm6, %v10731_v27, 0.0  ;;  %v10971_v43 = vsel %vm8249_vm6, %v10732_v6, 0.0 }
 0x543   : > { %v10950_v20 = vadd.f32 %v10949_v46, %v10948_v26  ;;  %v10973_v46 = vsel %vm8249_vm6, %v10733_v37, 0.0 }
 0x545   : > { %v10952_v4 = vadd.f32 %v10951_v23, %v10950_v20  ;;  %v10975_v23 = vsel %vm8249_vm6, %v10734_v50, 0.0 }
 0x547   : > { %v10954_v22 = vadd.f32 %v10953_v54, %v10952_v4 }
 0x549   : > { %v10956_v57 = vadd.f32 %v10955_v7, %v10954_v22  ;;  %v10738_v22 = vmul.f32 %v10610_v13, %v10610_v13  ;;  %v10981_v7 = vsel %vm8249_vm6, %v10737_v14, 0.0 }
 0x54b   : > { %v10958_v15 = vadd.f32 %v10957_v16, %v10956_v57  ;;  %v10983_v11 = vsel %vm8249_vm6, %v10738_v22, 0.0 }
 0x54d   : > { %v10960_v62 = vadd.f32 %v10959_v34, %v10958_v15  ;;  %v10742_v15 = vmul.f32 %v16548_v30, %v16548_v30  ;;  %v10743_v34 = vmul.f32 %v16551_v12, %v16551_v12  ;;  %v10995_v12 = vsel %vm8249_vm6, %v10744_v8, 0.0 }
 0x54f   : > { %v10962_v0 = vadd.f32 %v10961_v17, %v10960_v62  ;;  %v10991_v29 = vsel %vm8249_vm6, %v10742_v15, 0.0  ;;  %v10745_v17 = vmul.f32 %v16557_v39, %v16557_v39  ;;  %v10993_v30 = vsel %vm8249_vm6, %v10743_v34, 0.0 }
 0x551   : > { %v10964_v49 = vadd.f32 %v10963_v24, %v10962_v0  ;;  %v10747_v24 = vmul.f32 %v16563_v35, %v16563_v35  ;;  %v10997_v36 = vsel %vm8249_vm6, %v10745_v17, 0.0 }
 0x553   : > { %v10966_v10 = vadd.f32 %v10965_v59, %v10964_v49  ;;  %v11001_v39 = vsel %vm8249_vm6, %v10747_v24, 0.0 }
 0x555   : > { %v10968_v2 = vadd.f32 %v10967_v42, %v10966_v10 }
 0x557   : > { %v10970_v58 = vadd.f32 %v10969_v1, %v10968_v2 }
 0x559   : > { %v10972_v26 = vadd.f32 %v10971_v43, %v10970_v58 }
 0x55b   : > { %v10974_v20 = vadd.f32 %v10973_v46, %v10972_v26 }
 0x55d   : > { %v10976_v4 = vadd.f32 %v10975_v23, %v10974_v20 }
 0x55f   : > { %v10978_v54 = vadd.f32 %v10977_v19, %v10976_v4 }
 0x561   : > { %v10980_v60 = vadd.f32 %v10979_v25, %v10978_v54 }
 0x563   : > { %v10982_v57 = vadd.f32 %v10981_v7, %v10980_v60 }
 0x565   : > { %v10984_v21 = vadd.f32 %v10983_v11, %v10982_v57 }
 0x567   : > { %v10986_v16 = vadd.f32 %v10985_v32, %v10984_v21 }
 0x569   : > { %v10988_v47 = vadd.f32 %v10987_v3, %v10986_v16 }
 0x56b   : > { %v10990_v62 = vadd.f32 %v10989_v61, %v10988_v47 }
 0x56d   : > { %v10992_v40 = vadd.f32 %v10991_v29, %v10990_v62 }
 0x56f   : > { %v10994_v0 = vadd.f32 %v10993_v30, %v10992_v40 }
 0x571   : > { %v10996_v33 = vadd.f32 %v10995_v12, %v10994_v0 }
 0x573   : > { %v10998_v49 = vadd.f32 %v10997_v36, %v10996_v33 }
 0x575   : > { %v11000_v27 = vadd.f32 %v10999_v56, %v10998_v49 }
 0x577   : > { %v11002_v59 = vadd.f32 %v11001_v39, %v11000_v27 }
 0x579   : > { %v11003_v10 = vrot.slane %v11002_v59, 4 }
 0x57b   : > { %v11004_v5 = vadd.f32 %v11003_v10, %v11002_v59 }
 0x57d   : > { %v11005_v48 = vrot.slane %v11004_v5, 2 }
 0x57f   : > { %v11006_v6 = vadd.f32 %v11005_v48, %v11004_v5 }
 0x581   : > { %v11007_v18 = vrot.slane %v11006_v6, 1 }
 0x583   : > { %v11008_v35 = vadd.f32 %v11007_v18, %v11006_v6 }
 0x585   : > { %v11010_v42 = vsel %vm7545_vm1, %v16535_v44, %v11008_v35 }
 0x586   : > { %11012 = vst.msk [vmem:[%s212_s8] sm:$0x3] %vm11011_vm9, %v11010_v42 }
 0x587 PF: > { %s14_s14 = sadd.s32 1, %s12858_s14   ;;  %s17305_s12 = smov %s12854_s13 }
 0x588   : > { %p11_p5 = scmp.ge.s32.totalorder %s14_s14, 4   ;;  %s17306_s13 = smov %s17308_s15 }
 0x58a   :  { %13 = sbr.rel (!%p11_p5) target bundleno = 2 (0x2), region = 73 }

</bundles_post_ra>
